<compile_context>
chip_gen: v7x
topology: tpu7x:2x2x1
jax: 0.10.0
libtpu: 0.0.40
codegen_flags: <defaults>
</compile_context>

<pallas_src>
import functools

import jax
import jax.numpy as jnp
from jax.experimental import pallas as pl
from jax.experimental.pallas import tpu as pltpu

TM_MAX = 512                 # max output-row tile for the non-norm conv kernel
_LRELU_SLOPE = 0.2
_IN_EPS = 1e-5
_CT = 128                    # output-channel tile for the fused conv+IN kernel
_VMEM_LIMIT = 64 * 1024 * 1024


def _round_up(v, m):
    return (v + m - 1) // m * m


# ---------------------------------------------------------------------------
# Pallas kernels
# ---------------------------------------------------------------------------
def _accumulate_shifts(x_ref, w_ref, acc_ref, base, tm, offsets):
    """acc_ref[...] = sum_s  x[base+d_s : base+d_s+tm, :] @ w[s]   (f32)."""
    for s, d in enumerate(offsets):
        if base is None:                      # static starts
            start = d
        else:                                 # dynamic (row-tiled) starts
            start = base + d
            if d % 8 == 0:                    # sublane-aligned shift
                start = pl.multiple_of(start, 8)
        xs = x_ref[0, pl.ds(start, tm), :]                    # (tm, K) bf16
        part = jnp.dot(xs, w_ref[s], preferred_element_type=jnp.float32)
        if s == 0:
            acc_ref[...] = part
        else:
            acc_ref[...] += part


def _conv_bias_act_kernel(x_ref, w_ref, b_ref, o_ref, acc_ref, *,
                          offsets, tm, slope, single_tile):
    """Conv (shifted matmuls) + bias + optional LeakyReLU, output-row tiled."""
    base = None if single_tile else pl.program_id(1) * tm
    _accumulate_shifts(x_ref, w_ref, acc_ref, base, tm, offsets)
    acc = acc_ref[...] + b_ref[...]                           # (tm, Cout) f32
    if slope is not None:
        acc = jnp.where(acc > 0, acc, slope * acc)
    o_ref[0] = acc.astype(o_ref.dtype)


def _conv_in_lrelu_kernel(x_ref, w_ref, b_ref, o_ref, acc_ref, *,
                          offsets, lout, pitch, ow, inv_count, eps, slope):
    """Fused Conv + bias + InstanceNorm2d (no affine) + LeakyReLU.

    One (sample, 128-channel tile) per grid step.  The validity mask for the
    garbage pitch columns is built in-kernel from an iota (no mask input).
    """
    _accumulate_shifts(x_ref, w_ref, acc_ref, None, lout, offsets)
    acc = acc_ref[...] + b_ref[...]                           # (lout, ct) f32
    cols = jax.lax.broadcasted_iota(jnp.int32, (lout, 1), 0) % pitch
    mf = (cols < ow).astype(jnp.float32)                      # (lout, 1)
    mean = jnp.sum(acc * mf, axis=0, keepdims=True) * inv_count
    diff = acc - mean
    var = jnp.sum(diff * diff * mf, axis=0, keepdims=True) * inv_count
    y = diff * jax.lax.rsqrt(var + eps)
    y = jnp.where(y > 0, y, slope * y)
    o_ref[0] = y.astype(o_ref.dtype)


# ---------------------------------------------------------------------------
# Pallas wrappers
# ---------------------------------------------------------------------------
def _conv_tiled(x_flat, w_shifts, bias, *, offsets, lout, slope, out_dtype):
    """Conv without normalization; output rows tiled (fixed TM + cdiv grid)."""
    N, Lp, K = x_flat.shape
    S, _, Cout = w_shifts.shape
    tm = min(TM_MAX, _round_up(lout, 8))
    num_tiles = int(pl.cdiv(lout, tm))
    rows = num_tiles * tm
    need = _round_up(rows + max(offsets), 8)       # halo rows for shifted reads
    if Lp < need:
        x_flat = jnp.pad(x_flat, ((0, 0), (0, need - Lp), (0, 0)))
        Lp = need
    kernel = functools.partial(_conv_bias_act_kernel, offsets=offsets, tm=tm,
                               slope=slope, single_tile=(num_tiles == 1))
    flops = 2 * N * rows * S * K * Cout
    bytes_accessed = (x_flat.size * x_flat.dtype.itemsize
                      + w_shifts.size * w_shifts.dtype.itemsize
                      + bias.size * bias.dtype.itemsize
                      + N * rows * Cout * jnp.dtype(out_dtype).itemsize)
    return pl.pallas_call(
        kernel,
        out_shape=jax.ShapeDtypeStruct((N, rows, Cout), out_dtype),
        grid=(N, num_tiles),
        in_specs=[
            pl.BlockSpec((1, Lp, K), lambda n, m: (n, 0, 0)),
            pl.BlockSpec((S, K, Cout), lambda n, m: (0, 0, 0)),
            pl.BlockSpec((1, Cout), lambda n, m: (0, 0)),
        ],
        out_specs=pl.BlockSpec((1, tm, Cout), lambda n, m: (n, m, 0)),
        scratch_shapes=[pltpu.VMEM((tm, Cout), jnp.float32)],
        compiler_params=pltpu.CompilerParams(
            dimension_semantics=("parallel", "parallel"),
            vmem_limit_bytes=_VMEM_LIMIT),
        cost_estimate=pl.CostEstimate(flops=int(flops), transcendentals=0,
                                      bytes_accessed=int(bytes_accessed)),
    )(x_flat, w_shifts, bias)


def _conv_in_lrelu(x_flat, w_shifts, bias, *, offsets, lout, pitch, ow,
                   inv_count, slope, out_dtype):
    """Fused conv + InstanceNorm + LeakyReLU; (sample, channel-tile) grid."""
    N, Lp, K = x_flat.shape
    S, _, Cout = w_shifts.shape
    ct = min(_CT, Cout)
    assert Cout % ct == 0
    n_ct = Cout // ct
    need = _round_up(lout + max(offsets), 8)
    if Lp < need:
        x_flat = jnp.pad(x_flat, ((0, 0), (0, need - Lp), (0, 0)))
        Lp = need
    kernel = functools.partial(_conv_in_lrelu_kernel, offsets=offsets,
                               lout=lout, pitch=pitch, ow=ow,
                               inv_count=inv_count, eps=_IN_EPS, slope=slope)
    flops = 2 * N * lout * S * K * Cout + 8 * N * lout * Cout
    bytes_accessed = (x_flat.size * x_flat.dtype.itemsize
                      + w_shifts.size * w_shifts.dtype.itemsize
                      + bias.size * bias.dtype.itemsize
                      + N * lout * Cout * jnp.dtype(out_dtype).itemsize)
    return pl.pallas_call(
        kernel,
        out_shape=jax.ShapeDtypeStruct((N, lout, Cout), out_dtype),
        grid=(N, n_ct),
        in_specs=[
            pl.BlockSpec((1, Lp, K), lambda n, c: (n, 0, 0)),
            pl.BlockSpec((S, K, ct), lambda n, c: (0, 0, c)),
            pl.BlockSpec((1, ct), lambda n, c: (0, c)),
        ],
        out_specs=pl.BlockSpec((1, lout, ct), lambda n, c: (n, 0, c)),
        scratch_shapes=[pltpu.VMEM((lout, ct), jnp.float32)],
        compiler_params=pltpu.CompilerParams(
            dimension_semantics=("parallel", "parallel"),
            vmem_limit_bytes=_VMEM_LIMIT),
        cost_estimate=pl.CostEstimate(flops=int(flops),
                                      transcendentals=int(N * Cout),
                                      bytes_accessed=int(bytes_accessed)),
    )(x_flat, w_shifts, bias)


# ---------------------------------------------------------------------------
# Layout plumbing (plain JAX, ~1x activation volume; no HBM patch matrices)
# ---------------------------------------------------------------------------
def _space_to_depth_flat(x):
    """pad-1 + 2x2 space-to-depth + spatial flatten.  x: (N, H, W, C), H,W even.

    pitch is rounded up to a multiple of 8 so kh*pitch shifts are sublane
    aligned.  Returns (x_flat (N, (OH+2)*pitch, 4C), OH, OW, pitch); the
    k=4/s=2 conv becomes 4 shifted matmuls with offsets (0, 1, pitch, pitch+1).
    """
    N, H, W, C = x.shape
    OH, OW = H // 2, W // 2
    pitch = _round_up(OW + 1, 8)
    xp = jnp.pad(x, ((0, 0), (1, 1), (1, 1), (0, 0)))
    xp = xp.reshape(N, OH + 1, 2, OW + 1, 2, C)
    xp = jnp.transpose(xp, (0, 1, 3, 2, 4, 5)).reshape(N, OH + 1, OW + 1, 4 * C)
    # halo row + column padding to the aligned pitch
    xp = jnp.pad(xp, ((0, 0), (0, 1), (0, pitch - (OW + 1)), (0, 0)))
    return xp.reshape(N, (OH + 2) * pitch, 4 * C), OH, OW, pitch


def _disc_block(x, w_shifts, bias, *, norm):
    """Conv2d(k4,s2,p1) [+ InstanceNorm2d] + LeakyReLU(0.2), NHWC bf16."""
    N = x.shape[0]
    cout = w_shifts.shape[-1]
    x_flat, OH, OW, pitch = _space_to_depth_flat(x)
    offsets = tuple(kh * pitch + kw for kh in range(2) for kw in range(2))
    lout = OH * pitch
    if norm:
        y = _conv_in_lrelu(x_flat, w_shifts, bias, offsets=offsets, lout=lout,
                           pitch=pitch, ow=OW, inv_count=1.0 / (OH * OW),
                           slope=_LRELU_SLOPE, out_dtype=jnp.bfloat16)
    else:
        # Block 1 (tiny Cin): fold the 4 shifts into one K=16*Cin matmul via a
        # cheap im2col so x-load lanes / MXU contraction depth aren't wasted.
        x48 = jnp.concatenate([x_flat[:, d:d + lout, :] for d in offsets],
                              axis=-1)
        w48 = w_shifts.reshape(1, -1, cout)
        y = _conv_tiled(x48, w48, bias, offsets=(0,), lout=lout,
                        slope=_LRELU_SLOPE, out_dtype=jnp.bfloat16)
    # drop garbage columns/rows of the flattened layout, restore NHWC
    y = y[:, :lout, :].reshape(N, OH, pitch, cout)[:, :, :OW, :]
    return y


def _final_conv(x, w_shifts, bias):
    """ZeroPad2d((1,0,1,0)) + Conv2d(512->1, k4, s1, p1); Cout lane-padded."""
    N, H, W, C = x.shape
    pitch = _round_up(W + 3, 8)
    xp = jnp.pad(x, ((0, 0), (2, 1), (2, pitch - W - 2), (0, 0)))  # (N,H+3,pitch,C)
    x_flat = xp.reshape(N, (H + 3) * pitch, C)
    offsets = tuple(kh * pitch + kw for kh in range(4) for kw in range(4))
    lout = H * pitch
    y = _conv_tiled(x_flat, w_shifts, bias, offsets=offsets, lout=lout,
                    slope=None, out_dtype=jnp.float32)
    y = y[:, :lout, :].reshape(N, H, pitch, -1)[:, :, :W, :1]
    return y


def discriminator_forward(img_nchw, params):
    """PatchGAN discriminator forward.  img: (N, C, H, W) f32, H, W % 16 == 0."""
    x = jnp.transpose(img_nchw, (0, 2, 3, 1)).astype(jnp.bfloat16)    # NHWC bf16
    x = _disc_block(x, params["w1"], params["b1"], norm=False)        # -> 64
    x = _disc_block(x, params["w2"], params["b2"], norm=True)         # -> 128
    x = _disc_block(x, params["w3"], params["b3"], norm=True)         # -> 256
    x = _disc_block(x, params["w4"], params["b4"], norm=True)         # -> 512
    y = _final_conv(x, params["w5"], params["b5"])                    # -> 1
    return jnp.transpose(y, (0, 3, 1, 2)).astype(jnp.float32)         # NCHW


# ---------------------------------------------------------------------------
# Parameter preparation / deterministic synthetic init
# ---------------------------------------------------------------------------
def _prep_stride2_weight(w, b):
    """(Cout, Cin, 4, 4) -> (4, 4*Cin, Cout) bf16 shift-weights + (1, Cout) f32.

    Shift s = 2*kh2 + kw2; row index = (2*dh + dw)*Cin + ci matches the 2x2
    space-to-depth channel packing used in _space_to_depth_flat.
    """
    cout, cin = w.shape[0], w.shape[1]
    wt = jnp.transpose(w, (2, 3, 1, 0))                 # (kh, kw, cin, cout)
    wt = wt.reshape(2, 2, 2, 2, cin, cout)              # (kh2, dh, kw2, dw, ..)
    wt = jnp.transpose(wt, (0, 2, 1, 3, 4, 5))          # (kh2, kw2, dh, dw, ..)
    wt = wt.reshape(4, 4 * cin, cout).astype(jnp.bfloat16)
    return wt, b.reshape(1, cout).astype(jnp.float32)


def _prep_stride1_weight(w, b, lane_pad=128):
    """(Cout, Cin, 4, 4) -> (16, Cin, lane_pad) bf16; Cout zero-padded (lane-dense)."""
    cout, cin = w.shape[0], w.shape[1]
    wt = jnp.transpose(w, (2, 3, 1, 0)).reshape(16, cin, cout)
    wt = jnp.pad(wt, ((0, 0), (0, 0), (0, lane_pad - cout))).astype(jnp.bfloat16)
    bp = jnp.pad(b, (0, lane_pad - cout)).reshape(1, lane_pad).astype(jnp.float32)
    return wt, bp


def init_params(key, in_channels=3):
    cfgs = [(in_channels, 64), (64, 128), (128, 256), (256, 512), (512, 1)]
    params = {}
    keys = jax.random.split(key, 2 * len(cfgs))
    for i, (cin, cout) in enumerate(cfgs, start=1):
        kw_, kb_ = keys[2 * (i - 1)], keys[2 * (i - 1) + 1]
        fan_in = cin * 4 * 4
        scale = 1.0 / jnp.sqrt(jnp.float32(fan_in))
        w = scale * jax.random.normal(kw_, (cout, cin, 4, 4), jnp.float32)
        b = scale * jax.random.normal(kb_, (cout,), jnp.float32)
        if i < 5:
            params[f"w{i}"], params[f"b{i}"] = _prep_stride2_weight(w, b)
        else:
            params[f"w{i}"], params[f"b{i}"] = _prep_stride1_weight(w, b)
    return params


if __name__ == "__main__":
    key = jax.random.PRNGKey(0)
    k_img, k_par = jax.random.split(key)

    N, Cin, S = 2, 3, 32
    img = jax.random.normal(k_img, (N, Cin, S, S), jnp.float32)
    params = init_params(k_par, in_channels=Cin)

    fwd = jax.jit(discriminator_forward)
    out = fwd(img, params)
    jax.block_until_ready(out)

    assert out.shape == (N, 1, S // 16, S // 16), out.shape
    assert out.dtype == jnp.float32
    print("KERNEL_OK")
</pallas_src>

<mosaic_0001>
module attributes {stable_mosaic.version = 11 : i64} {
  func.func @_conv_bias_act_kernel(%arg0: i32, %arg1: i32, %arg2: memref<1x384x48xbf16, #tpu.memory_space<vmem>>, %arg3: memref<1x48x64xbf16, #tpu.memory_space<vmem>>, %arg4: memref<1x64xf32, #tpu.memory_space<vmem>>, %arg5: memref<1x384x64xbf16, #tpu.memory_space<vmem>>, %arg6: memref<384x64xf32, #tpu.memory_space<vmem>>) attributes {dimension_semantics = [#tpu.dimension_semantics<parallel>, #tpu.dimension_semantics<parallel>], iteration_bounds = array<i64: 2, 1>, scalar_prefetch = 0 : i64, scratch_operands = 1 : i64, tpu.core_type = #tpu.core_type<tc>, window_params = [{transform_indices = @transform_0, window_bounds = array<i64: 1, 384, 48>}, {pipeline_mode = #tpu.pipeline_mode<synchronous>, transform_indices = @transform_1, window_bounds = array<i64: 1, 48, 64>}, {pipeline_mode = #tpu.pipeline_mode<synchronous>, transform_indices = @transform_2, window_bounds = array<i64: 1, 64>}, {transform_indices = @transform_3, window_bounds = array<i64: 1, 384, 64>}]} {
    %c0 = arith.constant 0 : index
    %c0_0 = arith.constant 0 : index
    %c0_1 = arith.constant 0 : index
    %0 = vector.load %arg2[%c0, %c0_0, %c0_1] : memref<1x384x48xbf16, #tpu.memory_space<vmem>>, vector<1x384x48xbf16>
    %1 = vector.shape_cast %0 : vector<1x384x48xbf16> to vector<384x48xbf16>
    %c0_2 = arith.constant 0 : index
    %c0_3 = arith.constant 0 : index
    %c0_4 = arith.constant 0 : index
    %2 = vector.load %arg3[%c0_2, %c0_3, %c0_4] : memref<1x48x64xbf16, #tpu.memory_space<vmem>>, vector<1x48x64xbf16>
    %3 = vector.shape_cast %2 : vector<1x48x64xbf16> to vector<48x64xbf16>
    %cst = arith.constant dense<0.000000e+00> : vector<384x64xf32>
    %4 = tpu.matmul %1, %3, %cst {dimension_numbers = #tpu.dot_dimension_numbers<[1], [0], [0], [1], [0, 0, 1, 1], [], []>} : vector<384x48xbf16>, vector<48x64xbf16>, vector<384x64xf32> -> vector<384x64xf32>
    %c0_5 = arith.constant 0 : index
    %c0_6 = arith.constant 0 : index
    %5 = vector.load %arg6[%c0_5, %c0_6] : memref<384x64xf32, #tpu.memory_space<vmem>>, vector<384x64xf32>
    tpu.vector_store %arg6[%c0_5, %c0_6], %4 {strides = array<i32>} : memref<384x64xf32, #tpu.memory_space<vmem>>, vector<384x64xf32>,
    %c0_7 = arith.constant 0 : index
    %c0_8 = arith.constant 0 : index
    %6 = vector.load %arg6[%c0_7, %c0_8] : memref<384x64xf32, #tpu.memory_space<vmem>>, vector<384x64xf32>
    %c0_9 = arith.constant 0 : index
    %c0_10 = arith.constant 0 : index
    %7 = vector.load %arg4[%c0_9, %c0_10] : memref<1x64xf32, #tpu.memory_space<vmem>>, vector<1x64xf32>
    %8 = vector.broadcast %7 : vector<1x64xf32> to vector<384x64xf32>
    %9 = arith.addf %6, %8 : vector<384x64xf32>
    %cst_11 = arith.constant 0.000000e+00 : f32
    %10 = vector.broadcast %cst_11 : f32 to vector<384x64xf32>
    %11 = arith.cmpf ogt, %9, %10 : vector<384x64xf32>
    %cst_12 = arith.constant 2.000000e-01 : f32
    %12 = vector.broadcast %cst_12 : f32 to vector<384x64xf32>
    %13 = arith.mulf %12, %9 : vector<384x64xf32>
    %14 = arith.select %11, %9, %13 : vector<384x64xi1>, vector<384x64xf32>
    %15 = arith.truncf %14 : vector<384x64xf32> to vector<384x64xbf16>
    %c0_13 = arith.constant 0 : index
    %c0_14 = arith.constant 0 : index
    %c0_15 = arith.constant 0 : index
    %16 = vector.load %arg5[%c0_13, %c0_14, %c0_15] : memref<1x384x64xbf16, #tpu.memory_space<vmem>>, vector<1x384x64xbf16>
    %17 = vector.shape_cast %16 : vector<1x384x64xbf16> to vector<384x64xbf16>
    %18 = vector.shape_cast %15 : vector<384x64xbf16> to vector<1x384x64xbf16>
    tpu.vector_store %arg5[%c0_13, %c0_14, %c0_15], %18 {strides = array<i32>} : memref<1x384x64xbf16, #tpu.memory_space<vmem>>, vector<1x384x64xbf16>,
    return
  }
  func.func @transform_0(%arg0: i32, %arg1: i32) -> (i32, i32, i32) {
    %c0_i32 = arith.constant 0 : i32
    %c0_i32_0 = arith.constant 0 : i32
    %c0_i32_1 = arith.constant 0 : i32
    return %arg0, %c0_i32, %c0_i32_0 : i32, i32, i32
  }
  func.func @transform_1(%arg0: i32, %arg1: i32) -> (i32, i32, i32) {
    %c0_i32 = arith.constant 0 : i32
    %c0_i32_0 = arith.constant 0 : i32
    %c0_i32_1 = arith.constant 0 : i32
    %c0_i32_2 = arith.constant 0 : i32
    return %c0_i32, %c0_i32_0, %c0_i32_1 : i32, i32, i32
  }
  func.func @transform_2(%arg0: i32, %arg1: i32) -> (i32, i32) {
    %c0_i32 = arith.constant 0 : i32
    %c0_i32_0 = arith.constant 0 : i32
    %c0_i32_1 = arith.constant 0 : i32
    return %c0_i32, %c0_i32_0 : i32, i32
  }
  func.func @transform_3(%arg0: i32, %arg1: i32) -> (i32, i32, i32) {
    %c0_i32 = arith.constant 0 : i32
    %c0_i32_0 = arith.constant 0 : i32
    return %arg0, %arg1, %c0_i32 : i32, i32, i32
  }
}

module attributes {stable_mosaic.version = 11 : i64} {
  func.func @_conv_in_lrelu_kernel(%arg0: i32, %arg1: i32, %arg2: memref<1x160x256xbf16, #tpu.memory_space<vmem>>, %arg3: memref<4x256x128xbf16, #tpu.memory_space<vmem>>, %arg4: memref<1x128xf32, #tpu.memory_space<vmem>>, %arg5: memref<1x128x128xbf16, #tpu.memory_space<vmem>>, %arg6: memref<128x128xf32, #tpu.memory_space<vmem>>) attributes {dimension_semantics = [#tpu.dimension_semantics<parallel>, #tpu.dimension_semantics<parallel>], iteration_bounds = array<i64: 2, 1>, scalar_prefetch = 0 : i64, scratch_operands = 1 : i64, tpu.core_type = #tpu.core_type<tc>, window_params = [{transform_indices = @transform_0, window_bounds = array<i64: 1, 160, 256>}, {transform_indices = @transform_1, window_bounds = array<i64: 4, 256, 128>}, {transform_indices = @transform_2, window_bounds = array<i64: 1, 128>}, {transform_indices = @transform_3, window_bounds = array<i64: 1, 128, 128>}]} {
    %c0 = arith.constant 0 : index
    %c0_0 = arith.constant 0 : index
    %c0_1 = arith.constant 0 : index
    %0 = vector.load %arg2[%c0, %c0_0, %c0_1] : memref<1x160x256xbf16, #tpu.memory_space<vmem>>, vector<1x128x256xbf16>
    %1 = vector.shape_cast %0 : vector<1x128x256xbf16> to vector<128x256xbf16>
    %c0_2 = arith.constant 0 : index
    %c0_3 = arith.constant 0 : index
    %c0_4 = arith.constant 0 : index
    %2 = vector.load %arg3[%c0_2, %c0_3, %c0_4] : memref<4x256x128xbf16, #tpu.memory_space<vmem>>, vector<1x256x128xbf16>
    %3 = vector.shape_cast %2 : vector<1x256x128xbf16> to vector<256x128xbf16>
    %cst = arith.constant dense<0.000000e+00> : vector<128x128xf32>
    %4 = tpu.matmul %1, %3, %cst {dimension_numbers = #tpu.dot_dimension_numbers<[1], [0], [0], [1], [0, 0, 1, 1], [], []>} : vector<128x256xbf16>, vector<256x128xbf16>, vector<128x128xf32> -> vector<128x128xf32>
    %c0_5 = arith.constant 0 : index
    %c0_6 = arith.constant 0 : index
    %5 = vector.load %arg6[%c0_5, %c0_6] : memref<128x128xf32, #tpu.memory_space<vmem>>, vector<128x128xf32>
    tpu.vector_store %arg6[%c0_5, %c0_6], %4 {strides = array<i32>} : memref<128x128xf32, #tpu.memory_space<vmem>>, vector<128x128xf32>,
    %c0_7 = arith.constant 0 : index
    %c1 = arith.constant 1 : index
    %c0_8 = arith.constant 0 : index
    %6 = vector.load %arg2[%c0_7, %c1, %c0_8] : memref<1x160x256xbf16, #tpu.memory_space<vmem>>, vector<1x128x256xbf16>
    %7 = vector.shape_cast %6 : vector<1x128x256xbf16> to vector<128x256xbf16>
    %c1_9 = arith.constant 1 : index
    %c0_10 = arith.constant 0 : index
    %c0_11 = arith.constant 0 : index
    %8 = vector.load %arg3[%c1_9, %c0_10, %c0_11] : memref<4x256x128xbf16, #tpu.memory_space<vmem>>, vector<1x256x128xbf16>
    %9 = vector.shape_cast %8 : vector<1x256x128xbf16> to vector<256x128xbf16>
    %cst_12 = arith.constant dense<0.000000e+00> : vector<128x128xf32>
    %10 = tpu.matmul %7, %9, %cst_12 {dimension_numbers = #tpu.dot_dimension_numbers<[1], [0], [0], [1], [0, 0, 1, 1], [], []>} : vector<128x256xbf16>, vector<256x128xbf16>, vector<128x128xf32> -> vector<128x128xf32>
    %c0_13 = arith.constant 0 : index
    %c0_14 = arith.constant 0 : index
    %11 = vector.load %arg6[%c0_13, %c0_14] : memref<128x128xf32, #tpu.memory_space<vmem>>, vector<128x128xf32>
    %12 = arith.addf %11, %10 : vector<128x128xf32>
    %c0_15 = arith.constant 0 : index
    %c0_16 = arith.constant 0 : index
    %13 = vector.load %arg6[%c0_15, %c0_16] : memref<128x128xf32, #tpu.memory_space<vmem>>, vector<128x128xf32>
    tpu.vector_store %arg6[%c0_15, %c0_16], %12 {strides = array<i32>} : memref<128x128xf32, #tpu.memory_space<vmem>>, vector<128x128xf32>,
    %c0_17 = arith.constant 0 : index
    %c16 = arith.constant 16 : index
    %c0_18 = arith.constant 0 : index
    %14 = vector.load %arg2[%c0_17, %c16, %c0_18] : memref<1x160x256xbf16, #tpu.memory_space<vmem>>, vector<1x128x256xbf16>
    %15 = vector.shape_cast %14 : vector<1x128x256xbf16> to vector<128x256xbf16>
    %c2 = arith.constant 2 : index
    %c0_19 = arith.constant 0 : index
    %c0_20 = arith.constant 0 : index
    %16 = vector.load %arg3[%c2, %c0_19, %c0_20] : memref<4x256x128xbf16, #tpu.memory_space<vmem>>, vector<1x256x128xbf16>
    %17 = vector.shape_cast %16 : vector<1x256x128xbf16> to vector<256x128xbf16>
    %cst_21 = arith.constant dense<0.000000e+00> : vector<128x128xf32>
    %18 = tpu.matmul %15, %17, %cst_21 {dimension_numbers = #tpu.dot_dimension_numbers<[1], [0], [0], [1], [0, 0, 1, 1], [], []>} : vector<128x256xbf16>, vector<256x128xbf16>, vector<128x128xf32> -> vector<128x128xf32>
    %c0_22 = arith.constant 0 : index
    %c0_23 = arith.constant 0 : index
    %19 = vector.load %arg6[%c0_22, %c0_23] : memref<128x128xf32, #tpu.memory_space<vmem>>, vector<128x128xf32>
    %20 = arith.addf %19, %18 : vector<128x128xf32>
    %c0_24 = arith.constant 0 : index
    %c0_25 = arith.constant 0 : index
    %21 = vector.load %arg6[%c0_24, %c0_25] : memref<128x128xf32, #tpu.memory_space<vmem>>, vector<128x128xf32>
    tpu.vector_store %arg6[%c0_24, %c0_25], %20 {strides = array<i32>} : memref<128x128xf32, #tpu.memory_space<vmem>>, vector<128x128xf32>,
    %c0_26 = arith.constant 0 : index
    %c17 = arith.constant 17 : index
    %c0_27 = arith.constant 0 : index
    %22 = vector.load %arg2[%c0_26, %c17, %c0_27] : memref<1x160x256xbf16, #tpu.memory_space<vmem>>, vector<1x128x256xbf16>
    %23 = vector.shape_cast %22 : vector<1x128x256xbf16> to vector<128x256xbf16>
    %c3 = arith.constant 3 : index
    %c0_28 = arith.constant 0 : index
    %c0_29 = arith.constant 0 : index
    %24 = vector.load %arg3[%c3, %c0_28, %c0_29] : memref<4x256x128xbf16, #tpu.memory_space<vmem>>, vector<1x256x128xbf16>
    %25 = vector.shape_cast %24 : vector<1x256x128xbf16> to vector<256x128xbf16>
    %cst_30 = arith.constant dense<0.000000e+00> : vector<128x128xf32>
    %26 = tpu.matmul %23, %25, %cst_30 {dimension_numbers = #tpu.dot_dimension_numbers<[1], [0], [0], [1], [0, 0, 1, 1], [], []>} : vector<128x256xbf16>, vector<256x128xbf16>, vector<128x128xf32> -> vector<128x128xf32>
    %c0_31 = arith.constant 0 : index
    %c0_32 = arith.constant 0 : index
    %27 = vector.load %arg6[%c0_31, %c0_32] : memref<128x128xf32, #tpu.memory_space<vmem>>, vector<128x128xf32>
    %28 = arith.addf %27, %26 : vector<128x128xf32>
    %c0_33 = arith.constant 0 : index
    %c0_34 = arith.constant 0 : index
    %29 = vector.load %arg6[%c0_33, %c0_34] : memref<128x128xf32, #tpu.memory_space<vmem>>, vector<128x128xf32>
    tpu.vector_store %arg6[%c0_33, %c0_34], %28 {strides = array<i32>} : memref<128x128xf32, #tpu.memory_space<vmem>>, vector<128x128xf32>,
    %c0_35 = arith.constant 0 : index
    %c0_36 = arith.constant 0 : index
    %30 = vector.load %arg6[%c0_35, %c0_36] : memref<128x128xf32, #tpu.memory_space<vmem>>, vector<128x128xf32>
    %c0_37 = arith.constant 0 : index
    %c0_38 = arith.constant 0 : index
    %31 = vector.load %arg4[%c0_37, %c0_38] : memref<1x128xf32, #tpu.memory_space<vmem>>, vector<1x128xf32>
    %32 = vector.broadcast %31 : vector<1x128xf32> to vector<128x128xf32>
    %33 = arith.addf %30, %32 : vector<128x128xf32>
    %34 = tpu.iota {dimensions = array<i32: 0>} : vector<128x1xi32>
    %c16_i32 = arith.constant 16 : i32
    %c0_i32 = arith.constant 0 : i32
    %35 = arith.cmpi eq, %c16_i32, %c0_i32 : i32
    %c1_i32 = arith.constant 1 : i32
    %36 = arith.select %35, %c1_i32, %c16_i32 : i32
    %37 = vector.broadcast %36 : i32 to vector<128x1xi32>
    %38 = arith.remsi %34, %37 : vector<128x1xi32>
    %c0_i32_39 = arith.constant 0 : i32
    %39 = vector.broadcast %c0_i32_39 : i32 to vector<128x1xi32>
    %40 = arith.cmpi ne, %38, %39 : vector<128x1xi32>
    %c0_i32_40 = arith.constant 0 : i32
    %41 = vector.broadcast %c0_i32_40 : i32 to vector<128x1xi32>
    %42 = arith.cmpi slt, %38, %41 : vector<128x1xi32>
    %c0_i32_41 = arith.constant 0 : i32
    %43 = arith.cmpi slt, %36, %c0_i32_41 : i32
    %44 = vector.broadcast %43 : i1 to vector<128x1xi1>
    %45 = vector.broadcast %44 : vector<128x1xi1> to vector<128x1xi1>
    %46 = arith.xori %42, %45 : vector<128x1xi1>
    %47 = arith.andi %46, %40 : vector<128x1xi1>
    %48 = vector.broadcast %36 : i32 to vector<128x1xi32>
    %49 = arith.addi %38, %48 : vector<128x1xi32>
    %50 = arith.select %47, %49, %38 : vector<128x1xi1>, vector<128x1xi32>
    %c8_i32 = arith.constant 8 : i32
    %51 = vector.broadcast %c8_i32 : i32 to vector<128x1xi32>
    %52 = arith.cmpi slt, %50, %51 : vector<128x1xi32>
    %53 = arith.extui %52 : vector<128x1xi1> to vector<128x1xi32>
    %54 = arith.sitofp %53 : vector<128x1xi32> to vector<128x1xf32>
    %55 = vector.broadcast %54 : vector<128x1xf32> to vector<128x128xf32>
    %56 = arith.mulf %33, %55 : vector<128x128xf32>
    %cst_42 = arith.constant dense<0.000000e+00> : vector<128xf32>
    %57 = vector.multi_reduction <add>, %56, %cst_42 [0] : vector<128x128xf32> to vector<128xf32>
    %58 = vector.shape_cast %57 : vector<128xf32> to vector<1x128xf32>
    %cst_43 = arith.constant 1.562500e-02 : f32
    %59 = vector.broadcast %cst_43 : f32 to vector<1x128xf32>
    %60 = arith.mulf %58, %59 : vector<1x128xf32>
    %61 = vector.broadcast %60 : vector<1x128xf32> to vector<128x128xf32>
    %62 = arith.subf %33, %61 : vector<128x128xf32>
    %63 = arith.mulf %62, %62 : vector<128x128xf32>
    %64 = vector.broadcast %54 : vector<128x1xf32> to vector<128x128xf32>
    %65 = arith.mulf %63, %64 : vector<128x128xf32>
    %cst_44 = arith.constant dense<0.000000e+00> : vector<128xf32>
    %66 = vector.multi_reduction <add>, %65, %cst_44 [0] : vector<128x128xf32> to vector<128xf32>
    %67 = vector.shape_cast %66 : vector<128xf32> to vector<1x128xf32>
    %cst_45 = arith.constant 1.562500e-02 : f32
    %68 = vector.broadcast %cst_45 : f32 to vector<1x128xf32>
    %69 = arith.mulf %67, %68 : vector<1x128xf32>
    %cst_46 = arith.constant 9.99999974E-6 : f32
    %70 = vector.broadcast %cst_46 : f32 to vector<1x128xf32>
    %71 = arith.addf %69, %70 : vector<1x128xf32>
    %72 = math.rsqrt %71 : vector<1x128xf32>
    %73 = vector.broadcast %72 : vector<1x128xf32> to vector<128x128xf32>
    %74 = arith.mulf %62, %73 : vector<128x128xf32>
    %cst_47 = arith.constant 0.000000e+00 : f32
    %75 = vector.broadcast %cst_47 : f32 to vector<128x128xf32>
    %76 = arith.cmpf ogt, %74, %75 : vector<128x128xf32>
    %cst_48 = arith.constant 2.000000e-01 : f32
    %77 = vector.broadcast %cst_48 : f32 to vector<128x128xf32>
    %78 = arith.mulf %77, %74 : vector<128x128xf32>
    %79 = arith.select %76, %74, %78 : vector<128x128xi1>, vector<128x128xf32>
    %80 = arith.truncf %79 : vector<128x128xf32> to vector<128x128xbf16>
    %c0_49 = arith.constant 0 : index
    %c0_50 = arith.constant 0 : index
    %c0_51 = arith.constant 0 : index
    %81 = vector.load %arg5[%c0_49, %c0_50, %c0_51] : memref<1x128x128xbf16, #tpu.memory_space<vmem>>, vector<1x128x128xbf16>
    %82 = vector.shape_cast %81 : vector<1x128x128xbf16> to vector<128x128xbf16>
    %83 = vector.shape_cast %80 : vector<128x128xbf16> to vector<1x128x128xbf16>
    tpu.vector_store %arg5[%c0_49, %c0_50, %c0_51], %83 {strides = array<i32>} : memref<1x128x128xbf16, #tpu.memory_space<vmem>>, vector<1x128x128xbf16>,
    return
  }
  func.func @transform_0(%arg0: i32, %arg1: i32) -> (i32, i32, i32) {
    %c0_i32 = arith.constant 0 : i32
    %c0_i32_0 = arith.constant 0 : i32
    %c0_i32_1 = arith.constant 0 : i32
    return %arg0, %c0_i32, %c0_i32_0 : i32, i32, i32
  }
  func.func @transform_1(%arg0: i32, %arg1: i32) -> (i32, i32, i32) {
    %c0_i32 = arith.constant 0 : i32
    %c0_i32_0 = arith.constant 0 : i32
    %c0_i32_1 = arith.constant 0 : i32
    return %c0_i32, %c0_i32_0, %arg1 : i32, i32, i32
  }
  func.func @transform_2(%arg0: i32, %arg1: i32) -> (i32, i32) {
    %c0_i32 = arith.constant 0 : i32
    %c0_i32_0 = arith.constant 0 : i32
    return %c0_i32, %arg1 : i32, i32
  }
  func.func @transform_3(%arg0: i32, %arg1: i32) -> (i32, i32, i32) {
    %c0_i32 = arith.constant 0 : i32
    %c0_i32_0 = arith.constant 0 : i32
    return %arg0, %c0_i32, %arg1 : i32, i32, i32
  }
}

module attributes {stable_mosaic.version = 11 : i64} {
  func.func @_conv_in_lrelu_kernel(%arg0: i32, %arg1: i32, %arg2: memref<1x48x512xbf16, #tpu.memory_space<vmem>>, %arg3: memref<4x512x128xbf16, #tpu.memory_space<vmem>>, %arg4: memref<1x128xf32, #tpu.memory_space<vmem>>, %arg5: memref<1x32x128xbf16, #tpu.memory_space<vmem>>, %arg6: memref<32x128xf32, #tpu.memory_space<vmem>>) attributes {dimension_semantics = [#tpu.dimension_semantics<parallel>, #tpu.dimension_semantics<parallel>], iteration_bounds = array<i64: 2, 2>, scalar_prefetch = 0 : i64, scratch_operands = 1 : i64, tpu.core_type = #tpu.core_type<tc>, window_params = [{transform_indices = @transform_0, window_bounds = array<i64: 1, 48, 512>}, {transform_indices = @transform_1, window_bounds = array<i64: 4, 512, 128>}, {transform_indices = @transform_2, window_bounds = array<i64: 1, 128>}, {transform_indices = @transform_3, window_bounds = array<i64: 1, 32, 128>}]} {
    %c0 = arith.constant 0 : index
    %c0_0 = arith.constant 0 : index
    %c0_1 = arith.constant 0 : index
    %0 = vector.load %arg2[%c0, %c0_0, %c0_1] : memref<1x48x512xbf16, #tpu.memory_space<vmem>>, vector<1x32x512xbf16>
    %1 = vector.shape_cast %0 : vector<1x32x512xbf16> to vector<32x512xbf16>
    %c0_2 = arith.constant 0 : index
    %c0_3 = arith.constant 0 : index
    %c0_4 = arith.constant 0 : index
    %2 = vector.load %arg3[%c0_2, %c0_3, %c0_4] : memref<4x512x128xbf16, #tpu.memory_space<vmem>>, vector<1x512x128xbf16>
    %3 = vector.shape_cast %2 : vector<1x512x128xbf16> to vector<512x128xbf16>
    %cst = arith.constant dense<0.000000e+00> : vector<32x128xf32>
    %4 = tpu.matmul %1, %3, %cst {dimension_numbers = #tpu.dot_dimension_numbers<[1], [0], [0], [1], [0, 0, 1, 1], [], []>} : vector<32x512xbf16>, vector<512x128xbf16>, vector<32x128xf32> -> vector<32x128xf32>
    %c0_5 = arith.constant 0 : index
    %c0_6 = arith.constant 0 : index
    %5 = vector.load %arg6[%c0_5, %c0_6] : memref<32x128xf32, #tpu.memory_space<vmem>>, vector<32x128xf32>
    tpu.vector_store %arg6[%c0_5, %c0_6], %4 {strides = array<i32>} : memref<32x128xf32, #tpu.memory_space<vmem>>, vector<32x128xf32>,
    %c0_7 = arith.constant 0 : index
    %c1 = arith.constant 1 : index
    %c0_8 = arith.constant 0 : index
    %6 = vector.load %arg2[%c0_7, %c1, %c0_8] : memref<1x48x512xbf16, #tpu.memory_space<vmem>>, vector<1x32x512xbf16>
    %7 = vector.shape_cast %6 : vector<1x32x512xbf16> to vector<32x512xbf16>
    %c1_9 = arith.constant 1 : index
    %c0_10 = arith.constant 0 : index
    %c0_11 = arith.constant 0 : index
    %8 = vector.load %arg3[%c1_9, %c0_10, %c0_11] : memref<4x512x128xbf16, #tpu.memory_space<vmem>>, vector<1x512x128xbf16>
    %9 = vector.shape_cast %8 : vector<1x512x128xbf16> to vector<512x128xbf16>
    %cst_12 = arith.constant dense<0.000000e+00> : vector<32x128xf32>
    %10 = tpu.matmul %7, %9, %cst_12 {dimension_numbers = #tpu.dot_dimension_numbers<[1], [0], [0], [1], [0, 0, 1, 1], [], []>} : vector<32x512xbf16>, vector<512x128xbf16>, vector<32x128xf32> -> vector<32x128xf32>
    %c0_13 = arith.constant 0 : index
    %c0_14 = arith.constant 0 : index
    %11 = vector.load %arg6[%c0_13, %c0_14] : memref<32x128xf32, #tpu.memory_space<vmem>>, vector<32x128xf32>
    %12 = arith.addf %11, %10 : vector<32x128xf32>
    %c0_15 = arith.constant 0 : index
    %c0_16 = arith.constant 0 : index
    %13 = vector.load %arg6[%c0_15, %c0_16] : memref<32x128xf32, #tpu.memory_space<vmem>>, vector<32x128xf32>
    tpu.vector_store %arg6[%c0_15, %c0_16], %12 {strides = array<i32>} : memref<32x128xf32, #tpu.memory_space<vmem>>, vector<32x128xf32>,
    %c0_17 = arith.constant 0 : index
    %c8 = arith.constant 8 : index
    %c0_18 = arith.constant 0 : index
    %14 = vector.load %arg2[%c0_17, %c8, %c0_18] : memref<1x48x512xbf16, #tpu.memory_space<vmem>>, vector<1x32x512xbf16>
    %15 = vector.shape_cast %14 : vector<1x32x512xbf16> to vector<32x512xbf16>
    %c2 = arith.constant 2 : index
    %c0_19 = arith.constant 0 : index
    %c0_20 = arith.constant 0 : index
    %16 = vector.load %arg3[%c2, %c0_19, %c0_20] : memref<4x512x128xbf16, #tpu.memory_space<vmem>>, vector<1x512x128xbf16>
    %17 = vector.shape_cast %16 : vector<1x512x128xbf16> to vector<512x128xbf16>
    %cst_21 = arith.constant dense<0.000000e+00> : vector<32x128xf32>
    %18 = tpu.matmul %15, %17, %cst_21 {dimension_numbers = #tpu.dot_dimension_numbers<[1], [0], [0], [1], [0, 0, 1, 1], [], []>} : vector<32x512xbf16>, vector<512x128xbf16>, vector<32x128xf32> -> vector<32x128xf32>
    %c0_22 = arith.constant 0 : index
    %c0_23 = arith.constant 0 : index
    %19 = vector.load %arg6[%c0_22, %c0_23] : memref<32x128xf32, #tpu.memory_space<vmem>>, vector<32x128xf32>
    %20 = arith.addf %19, %18 : vector<32x128xf32>
    %c0_24 = arith.constant 0 : index
    %c0_25 = arith.constant 0 : index
    %21 = vector.load %arg6[%c0_24, %c0_25] : memref<32x128xf32, #tpu.memory_space<vmem>>, vector<32x128xf32>
    tpu.vector_store %arg6[%c0_24, %c0_25], %20 {strides = array<i32>} : memref<32x128xf32, #tpu.memory_space<vmem>>, vector<32x128xf32>,
    %c0_26 = arith.constant 0 : index
    %c9 = arith.constant 9 : index
    %c0_27 = arith.constant 0 : index
    %22 = vector.load %arg2[%c0_26, %c9, %c0_27] : memref<1x48x512xbf16, #tpu.memory_space<vmem>>, vector<1x32x512xbf16>
    %23 = vector.shape_cast %22 : vector<1x32x512xbf16> to vector<32x512xbf16>
    %c3 = arith.constant 3 : index
    %c0_28 = arith.constant 0 : index
    %c0_29 = arith.constant 0 : index
    %24 = vector.load %arg3[%c3, %c0_28, %c0_29] : memref<4x512x128xbf16, #tpu.memory_space<vmem>>, vector<1x512x128xbf16>
    %25 = vector.shape_cast %24 : vector<1x512x128xbf16> to vector<512x128xbf16>
    %cst_30 = arith.constant dense<0.000000e+00> : vector<32x128xf32>
    %26 = tpu.matmul %23, %25, %cst_30 {dimension_numbers = #tpu.dot_dimension_numbers<[1], [0], [0], [1], [0, 0, 1, 1], [], []>} : vector<32x512xbf16>, vector<512x128xbf16>, vector<32x128xf32> -> vector<32x128xf32>
    %c0_31 = arith.constant 0 : index
    %c0_32 = arith.constant 0 : index
    %27 = vector.load %arg6[%c0_31, %c0_32] : memref<32x128xf32, #tpu.memory_space<vmem>>, vector<32x128xf32>
    %28 = arith.addf %27, %26 : vector<32x128xf32>
    %c0_33 = arith.constant 0 : index
    %c0_34 = arith.constant 0 : index
    %29 = vector.load %arg6[%c0_33, %c0_34] : memref<32x128xf32, #tpu.memory_space<vmem>>, vector<32x128xf32>
    tpu.vector_store %arg6[%c0_33, %c0_34], %28 {strides = array<i32>} : memref<32x128xf32, #tpu.memory_space<vmem>>, vector<32x128xf32>,
    %c0_35 = arith.constant 0 : index
    %c0_36 = arith.constant 0 : index
    %30 = vector.load %arg6[%c0_35, %c0_36] : memref<32x128xf32, #tpu.memory_space<vmem>>, vector<32x128xf32>
    %c0_37 = arith.constant 0 : index
    %c0_38 = arith.constant 0 : index
    %31 = vector.load %arg4[%c0_37, %c0_38] : memref<1x128xf32, #tpu.memory_space<vmem>>, vector<1x128xf32>
    %32 = vector.broadcast %31 : vector<1x128xf32> to vector<32x128xf32>
    %33 = arith.addf %30, %32 : vector<32x128xf32>
    %34 = tpu.iota {dimensions = array<i32: 0>} : vector<32x1xi32>
    %c8_i32 = arith.constant 8 : i32
    %c0_i32 = arith.constant 0 : i32
    %35 = arith.cmpi eq, %c8_i32, %c0_i32 : i32
    %c1_i32 = arith.constant 1 : i32
    %36 = arith.select %35, %c1_i32, %c8_i32 : i32
    %37 = vector.broadcast %36 : i32 to vector<32x1xi32>
    %38 = arith.remsi %34, %37 : vector<32x1xi32>
    %c0_i32_39 = arith.constant 0 : i32
    %39 = vector.broadcast %c0_i32_39 : i32 to vector<32x1xi32>
    %40 = arith.cmpi ne, %38, %39 : vector<32x1xi32>
    %c0_i32_40 = arith.constant 0 : i32
    %41 = vector.broadcast %c0_i32_40 : i32 to vector<32x1xi32>
    %42 = arith.cmpi slt, %38, %41 : vector<32x1xi32>
    %c0_i32_41 = arith.constant 0 : i32
    %43 = arith.cmpi slt, %36, %c0_i32_41 : i32
    %44 = vector.broadcast %43 : i1 to vector<32x1xi1>
    %45 = vector.broadcast %44 : vector<32x1xi1> to vector<32x1xi1>
    %46 = arith.xori %42, %45 : vector<32x1xi1>
    %47 = arith.andi %46, %40 : vector<32x1xi1>
    %48 = vector.broadcast %36 : i32 to vector<32x1xi32>
    %49 = arith.addi %38, %48 : vector<32x1xi32>
    %50 = arith.select %47, %49, %38 : vector<32x1xi1>, vector<32x1xi32>
    %c4_i32 = arith.constant 4 : i32
    %51 = vector.broadcast %c4_i32 : i32 to vector<32x1xi32>
    %52 = arith.cmpi slt, %50, %51 : vector<32x1xi32>
    %53 = arith.extui %52 : vector<32x1xi1> to vector<32x1xi32>
    %54 = arith.sitofp %53 : vector<32x1xi32> to vector<32x1xf32>
    %55 = vector.broadcast %54 : vector<32x1xf32> to vector<32x128xf32>
    %56 = arith.mulf %33, %55 : vector<32x128xf32>
    %cst_42 = arith.constant dense<0.000000e+00> : vector<128xf32>
    %57 = vector.multi_reduction <add>, %56, %cst_42 [0] : vector<32x128xf32> to vector<128xf32>
    %58 = vector.shape_cast %57 : vector<128xf32> to vector<1x128xf32>
    %cst_43 = arith.constant 6.250000e-02 : f32
    %59 = vector.broadcast %cst_43 : f32 to vector<1x128xf32>
    %60 = arith.mulf %58, %59 : vector<1x128xf32>
    %61 = vector.broadcast %60 : vector<1x128xf32> to vector<32x128xf32>
    %62 = arith.subf %33, %61 : vector<32x128xf32>
    %63 = arith.mulf %62, %62 : vector<32x128xf32>
    %64 = vector.broadcast %54 : vector<32x1xf32> to vector<32x128xf32>
    %65 = arith.mulf %63, %64 : vector<32x128xf32>
    %cst_44 = arith.constant dense<0.000000e+00> : vector<128xf32>
    %66 = vector.multi_reduction <add>, %65, %cst_44 [0] : vector<32x128xf32> to vector<128xf32>
    %67 = vector.shape_cast %66 : vector<128xf32> to vector<1x128xf32>
    %cst_45 = arith.constant 6.250000e-02 : f32
    %68 = vector.broadcast %cst_45 : f32 to vector<1x128xf32>
    %69 = arith.mulf %67, %68 : vector<1x128xf32>
    %cst_46 = arith.constant 9.99999974E-6 : f32
    %70 = vector.broadcast %cst_46 : f32 to vector<1x128xf32>
    %71 = arith.addf %69, %70 : vector<1x128xf32>
    %72 = math.rsqrt %71 : vector<1x128xf32>
    %73 = vector.broadcast %72 : vector<1x128xf32> to vector<32x128xf32>
    %74 = arith.mulf %62, %73 : vector<32x128xf32>
    %cst_47 = arith.constant 0.000000e+00 : f32
    %75 = vector.broadcast %cst_47 : f32 to vector<32x128xf32>
    %76 = arith.cmpf ogt, %74, %75 : vector<32x128xf32>
    %cst_48 = arith.constant 2.000000e-01 : f32
    %77 = vector.broadcast %cst_48 : f32 to vector<32x128xf32>
    %78 = arith.mulf %77, %74 : vector<32x128xf32>
    %79 = arith.select %76, %74, %78 : vector<32x128xi1>, vector<32x128xf32>
    %80 = arith.truncf %79 : vector<32x128xf32> to vector<32x128xbf16>
    %c0_49 = arith.constant 0 : index
    %c0_50 = arith.constant 0 : index
    %c0_51 = arith.constant 0 : index
    %81 = vector.load %arg5[%c0_49, %c0_50, %c0_51] : memref<1x32x128xbf16, #tpu.memory_space<vmem>>, vector<1x32x128xbf16>
    %82 = vector.shape_cast %81 : vector<1x32x128xbf16> to vector<32x128xbf16>
    %83 = vector.shape_cast %80 : vector<32x128xbf16> to vector<1x32x128xbf16>
    tpu.vector_store %arg5[%c0_49, %c0_50, %c0_51], %83 {strides = array<i32>} : memref<1x32x128xbf16, #tpu.memory_space<vmem>>, vector<1x32x128xbf16>,
    return
  }
  func.func @transform_0(%arg0: i32, %arg1: i32) -> (i32, i32, i32) {
    %c0_i32 = arith.constant 0 : i32
    %c0_i32_0 = arith.constant 0 : i32
    %c0_i32_1 = arith.constant 0 : i32
    return %arg0, %c0_i32, %c0_i32_0 : i32, i32, i32
  }
  func.func @transform_1(%arg0: i32, %arg1: i32) -> (i32, i32, i32) {
    %c0_i32 = arith.constant 0 : i32
    %c0_i32_0 = arith.constant 0 : i32
    %c0_i32_1 = arith.constant 0 : i32
    return %c0_i32, %c0_i32_0, %arg1 : i32, i32, i32
  }
  func.func @transform_2(%arg0: i32, %arg1: i32) -> (i32, i32) {
    %c0_i32 = arith.constant 0 : i32
    %c0_i32_0 = arith.constant 0 : i32
    return %c0_i32, %arg1 : i32, i32
  }
  func.func @transform_3(%arg0: i32, %arg1: i32) -> (i32, i32, i32) {
    %c0_i32 = arith.constant 0 : i32
    %c0_i32_0 = arith.constant 0 : i32
    return %arg0, %c0_i32, %arg1 : i32, i32, i32
  }
}

module attributes {stable_mosaic.version = 11 : i64} {
  func.func @_conv_in_lrelu_kernel(%arg0: i32, %arg1: i32, %arg2: memref<1x32x1024xbf16, #tpu.memory_space<vmem>>, %arg3: memref<4x1024x128xbf16, #tpu.memory_space<vmem>>, %arg4: memref<1x128xf32, #tpu.memory_space<vmem>>, %arg5: memref<1x16x128xbf16, #tpu.memory_space<vmem>>, %arg6: memref<16x128xf32, #tpu.memory_space<vmem>>) attributes {dimension_semantics = [#tpu.dimension_semantics<parallel>, #tpu.dimension_semantics<parallel>], iteration_bounds = array<i64: 2, 4>, scalar_prefetch = 0 : i64, scratch_operands = 1 : i64, tpu.core_type = #tpu.core_type<tc>, window_params = [{transform_indices = @transform_0, window_bounds = array<i64: 1, 32, 1024>}, {transform_indices = @transform_1, window_bounds = array<i64: 4, 1024, 128>}, {transform_indices = @transform_2, window_bounds = array<i64: 1, 128>}, {transform_indices = @transform_3, window_bounds = array<i64: 1, 16, 128>}]} {
    %c0 = arith.constant 0 : index
    %c0_0 = arith.constant 0 : index
    %c0_1 = arith.constant 0 : index
    %0 = vector.load %arg2[%c0, %c0_0, %c0_1] : memref<1x32x1024xbf16, #tpu.memory_space<vmem>>, vector<1x16x1024xbf16>
    %1 = vector.shape_cast %0 : vector<1x16x1024xbf16> to vector<16x1024xbf16>
    %c0_2 = arith.constant 0 : index
    %c0_3 = arith.constant 0 : index
    %c0_4 = arith.constant 0 : index
    %2 = vector.load %arg3[%c0_2, %c0_3, %c0_4] : memref<4x1024x128xbf16, #tpu.memory_space<vmem>>, vector<1x1024x128xbf16>
    %3 = vector.shape_cast %2 : vector<1x1024x128xbf16> to vector<1024x128xbf16>
    %cst = arith.constant dense<0.000000e+00> : vector<16x128xf32>
    %4 = tpu.matmul %1, %3, %cst {dimension_numbers = #tpu.dot_dimension_numbers<[1], [0], [0], [1], [0, 0, 1, 1], [], []>} : vector<16x1024xbf16>, vector<1024x128xbf16>, vector<16x128xf32> -> vector<16x128xf32>
    %c0_5 = arith.constant 0 : index
    %c0_6 = arith.constant 0 : index
    %5 = vector.load %arg6[%c0_5, %c0_6] : memref<16x128xf32, #tpu.memory_space<vmem>>, vector<16x128xf32>
    tpu.vector_store %arg6[%c0_5, %c0_6], %4 {strides = array<i32>} : memref<16x128xf32, #tpu.memory_space<vmem>>, vector<16x128xf32>,
    %c0_7 = arith.constant 0 : index
    %c1 = arith.constant 1 : index
    %c0_8 = arith.constant 0 : index
    %6 = vector.load %arg2[%c0_7, %c1, %c0_8] : memref<1x32x1024xbf16, #tpu.memory_space<vmem>>, vector<1x16x1024xbf16>
    %7 = vector.shape_cast %6 : vector<1x16x1024xbf16> to vector<16x1024xbf16>
    %c1_9 = arith.constant 1 : index
    %c0_10 = arith.constant 0 : index
    %c0_11 = arith.constant 0 : index
    %8 = vector.load %arg3[%c1_9, %c0_10, %c0_11] : memref<4x1024x128xbf16, #tpu.memory_space<vmem>>, vector<1x1024x128xbf16>
    %9 = vector.shape_cast %8 : vector<1x1024x128xbf16> to vector<1024x128xbf16>
    %cst_12 = arith.constant dense<0.000000e+00> : vector<16x128xf32>
    %10 = tpu.matmul %7, %9, %cst_12 {dimension_numbers = #tpu.dot_dimension_numbers<[1], [0], [0], [1], [0, 0, 1, 1], [], []>} : vector<16x1024xbf16>, vector<1024x128xbf16>, vector<16x128xf32> -> vector<16x128xf32>
    %c0_13 = arith.constant 0 : index
    %c0_14 = arith.constant 0 : index
    %11 = vector.load %arg6[%c0_13, %c0_14] : memref<16x128xf32, #tpu.memory_space<vmem>>, vector<16x128xf32>
    %12 = arith.addf %11, %10 : vector<16x128xf32>
    %c0_15 = arith.constant 0 : index
    %c0_16 = arith.constant 0 : index
    %13 = vector.load %arg6[%c0_15, %c0_16] : memref<16x128xf32, #tpu.memory_space<vmem>>, vector<16x128xf32>
    tpu.vector_store %arg6[%c0_15, %c0_16], %12 {strides = array<i32>} : memref<16x128xf32, #tpu.memory_space<vmem>>, vector<16x128xf32>,
    %c0_17 = arith.constant 0 : index
    %c8 = arith.constant 8 : index
    %c0_18 = arith.constant 0 : index
    %14 = vector.load %arg2[%c0_17, %c8, %c0_18] : memref<1x32x1024xbf16, #tpu.memory_space<vmem>>, vector<1x16x1024xbf16>
    %15 = vector.shape_cast %14 : vector<1x16x1024xbf16> to vector<16x1024xbf16>
    %c2 = arith.constant 2 : index
    %c0_19 = arith.constant 0 : index
    %c0_20 = arith.constant 0 : index
    %16 = vector.load %arg3[%c2, %c0_19, %c0_20] : memref<4x1024x128xbf16, #tpu.memory_space<vmem>>, vector<1x1024x128xbf16>
    %17 = vector.shape_cast %16 : vector<1x1024x128xbf16> to vector<1024x128xbf16>
    %cst_21 = arith.constant dense<0.000000e+00> : vector<16x128xf32>
    %18 = tpu.matmul %15, %17, %cst_21 {dimension_numbers = #tpu.dot_dimension_numbers<[1], [0], [0], [1], [0, 0, 1, 1], [], []>} : vector<16x1024xbf16>, vector<1024x128xbf16>, vector<16x128xf32> -> vector<16x128xf32>
    %c0_22 = arith.constant 0 : index
    %c0_23 = arith.constant 0 : index
    %19 = vector.load %arg6[%c0_22, %c0_23] : memref<16x128xf32, #tpu.memory_space<vmem>>, vector<16x128xf32>
    %20 = arith.addf %19, %18 : vector<16x128xf32>
    %c0_24 = arith.constant 0 : index
    %c0_25 = arith.constant 0 : index
    %21 = vector.load %arg6[%c0_24, %c0_25] : memref<16x128xf32, #tpu.memory_space<vmem>>, vector<16x128xf32>
    tpu.vector_store %arg6[%c0_24, %c0_25], %20 {strides = array<i32>} : memref<16x128xf32, #tpu.memory_space<vmem>>, vector<16x128xf32>,
    %c0_26 = arith.constant 0 : index
    %c9 = arith.constant 9 : index
    %c0_27 = arith.constant 0 : index
    %22 = vector.load %arg2[%c0_26, %c9, %c0_27] : memref<1x32x1024xbf16, #tpu.memory_space<vmem>>, vector<1x16x1024xbf16>
    %23 = vector.shape_cast %22 : vector<1x16x1024xbf16> to vector<16x1024xbf16>
    %c3 = arith.constant 3 : index
    %c0_28 = arith.constant 0 : index
    %c0_29 = arith.constant 0 : index
    %24 = vector.load %arg3[%c3, %c0_28, %c0_29] : memref<4x1024x128xbf16, #tpu.memory_space<vmem>>, vector<1x1024x128xbf16>
    %25 = vector.shape_cast %24 : vector<1x1024x128xbf16> to vector<1024x128xbf16>
    %cst_30 = arith.constant dense<0.000000e+00> : vector<16x128xf32>
    %26 = tpu.matmul %23, %25, %cst_30 {dimension_numbers = #tpu.dot_dimension_numbers<[1], [0], [0], [1], [0, 0, 1, 1], [], []>} : vector<16x1024xbf16>, vector<1024x128xbf16>, vector<16x128xf32> -> vector<16x128xf32>
    %c0_31 = arith.constant 0 : index
    %c0_32 = arith.constant 0 : index
    %27 = vector.load %arg6[%c0_31, %c0_32] : memref<16x128xf32, #tpu.memory_space<vmem>>, vector<16x128xf32>
    %28 = arith.addf %27, %26 : vector<16x128xf32>
    %c0_33 = arith.constant 0 : index
    %c0_34 = arith.constant 0 : index
    %29 = vector.load %arg6[%c0_33, %c0_34] : memref<16x128xf32, #tpu.memory_space<vmem>>, vector<16x128xf32>
    tpu.vector_store %arg6[%c0_33, %c0_34], %28 {strides = array<i32>} : memref<16x128xf32, #tpu.memory_space<vmem>>, vector<16x128xf32>,
    %c0_35 = arith.constant 0 : index
    %c0_36 = arith.constant 0 : index
    %30 = vector.load %arg6[%c0_35, %c0_36] : memref<16x128xf32, #tpu.memory_space<vmem>>, vector<16x128xf32>
    %c0_37 = arith.constant 0 : index
    %c0_38 = arith.constant 0 : index
    %31 = vector.load %arg4[%c0_37, %c0_38] : memref<1x128xf32, #tpu.memory_space<vmem>>, vector<1x128xf32>
    %32 = vector.broadcast %31 : vector<1x128xf32> to vector<16x128xf32>
    %33 = arith.addf %30, %32 : vector<16x128xf32>
    %34 = tpu.iota {dimensions = array<i32: 0>} : vector<16x1xi32>
    %c8_i32 = arith.constant 8 : i32
    %c0_i32 = arith.constant 0 : i32
    %35 = arith.cmpi eq, %c8_i32, %c0_i32 : i32
    %c1_i32 = arith.constant 1 : i32
    %36 = arith.select %35, %c1_i32, %c8_i32 : i32
    %37 = vector.broadcast %36 : i32 to vector<16x1xi32>
    %38 = arith.remsi %34, %37 : vector<16x1xi32>
    %c0_i32_39 = arith.constant 0 : i32
    %39 = vector.broadcast %c0_i32_39 : i32 to vector<16x1xi32>
    %40 = arith.cmpi ne, %38, %39 : vector<16x1xi32>
    %c0_i32_40 = arith.constant 0 : i32
    %41 = vector.broadcast %c0_i32_40 : i32 to vector<16x1xi32>
    %42 = arith.cmpi slt, %38, %41 : vector<16x1xi32>
    %c0_i32_41 = arith.constant 0 : i32
    %43 = arith.cmpi slt, %36, %c0_i32_41 : i32
    %44 = vector.broadcast %43 : i1 to vector<16x1xi1>
    %45 = vector.broadcast %44 : vector<16x1xi1> to vector<16x1xi1>
    %46 = arith.xori %42, %45 : vector<16x1xi1>
    %47 = arith.andi %46, %40 : vector<16x1xi1>
    %48 = vector.broadcast %36 : i32 to vector<16x1xi32>
    %49 = arith.addi %38, %48 : vector<16x1xi32>
    %50 = arith.select %47, %49, %38 : vector<16x1xi1>, vector<16x1xi32>
    %c2_i32 = arith.constant 2 : i32
    %51 = vector.broadcast %c2_i32 : i32 to vector<16x1xi32>
    %52 = arith.cmpi slt, %50, %51 : vector<16x1xi32>
    %53 = arith.extui %52 : vector<16x1xi1> to vector<16x1xi32>
    %54 = arith.sitofp %53 : vector<16x1xi32> to vector<16x1xf32>
    %55 = vector.broadcast %54 : vector<16x1xf32> to vector<16x128xf32>
    %56 = arith.mulf %33, %55 : vector<16x128xf32>
    %cst_42 = arith.constant dense<0.000000e+00> : vector<128xf32>
    %57 = vector.multi_reduction <add>, %56, %cst_42 [0] : vector<16x128xf32> to vector<128xf32>
    %58 = vector.shape_cast %57 : vector<128xf32> to vector<1x128xf32>
    %cst_43 = arith.constant 2.500000e-01 : f32
    %59 = vector.broadcast %cst_43 : f32 to vector<1x128xf32>
    %60 = arith.mulf %58, %59 : vector<1x128xf32>
    %61 = vector.broadcast %60 : vector<1x128xf32> to vector<16x128xf32>
    %62 = arith.subf %33, %61 : vector<16x128xf32>
    %63 = arith.mulf %62, %62 : vector<16x128xf32>
    %64 = vector.broadcast %54 : vector<16x1xf32> to vector<16x128xf32>
    %65 = arith.mulf %63, %64 : vector<16x128xf32>
    %cst_44 = arith.constant dense<0.000000e+00> : vector<128xf32>
    %66 = vector.multi_reduction <add>, %65, %cst_44 [0] : vector<16x128xf32> to vector<128xf32>
    %67 = vector.shape_cast %66 : vector<128xf32> to vector<1x128xf32>
    %cst_45 = arith.constant 2.500000e-01 : f32
    %68 = vector.broadcast %cst_45 : f32 to vector<1x128xf32>
    %69 = arith.mulf %67, %68 : vector<1x128xf32>
    %cst_46 = arith.constant 9.99999974E-6 : f32
    %70 = vector.broadcast %cst_46 : f32 to vector<1x128xf32>
    %71 = arith.addf %69, %70 : vector<1x128xf32>
    %72 = math.rsqrt %71 : vector<1x128xf32>
    %73 = vector.broadcast %72 : vector<1x128xf32> to vector<16x128xf32>
    %74 = arith.mulf %62, %73 : vector<16x128xf32>
    %cst_47 = arith.constant 0.000000e+00 : f32
    %75 = vector.broadcast %cst_47 : f32 to vector<16x128xf32>
    %76 = arith.cmpf ogt, %74, %75 : vector<16x128xf32>
    %cst_48 = arith.constant 2.000000e-01 : f32
    %77 = vector.broadcast %cst_48 : f32 to vector<16x128xf32>
    %78 = arith.mulf %77, %74 : vector<16x128xf32>
    %79 = arith.select %76, %74, %78 : vector<16x128xi1>, vector<16x128xf32>
    %80 = arith.truncf %79 : vector<16x128xf32> to vector<16x128xbf16>
    %c0_49 = arith.constant 0 : index
    %c0_50 = arith.constant 0 : index
    %c0_51 = arith.constant 0 : index
    %81 = vector.load %arg5[%c0_49, %c0_50, %c0_51] : memref<1x16x128xbf16, #tpu.memory_space<vmem>>, vector<1x16x128xbf16>
    %82 = vector.shape_cast %81 : vector<1x16x128xbf16> to vector<16x128xbf16>
    %83 = vector.shape_cast %80 : vector<16x128xbf16> to vector<1x16x128xbf16>
    tpu.vector_store %arg5[%c0_49, %c0_50, %c0_51], %83 {strides = array<i32>} : memref<1x16x128xbf16, #tpu.memory_space<vmem>>, vector<1x16x128xbf16>,
    return
  }
  func.func @transform_0(%arg0: i32, %arg1: i32) -> (i32, i32, i32) {
    %c0_i32 = arith.constant 0 : i32
    %c0_i32_0 = arith.constant 0 : i32
    %c0_i32_1 = arith.constant 0 : i32
    return %arg0, %c0_i32, %c0_i32_0 : i32, i32, i32
  }
  func.func @transform_1(%arg0: i32, %arg1: i32) -> (i32, i32, i32) {
    %c0_i32 = arith.constant 0 : i32
    %c0_i32_0 = arith.constant 0 : i32
    %c0_i32_1 = arith.constant 0 : i32
    return %c0_i32, %c0_i32_0, %arg1 : i32, i32, i32
  }
  func.func @transform_2(%arg0: i32, %arg1: i32) -> (i32, i32) {
    %c0_i32 = arith.constant 0 : i32
    %c0_i32_0 = arith.constant 0 : i32
    return %c0_i32, %arg1 : i32, i32
  }
  func.func @transform_3(%arg0: i32, %arg1: i32) -> (i32, i32, i32) {
    %c0_i32 = arith.constant 0 : i32
    %c0_i32_0 = arith.constant 0 : i32
    return %arg0, %c0_i32, %arg1 : i32, i32, i32
  }
}

module attributes {stable_mosaic.version = 11 : i64} {
  func.func @_conv_bias_act_kernel(%arg0: i32, %arg1: i32, %arg2: memref<1x48x512xbf16, #tpu.memory_space<vmem>>, %arg3: memref<16x512x128xbf16, #tpu.memory_space<vmem>>, %arg4: memref<1x128xf32, #tpu.memory_space<vmem>>, %arg5: memref<1x16x128xf32, #tpu.memory_space<vmem>>, %arg6: memref<16x128xf32, #tpu.memory_space<vmem>>) attributes {dimension_semantics = [#tpu.dimension_semantics<parallel>, #tpu.dimension_semantics<parallel>], iteration_bounds = array<i64: 2, 1>, scalar_prefetch = 0 : i64, scratch_operands = 1 : i64, tpu.core_type = #tpu.core_type<tc>, window_params = [{transform_indices = @transform_0, window_bounds = array<i64: 1, 48, 512>}, {pipeline_mode = #tpu.pipeline_mode<synchronous>, transform_indices = @transform_1, window_bounds = array<i64: 16, 512, 128>}, {pipeline_mode = #tpu.pipeline_mode<synchronous>, transform_indices = @transform_2, window_bounds = array<i64: 1, 128>}, {transform_indices = @transform_3, window_bounds = array<i64: 1, 16, 128>}]} {
    %c0 = arith.constant 0 : index
    %c0_0 = arith.constant 0 : index
    %c0_1 = arith.constant 0 : index
    %0 = vector.load %arg2[%c0, %c0_0, %c0_1] : memref<1x48x512xbf16, #tpu.memory_space<vmem>>, vector<1x16x512xbf16>
    %1 = vector.shape_cast %0 : vector<1x16x512xbf16> to vector<16x512xbf16>
    %c0_2 = arith.constant 0 : index
    %c0_3 = arith.constant 0 : index
    %c0_4 = arith.constant 0 : index
    %2 = vector.load %arg3[%c0_2, %c0_3, %c0_4] : memref<16x512x128xbf16, #tpu.memory_space<vmem>>, vector<1x512x128xbf16>
    %3 = vector.shape_cast %2 : vector<1x512x128xbf16> to vector<512x128xbf16>
    %cst = arith.constant dense<0.000000e+00> : vector<16x128xf32>
    %4 = tpu.matmul %1, %3, %cst {dimension_numbers = #tpu.dot_dimension_numbers<[1], [0], [0], [1], [0, 0, 1, 1], [], []>} : vector<16x512xbf16>, vector<512x128xbf16>, vector<16x128xf32> -> vector<16x128xf32>
    %c0_5 = arith.constant 0 : index
    %c0_6 = arith.constant 0 : index
    %5 = vector.load %arg6[%c0_5, %c0_6] : memref<16x128xf32, #tpu.memory_space<vmem>>, vector<16x128xf32>
    tpu.vector_store %arg6[%c0_5, %c0_6], %4 {strides = array<i32>} : memref<16x128xf32, #tpu.memory_space<vmem>>, vector<16x128xf32>,
    %c0_7 = arith.constant 0 : index
    %c1 = arith.constant 1 : index
    %c0_8 = arith.constant 0 : index
    %6 = vector.load %arg2[%c0_7, %c1, %c0_8] : memref<1x48x512xbf16, #tpu.memory_space<vmem>>, vector<1x16x512xbf16>
    %7 = vector.shape_cast %6 : vector<1x16x512xbf16> to vector<16x512xbf16>
    %c1_9 = arith.constant 1 : index
    %c0_10 = arith.constant 0 : index
    %c0_11 = arith.constant 0 : index
    %8 = vector.load %arg3[%c1_9, %c0_10, %c0_11] : memref<16x512x128xbf16, #tpu.memory_space<vmem>>, vector<1x512x128xbf16>
    %9 = vector.shape_cast %8 : vector<1x512x128xbf16> to vector<512x128xbf16>
    %cst_12 = arith.constant dense<0.000000e+00> : vector<16x128xf32>
    %10 = tpu.matmul %7, %9, %cst_12 {dimension_numbers = #tpu.dot_dimension_numbers<[1], [0], [0], [1], [0, 0, 1, 1], [], []>} : vector<16x512xbf16>, vector<512x128xbf16>, vector<16x128xf32> -> vector<16x128xf32>
    %c0_13 = arith.constant 0 : index
    %c0_14 = arith.constant 0 : index
    %11 = vector.load %arg6[%c0_13, %c0_14] : memref<16x128xf32, #tpu.memory_space<vmem>>, vector<16x128xf32>
    %12 = arith.addf %11, %10 : vector<16x128xf32>
    %c0_15 = arith.constant 0 : index
    %c0_16 = arith.constant 0 : index
    %13 = vector.load %arg6[%c0_15, %c0_16] : memref<16x128xf32, #tpu.memory_space<vmem>>, vector<16x128xf32>
    tpu.vector_store %arg6[%c0_15, %c0_16], %12 {strides = array<i32>} : memref<16x128xf32, #tpu.memory_space<vmem>>, vector<16x128xf32>,
    %c0_17 = arith.constant 0 : index
    %c2 = arith.constant 2 : index
    %c0_18 = arith.constant 0 : index
    %14 = vector.load %arg2[%c0_17, %c2, %c0_18] : memref<1x48x512xbf16, #tpu.memory_space<vmem>>, vector<1x16x512xbf16>
    %15 = vector.shape_cast %14 : vector<1x16x512xbf16> to vector<16x512xbf16>
    %c2_19 = arith.constant 2 : index
    %c0_20 = arith.constant 0 : index
    %c0_21 = arith.constant 0 : index
    %16 = vector.load %arg3[%c2_19, %c0_20, %c0_21] : memref<16x512x128xbf16, #tpu.memory_space<vmem>>, vector<1x512x128xbf16>
    %17 = vector.shape_cast %16 : vector<1x512x128xbf16> to vector<512x128xbf16>
    %cst_22 = arith.constant dense<0.000000e+00> : vector<16x128xf32>
    %18 = tpu.matmul %15, %17, %cst_22 {dimension_numbers = #tpu.dot_dimension_numbers<[1], [0], [0], [1], [0, 0, 1, 1], [], []>} : vector<16x512xbf16>, vector<512x128xbf16>, vector<16x128xf32> -> vector<16x128xf32>
    %c0_23 = arith.constant 0 : index
    %c0_24 = arith.constant 0 : index
    %19 = vector.load %arg6[%c0_23, %c0_24] : memref<16x128xf32, #tpu.memory_space<vmem>>, vector<16x128xf32>
    %20 = arith.addf %19, %18 : vector<16x128xf32>
    %c0_25 = arith.constant 0 : index
    %c0_26 = arith.constant 0 : index
    %21 = vector.load %arg6[%c0_25, %c0_26] : memref<16x128xf32, #tpu.memory_space<vmem>>, vector<16x128xf32>
    tpu.vector_store %arg6[%c0_25, %c0_26], %20 {strides = array<i32>} : memref<16x128xf32, #tpu.memory_space<vmem>>, vector<16x128xf32>,
    %c0_27 = arith.constant 0 : index
    %c3 = arith.constant 3 : index
    %c0_28 = arith.constant 0 : index
    %22 = vector.load %arg2[%c0_27, %c3, %c0_28] : memref<1x48x512xbf16, #tpu.memory_space<vmem>>, vector<1x16x512xbf16>
    %23 = vector.shape_cast %22 : vector<1x16x512xbf16> to vector<16x512xbf16>
    %c3_29 = arith.constant 3 : index
    %c0_30 = arith.constant 0 : index
    %c0_31 = arith.constant 0 : index
    %24 = vector.load %arg3[%c3_29, %c0_30, %c0_31] : memref<16x512x128xbf16, #tpu.memory_space<vmem>>, vector<1x512x128xbf16>
    %25 = vector.shape_cast %24 : vector<1x512x128xbf16> to vector<512x128xbf16>
    %cst_32 = arith.constant dense<0.000000e+00> : vector<16x128xf32>
    %26 = tpu.matmul %23, %25, %cst_32 {dimension_numbers = #tpu.dot_dimension_numbers<[1], [0], [0], [1], [0, 0, 1, 1], [], []>} : vector<16x512xbf16>, vector<512x128xbf16>, vector<16x128xf32> -> vector<16x128xf32>
    %c0_33 = arith.constant 0 : index
    %c0_34 = arith.constant 0 : index
    %27 = vector.load %arg6[%c0_33, %c0_34] : memref<16x128xf32, #tpu.memory_space<vmem>>, vector<16x128xf32>
    %28 = arith.addf %27, %26 : vector<16x128xf32>
    %c0_35 = arith.constant 0 : index
    %c0_36 = arith.constant 0 : index
    %29 = vector.load %arg6[%c0_35, %c0_36] : memref<16x128xf32, #tpu.memory_space<vmem>>, vector<16x128xf32>
    tpu.vector_store %arg6[%c0_35, %c0_36], %28 {strides = array<i32>} : memref<16x128xf32, #tpu.memory_space<vmem>>, vector<16x128xf32>,
    %c0_37 = arith.constant 0 : index
    %c8 = arith.constant 8 : index
    %c0_38 = arith.constant 0 : index
    %30 = vector.load %arg2[%c0_37, %c8, %c0_38] : memref<1x48x512xbf16, #tpu.memory_space<vmem>>, vector<1x16x512xbf16>
    %31 = vector.shape_cast %30 : vector<1x16x512xbf16> to vector<16x512xbf16>
    %c4 = arith.constant 4 : index
    %c0_39 = arith.constant 0 : index
    %c0_40 = arith.constant 0 : index
    %32 = vector.load %arg3[%c4, %c0_39, %c0_40] : memref<16x512x128xbf16, #tpu.memory_space<vmem>>, vector<1x512x128xbf16>
    %33 = vector.shape_cast %32 : vector<1x512x128xbf16> to vector<512x128xbf16>
    %cst_41 = arith.constant dense<0.000000e+00> : vector<16x128xf32>
    %34 = tpu.matmul %31, %33, %cst_41 {dimension_numbers = #tpu.dot_dimension_numbers<[1], [0], [0], [1], [0, 0, 1, 1], [], []>} : vector<16x512xbf16>, vector<512x128xbf16>, vector<16x128xf32> -> vector<16x128xf32>
    %c0_42 = arith.constant 0 : index
    %c0_43 = arith.constant 0 : index
    %35 = vector.load %arg6[%c0_42, %c0_43] : memref<16x128xf32, #tpu.memory_space<vmem>>, vector<16x128xf32>
    %36 = arith.addf %35, %34 : vector<16x128xf32>
    %c0_44 = arith.constant 0 : index
    %c0_45 = arith.constant 0 : index
    %37 = vector.load %arg6[%c0_44, %c0_45] : memref<16x128xf32, #tpu.memory_space<vmem>>, vector<16x128xf32>
    tpu.vector_store %arg6[%c0_44, %c0_45], %36 {strides = array<i32>} : memref<16x128xf32, #tpu.memory_space<vmem>>, vector<16x128xf32>,
    %c0_46 = arith.constant 0 : index
    %c9 = arith.constant 9 : index
    %c0_47 = arith.constant 0 : index
    %38 = vector.load %arg2[%c0_46, %c9, %c0_47] : memref<1x48x512xbf16, #tpu.memory_space<vmem>>, vector<1x16x512xbf16>
    %39 = vector.shape_cast %38 : vector<1x16x512xbf16> to vector<16x512xbf16>
    %c5 = arith.constant 5 : index
    %c0_48 = arith.constant 0 : index
    %c0_49 = arith.constant 0 : index
    %40 = vector.load %arg3[%c5, %c0_48, %c0_49] : memref<16x512x128xbf16, #tpu.memory_space<vmem>>, vector<1x512x128xbf16>
    %41 = vector.shape_cast %40 : vector<1x512x128xbf16> to vector<512x128xbf16>
    %cst_50 = arith.constant dense<0.000000e+00> : vector<16x128xf32>
    %42 = tpu.matmul %39, %41, %cst_50 {dimension_numbers = #tpu.dot_dimension_numbers<[1], [0], [0], [1], [0, 0, 1, 1], [], []>} : vector<16x512xbf16>, vector<512x128xbf16>, vector<16x128xf32> -> vector<16x128xf32>
    %c0_51 = arith.constant 0 : index
    %c0_52 = arith.constant 0 : index
    %43 = vector.load %arg6[%c0_51, %c0_52] : memref<16x128xf32, #tpu.memory_space<vmem>>, vector<16x128xf32>
    %44 = arith.addf %43, %42 : vector<16x128xf32>
    %c0_53 = arith.constant 0 : index
    %c0_54 = arith.constant 0 : index
    %45 = vector.load %arg6[%c0_53, %c0_54] : memref<16x128xf32, #tpu.memory_space<vmem>>, vector<16x128xf32>
    tpu.vector_store %arg6[%c0_53, %c0_54], %44 {strides = array<i32>} : memref<16x128xf32, #tpu.memory_space<vmem>>, vector<16x128xf32>,
    %c0_55 = arith.constant 0 : index
    %c10 = arith.constant 10 : index
    %c0_56 = arith.constant 0 : index
    %46 = vector.load %arg2[%c0_55, %c10, %c0_56] : memref<1x48x512xbf16, #tpu.memory_space<vmem>>, vector<1x16x512xbf16>
    %47 = vector.shape_cast %46 : vector<1x16x512xbf16> to vector<16x512xbf16>
    %c6 = arith.constant 6 : index
    %c0_57 = arith.constant 0 : index
    %c0_58 = arith.constant 0 : index
    %48 = vector.load %arg3[%c6, %c0_57, %c0_58] : memref<16x512x128xbf16, #tpu.memory_space<vmem>>, vector<1x512x128xbf16>
    %49 = vector.shape_cast %48 : vector<1x512x128xbf16> to vector<512x128xbf16>
    %cst_59 = arith.constant dense<0.000000e+00> : vector<16x128xf32>
    %50 = tpu.matmul %47, %49, %cst_59 {dimension_numbers = #tpu.dot_dimension_numbers<[1], [0], [0], [1], [0, 0, 1, 1], [], []>} : vector<16x512xbf16>, vector<512x128xbf16>, vector<16x128xf32> -> vector<16x128xf32>
    %c0_60 = arith.constant 0 : index
    %c0_61 = arith.constant 0 : index
    %51 = vector.load %arg6[%c0_60, %c0_61] : memref<16x128xf32, #tpu.memory_space<vmem>>, vector<16x128xf32>
    %52 = arith.addf %51, %50 : vector<16x128xf32>
    %c0_62 = arith.constant 0 : index
    %c0_63 = arith.constant 0 : index
    %53 = vector.load %arg6[%c0_62, %c0_63] : memref<16x128xf32, #tpu.memory_space<vmem>>, vector<16x128xf32>
    tpu.vector_store %arg6[%c0_62, %c0_63], %52 {strides = array<i32>} : memref<16x128xf32, #tpu.memory_space<vmem>>, vector<16x128xf32>,
    %c0_64 = arith.constant 0 : index
    %c11 = arith.constant 11 : index
    %c0_65 = arith.constant 0 : index
    %54 = vector.load %arg2[%c0_64, %c11, %c0_65] : memref<1x48x512xbf16, #tpu.memory_space<vmem>>, vector<1x16x512xbf16>
    %55 = vector.shape_cast %54 : vector<1x16x512xbf16> to vector<16x512xbf16>
    %c7 = arith.constant 7 : index
    %c0_66 = arith.constant 0 : index
    %c0_67 = arith.constant 0 : index
    %56 = vector.load %arg3[%c7, %c0_66, %c0_67] : memref<16x512x128xbf16, #tpu.memory_space<vmem>>, vector<1x512x128xbf16>
    %57 = vector.shape_cast %56 : vector<1x512x128xbf16> to vector<512x128xbf16>
    %cst_68 = arith.constant dense<0.000000e+00> : vector<16x128xf32>
    %58 = tpu.matmul %55, %57, %cst_68 {dimension_numbers = #tpu.dot_dimension_numbers<[1], [0], [0], [1], [0, 0, 1, 1], [], []>} : vector<16x512xbf16>, vector<512x128xbf16>, vector<16x128xf32> -> vector<16x128xf32>
    %c0_69 = arith.constant 0 : index
    %c0_70 = arith.constant 0 : index
    %59 = vector.load %arg6[%c0_69, %c0_70] : memref<16x128xf32, #tpu.memory_space<vmem>>, vector<16x128xf32>
    %60 = arith.addf %59, %58 : vector<16x128xf32>
    %c0_71 = arith.constant 0 : index
    %c0_72 = arith.constant 0 : index
    %61 = vector.load %arg6[%c0_71, %c0_72] : memref<16x128xf32, #tpu.memory_space<vmem>>, vector<16x128xf32>
    tpu.vector_store %arg6[%c0_71, %c0_72], %60 {strides = array<i32>} : memref<16x128xf32, #tpu.memory_space<vmem>>, vector<16x128xf32>,
    %c0_73 = arith.constant 0 : index
    %c16 = arith.constant 16 : index
    %c0_74 = arith.constant 0 : index
    %62 = vector.load %arg2[%c0_73, %c16, %c0_74] : memref<1x48x512xbf16, #tpu.memory_space<vmem>>, vector<1x16x512xbf16>
    %63 = vector.shape_cast %62 : vector<1x16x512xbf16> to vector<16x512xbf16>
    %c8_75 = arith.constant 8 : index
    %c0_76 = arith.constant 0 : index
    %c0_77 = arith.constant 0 : index
    %64 = vector.load %arg3[%c8_75, %c0_76, %c0_77] : memref<16x512x128xbf16, #tpu.memory_space<vmem>>, vector<1x512x128xbf16>
    %65 = vector.shape_cast %64 : vector<1x512x128xbf16> to vector<512x128xbf16>
    %cst_78 = arith.constant dense<0.000000e+00> : vector<16x128xf32>
    %66 = tpu.matmul %63, %65, %cst_78 {dimension_numbers = #tpu.dot_dimension_numbers<[1], [0], [0], [1], [0, 0, 1, 1], [], []>} : vector<16x512xbf16>, vector<512x128xbf16>, vector<16x128xf32> -> vector<16x128xf32>
    %c0_79 = arith.constant 0 : index
    %c0_80 = arith.constant 0 : index
    %67 = vector.load %arg6[%c0_79, %c0_80] : memref<16x128xf32, #tpu.memory_space<vmem>>, vector<16x128xf32>
    %68 = arith.addf %67, %66 : vector<16x128xf32>
    %c0_81 = arith.constant 0 : index
    %c0_82 = arith.constant 0 : index
    %69 = vector.load %arg6[%c0_81, %c0_82] : memref<16x128xf32, #tpu.memory_space<vmem>>, vector<16x128xf32>
    tpu.vector_store %arg6[%c0_81, %c0_82], %68 {strides = array<i32>} : memref<16x128xf32, #tpu.memory_space<vmem>>, vector<16x128xf32>,
    %c0_83 = arith.constant 0 : index
    %c17 = arith.constant 17 : index
    %c0_84 = arith.constant 0 : index
    %70 = vector.load %arg2[%c0_83, %c17, %c0_84] : memref<1x48x512xbf16, #tpu.memory_space<vmem>>, vector<1x16x512xbf16>
    %71 = vector.shape_cast %70 : vector<1x16x512xbf16> to vector<16x512xbf16>
    %c9_85 = arith.constant 9 : index
    %c0_86 = arith.constant 0 : index
    %c0_87 = arith.constant 0 : index
    %72 = vector.load %arg3[%c9_85, %c0_86, %c0_87] : memref<16x512x128xbf16, #tpu.memory_space<vmem>>, vector<1x512x128xbf16>
    %73 = vector.shape_cast %72 : vector<1x512x128xbf16> to vector<512x128xbf16>
    %cst_88 = arith.constant dense<0.000000e+00> : vector<16x128xf32>
    %74 = tpu.matmul %71, %73, %cst_88 {dimension_numbers = #tpu.dot_dimension_numbers<[1], [0], [0], [1], [0, 0, 1, 1], [], []>} : vector<16x512xbf16>, vector<512x128xbf16>, vector<16x128xf32> -> vector<16x128xf32>
    %c0_89 = arith.constant 0 : index
    %c0_90 = arith.constant 0 : index
    %75 = vector.load %arg6[%c0_89, %c0_90] : memref<16x128xf32, #tpu.memory_space<vmem>>, vector<16x128xf32>
    %76 = arith.addf %75, %74 : vector<16x128xf32>
    %c0_91 = arith.constant 0 : index
    %c0_92 = arith.constant 0 : index
    %77 = vector.load %arg6[%c0_91, %c0_92] : memref<16x128xf32, #tpu.memory_space<vmem>>, vector<16x128xf32>
    tpu.vector_store %arg6[%c0_91, %c0_92], %76 {strides = array<i32>} : memref<16x128xf32, #tpu.memory_space<vmem>>, vector<16x128xf32>,
    %c0_93 = arith.constant 0 : index
    %c18 = arith.constant 18 : index
    %c0_94 = arith.constant 0 : index
    %78 = vector.load %arg2[%c0_93, %c18, %c0_94] : memref<1x48x512xbf16, #tpu.memory_space<vmem>>, vector<1x16x512xbf16>
    %79 = vector.shape_cast %78 : vector<1x16x512xbf16> to vector<16x512xbf16>
    %c10_95 = arith.constant 10 : index
    %c0_96 = arith.constant 0 : index
    %c0_97 = arith.constant 0 : index
    %80 = vector.load %arg3[%c10_95, %c0_96, %c0_97] : memref<16x512x128xbf16, #tpu.memory_space<vmem>>, vector<1x512x128xbf16>
    %81 = vector.shape_cast %80 : vector<1x512x128xbf16> to vector<512x128xbf16>
    %cst_98 = arith.constant dense<0.000000e+00> : vector<16x128xf32>
    %82 = tpu.matmul %79, %81, %cst_98 {dimension_numbers = #tpu.dot_dimension_numbers<[1], [0], [0], [1], [0, 0, 1, 1], [], []>} : vector<16x512xbf16>, vector<512x128xbf16>, vector<16x128xf32> -> vector<16x128xf32>
    %c0_99 = arith.constant 0 : index
    %c0_100 = arith.constant 0 : index
    %83 = vector.load %arg6[%c0_99, %c0_100] : memref<16x128xf32, #tpu.memory_space<vmem>>, vector<16x128xf32>
    %84 = arith.addf %83, %82 : vector<16x128xf32>
    %c0_101 = arith.constant 0 : index
    %c0_102 = arith.constant 0 : index
    %85 = vector.load %arg6[%c0_101, %c0_102] : memref<16x128xf32, #tpu.memory_space<vmem>>, vector<16x128xf32>
    tpu.vector_store %arg6[%c0_101, %c0_102], %84 {strides = array<i32>} : memref<16x128xf32, #tpu.memory_space<vmem>>, vector<16x128xf32>,
    %c0_103 = arith.constant 0 : index
    %c19 = arith.constant 19 : index
    %c0_104 = arith.constant 0 : index
    %86 = vector.load %arg2[%c0_103, %c19, %c0_104] : memref<1x48x512xbf16, #tpu.memory_space<vmem>>, vector<1x16x512xbf16>
    %87 = vector.shape_cast %86 : vector<1x16x512xbf16> to vector<16x512xbf16>
    %c11_105 = arith.constant 11 : index
    %c0_106 = arith.constant 0 : index
    %c0_107 = arith.constant 0 : index
    %88 = vector.load %arg3[%c11_105, %c0_106, %c0_107] : memref<16x512x128xbf16, #tpu.memory_space<vmem>>, vector<1x512x128xbf16>
    %89 = vector.shape_cast %88 : vector<1x512x128xbf16> to vector<512x128xbf16>
    %cst_108 = arith.constant dense<0.000000e+00> : vector<16x128xf32>
    %90 = tpu.matmul %87, %89, %cst_108 {dimension_numbers = #tpu.dot_dimension_numbers<[1], [0], [0], [1], [0, 0, 1, 1], [], []>} : vector<16x512xbf16>, vector<512x128xbf16>, vector<16x128xf32> -> vector<16x128xf32>
    %c0_109 = arith.constant 0 : index
    %c0_110 = arith.constant 0 : index
    %91 = vector.load %arg6[%c0_109, %c0_110] : memref<16x128xf32, #tpu.memory_space<vmem>>, vector<16x128xf32>
    %92 = arith.addf %91, %90 : vector<16x128xf32>
    %c0_111 = arith.constant 0 : index
    %c0_112 = arith.constant 0 : index
    %93 = vector.load %arg6[%c0_111, %c0_112] : memref<16x128xf32, #tpu.memory_space<vmem>>, vector<16x128xf32>
    tpu.vector_store %arg6[%c0_111, %c0_112], %92 {strides = array<i32>} : memref<16x128xf32, #tpu.memory_space<vmem>>, vector<16x128xf32>,
    %c0_113 = arith.constant 0 : index
    %c24 = arith.constant 24 : index
    %c0_114 = arith.constant 0 : index
    %94 = vector.load %arg2[%c0_113, %c24, %c0_114] : memref<1x48x512xbf16, #tpu.memory_space<vmem>>, vector<1x16x512xbf16>
    %95 = vector.shape_cast %94 : vector<1x16x512xbf16> to vector<16x512xbf16>
    %c12 = arith.constant 12 : index
    %c0_115 = arith.constant 0 : index
    %c0_116 = arith.constant 0 : index
    %96 = vector.load %arg3[%c12, %c0_115, %c0_116] : memref<16x512x128xbf16, #tpu.memory_space<vmem>>, vector<1x512x128xbf16>
    %97 = vector.shape_cast %96 : vector<1x512x128xbf16> to vector<512x128xbf16>
    %cst_117 = arith.constant dense<0.000000e+00> : vector<16x128xf32>
    %98 = tpu.matmul %95, %97, %cst_117 {dimension_numbers = #tpu.dot_dimension_numbers<[1], [0], [0], [1], [0, 0, 1, 1], [], []>} : vector<16x512xbf16>, vector<512x128xbf16>, vector<16x128xf32> -> vector<16x128xf32>
    %c0_118 = arith.constant 0 : index
    %c0_119 = arith.constant 0 : index
    %99 = vector.load %arg6[%c0_118, %c0_119] : memref<16x128xf32, #tpu.memory_space<vmem>>, vector<16x128xf32>
    %100 = arith.addf %99, %98 : vector<16x128xf32>
    %c0_120 = arith.constant 0 : index
    %c0_121 = arith.constant 0 : index
    %101 = vector.load %arg6[%c0_120, %c0_121] : memref<16x128xf32, #tpu.memory_space<vmem>>, vector<16x128xf32>
    tpu.vector_store %arg6[%c0_120, %c0_121], %100 {strides = array<i32>} : memref<16x128xf32, #tpu.memory_space<vmem>>, vector<16x128xf32>,
    %c0_122 = arith.constant 0 : index
    %c25 = arith.constant 25 : index
    %c0_123 = arith.constant 0 : index
    %102 = vector.load %arg2[%c0_122, %c25, %c0_123] : memref<1x48x512xbf16, #tpu.memory_space<vmem>>, vector<1x16x512xbf16>
    %103 = vector.shape_cast %102 : vector<1x16x512xbf16> to vector<16x512xbf16>
    %c13 = arith.constant 13 : index
    %c0_124 = arith.constant 0 : index
    %c0_125 = arith.constant 0 : index
    %104 = vector.load %arg3[%c13, %c0_124, %c0_125] : memref<16x512x128xbf16, #tpu.memory_space<vmem>>, vector<1x512x128xbf16>
    %105 = vector.shape_cast %104 : vector<1x512x128xbf16> to vector<512x128xbf16>
    %cst_126 = arith.constant dense<0.000000e+00> : vector<16x128xf32>
    %106 = tpu.matmul %103, %105, %cst_126 {dimension_numbers = #tpu.dot_dimension_numbers<[1], [0], [0], [1], [0, 0, 1, 1], [], []>} : vector<16x512xbf16>, vector<512x128xbf16>, vector<16x128xf32> -> vector<16x128xf32>
    %c0_127 = arith.constant 0 : index
    %c0_128 = arith.constant 0 : index
    %107 = vector.load %arg6[%c0_127, %c0_128] : memref<16x128xf32, #tpu.memory_space<vmem>>, vector<16x128xf32>
    %108 = arith.addf %107, %106 : vector<16x128xf32>
    %c0_129 = arith.constant 0 : index
    %c0_130 = arith.constant 0 : index
    %109 = vector.load %arg6[%c0_129, %c0_130] : memref<16x128xf32, #tpu.memory_space<vmem>>, vector<16x128xf32>
    tpu.vector_store %arg6[%c0_129, %c0_130], %108 {strides = array<i32>} : memref<16x128xf32, #tpu.memory_space<vmem>>, vector<16x128xf32>,
    %c0_131 = arith.constant 0 : index
    %c26 = arith.constant 26 : index
    %c0_132 = arith.constant 0 : index
    %110 = vector.load %arg2[%c0_131, %c26, %c0_132] : memref<1x48x512xbf16, #tpu.memory_space<vmem>>, vector<1x16x512xbf16>
    %111 = vector.shape_cast %110 : vector<1x16x512xbf16> to vector<16x512xbf16>
    %c14 = arith.constant 14 : index
    %c0_133 = arith.constant 0 : index
    %c0_134 = arith.constant 0 : index
    %112 = vector.load %arg3[%c14, %c0_133, %c0_134] : memref<16x512x128xbf16, #tpu.memory_space<vmem>>, vector<1x512x128xbf16>
    %113 = vector.shape_cast %112 : vector<1x512x128xbf16> to vector<512x128xbf16>
    %cst_135 = arith.constant dense<0.000000e+00> : vector<16x128xf32>
    %114 = tpu.matmul %111, %113, %cst_135 {dimension_numbers = #tpu.dot_dimension_numbers<[1], [0], [0], [1], [0, 0, 1, 1], [], []>} : vector<16x512xbf16>, vector<512x128xbf16>, vector<16x128xf32> -> vector<16x128xf32>
    %c0_136 = arith.constant 0 : index
    %c0_137 = arith.constant 0 : index
    %115 = vector.load %arg6[%c0_136, %c0_137] : memref<16x128xf32, #tpu.memory_space<vmem>>, vector<16x128xf32>
    %116 = arith.addf %115, %114 : vector<16x128xf32>
    %c0_138 = arith.constant 0 : index
    %c0_139 = arith.constant 0 : index
    %117 = vector.load %arg6[%c0_138, %c0_139] : memref<16x128xf32, #tpu.memory_space<vmem>>, vector<16x128xf32>
    tpu.vector_store %arg6[%c0_138, %c0_139], %116 {strides = array<i32>} : memref<16x128xf32, #tpu.memory_space<vmem>>, vector<16x128xf32>,
    %c0_140 = arith.constant 0 : index
    %c27 = arith.constant 27 : index
    %c0_141 = arith.constant 0 : index
    %118 = vector.load %arg2[%c0_140, %c27, %c0_141] : memref<1x48x512xbf16, #tpu.memory_space<vmem>>, vector<1x16x512xbf16>
    %119 = vector.shape_cast %118 : vector<1x16x512xbf16> to vector<16x512xbf16>
    %c15 = arith.constant 15 : index
    %c0_142 = arith.constant 0 : index
    %c0_143 = arith.constant 0 : index
    %120 = vector.load %arg3[%c15, %c0_142, %c0_143] : memref<16x512x128xbf16, #tpu.memory_space<vmem>>, vector<1x512x128xbf16>
    %121 = vector.shape_cast %120 : vector<1x512x128xbf16> to vector<512x128xbf16>
    %cst_144 = arith.constant dense<0.000000e+00> : vector<16x128xf32>
    %122 = tpu.matmul %119, %121, %cst_144 {dimension_numbers = #tpu.dot_dimension_numbers<[1], [0], [0], [1], [0, 0, 1, 1], [], []>} : vector<16x512xbf16>, vector<512x128xbf16>, vector<16x128xf32> -> vector<16x128xf32>
    %c0_145 = arith.constant 0 : index
    %c0_146 = arith.constant 0 : index
    %123 = vector.load %arg6[%c0_145, %c0_146] : memref<16x128xf32, #tpu.memory_space<vmem>>, vector<16x128xf32>
    %124 = arith.addf %123, %122 : vector<16x128xf32>
    %c0_147 = arith.constant 0 : index
    %c0_148 = arith.constant 0 : index
    %125 = vector.load %arg6[%c0_147, %c0_148] : memref<16x128xf32, #tpu.memory_space<vmem>>, vector<16x128xf32>
    tpu.vector_store %arg6[%c0_147, %c0_148], %124 {strides = array<i32>} : memref<16x128xf32, #tpu.memory_space<vmem>>, vector<16x128xf32>,
    %c0_149 = arith.constant 0 : index
    %c0_150 = arith.constant 0 : index
    %126 = vector.load %arg6[%c0_149, %c0_150] : memref<16x128xf32, #tpu.memory_space<vmem>>, vector<16x128xf32>
    %c0_151 = arith.constant 0 : index
    %c0_152 = arith.constant 0 : index
    %127 = vector.load %arg4[%c0_151, %c0_152] : memref<1x128xf32, #tpu.memory_space<vmem>>, vector<1x128xf32>
    %128 = vector.broadcast %127 : vector<1x128xf32> to vector<16x128xf32>
    %129 = arith.addf %126, %128 : vector<16x128xf32>
    %c0_153 = arith.constant 0 : index
    %c0_154 = arith.constant 0 : index
    %c0_155 = arith.constant 0 : index
    %130 = vector.load %arg5[%c0_153, %c0_154, %c0_155] : memref<1x16x128xf32, #tpu.memory_space<vmem>>, vector<1x16x128xf32>
    %131 = vector.shape_cast %130 : vector<1x16x128xf32> to vector<16x128xf32>
    %132 = vector.shape_cast %129 : vector<16x128xf32> to vector<1x16x128xf32>
    tpu.vector_store %arg5[%c0_153, %c0_154, %c0_155], %132 {strides = array<i32>} : memref<1x16x128xf32, #tpu.memory_space<vmem>>, vector<1x16x128xf32>,
    return
  }
  func.func @transform_0(%arg0: i32, %arg1: i32) -> (i32, i32, i32) {
    %c0_i32 = arith.constant 0 : i32
    %c0_i32_0 = arith.constant 0 : i32
    %c0_i32_1 = arith.constant 0 : i32
    return %arg0, %c0_i32, %c0_i32_0 : i32, i32, i32
  }
  func.func @transform_1(%arg0: i32, %arg1: i32) -> (i32, i32, i32) {
    %c0_i32 = arith.constant 0 : i32
    %c0_i32_0 = arith.constant 0 : i32
    %c0_i32_1 = arith.constant 0 : i32
    %c0_i32_2 = arith.constant 0 : i32
    return %c0_i32, %c0_i32_0, %c0_i32_1 : i32, i32, i32
  }
  func.func @transform_2(%arg0: i32, %arg1: i32) -> (i32, i32) {
    %c0_i32 = arith.constant 0 : i32
    %c0_i32_0 = arith.constant 0 : i32
    %c0_i32_1 = arith.constant 0 : i32
    return %c0_i32, %c0_i32_0 : i32, i32
  }
  func.func @transform_3(%arg0: i32, %arg1: i32) -> (i32, i32, i32) {
    %c0_i32 = arith.constant 0 : i32
    %c0_i32_0 = arith.constant 0 : i32
    return %arg0, %arg1, %c0_i32 : i32, i32, i32
  }
}

</mosaic_0001>

<bundles_post_ra>
// kernel: discriminator_forward.5
= control target key start
LH: loop header
LB: loop body
LE: loop exit
PB: predicated region body
PF: predicated region fallthrough
CT: control target
= control target key end

     0   :  { %8 = vsyncpa [#allocation4], 0  ;;  %s2466_s0 = inlined_call_operand.hbm [shape: bf16[2,384,48], index: 0, kind: input, shape index: {}]   ;;  %s2467_s1 = inlined_call_operand.hbm [shape: bf16[1,48,64], index: 1, kind: input, shape index: {}]   ;;  %s2468_s2 = inlined_call_operand.hbm [shape: f32[1,64], index: 2, kind: input, shape index: {}]   ;;  %s2469_s3 = inlined_call_operand.hbm [shape: bf16[2,384,64], index: 3, kind: output, shape index: {}]  }
   0x1   :  { %10 = vsyncpa [#allocation4 + $0x1], 0 }
   0x2   :  { %11 = vsyncpa [#allocation7], 0 }
   0x3   :  { %12 = vsyncpa [#allocation5], 0 }
   0x4   :  { %14 = vsyncpa [#allocation5 + $0x1], 0  ;;  %s1946_s12 = smov 0   ;;  %s1948_s13 = smov 0  }
   0x5   :  { %s1950_s14 = smov 0   ;;  %s1952_s15 = smov 0  }
   0x6   :  { %s1954_s16 = smov 0   ;;  %s1956_s17 = smov 0  }
   0x7 LB: > { %s1378_s18 = sadd.s32 4294967295, %s1916_s17   ;;  %s1379_s19 = sadd.s32 4294967294, %s1916_s17   ;;  %s1916_s17 = sphi %s1956_s17, %s20_s17   ;;  %s1912_s16 = sphi %s1954_s16, %s2491_s16   ;;  %s1908_s15 = sphi %s1952_s15, %s2490_s15   ;;  %s1904_s14 = sphi %s1950_s14, %s2489_s14   ;;  %s1900_s13 = sphi %s1948_s13, %s2488_s13   ;;  %s1896_s12 = sphi %s1946_s12, %s2487_s12  }
   0x8   : > { %p52_p0 = scmp.ne.s32.totalorder %s1900_s13, %s1896_s12  ;;  %p1980_p1 = scmp.eq.s32.totalorder %s1378_s18, 0 }
   0x9   : > { %p1984_p2 = scmp.eq.s32.totalorder %s1378_s18, 1  ;;  %p126_p3 = scmp.eq.s32.totalorder %s1379_s19, 1 }
   0xa   : > { %s2474_s20 = scalar_select %p1980_p1, 1, 0 }
   0xb   : > { %p1990_p4 = por %p1980_p1, %p52_p0  ;;  %p1380_p5 = scmp.ge.s32.totalorder %s1916_s17, 1 }
   0xc   : > { %p1995_p6 = por %p126_p3, %p52_p0  ;;  %p133_p7 = scmp.lt.s32.totalorder %s1916_s17, 3 }
   0xd   : > { %s2476_s22 = scalar_select %p1990_p4, 1, 0 }
   0xe   : > { %s2477_s23 = scalar_select %p1995_p6, 1, 0 }
   0xf   : > { %p2000_p8 = pnand %p1380_p5, %p133_p7  ;;  %s1918_s25 = smov [#allocation6]  }
  0x10   : > { %s145_s26 = sshll.u32 %s1918_s25, 4  ;;  %s1919_s28 = smov [#allocation8]   ;;  %s2004_s26 = int_to_ptr.vmem [resolvable:$true] %s145_s26 }
  0x11   : > { %p1642_p9 = pneg %p2000_p8  ;;  %s159_s29 = sshll.u32 %s1919_s28, 4  ;;  %s2015_s29 = int_to_ptr.vmem [resolvable:$true] %s159_s29 }
  0x12   : > { %s1744_s5 = scalar_lea.hbm %s2467_s1, 384 }
  0x13   : > { %p2011_p11 = pnand %p1642_p9, %p1980_p1  ;;  %p1745_p12 = scmp.ne.s32.totalorder %s2467_s1, %s1744_s5 }
  0x14   : > { %p1751_p5 = scmp.lt.u32.totalorder %s1744_s5, %s2467_s1 }
  0x15   : > { %p1746_p13 = pneg %p2011_p11 }
  0x17   : > { %p1747_p0 = pnand %p1746_p13, %p1745_p12 }
  0x19   : > { %p1748_p3 = pneg %p1747_p0 }
  0x1b   : > { %p1753_p7 = pnand %p1751_p5, %p1748_p3 }
  0x1d   : > { %1756 = shalt.err (!%p1753_p7)
}
  0x1e   : > { %s1757_s10 = scalar_lea.vmem %s2004_s26, 384  ;;  %p1765_p1 = scmp.lt.s32.totalorder %s2004_s26, %s2004_s26 }
  0x1f   : > { %p1758_p9 = scmp.ne.s32.totalorder %s2004_s26, %s1757_s10  ;;  %p1766_p12 = scmp.lt.s32.totalorder %s1757_s10, %s1757_s10 }
  0x21   : > { %p1760_p10 = pnand %p1758_p9, %p1746_p13  ;;  %p1767_p0 = por %p1766_p12, %p1765_p1 }
  0x23   : > { %p1761_p6 = pneg %p1760_p10 }
  0x25   : > { %p1768_p4 = pnand %p1767_p0, %p1761_p6 }
  0x27   : > { %1771 = shalt.err (!%p1768_p4)
}
  0x28   : > { %s1920_s11 = smov 64   ;;  %s1921_s18 = smov 4  }
  0x29   : > { %1645 = dma.hbm_to_vmem [thread:$0]  (!%p2011_p11), %s2467_s1, 384, %s2004_s26, [#allocation7], %s1920_s11, %s1920_s11, %s1921_s18  }
  0x2a   : > { %s1772_s4 = scalar_lea.hbm %s2468_s2, 16 }
  0x2b   : > { %p1773_p1 = scmp.ne.s32.totalorder %s2468_s2, %s1772_s4  ;;  %p1779_p10 = scmp.lt.u32.totalorder %s1772_s4, %s2468_s2 }
  0x2d   : > { %p1775_p4 = pnand %p1773_p1, %p1746_p13 }
  0x2f   : > { %p1776_p6 = pneg %p1775_p4 }
  0x31   : > { %p1781_p3 = pnand %p1779_p10, %p1776_p6 }
  0x33   : > { %1784 = shalt.err (!%p1781_p3)
}
  0x34   : > { %s1785_s26 = scalar_lea.vmem %s2015_s29, 16  ;;  %s1792_s9 = scalar_lea.vmem %s2015_s29, 32 }
  0x35   : > { %p1786_p5 = scmp.ne.s32.totalorder %s2015_s29, %s1785_s26  ;;  %p1793_p12 = scmp.lt.s32.totalorder %s2015_s29, %s2015_s29 }
  0x36   : > { %p1794_p0 = scmp.lt.s32.totalorder %s1792_s9, %s1785_s26 }
  0x37   : > { %p1788_p7 = pnand %p1786_p5, %p1746_p13 }
  0x38   : > { %p1795_p1 = por %p1794_p0, %p1793_p12 }
  0x39   : > { %p1789_p9 = pneg %p1788_p7 }
  0x3b   : > { %p1796_p4 = pnand %p1795_p1, %p1789_p9 }
  0x3d   : > { %1799 = shalt.err (!%p1796_p4)
}
  0x3e   : > { %1648 = dma.hbm_to_vmem [thread:$0]  (!%p2011_p11), %s2468_s2, 16, %s2015_s29, [#allocation7]  }
  0x3f   : > { %s32_s25 = sadd.s32 1, %s1912_s16  ;;  %s39_s28 = sadd.s32 1, %s1904_s14 }
  0x40   : > { %p34_p13 = scmp.ge.s32.totalorder %s32_s25, 2  ;;  %p46_p6 = scmp.ne.s32.totalorder %s1904_s14, %s1900_s13 }
  0x41   : > { %p47_p10 = scmp.eq.s32.totalorder %s1916_s17, 0  ;;  %p1659_p3 = scmp.lt.s32.totalorder %s1916_s17, 2 }
  0x42   : > { %s2493_s25 = smov (%p34_p13, %s32_s25), 0  ;;  %p2083_p7 = por %p1984_p2, %p46_p6 }
  0x43   : > { %p48_p5 = por %p47_p10, %p46_p6  ;;  %s36_s30 = ssub.s32 %s1912_s16, %s2493_s25 }
  0x44   : > { %s2480_s27 = scalar_select %p2083_p7, 1, 0 }
  0x45   : > { %s170_s4 = sand.u32 1, %s1904_s14   ;;  %p37_p9 = scmp.eq.s32.totalorder %s36_s30, 0 }
  0x46   : > { %s1626_s29 = smul.u32 192, %s170_s4  ;;  %p2090_p11 = pnand %p1659_p3, %p48_p5 }
  0x47   : > { %s2095_s6 = scalar_select %p37_p9, %s1904_s14, %s39_s28  }
  0x48   : > { %s1627_s7 = smul.u32 3072, %s1912_s16  ;;  %s174_s8 = scalar_lea.vmem [#allocation3], %s1626_s29 }
  0x49   : > { %s181_s26 = sshll.u32 %s174_s8, 4  ;;  %s2105_s19 = scalar_lea.sflag [#allocation4], %s170_s4  ;;  %s2103_s26 = int_to_ptr.vmem [resolvable:$true] %s181_s26 }
  0x4a   : > { %s2101_s10 = scalar_lea.hbm %s2466_s0, %s1627_s7  ;;  %p1802_p12 = pneg %p2090_p11 }
  0x4b   : > { %s1800_s30 = scalar_lea.hbm %s2101_s10, 3072  ;;  %s1805_s7 = scalar_lea.hbm %s2466_s0, 6144 }
  0x4c   : > { %p1801_p2 = scmp.ne.s32.totalorder %s2101_s10, %s1800_s30  ;;  %p1806_p4 = scmp.lt.u32.totalorder %s2101_s10, %s2466_s0 }
  0x4d   : > { %p1807_p13 = scmp.lt.u32.totalorder %s1805_s7, %s1800_s30  ;;  %p1809_p10 = scmp.lt.u32.totalorder %s1800_s30, %s2101_s10 }
  0x4e   : > { %p1803_p0 = pnand %p1802_p12, %p1801_p2 }
  0x4f   : > { %p1808_p6 = por %p1807_p13, %p1806_p4 }
  0x50   : > { %p1804_p1 = pneg %p1803_p0 }
  0x51   : > { %p1810_p3 = por %p1809_p10, %p1808_p6 }
  0x53   : > { %p1811_p5 = pnand %p1810_p3, %p1804_p1 }
  0x55   : > { %1814 = shalt.err (!%p1811_p5)
}
  0x56   : > { %s1815_s4 = scalar_lea.vmem %s2103_s26, 3072  ;;  %s1922_s9 = smov [#allocation3]  }
  0x57   : > { %p1816_p9 = scmp.ne.s32.totalorder %s2103_s26, %s1815_s4  ;;  %s1820_s28 = sshll.u32 %s1922_s9, 4  ;;  %s1821_s28 = int_to_ptr.vmem [resolvable:$false] %s1820_s28 }
  0x58   : > { %s1822_s29 = scalar_lea.vmem %s1821_s28, 6144  ;;  %p1823_p7 = scmp.lt.s32.totalorder %s2103_s26, %s1821_s28 }
  0x59   : > { %p1818_p2 = pnand %p1816_p9, %p1802_p12  ;;  %p1824_p4 = scmp.lt.s32.totalorder %s1822_s29, %s1815_s4 }
  0x5b   : > { %p1819_p0 = pneg %p1818_p2  ;;  %p1825_p13 = por %p1824_p4, %p1823_p7 }
  0x5d   : > { %p1826_p6 = pnand %p1825_p13, %p1819_p0 }
  0x5f   : > { %1829 = shalt.err (!%p1826_p6)
}
  0x60   : > { %1652 = dma.hbm_to_vmem [thread:$0]  (!%p2090_p11), %s2101_s10, 3072, %s2103_s26, %s2105_s19, %s1920_s11, %s1920_s11, %s1921_s18  }
  0x61   : > { %193 = sbr.rel (%p2000_p8) target bundleno = 426 (0x1aa), region = 32  ;;  %s2139_s30 = sand.u32 (!%p2000_p8), 1, %s1900_s13  }
  0x62   : > { %s1628_s7 = smul.u32 (!%p2000_p8), 192, %s2139_s30  ;;  %s196_s8 = scalar_lea.sflag (!%p2000_p8), [#allocation4], %s2139_s30 }
  0x63   : > { %p2482_p7 = scmp.ne.s32.totalorder (!%p2000_p8), %s2476_s22, 0 }
  0x64   : > { %s2145_s5 = scalar_lea.vmem (!%p2000_p8), [#allocation3], %s1628_s7 }
  0x68   : > { %1883 = dma.done.wait (%p2482_p7), %s196_s8, 3072  }
  0x69   : > { %1885 = vsyncadd (%p2482_p7), %s196_s8, 4294964224  ;;  %p2483_p11 = scmp.ne.s32.totalorder %s2474_s20, 0 }
  0x6b   : > { %1887 = dma.done.wait (%p2483_p11), [#allocation7], 400  }
  0x6c   : > { %1889 = vsyncadd (%p2483_p11), [#allocation7], 4294966896  ;;  %v1717_v0 = vld [vmem:[#allocation6] sm:$0xff]   ;;  %v1718_v1 = vld [vmem:[#allocation6 + $0x8] sm:$0xff]   ;;  %vm424_vm0 = vcmask 392192   ;;  %vm722_vm1 = vcmask 523264  }
  0x6d   : > { %1566 = vmatprep.subr.bf16.mxu0 %v1717_v0  ;;  %1620 = vmatprep.subr.bf16.mxu1 %v1717_v0  ;;  %v1719_v2 = vld [vmem:[#allocation6 + $0x10] sm:$0xff]   ;;  %v1720_v3 = vld [vmem:[%s2145_s5] sm:$0xff]   ;;  %v1722_v5 = vld [vmem:[%s2145_s5 + $0x8] sm:$0xff]   ;;  %vm1210_vm2 = vcmask 519168   ;;  %s2229_s20 = scalar_lea.vmem [#allocation9], %s1628_s7  ;;  %s1629_s22 = smul.u32 3072, %s1908_s15 }
  0x6e   : > { %1567 = vmatpush3.bf16.msra.mxu0 %v1717_v0  ;;  %1623 = vmatpush3.bf16.msra.mxu1 %v1717_v0  ;;  %v1721_v4 = vld [vmem:[%s2145_s5 + $0x60] sm:$0xff]   ;;  %v1723_v6 = vld [vmem:[%s2145_s5 + $0x68] sm:$0xff]   ;;  %v1724_v7 = vld [vmem:[%s2145_s5 + $0x10] sm:$0xff]   ;;  %s1275_s24 = sshll.u32 %s2229_s20, 4  ;;  %s1260_s26 = scalar_lea.sflag [#allocation5], %s2139_s30  ;;  %s2415_s24 = int_to_ptr.vmem [resolvable:$true] %s1275_s24 }
  0x6f   : > { %1568 = vmatprep.subr.bf16.mxu0 %v1718_v1  ;;  %1621 = vmatprep.subr.bf16.mxu1 %v1718_v1  ;;  %v1725_v8 = vld [vmem:[%s2145_s5 + $0x70] sm:$0xff]   ;;  %v1726_v9 = vld [vmem:[%s2145_s5 + $0x18] sm:$0xff]   ;;  %v1728_v11 = vld [vmem:[%s2145_s5 + $0x20] sm:$0xff]   ;;  %s2413_s18 = scalar_lea.hbm %s2469_s3, %s1629_s22  ;;  %s1830_s10 = scalar_lea.vmem %s2415_s24, 3072 }
  0x70   : > { %1572 = vmatprep.mubr.msk.bf16.mxu0 %vm424_vm0, %v1720_v3  ;;  %1596 = vmatprep.mubr.msk.bf16.mxu1 %vm424_vm0, %v1721_v4  ;;  %v1727_v10 = vld [vmem:[%s2145_s5 + $0x78] sm:$0xff]   ;;  %v1729_v12 = vld [vmem:[%s2145_s5 + $0x80] sm:$0xff]   ;;  %v1730_v13 = vld [vmem:[%s2145_s5 + $0x28] sm:$0xff]   ;;  %p1831_p8 = scmp.ne.s32.totalorder %s2415_s24, %s1830_s10  ;;  %p2484_p12 = scmp.ne.s32.totalorder %s2480_s27, 0 }
  0x71   : > { %v1731_v14 = vld [vmem:[%s2145_s5 + $0x88] sm:$0xff]   ;;  %v1732_v15 = vld [vmem:[%s2145_s5 + $0x30] sm:$0xff]   ;;  %v1734_v17 = vld [vmem:[%s2145_s5 + $0x38] sm:$0xff]   ;;  %s1923_s19 = smov [#allocation9]  }
  0x72   : > { %1569 = vmatpush3.bf16.msra.mxu0 %v1718_v1  ;;  %1624 = vmatpush3.bf16.msra.mxu1 %v1718_v1  ;;  %v1733_v16 = vld [vmem:[%s2145_s5 + $0x90] sm:$0xff]   ;;  %v1735_v18 = vld [vmem:[%s2145_s5 + $0x98] sm:$0xff]   ;;  %v1736_v19 = vld [vmem:[%s2145_s5 + $0x40] sm:$0xff]   ;;  %p1832_p1 = pnand %p1831_p8, %p2484_p12  ;;  %s1834_s21 = sshll.u32 %s1923_s19, 4  ;;  %s1835_s21 = int_to_ptr.vmem [resolvable:$false] %s1834_s21 }
  0x73   : > { %1570 = vmatprep.subr.bf16.mxu0 %v1719_v2  ;;  %1622 = vmatprep.subr.bf16.mxu1 %v1719_v2  ;;  %v1737_v20 = vld [vmem:[%s2145_s5 + $0xa0] sm:$0xff]   ;;  %v1738_v21 = vld [vmem:[%s2145_s5 + $0x48] sm:$0xff]   ;;  %v1740_v23 = vld [vmem:[%s2145_s5 + $0x50] sm:$0xff]   ;;  %s1836_s4 = scalar_lea.vmem %s1835_s21, 6144  ;;  %p1837_p3 = scmp.lt.s32.totalorder %s2415_s24, %s1835_s21 }
  0x74   : > { %v1739_v22 = vld [vmem:[%s2145_s5 + $0xa8] sm:$0xff]   ;;  %v1741_v24 = vld [vmem:[%s2145_s5 + $0xb0] sm:$0xff]   ;;  %v1742_v25 = vld [vmem:[%s2145_s5 + $0x58] sm:$0xff]   ;;  %p1833_p10 = pneg %p1832_p1  ;;  %p1838_p5 = scmp.lt.s32.totalorder %s1836_s4, %s1830_s10 }
  0x75   : > { %v1743_v26 = vld [vmem:[%s2145_s5 + $0xb8] sm:$0xff]  }
  0x76   : > { %1571 = vmatpush3.bf16.msra.mxu0 %v1719_v2  ;;  %1625 = vmatpush3.bf16.msra.mxu1 %v1719_v2  ;;  %v2211_v35 = vld [vmem:[#allocation8] ss:$0 sm:$0xff]  ;;  %p1839_p9 = por %p1838_p5, %p1837_p3 }
  0x78   : > { %p1840_p2 = pnand %p1839_p9, %p1833_p10 }
  0x79   : > { %1573 = vmatmul.mubr.msk.bf16.vlgmr.msra.gmra.mrb[0].mxu0 %vm424_vm0, %v1722_v5  ;;  %1597 = vmatmul.mubr.msk.bf16.vlgmr.msra.gmra.mrb[0].mxu1 %vm424_vm0, %v1723_v6 }
  0x7a   : > { %1576 = vmatprep.mubr.msk.bf16.mxu0 %vm424_vm0, %v1724_v7  ;;  %1600 = vmatprep.mubr.msk.bf16.mxu1 %vm424_vm0, %v1725_v8 }
  0x81   : > { %1577 = vmatmul.mubr.msk.bf16.gmra.mrb[4].mxu0 %vm424_vm0, %v1726_v9  ;;  %1601 = vmatmul.mubr.msk.bf16.gmra.mrb[4].mxu1 %vm424_vm0, %v1727_v10 }
  0x82   : > { %1580 = vmatprep.mubr.msk.bf16.mxu0 %vm424_vm0, %v1728_v11  ;;  %1604 = vmatprep.mubr.msk.bf16.mxu1 %vm424_vm0, %v1729_v12 }
  0x89   : > { %1581 = vmatmul.mubr.msk.bf16.gmra.mrb[8].mxu0 %vm424_vm0, %v1730_v13  ;;  %1605 = vmatmul.mubr.msk.bf16.gmra.mrb[8].mxu1 %vm424_vm0, %v1731_v14 }
  0x8a   : > { %1584 = vmatprep.mubr.msk.bf16.mxu0 %vm424_vm0, %v1732_v15  ;;  %1608 = vmatprep.mubr.msk.bf16.mxu1 %vm424_vm0, %v1733_v16 }
  0x91   : > { %1585 = vmatmul.mubr.msk.bf16.gmra.mrb[12].mxu0 %vm424_vm0, %v1734_v17  ;;  %1609 = vmatmul.mubr.msk.bf16.gmra.mrb[12].mxu1 %vm424_vm0, %v1735_v18 }
  0x92   : > { %1588 = vmatprep.mubr.msk.bf16.mxu0 %vm424_vm0, %v1736_v19  ;;  %1612 = vmatprep.mubr.msk.bf16.mxu1 %vm424_vm0, %v1737_v20 }
  0x99   : > { %1589 = vmatmul.mubr.msk.bf16.gmra.mrb[16].mxu0 %vm424_vm0, %v1738_v21  ;;  %1613 = vmatmul.mubr.msk.bf16.gmra.mrb[16].mxu1 %vm424_vm0, %v1739_v22 }
  0x9a   : > { %1592 = vmatprep.mubr.msk.bf16.mxu0 %vm424_vm0, %v1740_v23  ;;  %1616 = vmatprep.mubr.msk.bf16.mxu1 %vm424_vm0, %v1741_v24 }
  0xa1   : > { %1593 = vmatmul.mubr.msk.bf16.gmra.mrb[20].mxu0 %vm424_vm0, %v1742_v25  ;;  %1617 = vmatmul.mubr.msk.bf16.gmra.mrb[20].mxu1 %vm424_vm0, %v1743_v26 }
 0x14c   : > { %v1574_v27 = vpop.f32.mrb[0].mxu0  ;;  %v1598_v28 = vpop.f32.mrb[0].mxu1 }
 0x14d   : > { %725 = vst.msk [vmem:[#allocation2 + $0x10] sm:$0xff] %vm722_vm1, %v1574_v27  ;;  %749 = vst.msk [vmem:[#allocation2 + $0xd0] sm:$0xff] %vm722_vm1, %v1598_v28  ;;  %v531_v29 = vpop.f32.mrb[1].mxu0  ;;  %v627_v30 = vpop.f32.mrb[1].mxu1 }
 0x14e   : > { %723 = vst.msk [vmem:[#allocation2] sm:$0xff] %vm722_vm1, %v531_v29  ;;  %747 = vst.msk [vmem:[#allocation2 + $0xc0] sm:$0xff] %vm722_vm1, %v627_v30  ;;  %v1575_v31 = vpop.f32.mrb[2].mxu0  ;;  %v1599_v32 = vpop.f32.mrb[2].mxu1 }
 0x14f   : > { %726 = vst.msk [vmem:[#allocation2 + $0x18] sm:$0xff] %vm722_vm1, %v1575_v31  ;;  %750 = vst.msk [vmem:[#allocation2 + $0xd8] sm:$0xff] %vm722_vm1, %v1599_v32  ;;  %v534_v33 = vpop.f32.mrb[3].mxu0  ;;  %v630_v34 = vpop.f32.mrb[3].mxu1 }
 0x150   : > { %724 = vst.msk [vmem:[#allocation2 + $0x8] sm:$0xff] %vm722_vm1, %v534_v33  ;;  %748 = vst.msk [vmem:[#allocation2 + $0xc8] sm:$0xff] %vm722_vm1, %v630_v34 }
 0x154   : > { %v773_v36 = vld [vmem:[#allocation2 + $0x10] sm:$0xff]  ;;  %v1578_v38 = vpop.f32.mrb[4].mxu0  ;;  %v1602_v39 = vpop.f32.mrb[4].mxu1 }
 0x155   : > { %v797_v37 = vld [vmem:[#allocation2 + $0xd0] sm:$0xff]  ;;  %v828_v40 = vadd.f32 %v2211_v35, %v773_v36  ;;  %v771_v42 = vld [vmem:[#allocation2] sm:$0xff]  ;;  %729 = vst.msk [vmem:[#allocation2 + $0x30] sm:$0xff] %vm722_vm1, %v1578_v38  ;;  %753 = vst.msk [vmem:[#allocation2 + $0xf0] sm:$0xff] %vm722_vm1, %v1602_v39  ;;  %v547_v44 = vpop.f32.mrb[5].mxu0  ;;  %v643_v45 = vpop.f32.mrb[5].mxu1 }
 0x156   : > { %v852_v41 = vadd.f32 %v2211_v35, %v797_v37  ;;  %v795_v43 = vld [vmem:[#allocation2 + $0xc0] sm:$0xff]  ;;  %v826_v46 = vadd.f32 %v2211_v35, %v771_v42  ;;  %v774_v48 = vld [vmem:[#allocation2 + $0x18] sm:$0xff]  ;;  %727 = vst.msk [vmem:[#allocation2 + $0x20] sm:$0xff] %vm722_vm1, %v547_v44  ;;  %751 = vst.msk [vmem:[#allocation2 + $0xe0] sm:$0xff] %vm722_vm1, %v643_v45  ;;  %v1579_v50 = vpop.f32.mrb[6].mxu0  ;;  %v1603_v51 = vpop.f32.mrb[6].mxu1 }
 0x157   : > { %v850_v47 = vadd.f32 %v2211_v35, %v795_v43  ;;  %v798_v49 = vld [vmem:[#allocation2 + $0xd8] sm:$0xff]  ;;  %vm876_vm3 = vcmp.gt.f32.partialorder %v828_v40, 0.0  ;;  %v924_v52 = vmul.f32 0.2, %v828_v40  ;;  %730 = vst.msk [vmem:[#allocation2 + $0x38] sm:$0xff] %vm722_vm1, %v1579_v50  ;;  %754 = vst.msk [vmem:[#allocation2 + $0xf8] sm:$0xff] %vm722_vm1, %v1603_v51  ;;  %v829_v58 = vadd.f32 %v2211_v35, %v774_v48 }
 0x158   : > { %vm900_vm4 = vcmp.gt.f32.partialorder %v852_v41, 0.0  ;;  %v948_v53 = vmul.f32 0.2, %v852_v41  ;;  %vm874_vm5 = vcmp.gt.f32.partialorder %v826_v46, 0.0  ;;  %v922_v54 = vmul.f32 0.2, %v826_v46 }
 0x159   : > { %vm898_vm6 = vcmp.gt.f32.partialorder %v850_v47, 0.0  ;;  %v946_v55 = vmul.f32 0.2, %v850_v47  ;;  %v972_v56 = vsel %vm876_vm3, %v828_v40, %v924_v52  ;;  %v853_v59 = vadd.f32 %v2211_v35, %v798_v49  ;;  %v772_v60 = vld [vmem:[#allocation2 + $0x8] sm:$0xff]  ;;  %v550_v62 = vpop.f32.mrb[7].mxu0  ;;  %v646_v63 = vpop.f32.mrb[7].mxu1 }
 0x15a   : > { %v996_v57 = vsel %vm900_vm4, %v852_v41, %v948_v53  ;;  %v796_v61 = vld [vmem:[#allocation2 + $0xc8] sm:$0xff]  ;;  %v1493_v0 = vpack.c.bf16 %v972_v56, %v972_v56  ;;  %v970_v2 = vsel %vm874_vm5, %v826_v46, %v922_v54  ;;  %728 = vst.msk [vmem:[#allocation2 + $0x28] sm:$0xff] %vm722_vm1, %v550_v62  ;;  %752 = vst.msk [vmem:[#allocation2 + $0xe8] sm:$0xff] %vm722_vm1, %v646_v63  ;;  %vm877_vm7 = vcmp.gt.f32.partialorder %v829_v58, 0.0 }
 0x15b   : > { %v1517_v1 = vpack.c.bf16 %v996_v57, %v996_v57  ;;  %v994_v3 = vsel %vm898_vm6, %v850_v47, %v946_v55  ;;  %v1491_v4 = vpack.c.bf16 %v970_v2, %v970_v2  ;;  %v925_v6 = vmul.f32 0.2, %v829_v58 }
 0x15c   : > { %v1515_v5 = vpack.c.bf16 %v994_v3, %v994_v3  ;;  %1213 = vst.msk [vmem:[%s2229_s20 + $0x8] sm:$0xf] %vm1210_vm2, %v1493_v0  ;;  %vm901_vm8 = vcmp.gt.f32.partialorder %v853_v59, 0.0  ;;  %v949_v7 = vmul.f32 0.2, %v853_v59  ;;  %v827_v8 = vadd.f32 %v2211_v35, %v772_v60  ;;  %v777_v10 = vld [vmem:[#allocation2 + $0x30] sm:$0xff] }
 0x15d   : > { %1237 = vst.msk [vmem:[%s2229_s20 + $0x68] sm:$0xf] %vm1210_vm2, %v1517_v1  ;;  %v851_v9 = vadd.f32 %v2211_v35, %v796_v61  ;;  %v801_v11 = vld [vmem:[#allocation2 + $0xf0] sm:$0xff]  ;;  %v1582_v12 = vpop.f32.mrb[8].mxu0  ;;  %1211 = vst.msk [vmem:[%s2229_s20] sm:$0xf] %vm1210_vm2, %v1491_v4  ;;  %v973_v13 = vsel %vm877_vm7, %v829_v58, %v925_v6  ;;  %v832_v14 = vadd.f32 %v2211_v35, %v777_v10 }
 0x15e   : > { %1235 = vst.msk [vmem:[%s2229_s20 + $0x60] sm:$0xf] %vm1210_vm2, %v1515_v5  ;;  %v856_v15 = vadd.f32 %v2211_v35, %v801_v11  ;;  %v775_v16 = vld [vmem:[#allocation2 + $0x20] sm:$0xff]  ;;  %v1606_v17 = vpop.f32.mrb[8].mxu1  ;;  %v563_v18 = vpop.f32.mrb[9].mxu0  ;;  %v1494_v19 = vpack.c.bf16 %v973_v13, %v973_v13  ;;  %v997_v20 = vsel %vm901_vm8, %v853_v59, %v949_v7  ;;  %vm875_vm9 = vcmp.gt.f32.partialorder %v827_v8, 0.0 }
 0x15f   : > { %733 = vst.msk [vmem:[#allocation2 + $0x50] sm:$0xff] %vm722_vm1, %v1582_v12  ;;  %v923_v21 = vmul.f32 0.2, %v827_v8  ;;  %v799_v22 = vld [vmem:[#allocation2 + $0xe0] sm:$0xff]  ;;  %v778_v23 = vld [vmem:[#allocation2 + $0x38] sm:$0xff]  ;;  %757 = vst.msk [vmem:[#allocation2 + $0x110] sm:$0xff] %vm722_vm1, %v1606_v17  ;;  %v1518_v25 = vpack.c.bf16 %v997_v20, %v997_v20  ;;  %v830_v36 = vadd.f32 %v2211_v35, %v775_v16 }
 0x160   : > { %731 = vst.msk [vmem:[#allocation2 + $0x40] sm:$0xff] %vm722_vm1, %v563_v18  ;;  %v659_v24 = vpop.f32.mrb[9].mxu1  ;;  %vm899_vm10 = vcmp.gt.f32.partialorder %v851_v9, 0.0  ;;  %v947_v26 = vmul.f32 0.2, %v851_v9  ;;  %vm880_vm11 = vcmp.gt.f32.partialorder %v832_v14, 0.0  ;;  %v854_v37 = vadd.f32 %v2211_v35, %v799_v22 }
 0x161   : > { %755 = vst.msk [vmem:[#allocation2 + $0x100] sm:$0xff] %vm722_vm1, %v659_v24  ;;  %v1583_v27 = vpop.f32.mrb[10].mxu0  ;;  %v1607_v28 = vpop.f32.mrb[10].mxu1  ;;  %v971_v29 = vsel %vm875_vm9, %v827_v8, %v923_v21  ;;  %v928_v30 = vmul.f32 0.2, %v832_v14  ;;  %vm904_vm12 = vcmp.gt.f32.partialorder %v856_v15, 0.0  ;;  %v833_v42 = vadd.f32 %v2211_v35, %v778_v23 }
 0x162   : > { %1214 = vst.msk [vmem:[%s2229_s20 + $0xc] sm:$0xf] %vm1210_vm2, %v1494_v19  ;;  %v952_v31 = vmul.f32 0.2, %v856_v15  ;;  %v566_v32 = vpop.f32.mrb[11].mxu0  ;;  %v1492_v33 = vpack.c.bf16 %v971_v29, %v971_v29  ;;  %v995_v34 = vsel %vm899_vm10, %v851_v9, %v947_v26  ;;  %v662_v38 = vpop.f32.mrb[11].mxu1 }
 0x163   : > { %734 = vst.msk [vmem:[#allocation2 + $0x58] sm:$0xff] %vm722_vm1, %v1583_v27  ;;  %758 = vst.msk [vmem:[#allocation2 + $0x118] sm:$0xff] %vm722_vm1, %v1607_v28  ;;  %v1516_v39 = vpack.c.bf16 %v995_v34, %v995_v34  ;;  %v976_v40 = vsel %vm880_vm11, %v832_v14, %v928_v30  ;;  %v802_v43 = vld [vmem:[#allocation2 + $0xf8] sm:$0xff]  ;;  %v776_v44 = vld [vmem:[#allocation2 + $0x28] sm:$0xff]  ;;  %vm878_vm13 = vcmp.gt.f32.partialorder %v830_v36, 0.0  ;;  %vm902_vm14 = vcmp.gt.f32.partialorder %v854_v37, 0.0 }
 0x164   : > { %1238 = vst.msk [vmem:[%s2229_s20 + $0x6c] sm:$0xf] %vm1210_vm2, %v1518_v25  ;;  %v1000_v41 = vsel %vm904_vm12, %v856_v15, %v952_v31  ;;  %v800_v45 = vld [vmem:[#allocation2 + $0xe8] sm:$0xff]  ;;  %1212 = vst.msk [vmem:[%s2229_s20 + $0x4] sm:$0xf] %vm1210_vm2, %v1492_v33  ;;  %v1497_v46 = vpack.c.bf16 %v976_v40, %v976_v40  ;;  %vm881_vm15 = vcmp.gt.f32.partialorder %v833_v42, 0.0  ;;  %v857_v52 = vadd.f32 %v2211_v35, %v802_v43 }
 0x165   : > { %732 = vst.msk [vmem:[#allocation2 + $0x48] sm:$0xff] %vm722_vm1, %v566_v32  ;;  %756 = vst.msk [vmem:[#allocation2 + $0x108] sm:$0xff] %vm722_vm1, %v662_v38  ;;  %v1521_v47 = vpack.c.bf16 %v1000_v41, %v1000_v41  ;;  %v926_v48 = vmul.f32 0.2, %v830_v36  ;;  %v950_v49 = vmul.f32 0.2, %v854_v37  ;;  %v831_v53 = vadd.f32 %v2211_v35, %v776_v44 }
 0x166   : > { %1236 = vst.msk [vmem:[%s2229_s20 + $0x64] sm:$0xf] %vm1210_vm2, %v1516_v39  ;;  %v929_v50 = vmul.f32 0.2, %v833_v42  ;;  %1217 = vst.msk [vmem:[%s2229_s20 + $0x18] sm:$0xf] %vm1210_vm2, %v1497_v46  ;;  %v855_v54 = vadd.f32 %v2211_v35, %v800_v45 }
 0x167   : > { %1241 = vst.msk [vmem:[%s2229_s20 + $0x78] sm:$0xf] %vm1210_vm2, %v1521_v47  ;;  %v974_v51 = vsel %vm878_vm13, %v830_v36, %v926_v48  ;;  %v781_v55 = vld [vmem:[#allocation2 + $0x50] sm:$0xff]  ;;  %v1586_v56 = vpop.f32.mrb[12].mxu0  ;;  %v1610_v57 = vpop.f32.mrb[12].mxu1  ;;  %v998_v59 = vsel %vm902_vm14, %v854_v37, %v950_v49  ;;  %vm905_vm0 = vcmp.gt.f32.partialorder %v857_v52, 0.0 }
 0x168   : > { %v1495_v58 = vpack.c.bf16 %v974_v51, %v974_v51  ;;  %v977_v60 = vsel %vm881_vm15, %v833_v42, %v929_v50  ;;  %v836_v61 = vadd.f32 %v2211_v35, %v781_v55  ;;  %v805_v62 = vld [vmem:[#allocation2 + $0x110] sm:$0xff]  ;;  %737 = vst.msk [vmem:[#allocation2 + $0x70] sm:$0xff] %vm722_vm1, %v1586_v56  ;;  %761 = vst.msk [vmem:[#allocation2 + $0x130] sm:$0xff] %vm722_vm1, %v1610_v57  ;;  %v579_v63 = vpop.f32.mrb[13].mxu0  ;;  %v675_v0 = vpop.f32.mrb[13].mxu1  ;;  %v779_v4 = vld [vmem:[#allocation2 + $0x40] sm:$0xff] }
 0x169   : > { %v1519_v1 = vpack.c.bf16 %v998_v59, %v998_v59  ;;  %v1498_v2 = vpack.c.bf16 %v977_v60, %v977_v60  ;;  %v953_v3 = vmul.f32 0.2, %v857_v52  ;;  %735 = vst.msk [vmem:[#allocation2 + $0x60] sm:$0xff] %vm722_vm1, %v579_v63  ;;  %759 = vst.msk [vmem:[#allocation2 + $0x120] sm:$0xff] %vm722_vm1, %v675_v0  ;;  %v1587_v5 = vpop.f32.mrb[14].mxu0  ;;  %vm879_vm3 = vcmp.gt.f32.partialorder %v831_v53, 0.0 }
 0x16a   : > { %1215 = vst.msk [vmem:[%s2229_s20 + $0x10] sm:$0xf] %vm1210_vm2, %v1495_v58  ;;  %v927_v6 = vmul.f32 0.2, %v831_v53  ;;  %vm903_vm4 = vcmp.gt.f32.partialorder %v855_v54, 0.0  ;;  %vm884_vm5 = vcmp.gt.f32.partialorder %v836_v61, 0.0  ;;  %v860_v10 = vadd.f32 %v2211_v35, %v805_v62 }
 0x16b   : > { %v951_v7 = vmul.f32 0.2, %v855_v54  ;;  %738 = vst.msk [vmem:[#allocation2 + $0x78] sm:$0xff] %vm722_vm1, %v1587_v5  ;;  %v1001_v8 = vsel %vm905_vm0, %v857_v52, %v953_v3  ;;  %v932_v9 = vmul.f32 0.2, %v836_v61  ;;  %v803_v11 = vld [vmem:[#allocation2 + $0x100] sm:$0xff]  ;;  %v834_v16 = vadd.f32 %v2211_v35, %v779_v4 }
 0x16c   : > { %1239 = vst.msk [vmem:[%s2229_s20 + $0x70] sm:$0xf] %vm1210_vm2, %v1519_v1  ;;  %1218 = vst.msk [vmem:[%s2229_s20 + $0x1c] sm:$0xf] %vm1210_vm2, %v1498_v2  ;;  %v1611_v12 = vpop.f32.mrb[14].mxu1  ;;  %v1522_v13 = vpack.c.bf16 %v1001_v8, %v1001_v8  ;;  %v975_v14 = vsel %vm879_vm3, %v831_v53, %v927_v6  ;;  %v782_v17 = vld [vmem:[#allocation2 + $0x58] sm:$0xff]  ;;  %v858_v30 = vadd.f32 %v2211_v35, %v803_v11 }
 0x16d   : > { %v999_v15 = vsel %vm903_vm4, %v855_v54, %v951_v7  ;;  %v806_v18 = vld [vmem:[#allocation2 + $0x118] sm:$0xff]  ;;  %v780_v19 = vld [vmem:[#allocation2 + $0x48] sm:$0xff]  ;;  %762 = vst.msk [vmem:[#allocation2 + $0x138] sm:$0xff] %vm722_vm1, %v1611_v12  ;;  %v582_v20 = vpop.f32.mrb[15].mxu0  ;;  %v678_v21 = vpop.f32.mrb[15].mxu1  ;;  %v1496_v22 = vpack.c.bf16 %v975_v14, %v975_v14  ;;  %v980_v24 = vsel %vm884_vm5, %v836_v61, %v932_v9  ;;  %vm908_vm6 = vcmp.gt.f32.partialorder %v860_v10, 0.0 }
 0x16e   : > { %v1520_v23 = vpack.c.bf16 %v999_v15, %v999_v15  ;;  %v804_v25 = vld [vmem:[#allocation2 + $0x108] sm:$0xff]  ;;  %736 = vst.msk [vmem:[#allocation2 + $0x68] sm:$0xff] %vm722_vm1, %v582_v20  ;;  %760 = vst.msk [vmem:[#allocation2 + $0x128] sm:$0xff] %vm722_vm1, %v678_v21  ;;  %v1501_v26 = vpack.c.bf16 %v980_v24, %v980_v24  ;;  %v956_v27 = vmul.f32 0.2, %v860_v10  ;;  %vm882_vm7 = vcmp.gt.f32.partialorder %v834_v16, 0.0 }
 0x16f   : > { %1242 = vst.msk [vmem:[%s2229_s20 + $0x7c] sm:$0xf] %vm1210_vm2, %v1522_v13  ;;  %v930_v28 = vmul.f32 0.2, %v834_v16  ;;  %v1590_v29 = vpop.f32.mrb[16].mxu0  ;;  %v837_v31 = vadd.f32 %v2211_v35, %v782_v17  ;;  %v861_v32 = vadd.f32 %v2211_v35, %v806_v18  ;;  %v835_v33 = vadd.f32 %v2211_v35, %v780_v19  ;;  %v785_v34 = vld [vmem:[#allocation2 + $0x70] sm:$0xff] }
 0x170   : > { %1216 = vst.msk [vmem:[%s2229_s20 + $0x14] sm:$0xf] %vm1210_vm2, %v1496_v22  ;;  %1240 = vst.msk [vmem:[%s2229_s20 + $0x74] sm:$0xf] %vm1210_vm2, %v1520_v23  ;;  %v1614_v36 = vpop.f32.mrb[16].mxu1  ;;  %v595_v37 = vpop.f32.mrb[17].mxu0  ;;  %v1004_v38 = vsel %vm908_vm6, %v860_v10, %v956_v27  ;;  %v859_v40 = vadd.f32 %v2211_v35, %v804_v25  ;;  %v840_v41 = vadd.f32 %v2211_v35, %v785_v34 }
 0x171   : > { %741 = vst.msk [vmem:[#allocation2 + $0x90] sm:$0xff] %vm722_vm1, %v1590_v29  ;;  %v978_v39 = vsel %vm882_vm7, %v834_v16, %v930_v28  ;;  %765 = vst.msk [vmem:[#allocation2 + $0x150] sm:$0xff] %vm722_vm1, %v1614_v36  ;;  %v691_v42 = vpop.f32.mrb[17].mxu1  ;;  %v1591_v43 = vpop.f32.mrb[18].mxu0  ;;  %v1525_v44 = vpack.c.bf16 %v1004_v38, %v1004_v38  ;;  %vm906_vm8 = vcmp.gt.f32.partialorder %v858_v30, 0.0  ;;  %vm885_vm9 = vcmp.gt.f32.partialorder %v837_v31, 0.0 }
 0x172   : > { %1221 = vst.msk [vmem:[%s2229_s20 + $0x28] sm:$0xf] %vm1210_vm2, %v1501_v26  ;;  %v1499_v45 = vpack.c.bf16 %v978_v39, %v978_v39  ;;  %v954_v46 = vmul.f32 0.2, %v858_v30  ;;  %v1615_v47 = vpop.f32.mrb[18].mxu1  ;;  %v598_v48 = vpop.f32.mrb[19].mxu0 }
 0x173   : > { %739 = vst.msk [vmem:[#allocation2 + $0x80] sm:$0xff] %vm722_vm1, %v595_v37  ;;  %763 = vst.msk [vmem:[#allocation2 + $0x140] sm:$0xff] %vm722_vm1, %v691_v42  ;;  %v933_v49 = vmul.f32 0.2, %v837_v31  ;;  %vm909_vm10 = vcmp.gt.f32.partialorder %v861_v32, 0.0  ;;  %vm883_vm11 = vcmp.gt.f32.partialorder %v835_v33, 0.0 }
 0x174   : > { %742 = vst.msk [vmem:[#allocation2 + $0x98] sm:$0xff] %vm722_vm1, %v1591_v43  ;;  %v957_v50 = vmul.f32 0.2, %v861_v32  ;;  %766 = vst.msk [vmem:[#allocation2 + $0x158] sm:$0xff] %vm722_vm1, %v1615_v47  ;;  %v1002_v51 = vsel %vm906_vm8, %v858_v30, %v954_v46  ;;  %v931_v52 = vmul.f32 0.2, %v835_v33 }
 0x175   : > { %740 = vst.msk [vmem:[#allocation2 + $0x88] sm:$0xff] %vm722_vm1, %v598_v48  ;;  %vm907_vm12 = vcmp.gt.f32.partialorder %v859_v40, 0.0  ;;  %v809_v53 = vld [vmem:[#allocation2 + $0x130] sm:$0xff]  ;;  %v694_v54 = vpop.f32.mrb[19].mxu1  ;;  %v1523_v55 = vpack.c.bf16 %v1002_v51, %v1002_v51  ;;  %v981_v56 = vsel %vm885_vm9, %v837_v31, %v933_v49  ;;  %v955_v58 = vmul.f32 0.2, %v859_v40 }
 0x176   : > { %1245 = vst.msk [vmem:[%s2229_s20 + $0x88] sm:$0xf] %vm1210_vm2, %v1525_v44  ;;  %1219 = vst.msk [vmem:[%s2229_s20 + $0x20] sm:$0xf] %vm1210_vm2, %v1499_v45  ;;  %v1005_v57 = vsel %vm909_vm10, %v861_v32, %v957_v50  ;;  %v783_v59 = vld [vmem:[#allocation2 + $0x60] sm:$0xff]  ;;  %v786_v61 = vld [vmem:[#allocation2 + $0x78] sm:$0xff]  ;;  %v1502_v62 = vpack.c.bf16 %v981_v56, %v981_v56  ;;  %v979_v0 = vsel %vm883_vm11, %v835_v33, %v931_v52 }
 0x177   : > { %v807_v60 = vld [vmem:[#allocation2 + $0x120] sm:$0xff]  ;;  %764 = vst.msk [vmem:[#allocation2 + $0x148] sm:$0xff] %vm722_vm1, %v694_v54  ;;  %v1526_v63 = vpack.c.bf16 %v1005_v57, %v1005_v57  ;;  %vm888_vm13 = vcmp.gt.f32.partialorder %v840_v41, 0.0  ;;  %v810_v1 = vld [vmem:[#allocation2 + $0x138] sm:$0xff]  ;;  %v1500_v2 = vpack.c.bf16 %v979_v0, %v979_v0  ;;  %v1003_v3 = vsel %vm907_vm12, %v859_v40, %v955_v58  ;;  %v1594_v6 = vpop.f32.mrb[20].mxu0  ;;  %v1618_v7 = vpop.f32.mrb[20].mxu1 }
 0x178   : > { %1243 = vst.msk [vmem:[%s2229_s20 + $0x80] sm:$0xf] %vm1210_vm2, %v1523_v55  ;;  %v936_v4 = vmul.f32 0.2, %v840_v41  ;;  %v864_v5 = vadd.f32 %v2211_v35, %v809_v53  ;;  %1222 = vst.msk [vmem:[%s2229_s20 + $0x2c] sm:$0xf] %vm1210_vm2, %v1502_v62  ;;  %v1524_v8 = vpack.c.bf16 %v1003_v3, %v1003_v3  ;;  %v838_v9 = vadd.f32 %v2211_v35, %v783_v59 }
 0x179   : > { %1246 = vst.msk [vmem:[%s2229_s20 + $0x8c] sm:$0xf] %vm1210_vm2, %v1526_v63  ;;  %v862_v10 = vadd.f32 %v2211_v35, %v807_v60  ;;  %v841_v11 = vadd.f32 %v2211_v35, %v786_v61  ;;  %v611_v12 = vpop.f32.mrb[21].mxu0  ;;  %v707_v13 = vpop.f32.mrb[21].mxu1  ;;  %1220 = vst.msk [vmem:[%s2229_s20 + $0x24] sm:$0xf] %vm1210_vm2, %v1500_v2  ;;  %v865_v16 = vadd.f32 %v2211_v35, %v810_v1 }
 0x17a   : > { %745 = vst.msk [vmem:[#allocation2 + $0xb0] sm:$0xff] %vm722_vm1, %v1594_v6  ;;  %769 = vst.msk [vmem:[#allocation2 + $0x170] sm:$0xff] %vm722_vm1, %v1618_v7  ;;  %v984_v14 = vsel %vm888_vm13, %v840_v41, %v936_v4  ;;  %vm912_vm14 = vcmp.gt.f32.partialorder %v864_v5, 0.0  ;;  %v960_v15 = vmul.f32 0.2, %v864_v5  ;;  %v1595_v17 = vpop.f32.mrb[22].mxu0 }
 0x17b   : > { %743 = vst.msk [vmem:[#allocation2 + $0xa0] sm:$0xff] %vm722_vm1, %v611_v12  ;;  %767 = vst.msk [vmem:[#allocation2 + $0x160] sm:$0xff] %vm722_vm1, %v707_v13  ;;  %v1505_v18 = vpack.c.bf16 %v984_v14, %v984_v14  ;;  %vm886_vm15 = vcmp.gt.f32.partialorder %v838_v9, 0.0  ;;  %v934_v19 = vmul.f32 0.2, %v838_v9  ;;  %vm910_vm0 = vcmp.gt.f32.partialorder %v862_v10, 0.0 }
 0x17c   : > { %1244 = vst.msk [vmem:[%s2229_s20 + $0x84] sm:$0xf] %vm1210_vm2, %v1524_v8  ;;  %v784_v20 = vld [vmem:[#allocation2 + $0x68] sm:$0xff]  ;;  %v1008_v22 = vsel %vm912_vm14, %v864_v5, %v960_v15  ;;  %v958_v23 = vmul.f32 0.2, %v862_v10  ;;  %vm889_vm3 = vcmp.gt.f32.partialorder %v841_v11, 0.0 }
 0x17d   : > { %v808_v21 = vld [vmem:[#allocation2 + $0x128] sm:$0xff]  ;;  %746 = vst.msk [vmem:[#allocation2 + $0xb8] sm:$0xff] %vm722_vm1, %v1595_v17  ;;  %v937_v24 = vmul.f32 0.2, %v841_v11  ;;  %v1619_v25 = vpop.f32.mrb[22].mxu1  ;;  %v1529_v26 = vpack.c.bf16 %v1008_v22, %v1008_v22  ;;  %v982_v27 = vsel %vm886_vm15, %v838_v9, %v934_v19  ;;  %vm913_vm4 = vcmp.gt.f32.partialorder %v865_v16, 0.0 }
 0x17e   : > { %1225 = vst.msk [vmem:[%s2229_s20 + $0x38] sm:$0xf] %vm1210_vm2, %v1505_v18  ;;  %v961_v28 = vmul.f32 0.2, %v865_v16  ;;  %v789_v29 = vld [vmem:[#allocation2 + $0x90] sm:$0xff]  ;;  %v614_v30 = vpop.f32.mrb[23].mxu0  ;;  %v1503_v32 = vpack.c.bf16 %v982_v27, %v982_v27  ;;  %v1006_v33 = vsel %vm910_vm0, %v862_v10, %v958_v23  ;;  %v839_v36 = vadd.f32 %v2211_v35, %v784_v20 }
 0x17f   : > { %770 = vst.msk [vmem:[#allocation2 + $0x178] sm:$0xff] %vm722_vm1, %v1619_v25  ;;  %v710_v31 = vpop.f32.mrb[23].mxu1  ;;  %v985_v34 = vsel %vm889_vm3, %v841_v11, %v937_v24  ;;  %v813_v37 = vld [vmem:[#allocation2 + $0x150] sm:$0xff]  ;;  %v787_v38 = vld [vmem:[#allocation2 + $0x80] sm:$0xff]  ;;  %744 = vst.msk [vmem:[#allocation2 + $0xa8] sm:$0xff] %vm722_vm1, %v614_v30  ;;  %v1527_v39 = vpack.c.bf16 %v1006_v33, %v1006_v33  ;;  %v863_v42 = vadd.f32 %v2211_v35, %v808_v21 }
 0x180   : > { %768 = vst.msk [vmem:[#allocation2 + $0x168] sm:$0xff] %vm722_vm1, %v710_v31  ;;  %v1506_v40 = vpack.c.bf16 %v985_v34, %v985_v34  ;;  %v1009_v41 = vsel %vm913_vm4, %v865_v16, %v961_v28  ;;  %v811_v43 = vld [vmem:[#allocation2 + $0x140] sm:$0xff]  ;;  %vm887_vm5 = vcmp.gt.f32.partialorder %v839_v36, 0.0  ;;  %v935_v45 = vmul.f32 0.2, %v839_v36  ;;  %v790_v56 = vld [vmem:[#allocation2 + $0x98] sm:$0xff] }
 0x181   : > { %1249 = vst.msk [vmem:[%s2229_s20 + $0x98] sm:$0xf] %vm1210_vm2, %v1529_v26  ;;  %1223 = vst.msk [vmem:[%s2229_s20 + $0x30] sm:$0xf] %vm1210_vm2, %v1503_v32  ;;  %v1530_v44 = vpack.c.bf16 %v1009_v41, %v1009_v41  ;;  %v844_v46 = vadd.f32 %v2211_v35, %v789_v29  ;;  %vm911_vm1 = vcmp.gt.f32.partialorder %v863_v42, 0.0  ;;  %v868_v48 = vadd.f32 %v2211_v35, %v813_v37  ;;  %v814_v57 = vld [vmem:[#allocation2 + $0x158] sm:$0xff] }
 0x182   : > { %1247 = vst.msk [vmem:[%s2229_s20 + $0x90] sm:$0xf] %vm1210_vm2, %v1527_v39  ;;  %1226 = vst.msk [vmem:[%s2229_s20 + $0x3c] sm:$0xf] %vm1210_vm2, %v1506_v40  ;;  %v959_v47 = vmul.f32 0.2, %v863_v42  ;;  %v842_v49 = vadd.f32 %v2211_v35, %v787_v38  ;;  %v983_v50 = vsel %vm887_vm5, %v839_v36, %v935_v45  ;;  %v866_v52 = vadd.f32 %v2211_v35, %v811_v43 }
 0x183   : > { %1250 = vst.msk [vmem:[%s2229_s20 + $0x9c] sm:$0xf] %vm1210_vm2, %v1530_v44  ;;  %vm892_vm6 = vcmp.gt.f32.partialorder %v844_v46, 0.0  ;;  %v940_v51 = vmul.f32 0.2, %v844_v46  ;;  %v1504_v53 = vpack.c.bf16 %v983_v50, %v983_v50  ;;  %vm916_vm7 = vcmp.gt.f32.partialorder %v868_v48, 0.0 }
 0x184   : > { %v1007_v54 = vsel %vm911_vm1, %v863_v42, %v959_v47  ;;  %v964_v55 = vmul.f32 0.2, %v868_v48  ;;  %vm890_vm8 = vcmp.gt.f32.partialorder %v842_v49, 0.0  ;;  %v938_v60 = vmul.f32 0.2, %v842_v49  ;;  %v788_v61 = vld [vmem:[#allocation2 + $0x88] sm:$0xff] }
 0x185   : > { %v1528_v58 = vpack.c.bf16 %v1007_v54, %v1007_v54  ;;  %v988_v59 = vsel %vm892_vm6, %v844_v46, %v940_v51  ;;  %v812_v62 = vld [vmem:[#allocation2 + $0x148] sm:$0xff]  ;;  %1224 = vst.msk [vmem:[%s2229_s20 + $0x34] sm:$0xf] %vm1210_vm2, %v1504_v53  ;;  %vm914_vm9 = vcmp.gt.f32.partialorder %v866_v52, 0.0  ;;  %v962_v1 = vmul.f32 0.2, %v866_v52 }
 0x186   : > { %v1509_v63 = vpack.c.bf16 %v988_v59, %v988_v59  ;;  %v1012_v0 = vsel %vm916_vm7, %v868_v48, %v964_v55  ;;  %v986_v3 = vsel %vm890_vm8, %v842_v49, %v938_v60  ;;  %v845_v4 = vadd.f32 %v2211_v35, %v790_v56  ;;  %v793_v10 = vld [vmem:[#allocation2 + $0xb0] sm:$0xff]  ;;  %v791_v14 = vld [vmem:[#allocation2 + $0xa0] sm:$0xff]  ;;  %v794_v26 = vld [vmem:[#allocation2 + $0xb8] sm:$0xff] }
 0x187   : > { %1248 = vst.msk [vmem:[%s2229_s20 + $0x94] sm:$0xf] %vm1210_vm2, %v1528_v58  ;;  %v1533_v2 = vpack.c.bf16 %v1012_v0, %v1012_v0  ;;  %v869_v5 = vadd.f32 %v2211_v35, %v814_v57  ;;  %v1507_v6 = vpack.c.bf16 %v986_v3, %v986_v3  ;;  %v1010_v7 = vsel %vm914_vm9, %v866_v52, %v962_v1  ;;  %v817_v11 = vld [vmem:[#allocation2 + $0x170] sm:$0xff]  ;;  %v815_v25 = vld [vmem:[#allocation2 + $0x160] sm:$0xff]  ;;  %v818_v30 = vld [vmem:[#allocation2 + $0x178] sm:$0xff] }
 0x188   : > { %1229 = vst.msk [vmem:[%s2229_s20 + $0x48] sm:$0xf] %vm1210_vm2, %v1509_v63  ;;  %v843_v8 = vadd.f32 %v2211_v35, %v788_v61  ;;  %v867_v9 = vadd.f32 %v2211_v35, %v812_v62  ;;  %v1531_v12 = vpack.c.bf16 %v1010_v7, %v1010_v7  ;;  %vm893_vm10 = vcmp.gt.f32.partialorder %v845_v4, 0.0  ;;  %v792_v31 = vld [vmem:[#allocation2 + $0xa8] sm:$0xff] }
 0x189   : > { %1253 = vst.msk [vmem:[%s2229_s20 + $0xa8] sm:$0xf] %vm1210_vm2, %v1533_v2  ;;  %v941_v13 = vmul.f32 0.2, %v845_v4  ;;  %vm917_vm11 = vcmp.gt.f32.partialorder %v869_v5, 0.0  ;;  %v848_v19 = vadd.f32 %v2211_v35, %v793_v10  ;;  %v872_v20 = vadd.f32 %v2211_v35, %v817_v11  ;;  %v816_v46 = vld [vmem:[#allocation2 + $0x168] sm:$0xff] }
 0x18a   : > { %1227 = vst.msk [vmem:[%s2229_s20 + $0x40] sm:$0xf] %vm1210_vm2, %v1507_v6  ;;  %v965_v15 = vmul.f32 0.2, %v869_v5  ;;  %vm891_vm12 = vcmp.gt.f32.partialorder %v843_v8, 0.0  ;;  %vm915_vm13 = vcmp.gt.f32.partialorder %v867_v9, 0.0  ;;  %v846_v24 = vadd.f32 %v2211_v35, %v791_v14 }
 0x18b   : > { %v939_v16 = vmul.f32 0.2, %v843_v8  ;;  %1251 = vst.msk [vmem:[%s2229_s20 + $0xa0] sm:$0xf] %vm1210_vm2, %v1531_v12  ;;  %v989_v17 = vsel %vm893_vm10, %v845_v4, %v941_v13  ;;  %v963_v18 = vmul.f32 0.2, %v867_v9  ;;  %v870_v37 = vadd.f32 %v2211_v35, %v815_v25 }
 0x18c   : > { %v1510_v21 = vpack.c.bf16 %v989_v17, %v989_v17  ;;  %v1013_v22 = vsel %vm917_vm11, %v869_v5, %v965_v15  ;;  %vm896_vm14 = vcmp.gt.f32.partialorder %v848_v19, 0.0  ;;  %v944_v33 = vmul.f32 0.2, %v848_v19 }
 0x18d   : > { %v987_v23 = vsel %vm891_vm12, %v843_v8, %v939_v16  ;;  %v1534_v27 = vpack.c.bf16 %v1013_v22, %v1013_v22  ;;  %v1011_v29 = vsel %vm915_vm13, %v867_v9, %v963_v18  ;;  %vm920_vm15 = vcmp.gt.f32.partialorder %v872_v20, 0.0 }
 0x18e   : > { %v1508_v28 = vpack.c.bf16 %v987_v23, %v987_v23  ;;  %1230 = vst.msk [vmem:[%s2229_s20 + $0x4c] sm:$0xf] %vm1210_vm2, %v1510_v21  ;;  %v1532_v32 = vpack.c.bf16 %v1011_v29, %v1011_v29  ;;  %v968_v34 = vmul.f32 0.2, %v872_v20  ;;  %vm894_vm0 = vcmp.gt.f32.partialorder %v846_v24, 0.0 }
 0x18f   : > { %1254 = vst.msk [vmem:[%s2229_s20 + $0xac] sm:$0xf] %vm1210_vm2, %v1534_v27  ;;  %v942_v36 = vmul.f32 0.2, %v846_v24  ;;  %v849_v38 = vadd.f32 %v2211_v35, %v794_v26  ;;  %v992_v39 = vsel %vm896_vm14, %v848_v19, %v944_v33  ;;  %v873_v41 = vadd.f32 %v2211_v35, %v818_v30 }
 0x190   : > { %1228 = vst.msk [vmem:[%s2229_s20 + $0x44] sm:$0xf] %vm1210_vm2, %v1508_v28  ;;  %1252 = vst.msk [vmem:[%s2229_s20 + $0xa4] sm:$0xf] %vm1210_vm2, %v1532_v32  ;;  %v1016_v40 = vsel %vm920_vm15, %v872_v20, %v968_v34  ;;  %v847_v42 = vadd.f32 %v2211_v35, %v792_v31  ;;  %v1513_v43 = vpack.c.bf16 %v992_v39, %v992_v39  ;;  %vm918_vm3 = vcmp.gt.f32.partialorder %v870_v37, 0.0 }
 0x191   : > { %v1537_v44 = vpack.c.bf16 %v1016_v40, %v1016_v40  ;;  %v990_v45 = vsel %vm894_vm0, %v846_v24, %v942_v36  ;;  %v966_v48 = vmul.f32 0.2, %v870_v37  ;;  %vm897_vm4 = vcmp.gt.f32.partialorder %v849_v38, 0.0 }
 0x192   : > { %v1511_v47 = vpack.c.bf16 %v990_v45, %v990_v45  ;;  %v945_v49 = vmul.f32 0.2, %v849_v38  ;;  %1233 = vst.msk [vmem:[%s2229_s20 + $0x58] sm:$0xf] %vm1210_vm2, %v1513_v43  ;;  %vm921_vm5 = vcmp.gt.f32.partialorder %v873_v41, 0.0  ;;  %vm895_vm1 = vcmp.gt.f32.partialorder %v847_v42, 0.0 }
 0x193   : > { %1257 = vst.msk [vmem:[%s2229_s20 + $0xb8] sm:$0xf] %vm1210_vm2, %v1537_v44  ;;  %v969_v50 = vmul.f32 0.2, %v873_v41  ;;  %v943_v51 = vmul.f32 0.2, %v847_v42  ;;  %v1014_v52 = vsel %vm918_vm3, %v870_v37, %v966_v48  ;;  %v871_v54 = vadd.f32 %v2211_v35, %v816_v46 }
 0x194   : > { %1231 = vst.msk [vmem:[%s2229_s20 + $0x50] sm:$0xf] %vm1210_vm2, %v1511_v47  ;;  %v993_v53 = vsel %vm897_vm4, %v849_v38, %v945_v49  ;;  %v1535_v55 = vpack.c.bf16 %v1014_v52, %v1014_v52 }
 0x195   : > { %v1514_v56 = vpack.c.bf16 %v993_v53, %v993_v53  ;;  %v1017_v57 = vsel %vm921_vm5, %v873_v41, %v969_v50  ;;  %v991_v58 = vsel %vm895_vm1, %v847_v42, %v943_v51  ;;  %vm919_vm6 = vcmp.gt.f32.partialorder %v871_v54, 0.0 }
 0x196   : > { %v1538_v59 = vpack.c.bf16 %v1017_v57, %v1017_v57  ;;  %v1512_v60 = vpack.c.bf16 %v991_v58, %v991_v58  ;;  %v967_v61 = vmul.f32 0.2, %v871_v54  ;;  %1255 = vst.msk [vmem:[%s2229_s20 + $0xb0] sm:$0xf] %vm1210_vm2, %v1535_v55 }
 0x197   : > { %1234 = vst.msk [vmem:[%s2229_s20 + $0x5c] sm:$0xf] %vm1210_vm2, %v1514_v56 }
 0x198   : > { %1258 = vst.msk [vmem:[%s2229_s20 + $0xbc] sm:$0xf] %vm1210_vm2, %v1538_v59  ;;  %1232 = vst.msk [vmem:[%s2229_s20 + $0x54] sm:$0xf] %vm1210_vm2, %v1512_v60  ;;  %v1015_v35 = vsel %vm919_vm6, %v871_v54, %v967_v61 }
 0x199   : > { %v1536_v62 = vpack.c.bf16 %v1015_v35, %v1015_v35 }
 0x19b   : > { %1256 = vst.msk [vmem:[%s2229_s20 + $0xb4] sm:$0xf] %vm1210_vm2, %v1536_v62 }
 0x19c   : > { %1843 = shalt.err (!%p1840_p2)
}
 0x19d   : > { %s1844_s9 = scalar_lea.hbm %s2413_s18, 3072  ;;  %s1848_s7 = scalar_lea.hbm %s2469_s3, 6144 }
 0x19e   : > { %p1845_p0 = scmp.ne.s32.totalorder %s2413_s18, %s1844_s9  ;;  %p1849_p6 = scmp.lt.u32.totalorder %s2413_s18, %s2469_s3 }
 0x19f   : > { %p1850_p7 = scmp.lt.u32.totalorder %s1848_s7, %s1844_s9  ;;  %p1852_p8 = scmp.lt.u32.totalorder %s1844_s9, %s2413_s18 }
 0x1a0   : > { %p1846_p4 = pnand %p1845_p0, %p2484_p12 }
 0x1a1   : > { %p1851_p11 = por %p1850_p7, %p1849_p6 }
 0x1a2   : > { %p1847_p13 = pneg %p1846_p4 }
 0x1a3   : > { %p1853_p1 = por %p1852_p8, %p1851_p11 }
 0x1a5   : > { %p1854_p10 = pnand %p1853_p1, %p1847_p13 }
 0x1a7   : > { %1857 = shalt.err (!%p1854_p10)
}
 0x1a8   : > { %s1924_s20 = smov 64   ;;  %s1925_s22 = smov 4  }
 0x1a9   : > { %1640 = dma.vmem_to_hbm [thread:$0]  (%p2484_p12), %s2415_s24, 3072, %s2413_s18, %s1260_s26, %s1924_s20, %s1924_s20, %s1925_s22  }
 0x1aa PF: > { %s1290_s15 = sand.u32 1, %s1896_s12   ;;  %p2485_p3 = scmp.ne.s32.totalorder %s2477_s23, 0 }
 0x1ab   : > { %p2486_p5 = scmp.ge.s32.totalorder %s1916_s17, 2  ;;  %s1291_s11 = scalar_lea.sflag [#allocation5], %s1290_s15 }
 0x1ad   : > { %p1654_p9 = pnand %p2486_p5, %p2485_p3 }
 0x1af   : > { %1891 = dma.done.wait (!%p1654_p9), %s1291_s11, 3072  }
 0x1b0   : > { %1893 = vsyncadd (!%p1654_p9), %s1291_s11, 4294964224  ;;  %s20_s17 = sadd.s32 1, %s1916_s17   ;;  %s2487_s12 = smov %s1900_s13 }
 0x1b1   : > { %p17_p2 = scmp.ge.s32.totalorder %s20_s17, 4   ;;  %s2488_s13 = smov %s1904_s14 }
 0x1b2   : > { %s2489_s14 = smov %s2095_s6  ;;  %s2490_s15 = smov %s1912_s16 }
 0x1b3   : > { %s2491_s16 = smov %s2493_s25  ;;  %19 = sbr.rel (!%p17_p2) target bundleno = 7 (0x7), region = 85 }
 0x1ba   :  { %1296 = vsyncpa [#allocation4], 1 }
 0x1bb   :  { %1298 = vsyncpa [#allocation4 + $0x1], 1 }
 0x1bc   :  { %1299 = vsyncpa [#allocation7], 1 }
 0x1bd   :  { %1300 = vsyncpa [#allocation5], 1 }
 0x1be   :  { %1302 = vsyncpa [#allocation5 + $0x1], 1 }

// kernel: discriminator_forward.6
= control target key start
LH: loop header
LB: loop body
LE: loop exit
PB: predicated region body
PF: predicated region fallthrough
CT: control target
= control target key end

     0   :  { %8 = vsyncpa [#allocation4], 0  ;;  %s4147_s0 = inlined_call_operand.hbm [shape: bf16[2,160,256], index: 0, kind: input, shape index: {}]   ;;  %s4148_s1 = inlined_call_operand.hbm [shape: bf16[4,256,128], index: 1, kind: input, shape index: {}]   ;;  %s4149_s2 = inlined_call_operand.hbm [shape: f32[1,128], index: 2, kind: input, shape index: {}]   ;;  %s4150_s3 = inlined_call_operand.hbm [shape: bf16[2,128,128], index: 3, kind: output, shape index: {}]  }
   0x1   :  { %10 = vsyncpa [#allocation4 + $0x1], 0 }
   0x2   :  { %11 = vsyncpa [#allocation7], 0 }
   0x3   :  { %12 = vsyncpa [#allocation5], 0 }
   0x4   :  { %14 = vsyncpa [#allocation5 + $0x1], 0  ;;  %s3526_s12 = smov 0   ;;  %s3528_s13 = smov 0  }
   0x5   :  { %s3530_s14 = smov 0   ;;  %s3532_s15 = smov 0  }
   0x6   :  { %s3534_s16 = smov 0   ;;  %s3536_s17 = smov 0  }
   0x7 LB: > { %s2648_s18 = sadd.s32 4294967295, %s3494_s17   ;;  %s2649_s19 = sadd.s32 4294967294, %s3494_s17   ;;  %s3494_s17 = sphi %s3536_s17, %s20_s17   ;;  %s3490_s16 = sphi %s3534_s16, %s4172_s16   ;;  %s3486_s15 = sphi %s3532_s15, %s4171_s15   ;;  %s3482_s14 = sphi %s3530_s14, %s4170_s14   ;;  %s3478_s13 = sphi %s3528_s13, %s4169_s13   ;;  %s3474_s12 = sphi %s3526_s12, %s4168_s12  }
   0x8   : > { %p52_p0 = scmp.ne.s32.totalorder %s3478_s13, %s3474_s12  ;;  %p3560_p1 = scmp.eq.s32.totalorder %s2648_s18, 0 }
   0x9   : > { %p3564_p2 = scmp.eq.s32.totalorder %s2648_s18, 1  ;;  %p136_p3 = scmp.eq.s32.totalorder %s2649_s19, 1 }
   0xa   : > { %s4155_s20 = scalar_select %p3560_p1, 1, 0 }
   0xb   : > { %p3570_p4 = por %p3560_p1, %p52_p0  ;;  %p2650_p5 = scmp.ge.s32.totalorder %s3494_s17, 1 }
   0xc   : > { %p3575_p6 = por %p136_p3, %p52_p0  ;;  %p143_p7 = scmp.lt.s32.totalorder %s3494_s17, 3 }
   0xd   : > { %s4157_s22 = scalar_select %p3570_p4, 1, 0 }
   0xe   : > { %s4158_s23 = scalar_select %p3575_p6, 1, 0 }
   0xf   : > { %p3580_p8 = pnand %p2650_p5, %p143_p7  ;;  %s3496_s25 = smov [#allocation6]  }
  0x10   : > { %s157_s26 = sshll.u32 %s3496_s25, 4  ;;  %s3497_s28 = smov [#allocation8]   ;;  %s3584_s26 = int_to_ptr.vmem [resolvable:$true] %s157_s26 }
  0x11   : > { %p3148_p9 = pneg %p3580_p8  ;;  %s173_s29 = sshll.u32 %s3497_s28, 4  ;;  %s3595_s29 = int_to_ptr.vmem [resolvable:$true] %s173_s29 }
  0x12   : > { %s3322_s5 = scalar_lea.hbm %s4148_s1, 8192 }
  0x13   : > { %p3591_p11 = pnand %p3148_p9, %p3560_p1  ;;  %p3323_p12 = scmp.ne.s32.totalorder %s4148_s1, %s3322_s5 }
  0x14   : > { %p3329_p5 = scmp.lt.u32.totalorder %s3322_s5, %s4148_s1 }
  0x15   : > { %p3324_p13 = pneg %p3591_p11 }
  0x17   : > { %p3325_p0 = pnand %p3324_p13, %p3323_p12 }
  0x19   : > { %p3326_p3 = pneg %p3325_p0 }
  0x1b   : > { %p3331_p7 = pnand %p3329_p5, %p3326_p3 }
  0x1d   : > { %3334 = shalt.err (!%p3331_p7)
}
  0x1e   : > { %s3335_s10 = scalar_lea.vmem %s3584_s26, 8192  ;;  %p3343_p1 = scmp.lt.s32.totalorder %s3584_s26, %s3584_s26 }
  0x1f   : > { %p3336_p9 = scmp.ne.s32.totalorder %s3584_s26, %s3335_s10  ;;  %p3344_p12 = scmp.lt.s32.totalorder %s3335_s10, %s3335_s10 }
  0x21   : > { %p3338_p10 = pnand %p3336_p9, %p3324_p13  ;;  %p3345_p0 = por %p3344_p12, %p3343_p1 }
  0x23   : > { %p3339_p6 = pneg %p3338_p10 }
  0x25   : > { %p3346_p4 = pnand %p3345_p0, %p3339_p6 }
  0x27   : > { %3349 = shalt.err (!%p3346_p4)
}
  0x28   : > { %s3498_s11 = smov 64   ;;  %s3499_s18 = smov 4  }
  0x29   : > { %3151 = dma.hbm_to_vmem [thread:$0]  (!%p3591_p11), %s4148_s1, 8192, %s3584_s26, [#allocation7], %s3498_s11, %s3498_s11, %s3499_s18  }
  0x2a   : > { %s3350_s4 = scalar_lea.hbm %s4149_s2, 16 }
  0x2b   : > { %p3351_p1 = scmp.ne.s32.totalorder %s4149_s2, %s3350_s4  ;;  %p3357_p10 = scmp.lt.u32.totalorder %s3350_s4, %s4149_s2 }
  0x2d   : > { %p3353_p4 = pnand %p3351_p1, %p3324_p13 }
  0x2f   : > { %p3354_p6 = pneg %p3353_p4 }
  0x31   : > { %p3359_p3 = pnand %p3357_p10, %p3354_p6 }
  0x33   : > { %3362 = shalt.err (!%p3359_p3)
}
  0x34   : > { %s3363_s26 = scalar_lea.vmem %s3595_s29, 16  ;;  %s3370_s9 = scalar_lea.vmem %s3595_s29, 32 }
  0x35   : > { %p3364_p5 = scmp.ne.s32.totalorder %s3595_s29, %s3363_s26  ;;  %p3371_p12 = scmp.lt.s32.totalorder %s3595_s29, %s3595_s29 }
  0x36   : > { %p3372_p0 = scmp.lt.s32.totalorder %s3370_s9, %s3363_s26 }
  0x37   : > { %p3366_p7 = pnand %p3364_p5, %p3324_p13 }
  0x38   : > { %p3373_p1 = por %p3372_p0, %p3371_p12 }
  0x39   : > { %p3367_p9 = pneg %p3366_p7 }
  0x3b   : > { %p3374_p4 = pnand %p3373_p1, %p3367_p9 }
  0x3d   : > { %3377 = shalt.err (!%p3374_p4)
}
  0x3e   : > { %3154 = dma.hbm_to_vmem [thread:$0]  (!%p3591_p11), %s4149_s2, 16, %s3595_s29, [#allocation7]  }
  0x3f   : > { %s32_s18 = sadd.s32 1, %s3490_s16  ;;  %s39_s19 = sadd.s32 1, %s3482_s14 }
  0x40   : > { %p34_p13 = scmp.ge.s32.totalorder %s32_s18, 2  ;;  %p46_p6 = scmp.ne.s32.totalorder %s3482_s14, %s3478_s13 }
  0x41   : > { %p47_p10 = scmp.eq.s32.totalorder %s3494_s17, 0  ;;  %p3165_p3 = scmp.lt.s32.totalorder %s3494_s17, 2 }
  0x42   : > { %s4174_s18 = smov (%p34_p13, %s32_s18), 0  ;;  %p3660_p7 = por %p3564_p2, %p46_p6 }
  0x43   : > { %p48_p5 = por %p47_p10, %p46_p6  ;;  %s36_s25 = ssub.s32 %s3490_s16, %s4174_s18 }
  0x44   : > { %s4161_s27 = scalar_select %p3660_p7, 1, 0 }
  0x45   : > { %s184_s28 = sand.u32 1, %s3482_s14   ;;  %p37_p9 = scmp.eq.s32.totalorder %s36_s25, 0 }
  0x46   : > { %s3133_s29 = smul.u32 160, %s184_s28  ;;  %p3667_p11 = pnand %p3165_p3, %p48_p5 }
  0x47   : > { %s3672_s4 = scalar_select %p37_p9, %s3482_s14, %s39_s19  }
  0x48   : > { %s3134_s5 = smul.u32 2560, %s3490_s16  ;;  %s188_s6 = scalar_lea.vmem [#allocation3], %s3133_s29 }
  0x49   : > { %s195_s7 = sshll.u32 %s188_s6, 4  ;;  %s3682_s9 = scalar_lea.sflag [#allocation4], %s184_s28  ;;  %s3680_s7 = int_to_ptr.vmem [resolvable:$true] %s195_s7 }
  0x4a   : > { %s3678_s26 = scalar_lea.hbm %s4147_s0, %s3134_s5  ;;  %p3380_p12 = pneg %p3667_p11 }
  0x4b   : > { %s3378_s10 = scalar_lea.hbm %s3678_s26, 2560  ;;  %s3383_s25 = scalar_lea.hbm %s4147_s0, 5120 }
  0x4c   : > { %p3379_p2 = scmp.ne.s32.totalorder %s3678_s26, %s3378_s10  ;;  %p3384_p4 = scmp.lt.u32.totalorder %s3678_s26, %s4147_s0 }
  0x4d   : > { %p3385_p13 = scmp.lt.u32.totalorder %s3383_s25, %s3378_s10  ;;  %p3387_p10 = scmp.lt.u32.totalorder %s3378_s10, %s3678_s26 }
  0x4e   : > { %p3381_p0 = pnand %p3380_p12, %p3379_p2 }
  0x4f   : > { %p3386_p6 = por %p3385_p13, %p3384_p4 }
  0x50   : > { %p3382_p1 = pneg %p3381_p0 }
  0x51   : > { %p3388_p3 = por %p3387_p10, %p3386_p6 }
  0x53   : > { %p3389_p5 = pnand %p3388_p3, %p3382_p1 }
  0x55   : > { %3392 = shalt.err (!%p3389_p5)
}
  0x56   : > { %s3393_s28 = scalar_lea.vmem %s3680_s7, 2560  ;;  %s3500_s6 = smov [#allocation3]  }
  0x57   : > { %p3394_p9 = scmp.ne.s32.totalorder %s3680_s7, %s3393_s28  ;;  %s3398_s21 = sshll.u32 %s3500_s6, 4  ;;  %s3399_s21 = int_to_ptr.vmem [resolvable:$false] %s3398_s21 }
  0x58   : > { %s3400_s8 = scalar_lea.vmem %s3399_s21, 5120  ;;  %p3401_p7 = scmp.lt.s32.totalorder %s3680_s7, %s3399_s21 }
  0x59   : > { %p3396_p2 = pnand %p3394_p9, %p3380_p12  ;;  %p3402_p4 = scmp.lt.s32.totalorder %s3400_s8, %s3393_s28 }
  0x5b   : > { %p3397_p0 = pneg %p3396_p2  ;;  %p3403_p13 = por %p3402_p4, %p3401_p7 }
  0x5d   : > { %p3404_p6 = pnand %p3403_p13, %p3397_p0 }
  0x5f   : > { %3407 = shalt.err (!%p3404_p6)
}
  0x60   : > { %s3501_s10 = smov 128   ;;  %s3502_s11 = smov 8  }
  0x61   : > { %3158 = dma.hbm_to_vmem [thread:$0]  (!%p3667_p11), %s3678_s26, 2560, %s3680_s7, %s3682_s9, %s3501_s10, %s3501_s10, %s3502_s11  }
  0x62   : > { %207 = sbr.rel (%p3580_p8) target bundleno = 605 (0x25d), region = 32  ;;  %s3713_s19 = sand.u32 (!%p3580_p8), 1, %s3478_s13  }
  0x63   : > { %s3135_s25 = smul.u32 (!%p3580_p8), 160, %s3713_s19  ;;  %s210_s29 = scalar_lea.sflag (!%p3580_p8), [#allocation4], %s3713_s19 }
  0x64   : > { %p4163_p7 = scmp.ne.s32.totalorder (!%p3580_p8), %s4157_s22, 0 }
  0x65   : > { %s3717_s5 = scalar_lea.vmem (!%p3580_p8), [#allocation3], %s3135_s25 }
  0x69   : > { %3461 = dma.done.wait (%p4163_p7), %s210_s29, 2560  }
  0x6a   : > { %3463 = vsyncadd (%p4163_p7), %s210_s29, 4294964736  ;;  %p4164_p11 = scmp.ne.s32.totalorder %s4155_s20, 0 }
  0x6c   : > { %3465 = dma.done.wait (%p4164_p11), [#allocation7], 8208  }
  0x6d   : > { %3467 = vsyncadd (%p4164_p11), [#allocation7], 4294959088  ;;  %v3225_v0 = vld [vmem:[#allocation6 + $0x40] sm:$0xff]   ;;  %v3229_v4 = vld [vmem:[#allocation6 + $0x48] sm:$0xff]   ;;  %vm701_vm0 = vsmask.f32 7424 }
  0x6e   : > { %v3226_v1 = vld [vmem:[#allocation6 + $0xc0] sm:$0xff]   ;;  %2877 = vmatprep.subr.bf16.mxu0 %v3225_v0  ;;  %v3230_v5 = vld [vmem:[#allocation6 + $0xc8] sm:$0xff]   ;;  %v3233_v8 = vld [vmem:[#allocation6 + $0x50] sm:$0xff]   ;;  %s2658_s20 = sshll.u32 %s3713_s19, 6  ;;  %s2829_s22 = sshll.u32 %s3486_s15, 10 }
  0x6f   : > { %v3227_v2 = vld [vmem:[#allocation6] sm:$0xff]   ;;  %2941 = vmatprep.subr.bf16.mxu1 %v3226_v1  ;;  %v3231_v6 = vld [vmem:[#allocation6 + $0x8] sm:$0xff]   ;;  %v3234_v9 = vld [vmem:[#allocation6 + $0xd0] sm:$0xff]   ;;  %s243_s24 = scalar_lea.vmem [#allocation9], %s2658_s20  ;;  %s4096_s26 = scalar_lea.hbm %s4150_s3, %s2829_s22 }
  0x70   : > { %v3228_v3 = vld [vmem:[#allocation6 + $0x80] sm:$0xff]   ;;  %2878 = vmatpush3.bf16.msra.mxu0 %v3227_v2  ;;  %v3232_v7 = vld [vmem:[#allocation6 + $0x88] sm:$0xff]   ;;  %v3235_v10 = vld [vmem:[#allocation6 + $0x10] sm:$0xff]   ;;  %s2542_s30 = sshll.u32 %s243_s24, 4  ;;  %s2528_s9 = scalar_lea.sflag [#allocation5], %s3713_s19  ;;  %s4098_s30 = int_to_ptr.vmem [resolvable:$true] %s2542_s30 }
  0x71   : > { %2942 = vmatpush3.bf16.msra.mxu1 %v3228_v3  ;;  %2879 = vmatprep.subr.bf16.mxu0 %v3229_v4  ;;  %v3236_v11 = vld [vmem:[#allocation6 + $0x90] sm:$0xff]   ;;  %v3237_v12 = vld [vmem:[#allocation6 + $0x58] sm:$0xff]   ;;  %v3241_v16 = vld [vmem:[#allocation6 + $0x60] sm:$0xff]   ;;  %s3408_s28 = scalar_lea.vmem %s4098_s30, 1024  ;;  %p4165_p12 = scmp.ne.s32.totalorder %s4161_s27, 0 }
  0x72   : > { %2943 = vmatprep.subr.bf16.mxu1 %v3230_v5  ;;  %v3238_v13 = vld [vmem:[#allocation6 + $0xd8] sm:$0xff]   ;;  %v3242_v17 = vld [vmem:[#allocation6 + $0xe0] sm:$0xff]   ;;  %v3245_v20 = vld [vmem:[#allocation6 + $0x68] sm:$0xff]   ;;  %p3409_p8 = scmp.ne.s32.totalorder %s4098_s30, %s3408_s28  ;;  %s3503_s6 = smov [#allocation9]  }
  0x73   : > { %v3239_v14 = vld [vmem:[#allocation6 + $0x18] sm:$0xff]   ;;  %v3243_v18 = vld [vmem:[#allocation6 + $0x20] sm:$0xff]   ;;  %v3246_v21 = vld [vmem:[#allocation6 + $0xe8] sm:$0xff]   ;;  %s3412_s21 = sshll.u32 %s3503_s6, 4  ;;  %s3413_s21 = int_to_ptr.vmem [resolvable:$false] %s3412_s21 }
  0x74   : > { %2880 = vmatpush3.bf16.msra.mxu0 %v3231_v6  ;;  %v3240_v15 = vld [vmem:[#allocation6 + $0x98] sm:$0xff]   ;;  %v3244_v19 = vld [vmem:[#allocation6 + $0xa0] sm:$0xff]   ;;  %v3247_v22 = vld [vmem:[#allocation6 + $0x28] sm:$0xff]   ;;  %p3410_p1 = pnand %p3409_p8, %p4165_p12  ;;  %s3414_s8 = scalar_lea.vmem %s3413_s21, 2048 }
  0x75   : > { %2944 = vmatpush3.bf16.msra.mxu1 %v3232_v7  ;;  %2881 = vmatprep.subr.bf16.mxu0 %v3233_v8  ;;  %v3248_v23 = vld [vmem:[#allocation6 + $0xa8] sm:$0xff]   ;;  %v3249_v24 = vld [vmem:[#allocation6 + $0x70] sm:$0xff]   ;;  %v3253_v28 = vld [vmem:[#allocation6 + $0x78] sm:$0xff]   ;;  %p3415_p3 = scmp.lt.s32.totalorder %s4098_s30, %s3413_s21  ;;  %p3416_p5 = scmp.lt.s32.totalorder %s3414_s8, %s3408_s28 }
  0x76   : > { %2945 = vmatprep.subr.bf16.mxu1 %v3234_v9  ;;  %v3250_v25 = vld [vmem:[#allocation6 + $0xf0] sm:$0xff]   ;;  %v3254_v29 = vld [vmem:[#allocation6 + $0xf8] sm:$0xff]   ;;  %v3257_v32 = vld [vmem:[%s3717_s5] ss:$8 sps:$4 sm:$0xff]   ;;  %p3411_p10 = pneg %p3410_p1 }
  0x77   : > { %v3251_v26 = vld [vmem:[#allocation6 + $0x30] sm:$0xff]   ;;  %v3255_v30 = vld [vmem:[#allocation6 + $0x38] sm:$0xff]   ;;  %v3259_v33 = vld [vmem:[%s3717_s5 + $0x4] ss:$8 sps:$4 sm:$0xff]   ;;  %v703_v36 = vshrl.u32 %v3257_v32, 16  ;;  %v705_v37 = vshll.u32 %v3257_v32, 16  ;;  %p3417_p9 = por %p3416_p5, %p3415_p3 }
  0x78   : > { %2882 = vmatpush3.bf16.msra.mxu0 %v3235_v10  ;;  %v3252_v27 = vld [vmem:[#allocation6 + $0xb0] sm:$0xff]   ;;  %v3256_v31 = vld [vmem:[#allocation6 + $0xb8] sm:$0xff]   ;;  %501 = vmatprep.mubr.bf16.mxu0 %v3259_v33  ;;  %v715_v38 = vshrl.u32 %v3259_v33, 16  ;;  %v717_v39 = vshll.u32 %v3259_v33, 16  ;;  %v3263_v43 = vld [vmem:[#allocation6 + $0x140] sm:$0xff]  }
  0x79   : > { %2946 = vmatpush3.bf16.msra.mxu1 %v3236_v11  ;;  %2883 = vmatprep.subr.bf16.mxu0 %v3237_v12  ;;  %v3730_v34 = vld [vmem:[%s3717_s5 + $0x14] ss:$8 sps:$4 sm:$0xff]   ;;  %v3733_v35 = vld [vmem:[%s3717_s5 + $0x10] ss:$8 sps:$4 sm:$0xff]   ;;  %v707_v41 = vrot.slane %v705_v37, 1  ;;  %v3264_v45 = vld [vmem:[#allocation6 + $0x100] sm:$0xff]   ;;  %p3418_p2 = pnand %p3417_p9, %p3411_p10 }
  0x7a   : > { %2947 = vmatprep.subr.bf16.mxu1 %v3238_v13  ;;  %v722_v40 = vshll.u32 %v3730_v34, 16  ;;  %v710_v42 = vshll.u32 %v3733_v35, 16  ;;  %v719_v44 = vrot.slane %v717_v39, 1  ;;  %v3265_v49 = vld [vmem:[#allocation6 + $0x1c0] sm:$0xff]   ;;  %v734_v52 = vshrl.u32 %v3730_v34, 16  ;;  %v3270_v58 = vld [vmem:[#allocation6 + $0x148] sm:$0xff]  }
  0x7b   : > { %v708_v47 = vor.u32 %v707_v41, %v703_v36  ;;  %v3266_v50 = vld [vmem:[#allocation6 + $0x180] sm:$0xff]   ;;  %v726_v56 = vshrl.u32 %v3733_v35, 16  ;;  %v3271_v62 = vld [vmem:[#allocation6 + $0x108] sm:$0xff]   ;;  %v3757_v6 = vld [vmem:[%s3717_s5 + $0x34] ss:$8 sps:$4 sm:$0xff]  }
  0x7c   : > { %2884 = vmatpush3.bf16.msra.mxu0 %v3239_v14  ;;  %v724_v46 = vrot.slane %v722_v40, 1  ;;  %v712_v48 = vrot.slane %v710_v42, 1  ;;  %v720_v51 = vor.u32 %v719_v44, %v715_v38  ;;  %v3741_v54 = vld [vmem:[%s3717_s5 + $0x24] ss:$8 sps:$4 sm:$0xff]   ;;  %v3744_v55 = vld [vmem:[%s3717_s5 + $0x20] ss:$8 sps:$4 sm:$0xff]  }
  0x7d   : > { %2948 = vmatpush3.bf16.msra.mxu1 %v3240_v15  ;;  %2885 = vmatprep.subr.bf16.mxu0 %v3241_v16  ;;  %v738_v60 = vshll.u32 %v3741_v54, 16  ;;  %v730_v61 = vshll.u32 %v3744_v55, 16  ;;  %v750_v63 = vshrl.u32 %v3741_v54, 16  ;;  %v3272_v3 = vld [vmem:[#allocation6 + $0x1c8] sm:$0xff]   ;;  %v3760_v7 = vld [vmem:[%s3717_s5 + $0x30] ss:$8 sps:$4 sm:$0xff]  }
  0x7e   : > { %2949 = vmatprep.subr.bf16.mxu1 %v3242_v17  ;;  %v713_v53 = vsel %vm701_vm0, %v708_v47, %v712_v48  ;;  %v725_v57 = vsel %vm701_vm0, %v720_v51, %v724_v46  ;;  %v736_v59 = vor.u32 %v734_v52, %v724_v46  ;;  %v728_v1 = vor.u32 %v726_v56, %v712_v48  ;;  %v3273_v4 = vld [vmem:[#allocation6 + $0x188] sm:$0xff]   ;;  %v3277_v9 = vld [vmem:[#allocation6 + $0x150] sm:$0xff]   ;;  %v3291_v40 = vld [vmem:[#allocation6 + $0x160] sm:$0xff]  }
  0x7f   : > { %982 = vmatprep.mubr.bf16.mxu1 %v725_v57  ;;  %v740_v0 = vrot.slane %v738_v60, 1  ;;  %v732_v2 = vrot.slane %v730_v61, 1  ;;  %v742_v8 = vshrl.u32 %v3744_v55, 16  ;;  %v754_v12 = vshll.u32 %v3757_v6, 16  ;;  %v3278_v14 = vld [vmem:[#allocation6 + $0x110] sm:$0xff]   ;;  %v3293_v44 = vld [vmem:[#allocation6 + $0x1e0] sm:$0xff]  }
  0x80   : > { %2886 = vmatpush3.bf16.msra.mxu0 %v3243_v18  ;;  %v746_v13 = vshll.u32 %v3760_v7, 16  ;;  %v3279_v15 = vld [vmem:[#allocation6 + $0x1d0] sm:$0xff]   ;;  %v3771_v18 = vld [vmem:[%s3717_s5 + $0x44] ss:$8 sps:$4 sm:$0xff]   ;;  %v758_v33 = vshrl.u32 %v3760_v7, 16 }
  0x81   : > { %2950 = vmatpush3.bf16.msra.mxu1 %v3244_v19  ;;  %2887 = vmatprep.subr.bf16.mxu0 %v3245_v20  ;;  %v3754_v5 = vsel %vm701_vm0, %v736_v59, %v740_v0  ;;  %v3765_v10 = vsel %vm701_vm0, %v728_v1, %v732_v2  ;;  %v752_v11 = vor.u32 %v750_v63, %v740_v0  ;;  %v756_v16 = vrot.slane %v754_v12, 1  ;;  %v3280_v17 = vld [vmem:[#allocation6 + $0x190] sm:$0xff]   ;;  %v3775_v20 = vld [vmem:[%s3717_s5 + $0x40] ss:$8 sps:$4 sm:$0xff]  }
  0x82   : > { %2951 = vmatprep.subr.bf16.mxu1 %v3246_v21  ;;  %v766_v19 = vshrl.u32 %v3757_v6, 16  ;;  %v782_v36 = vshrl.u32 %v3771_v18, 16  ;;  %v3794_v38 = vld [vmem:[%s3717_s5 + $0x54] ss:$8 sps:$4 sm:$0xff]   ;;  %v3797_v39 = vld [vmem:[%s3717_s5 + $0x50] ss:$8 sps:$4 sm:$0xff]  }
  0x83   : > { %v3778_v21 = vsel %vm701_vm0, %v752_v11, %v756_v16  ;;  %v786_v42 = vshll.u32 %v3794_v38, 16  ;;  %v3294_v48 = vld [vmem:[#allocation6 + $0x1a0] sm:$0xff]   ;;  %v3298_v51 = vld [vmem:[#allocation6 + $0x168] sm:$0xff]   ;;  %v798_v56 = vshrl.u32 %v3794_v38, 16  ;;  %v3824_v1 = vld [vmem:[%s3717_s5 + $0x74] ss:$8 sps:$4 sm:$0xff]  }
  0x84   : > { %2888 = vmatpush3.bf16.msra.mxu0 %v3247_v22  ;;  %v744_v22 = vor.u32 %v742_v8, %v732_v2  ;;  %v3299_v59 = vld [vmem:[#allocation6 + $0x128] sm:$0xff]   ;;  %v3306_v8 = vld [vmem:[#allocation6 + $0x130] sm:$0xff]   ;;  %v790_v12 = vshrl.u32 %v3797_v39, 16 }
  0x85   : > { %2952 = vmatpush3.bf16.msra.mxu1 %v3248_v23  ;;  %2889 = vmatprep.subr.bf16.mxu0 %v3249_v24  ;;  %v748_v23 = vrot.slane %v746_v13, 1  ;;  %v3284_v24 = vld [vmem:[#allocation6 + $0x158] sm:$0xff]   ;;  %v788_v47 = vrot.slane %v786_v42, 1  ;;  %v3300_v60 = vld [vmem:[#allocation6 + $0x1e8] sm:$0xff]   ;;  %v830_v42 = vshrl.u32 %v3824_v1, 16 }
  0x86   : > { %2953 = vmatprep.subr.bf16.mxu1 %v3250_v25  ;;  %v768_v25 = vor.u32 %v766_v19, %v756_v16  ;;  %v3301_v61 = vld [vmem:[#allocation6 + $0x1a8] sm:$0xff]   ;;  %v598_v19 = vld [vmem:[%s3717_s5 + $0x80] sm:$0x11] }
  0x87   : > { %v3821_v0 = vld [vmem:[%s3717_s5 + $0x60] ss:$8 sps:$4 sm:$0xff]   ;;  %v800_v2 = vor.u32 %v798_v56, %v788_v47 }
  0x88   : > { %2890 = vmatpush3.bf16.msra.mxu0 %v3251_v26  ;;  %v770_v26 = vshll.u32 %v3771_v18, 16  ;;  %v794_v13 = vshll.u32 %v3821_v0, 16 }
  0x89   : > { %2954 = vmatpush3.bf16.msra.mxu1 %v3252_v27  ;;  %2891 = vmatprep.subr.bf16.mxu0 %v3253_v28  ;;  %v3285_v27 = vld [vmem:[#allocation6 + $0x118] sm:$0xff]  }
  0x8a   : > { %2955 = vmatprep.subr.bf16.mxu1 %v3254_v29  ;;  %v772_v28 = vrot.slane %v770_v26, 1  ;;  %v762_v29 = vshll.u32 %v3775_v20, 16  ;;  %v796_v26 = vrot.slane %v794_v13, 1 }
  0x8c   : > { %2892 = vmatpush3.bf16.msra.mxu0 %v3255_v30  ;;  %v3286_v30 = vld [vmem:[#allocation6 + $0x1d8] sm:$0xff]   ;;  %v3791_v37 = vsel %vm701_vm0, %v768_v25, %v772_v28  ;;  %v764_v41 = vrot.slane %v762_v29, 1  ;;  %v784_v46 = vor.u32 %v782_v36, %v772_v28  ;;  %v806_v36 = vshrl.u32 %v3821_v0, 16 }
  0x8d   : > { %2956 = vmatpush3.bf16.msra.mxu1 %v3256_v31  ;;  %3005 = vmatprep.subr.bf16.mxu0 %v3263_v43  ;;  %v3287_v31 = vld [vmem:[#allocation6 + $0x198] sm:$0xff]   ;;  %v3292_v43 = vld [vmem:[#allocation6 + $0x120] sm:$0xff]  }
  0x8e   : > { %3069 = vmatprep.subr.bf16.mxu1 %v3265_v49  ;;  %v3805_v49 = vld [vmem:[%s3717_s5 + $0x64] ss:$8 sps:$4 sm:$0xff]   ;;  %v3814_v57 = vsel %vm701_vm0, %v784_v46, %v788_v47  ;;  %v2707_v46 = vcombine.low %v598_v19, %v598_v19 }
  0x8f   : > { %502 = vmatmul.mubr.bf16.vlgmr.msra.gmra.mrb[0].mxu0 %v3257_v32  ;;  %v3786_v32 = vsel %vm701_vm0, %v744_v22, %v748_v23  ;;  %v3311_v22 = vld [vmem:[#allocation6 + $0x178] sm:$0xff]  }
  0x90   : > { %509 = vmatprep.mubr.bf16.mxu0 %v3730_v34  ;;  %3006 = vmatpush3.bf16.msra.mxu0 %v3264_v45  ;;  %v760_v45 = vor.u32 %v758_v33, %v748_v23  ;;  %v3839_v23 = vld [vmem:[%s3717_s5 + $0x70] ss:$8 sps:$4 sm:$0xff]  }
  0x91   : > { %983 = vmatmul.mubr.bf16.vlgmr.msra.gmra.mrb[0].mxu1 %v713_v53  ;;  %3007 = vmatprep.subr.bf16.mxu0 %v3270_v58  ;;  %v774_v53 = vshrl.u32 %v3775_v20, 16  ;;  %v802_v58 = vshll.u32 %v3805_v49, 16 }
  0x92   : > { %3070 = vmatpush3.bf16.msra.mxu1 %v3266_v50  ;;  %990 = vmatprep.mubr.bf16.mxu1 %v3754_v5  ;;  %v778_v50 = vshll.u32 %v3797_v39, 16  ;;  %v3809_v52 = vsel %vm701_vm0, %v760_v45, %v764_v41 }
  0x93   : > { %3071 = vmatprep.subr.bf16.mxu1 %v3272_v3  ;;  %v776_v63 = vor.u32 %v774_v53, %v764_v41  ;;  %v804_v3 = vrot.slane %v802_v58, 1  ;;  %v826_v53 = vshll.u32 %v2707_v46, 16 }
  0x94   : > { %3008 = vmatpush3.bf16.msra.mxu0 %v3271_v62  ;;  %v780_v62 = vrot.slane %v778_v50, 1 }
  0x95   : > { %3009 = vmatprep.subr.bf16.mxu0 %v3277_v9  ;;  %v3307_v9 = vld [vmem:[#allocation6 + $0x1f0] sm:$0xff]   ;;  %v3834_v16 = vsel %vm701_vm0, %v800_v2, %v804_v3 }
  0x96   : > { %3072 = vmatpush3.bf16.msra.mxu1 %v3273_v4  ;;  %v3305_v4 = vld [vmem:[#allocation6 + $0x170] sm:$0xff]   ;;  %v3828_v11 = vsel %vm701_vm0, %v776_v63, %v780_v62  ;;  %v792_v25 = vor.u32 %v790_v12, %v780_v62 }
  0x97   : > { %510 = vmatmul.mubr.bf16.gmra.mrb[4].mxu0 %v3733_v35  ;;  %3073 = vmatprep.subr.bf16.mxu1 %v3279_v15  ;;  %v3308_v15 = vld [vmem:[#allocation6 + $0x1b0] sm:$0xff]  }
  0x98   : > { %517 = vmatprep.mubr.bf16.mxu0 %v3741_v54  ;;  %3010 = vmatpush3.bf16.msra.mxu0 %v3278_v14  ;;  %v814_v14 = vshrl.u32 %v3805_v49, 16  ;;  %v797_v33 = vsel %vm701_vm0, %v792_v25, %v796_v26 }
  0x99   : > { %991 = vmatmul.mubr.bf16.gmra.mrb[4].mxu1 %v3765_v10  ;;  %3011 = vmatprep.subr.bf16.mxu0 %v3284_v24  ;;  %v3312_v24 = vld [vmem:[#allocation6 + $0x138] sm:$0xff]  }
  0x9a   : > { %3074 = vmatpush3.bf16.msra.mxu1 %v3280_v17  ;;  %998 = vmatprep.mubr.bf16.mxu1 %v3778_v21  ;;  %v818_v17 = vshll.u32 %v3824_v1, 16  ;;  %v816_v28 = vor.u32 %v814_v14, %v804_v3 }
  0x9b   : > { %3075 = vmatprep.subr.bf16.mxu1 %v3286_v30  ;;  %v2708_v30 = vcombine.high %v598_v19, %v598_v19 }
  0x9c   : > { %3012 = vmatpush3.bf16.msra.mxu0 %v3285_v27  ;;  %v3313_v27 = vld [vmem:[#allocation6 + $0x1f8] sm:$0xff]   ;;  %v820_v29 = vrot.slane %v818_v17, 1 }
  0x9d   : > { %3013 = vmatprep.subr.bf16.mxu0 %v3291_v40  ;;  %v810_v40 = vshll.u32 %v3839_v23, 16 }
  0x9e   : > { %3076 = vmatpush3.bf16.msra.mxu1 %v3287_v31  ;;  %v3314_v31 = vld [vmem:[#allocation6 + $0x1b8] sm:$0xff]   ;;  %v821_v41 = vsel %vm701_vm0, %v816_v28, %v820_v29  ;;  %v832_v47 = vor.u32 %v830_v42, %v820_v29 }
  0x9f   : > { %518 = vmatmul.mubr.bf16.gmra.mrb[8].mxu0 %v3744_v55  ;;  %3077 = vmatprep.subr.bf16.mxu1 %v3293_v44  ;;  %v808_v44 = vor.u32 %v806_v36, %v796_v26  ;;  %v812_v45 = vrot.slane %v810_v40, 1 }
  0xa0   : > { %525 = vmatprep.mubr.bf16.mxu0 %v3757_v6  ;;  %3014 = vmatpush3.bf16.msra.mxu0 %v3292_v43  ;;  %v834_v43 = vshll.u32 %v2708_v30, 16 }
  0xa1   : > { %999 = vmatmul.mubr.bf16.gmra.mrb[8].mxu1 %v3786_v32  ;;  %3015 = vmatprep.subr.bf16.mxu0 %v3298_v51  ;;  %v813_v50 = vsel %vm701_vm0, %v808_v44, %v812_v45  ;;  %v822_v51 = vshrl.u32 %v3839_v23, 16 }
  0xa2   : > { %1006 = vmatprep.mubr.bf16.mxu1 %v3791_v37  ;;  %3078 = vmatpush3.bf16.msra.mxu1 %v3294_v48  ;;  %v836_v48 = vrot.slane %v834_v43, 1 }
  0xa3   : > { %3079 = vmatprep.subr.bf16.mxu1 %v3300_v60  ;;  %v824_v58 = vor.u32 %v822_v51, %v812_v45 }
  0xa4   : > { %3016 = vmatpush3.bf16.msra.mxu0 %v3299_v59  ;;  %v837_v56 = vsel %vm701_vm0, %v832_v47, %v836_v48  ;;  %v828_v59 = vrot.slane %v826_v53, 1 }
  0xa5   : > { %3017 = vmatprep.subr.bf16.mxu0 %v3305_v4 }
  0xa6   : > { %3080 = vmatpush3.bf16.msra.mxu1 %v3301_v61  ;;  %v829_v60 = vsel %vm701_vm0, %v824_v58, %v828_v59 }
  0xa7   : > { %526 = vmatmul.mubr.bf16.gmra.mrb[12].mxu0 %v3760_v7  ;;  %3081 = vmatprep.subr.bf16.mxu1 %v3307_v9 }
  0xa8   : > { %533 = vmatprep.mubr.bf16.mxu0 %v3771_v18  ;;  %3018 = vmatpush3.bf16.msra.mxu0 %v3306_v8 }
  0xa9   : > { %1007 = vmatmul.mubr.bf16.gmra.mrb[12].mxu1 %v3809_v52  ;;  %3019 = vmatprep.subr.bf16.mxu0 %v3311_v22 }
  0xaa   : > { %1014 = vmatprep.mubr.bf16.mxu1 %v3814_v57  ;;  %3082 = vmatpush3.bf16.msra.mxu1 %v3308_v15 }
  0xab   : > { %3083 = vmatprep.subr.bf16.mxu1 %v3313_v27 }
  0xac   : > { %3020 = vmatpush3.bf16.msra.mxu0 %v3312_v24 }
  0xae   : > { %3084 = vmatpush3.bf16.msra.mxu1 %v3314_v31 }
  0xaf   : > { %534 = vmatmul.mubr.bf16.gmra.mrb[16].mxu0 %v3775_v20 }
  0xb0   : > { %541 = vmatprep.mubr.bf16.mxu0 %v3794_v38 }
  0xb1   : > { %1015 = vmatmul.mubr.bf16.gmra.mrb[16].mxu1 %v3828_v11 }
  0xb2   : > { %1022 = vmatprep.mubr.bf16.mxu1 %v3834_v16 }
  0xb7   : > { %542 = vmatmul.mubr.bf16.gmra.mrb[20].mxu0 %v3797_v39 }
  0xb8   : > { %549 = vmatprep.mubr.bf16.mxu0 %v3805_v49 }
  0xb9   : > { %1023 = vmatmul.mubr.bf16.gmra.mrb[20].mxu1 %v797_v33 }
  0xba   : > { %1030 = vmatprep.mubr.bf16.mxu1 %v821_v41 }
  0xbf   : > { %550 = vmatmul.mubr.bf16.gmra.mrb[24].mxu0 %v3821_v0 }
  0xc0   : > { %557 = vmatprep.mubr.bf16.mxu0 %v3824_v1 }
  0xc1   : > { %1031 = vmatmul.mubr.bf16.gmra.mrb[24].mxu1 %v813_v50 }
  0xc2   : > { %1038 = vmatprep.mubr.bf16.mxu1 %v837_v56 }
  0xc7   : > { %558 = vmatmul.mubr.bf16.gmra.mrb[28].mxu0 %v3839_v23 }
  0xc8   : > { %1352 = vmatprep.mubr.bf16.mxu0 %v3730_v34  ;;  %v3315_v34 = vld [vmem:[%s3717_s5 + $0x84] ss:$8 sps:$4 sm:$0xff]  }
  0xc9   : > { %1039 = vmatmul.mubr.bf16.gmra.mrb[28].mxu1 %v829_v60 }
  0xca   : > { %1864 = vmatprep.mubr.bf16.mxu1 %v3754_v5 }
  0xcf   : > { %1353 = vmatmul.mubr.bf16.vlgmr.msra.gmra.mrb[32].mxu0 %v3733_v35  ;;  %v1700_v35 = vshll.u32 %v3315_v34, 16 }
  0xd0   : > { %1360 = vmatprep.mubr.bf16.mxu0 %v3741_v54  ;;  %v1481_v54 = vld [vmem:[%s3717_s5 + $0x90] sm:$0x11] }
  0xd1   : > { %1865 = vmatmul.mubr.bf16.vlgmr.msra.gmra.mrb[32].mxu1 %v3765_v10  ;;  %v1702_v5 = vrot.slane %v1700_v35, 1 }
  0xd2   : > { %1872 = vmatprep.mubr.bf16.mxu1 %v3778_v21 }
  0xd3   : > { %v1703_v10 = vsel %vm701_vm0, %v832_v47, %v1702_v5 }
  0xd7   : > { %1361 = vmatmul.mubr.bf16.gmra.mrb[36].mxu0 %v3744_v55  ;;  %v3317_v55 = vld [vmem:[%s3717_s5 + $0x80] ss:$8 sps:$4 sm:$0xff]  }
  0xd8   : > { %1368 = vmatprep.mubr.bf16.mxu0 %v3757_v6  ;;  %v2774_v6 = vcombine.high %v1481_v54, %v1481_v54 }
  0xd9   : > { %1873 = vmatmul.mubr.bf16.gmra.mrb[36].mxu1 %v3786_v32  ;;  %v2773_v32 = vcombine.low %v1481_v54, %v1481_v54 }
  0xda   : > { %1880 = vmatprep.mubr.bf16.mxu1 %v3791_v37 }
  0xdf   : > { %1369 = vmatmul.mubr.bf16.gmra.mrb[40].mxu0 %v3760_v7  ;;  %v1692_v7 = vshll.u32 %v3317_v55, 16 }
  0xe0   : > { %1376 = vmatprep.mubr.bf16.mxu0 %v3771_v18  ;;  %v1712_v18 = vshrl.u32 %v3315_v34, 16 }
  0xe1   : > { %1881 = vmatmul.mubr.bf16.gmra.mrb[40].mxu1 %v3809_v52  ;;  %v1694_v21 = vrot.slane %v1692_v7, 1  ;;  %v1708_v52 = vshll.u32 %v2773_v32, 16 }
  0xe2   : > { %1888 = vmatprep.mubr.bf16.mxu1 %v3814_v57  ;;  %v1714_v37 = vor.u32 %v1712_v18, %v1702_v5 }
  0xe3   : > { %v1710_v62 = vrot.slane %v1708_v52, 1 }
  0xe7   : > { %1377 = vmatmul.mubr.bf16.gmra.mrb[44].mxu0 %v3775_v20  ;;  %v1716_v20 = vshll.u32 %v2774_v6, 16 }
  0xe8   : > { %1384 = vmatprep.mubr.bf16.mxu0 %v3794_v38 }
  0xe9   : > { %1889 = vmatmul.mubr.bf16.gmra.mrb[44].mxu1 %v3828_v11  ;;  %v1718_v38 = vrot.slane %v1716_v20, 1 }
  0xea   : > { %1896 = vmatprep.mubr.bf16.mxu1 %v3834_v16 }
  0xeb   : > { %v1719_v57 = vsel %vm701_vm0, %v1714_v37, %v1718_v38 }
  0xef   : > { %1385 = vmatmul.mubr.bf16.gmra.mrb[48].mxu0 %v3797_v39  ;;  %v1695_v39 = vsel %vm701_vm0, %v824_v58, %v1694_v21 }
  0xf0   : > { %1392 = vmatprep.mubr.bf16.mxu0 %v3805_v49  ;;  %v1704_v49 = vshrl.u32 %v3317_v55, 16 }
  0xf1   : > { %1897 = vmatmul.mubr.bf16.gmra.mrb[48].mxu1 %v797_v33 }
  0xf2   : > { %1904 = vmatprep.mubr.bf16.mxu1 %v821_v41  ;;  %v1706_v61 = vor.u32 %v1704_v49, %v1694_v21 }
  0xf4   : > { %v1711_v63 = vsel %vm701_vm0, %v1706_v61, %v1710_v62 }
  0xf7   : > { %1393 = vmatmul.mubr.bf16.gmra.mrb[52].mxu0 %v3821_v0 }
  0xf8   : > { %1400 = vmatprep.mubr.bf16.mxu0 %v3824_v1 }
  0xf9   : > { %1905 = vmatmul.mubr.bf16.gmra.mrb[52].mxu1 %v813_v50 }
  0xfa   : > { %1912 = vmatprep.mubr.bf16.mxu1 %v1703_v10 }
  0xff   : > { %1401 = vmatmul.mubr.bf16.gmra.mrb[56].mxu0 %v3839_v23 }
 0x100   : > { %1408 = vmatprep.mubr.bf16.mxu0 %v3315_v34 }
 0x101   : > { %1913 = vmatmul.mubr.bf16.gmra.mrb[56].mxu1 %v1695_v39 }
 0x102   : > { %1920 = vmatprep.mubr.bf16.mxu1 %v1719_v57 }
 0x107   : > { %1409 = vmatmul.mubr.bf16.gmra.mrb[60].mxu0 %v3317_v55 }
 0x109   : > { %1921 = vmatmul.mubr.bf16.gmra.mrb[60].mxu1 %v1711_v63 }
 0x162   : > { %v2893_v0 = vpop.f32.mrb[0].mxu0 }
 0x163   : > { %v2894_v1 = vpop.f32.mrb[1].mxu0 }
 0x164   : > { %v2895_v2 = vadd.f32 %v2894_v1, %v2893_v0  ;;  %v2896_v3 = vpop.f32.mrb[2].mxu0  ;;  %v2957_v9 = vpop.f32.mrb[0].mxu1 }
 0x165   : > { %v2897_v4 = vpop.f32.mrb[3].mxu0  ;;  %v2958_v11 = vpop.f32.mrb[1].mxu1 }
 0x166   : > { %v2898_v8 = vadd.f32 %v2897_v4, %v2896_v3  ;;  %v2959_v13 = vadd.f32 %v2958_v11, %v2957_v9  ;;  %v2960_v14 = vpop.f32.mrb[2].mxu1 }
 0x167   : > { %v2961_v16 = vpop.f32.mrb[3].mxu1 }
 0x168   : > { %v3887_v22 = vadd.f32 %v2959_v13, %v2895_v2  ;;  %v2962_v23 = vadd.f32 %v2961_v16, %v2960_v14 }
 0x16a   : > { %v2899_v12 = vpop.f32.mrb[4].mxu0  ;;  %v3889_v26 = vadd.f32 %v2962_v23, %v2898_v8 }
 0x16b   : > { %v2900_v15 = vpop.f32.mrb[5].mxu0 }
 0x16c   : > { %v2901_v17 = vadd.f32 %v2900_v15, %v2899_v12  ;;  %v2902_v19 = vpop.f32.mrb[6].mxu0  ;;  %v2963_v27 = vpop.f32.mrb[4].mxu1 }
 0x16d   : > { %v2903_v24 = vpop.f32.mrb[7].mxu0  ;;  %v2964_v28 = vpop.f32.mrb[5].mxu1 }
 0x16e   : > { %v2904_v25 = vadd.f32 %v2903_v24, %v2902_v19  ;;  %v2965_v30 = vadd.f32 %v2964_v28, %v2963_v27  ;;  %v2966_v31 = vpop.f32.mrb[6].mxu1 }
 0x16f   : > { %v2967_v36 = vpop.f32.mrb[7].mxu1 }
 0x170   : > { %v3891_v42 = vadd.f32 %v2965_v30, %v2901_v17  ;;  %v2968_v43 = vadd.f32 %v2967_v36, %v2966_v31 }
 0x172   : > { %v2905_v29 = vpop.f32.mrb[8].mxu0  ;;  %v3893_v46 = vadd.f32 %v2968_v43, %v2904_v25 }
 0x173   : > { %v2906_v33 = vpop.f32.mrb[9].mxu0 }
 0x174   : > { %v2907_v40 = vadd.f32 %v2906_v33, %v2905_v29  ;;  %v2908_v41 = vpop.f32.mrb[10].mxu0  ;;  %v2969_v47 = vpop.f32.mrb[8].mxu1 }
 0x175   : > { %v2909_v44 = vpop.f32.mrb[11].mxu0  ;;  %v2970_v48 = vpop.f32.mrb[9].mxu1 }
 0x176   : > { %v2910_v45 = vadd.f32 %v2909_v44, %v2908_v41  ;;  %v2971_v51 = vadd.f32 %v2970_v48, %v2969_v47  ;;  %v2972_v53 = vpop.f32.mrb[10].mxu1 }
 0x177   : > { %v2973_v58 = vpop.f32.mrb[11].mxu1 }
 0x178   : > { %v3895_v34 = vadd.f32 %v2971_v51, %v2907_v40  ;;  %v2974_v35 = vadd.f32 %v2973_v58, %v2972_v53 }
 0x17a   : > { %v2911_v50 = vpop.f32.mrb[12].mxu0  ;;  %v3897_v5 = vadd.f32 %v2974_v35, %v2910_v45 }
 0x17b   : > { %v2912_v56 = vpop.f32.mrb[13].mxu0 }
 0x17c   : > { %v2913_v59 = vadd.f32 %v2912_v56, %v2911_v50  ;;  %v2914_v60 = vpop.f32.mrb[14].mxu0  ;;  %v2975_v6 = vpop.f32.mrb[12].mxu1 }
 0x17d   : > { %v2915_v54 = vpop.f32.mrb[15].mxu0  ;;  %v2976_v7 = vpop.f32.mrb[13].mxu1 }
 0x17e   : > { %v2916_v55 = vadd.f32 %v2915_v54, %v2914_v60  ;;  %v2977_v18 = vadd.f32 %v2976_v7, %v2975_v6  ;;  %v2978_v20 = vpop.f32.mrb[14].mxu1 }
 0x17f   : > { %v2979_v32 = vpop.f32.mrb[15].mxu1 }
 0x180   : > { %v3899_v39 = vadd.f32 %v2977_v18, %v2913_v59  ;;  %v2980_v49 = vadd.f32 %v2979_v32, %v2978_v20 }
 0x182   : > { %v2917_v10 = vpop.f32.mrb[16].mxu0  ;;  %v3901_v61 = vadd.f32 %v2980_v49, %v2916_v55 }
 0x183   : > { %v2918_v21 = vpop.f32.mrb[17].mxu0 }
 0x184   : > { %v2919_v37 = vadd.f32 %v2918_v21, %v2917_v10  ;;  %v2920_v38 = vpop.f32.mrb[18].mxu0  ;;  %v2981_v62 = vpop.f32.mrb[16].mxu1 }
 0x185   : > { %v2921_v52 = vpop.f32.mrb[19].mxu0  ;;  %v2982_v63 = vpop.f32.mrb[17].mxu1 }
 0x186   : > { %v2922_v57 = vadd.f32 %v2921_v52, %v2920_v38  ;;  %v2983_v1 = vadd.f32 %v2982_v63, %v2981_v62  ;;  %v2984_v2 = vpop.f32.mrb[18].mxu1 }
 0x187   : > { %v2985_v4 = vpop.f32.mrb[19].mxu1 }
 0x188   : > { %v3903_v11 = vadd.f32 %v2983_v1, %v2919_v37  ;;  %v2986_v12 = vadd.f32 %v2985_v4, %v2984_v2 }
 0x18a   : > { %v2923_v0 = vpop.f32.mrb[20].mxu0  ;;  %v3905_v15 = vadd.f32 %v2986_v12, %v2922_v57 }
 0x18b   : > { %v2924_v3 = vpop.f32.mrb[21].mxu0 }
 0x18c   : > { %v2925_v8 = vadd.f32 %v2924_v3, %v2923_v0  ;;  %v2926_v9 = vpop.f32.mrb[22].mxu0  ;;  %v2987_v16 = vpop.f32.mrb[20].mxu1 }
 0x18d   : > { %v2927_v13 = vpop.f32.mrb[23].mxu0  ;;  %v2988_v17 = vpop.f32.mrb[21].mxu1 }
 0x18e   : > { %v2928_v14 = vadd.f32 %v2927_v13, %v2926_v9  ;;  %v2989_v23 = vadd.f32 %v2988_v17, %v2987_v16  ;;  %v2990_v24 = vpop.f32.mrb[22].mxu1 }
 0x18f   : > { %v2991_v27 = vpop.f32.mrb[23].mxu1 }
 0x190   : > { %v3907_v30 = vadd.f32 %v2989_v23, %v2925_v8  ;;  %v2992_v31 = vadd.f32 %v2991_v27, %v2990_v24  ;;  %v3922_v24 = vld [vmem:[#allocation8] ss:$0 sm:$0xff] }
 0x192   : > { %v2929_v19 = vpop.f32.mrb[24].mxu0  ;;  %v3909_v40 = vadd.f32 %v2992_v31, %v2928_v14 }
 0x193   : > { %v2930_v25 = vpop.f32.mrb[25].mxu0 }
 0x194   : > { %v2931_v28 = vadd.f32 %v2930_v25, %v2929_v19  ;;  %v2932_v29 = vpop.f32.mrb[26].mxu0  ;;  %v2993_v41 = vpop.f32.mrb[24].mxu1 }
 0x195   : > { %v2933_v33 = vpop.f32.mrb[27].mxu0  ;;  %v2994_v43 = vpop.f32.mrb[25].mxu1 }
 0x196   : > { %v2934_v36 = vadd.f32 %v2933_v33, %v2932_v29  ;;  %v2995_v45 = vadd.f32 %v2994_v43, %v2993_v41  ;;  %v2996_v47 = vpop.f32.mrb[26].mxu1 }
 0x197   : > { %v2997_v50 = vpop.f32.mrb[27].mxu1 }
 0x198   : > { %v3911_v56 = vadd.f32 %v2995_v45, %v2931_v28  ;;  %v2998_v58 = vadd.f32 %v2997_v50, %v2996_v47 }
 0x19a   : > { %v2935_v44 = vpop.f32.mrb[28].mxu0  ;;  %v3913_v35 = vadd.f32 %v2998_v58, %v2934_v36 }
 0x19b   : > { %v2936_v48 = vpop.f32.mrb[29].mxu0 }
 0x19c   : > { %v2937_v51 = vadd.f32 %v2936_v48, %v2935_v44  ;;  %v2938_v53 = vpop.f32.mrb[30].mxu0  ;;  %v2999_v54 = vpop.f32.mrb[28].mxu1 }
 0x19d   : > { %v2939_v59 = vpop.f32.mrb[31].mxu0  ;;  %v3000_v55 = vpop.f32.mrb[29].mxu1 }
 0x19e   : > { %v2940_v60 = vadd.f32 %v2939_v59, %v2938_v53  ;;  %v3001_v7 = vadd.f32 %v3000_v55, %v2999_v54  ;;  %v3002_v10 = vpop.f32.mrb[30].mxu1 }
 0x19f   : > { %v3003_v20 = vpop.f32.mrb[31].mxu1 }
 0x1a0   : > { %v3915_v37 = vadd.f32 %v3001_v7, %v2937_v51  ;;  %v3004_v38 = vadd.f32 %v3003_v20, %v3002_v10 }
 0x1a2   : > { %v3021_v6 = vpop.f32.mrb[32].mxu0  ;;  %v3918_v62 = vadd.f32 %v3004_v38, %v2940_v60 }
 0x1a3   : > { %v3022_v18 = vpop.f32.mrb[33].mxu0 }
 0x1a4   : > { %v3023_v21 = vadd.f32 %v3022_v18, %v3021_v6  ;;  %v3024_v32 = vpop.f32.mrb[34].mxu0  ;;  %v3085_v0 = vpop.f32.mrb[32].mxu1 }
 0x1a5   : > { %v3025_v49 = vpop.f32.mrb[35].mxu0  ;;  %v3086_v1 = vpop.f32.mrb[33].mxu1 }
 0x1a6   : > { %v1433_v52 = vadd.f32 %v3023_v21, %v3887_v22  ;;  %v3026_v57 = vadd.f32 %v3025_v49, %v3024_v32  ;;  %v3087_v3 = vadd.f32 %v3086_v1, %v3085_v0  ;;  %v3088_v4 = vpop.f32.mrb[34].mxu1 }
 0x1a7   : > { %v3089_v9 = vpop.f32.mrb[35].mxu1 }
 0x1a8   : > { %v1434_v63 = vadd.f32 %v3026_v57, %v3889_v26  ;;  %v1945_v14 = vadd.f32 %v3087_v3, %v1433_v52  ;;  %v3090_v16 = vadd.f32 %v3089_v9, %v3088_v4 }
 0x1aa   : > { %v3027_v2 = vpop.f32.mrb[36].mxu0  ;;  %v1946_v23 = vadd.f32 %v3090_v16, %v1434_v63  ;;  %v3929_v31 = vadd.f32 %v3922_v24, %v1945_v14 }
 0x1ab   : > { %v3028_v8 = vpop.f32.mrb[37].mxu0 }
 0x1ac   : > { %v3029_v12 = vadd.f32 %v3028_v8, %v3027_v2  ;;  %v3030_v13 = vpop.f32.mrb[38].mxu0  ;;  %v3926_v25 = vadd.f32 %v3922_v24, %v1946_v23  ;;  %v3091_v27 = vpop.f32.mrb[36].mxu1 }
 0x1ad   : > { %v3031_v17 = vpop.f32.mrb[39].mxu0  ;;  %v3092_v28 = vpop.f32.mrb[37].mxu1 }
 0x1ae   : > { %v1435_v19 = vadd.f32 %v3029_v12, %v3891_v42  ;;  %v3032_v22 = vadd.f32 %v3031_v17, %v3030_v13  ;;  %v2274_v33 = vmul.f32 0.0, %v3926_v25  ;;  %v3093_v36 = vadd.f32 %v3092_v28, %v3091_v27  ;;  %v3094_v41 = vpop.f32.mrb[38].mxu1 }
 0x1af   : > { %v3095_v43 = vpop.f32.mrb[39].mxu1 }
 0x1b0   : > { %v1436_v26 = vadd.f32 %v3032_v22, %v3893_v46  ;;  %v1947_v47 = vadd.f32 %v3093_v36, %v1435_v19  ;;  %v2289_v46 = vadd.f32 %v2274_v33, %v3929_v31  ;;  %v3096_v48 = vadd.f32 %v3095_v43, %v3094_v41 }
 0x1b2   : > { %v3033_v29 = vpop.f32.mrb[40].mxu0  ;;  %v3935_v58 = vadd.f32 %v3922_v24, %v1947_v47  ;;  %v1948_v59 = vadd.f32 %v3096_v48, %v1436_v26 }
 0x1b3   : > { %v3034_v42 = vpop.f32.mrb[41].mxu0 }
 0x1b4   : > { %v3035_v44 = vadd.f32 %v3034_v42, %v3033_v29  ;;  %v3036_v45 = vpop.f32.mrb[42].mxu0  ;;  %v2290_v54 = vadd.f32 %v2289_v46, %v3935_v58  ;;  %v3940_v55 = vadd.f32 %v3922_v24, %v1948_v59  ;;  %v3097_v6 = vpop.f32.mrb[40].mxu1 }
 0x1b5   : > { %v3037_v50 = vpop.f32.mrb[43].mxu0  ;;  %v3098_v7 = vpop.f32.mrb[41].mxu1 }
 0x1b6   : > { %v1437_v51 = vadd.f32 %v3035_v44, %v3895_v34  ;;  %v3038_v53 = vadd.f32 %v3037_v50, %v3036_v45  ;;  %v2276_v18 = vmul.f32 0.0, %v3940_v55  ;;  %v3099_v20 = vadd.f32 %v3098_v7, %v3097_v6  ;;  %v3100_v21 = vpop.f32.mrb[42].mxu1 }
 0x1b7   : > { %v3101_v32 = vpop.f32.mrb[43].mxu1 }
 0x1b8   : > { %v1438_v60 = vadd.f32 %v3038_v53, %v3897_v5  ;;  %v1949_v52 = vadd.f32 %v3099_v20, %v1437_v51  ;;  %v2291_v57 = vadd.f32 %v2290_v54, %v2276_v18  ;;  %v3102_v63 = vadd.f32 %v3101_v32, %v3100_v21 }
 0x1ba   : > { %v3039_v10 = vpop.f32.mrb[44].mxu0  ;;  %v3945_v2 = vadd.f32 %v3922_v24, %v1949_v52  ;;  %v1950_v3 = vadd.f32 %v3102_v63, %v1438_v60 }
 0x1bb   : > { %v3040_v34 = vpop.f32.mrb[45].mxu0 }
 0x1bc   : > { %v3041_v38 = vadd.f32 %v3040_v34, %v3039_v10  ;;  %v3042_v49 = vpop.f32.mrb[46].mxu0  ;;  %v2292_v8 = vadd.f32 %v2291_v57, %v3945_v2  ;;  %v3950_v9 = vadd.f32 %v3922_v24, %v1950_v3  ;;  %v3103_v12 = vpop.f32.mrb[44].mxu1 }
 0x1bd   : > { %v3043_v5 = vpop.f32.mrb[47].mxu0  ;;  %v3104_v13 = vpop.f32.mrb[45].mxu1 }
 0x1be   : > { %v1439_v0 = vadd.f32 %v3041_v38, %v3899_v39  ;;  %v3044_v1 = vadd.f32 %v3043_v5, %v3042_v49  ;;  %v2278_v16 = vmul.f32 0.0, %v3950_v9  ;;  %v3105_v17 = vadd.f32 %v3104_v13, %v3103_v12  ;;  %v3106_v19 = vpop.f32.mrb[46].mxu1 }
 0x1bf   : > { %v3107_v22 = vpop.f32.mrb[47].mxu1 }
 0x1c0   : > { %v1440_v4 = vadd.f32 %v3044_v1, %v3901_v61  ;;  %v1951_v27 = vadd.f32 %v3105_v17, %v1439_v0  ;;  %v2293_v28 = vadd.f32 %v2292_v8, %v2278_v16  ;;  %v3108_v29 = vadd.f32 %v3107_v22, %v3106_v19 }
 0x1c2   : > { %v3045_v14 = vpop.f32.mrb[48].mxu0  ;;  %v3955_v41 = vadd.f32 %v3922_v24, %v1951_v27  ;;  %v1952_v42 = vadd.f32 %v3108_v29, %v1440_v4 }
 0x1c3   : > { %v3046_v39 = vpop.f32.mrb[49].mxu0 }
 0x1c4   : > { %v3047_v23 = vadd.f32 %v3046_v39, %v3045_v14  ;;  %v3048_v26 = vpop.f32.mrb[50].mxu0  ;;  %v2294_v44 = vadd.f32 %v2293_v28, %v3955_v41  ;;  %v3960_v45 = vadd.f32 %v3922_v24, %v1952_v42  ;;  %v3109_v47 = vpop.f32.mrb[48].mxu1 }
 0x1c5   : > { %v3049_v61 = vpop.f32.mrb[51].mxu0  ;;  %v3110_v46 = vpop.f32.mrb[49].mxu1 }
 0x1c6   : > { %v1441_v33 = vadd.f32 %v3047_v23, %v3903_v11  ;;  %v3050_v36 = vadd.f32 %v3049_v61, %v3048_v26  ;;  %v2280_v50 = vmul.f32 0.0, %v3960_v45  ;;  %v3111_v51 = vadd.f32 %v3110_v46, %v3109_v47  ;;  %v3112_v53 = vpop.f32.mrb[50].mxu1 }
 0x1c7   : > { %v3113_v59 = vpop.f32.mrb[51].mxu1 }
 0x1c8   : > { %v1442_v43 = vadd.f32 %v3050_v36, %v3905_v15  ;;  %v1953_v6 = vadd.f32 %v3111_v51, %v1441_v33  ;;  %v2295_v7 = vadd.f32 %v2294_v44, %v2280_v50  ;;  %v3114_v10 = vadd.f32 %v3113_v59, %v3112_v53 }
 0x1ca   : > { %v3051_v48 = vpop.f32.mrb[52].mxu0  ;;  %v3965_v21 = vadd.f32 %v3922_v24, %v1953_v6  ;;  %v1954_v34 = vadd.f32 %v3114_v10, %v1442_v43 }
 0x1cb   : > { %v3052_v11 = vpop.f32.mrb[53].mxu0 }
 0x1cc   : > { %v3053_v60 = vadd.f32 %v3052_v11, %v3051_v48  ;;  %v3054_v54 = vpop.f32.mrb[54].mxu0  ;;  %v2296_v38 = vadd.f32 %v2295_v7, %v3965_v21  ;;  %v3970_v49 = vadd.f32 %v3922_v24, %v1954_v34  ;;  %v3115_v52 = vpop.f32.mrb[52].mxu1 }
 0x1cd   : > { %v3055_v15 = vpop.f32.mrb[55].mxu0  ;;  %v3116_v57 = vpop.f32.mrb[53].mxu1 }
 0x1ce   : > { %v1443_v18 = vadd.f32 %v3053_v60, %v3907_v30  ;;  %v3056_v20 = vadd.f32 %v3055_v15, %v3054_v54  ;;  %v2282_v5 = vmul.f32 0.0, %v3970_v49  ;;  %v3117_v0 = vadd.f32 %v3116_v57, %v3115_v52  ;;  %v3118_v1 = vpop.f32.mrb[54].mxu1 }
 0x1cf   : > { %v3119_v3 = vpop.f32.mrb[55].mxu1 }
 0x1d0   : > { %v1444_v32 = vadd.f32 %v3056_v20, %v3909_v40  ;;  %v1955_v12 = vadd.f32 %v3117_v0, %v1443_v18  ;;  %v2297_v13 = vadd.f32 %v2296_v38, %v2282_v5  ;;  %v3120_v14 = vadd.f32 %v3119_v3, %v3118_v1 }
 0x1d2   : > { %v3057_v63 = vpop.f32.mrb[56].mxu0  ;;  %v2010_v19 = vadd.f32 %v3922_v24, %v1955_v12  ;;  %v1956_v39 = vadd.f32 %v3120_v14, %v1444_v32 }
 0x1d3   : > { %v3058_v30 = vpop.f32.mrb[57].mxu0 }
 0x1d4   : > { %v3059_v4 = vadd.f32 %v3058_v30, %v3057_v63  ;;  %v3060_v8 = vpop.f32.mrb[58].mxu0  ;;  %v2298_v23 = vadd.f32 %v2297_v13, %v2010_v19  ;;  %v2011_v26 = vadd.f32 %v3922_v24, %v1956_v39  ;;  %v3121_v27 = vpop.f32.mrb[56].mxu1 }
 0x1d5   : > { %v3061_v40 = vpop.f32.mrb[59].mxu0  ;;  %v3122_v28 = vpop.f32.mrb[57].mxu1 }
 0x1d6   : > { %v1445_v16 = vadd.f32 %v3059_v4, %v3911_v56  ;;  %v3062_v17 = vadd.f32 %v3061_v40, %v3060_v8  ;;  %v2284_v61 = vmul.f32 0.0, %v2011_v26  ;;  %v3123_v33 = vadd.f32 %v3122_v28, %v3121_v27  ;;  %v3124_v36 = vpop.f32.mrb[58].mxu1 }
 0x1d7   : > { %v3125_v43 = vpop.f32.mrb[59].mxu1 }
 0x1d8   : > { %v1446_v22 = vadd.f32 %v3062_v17, %v3913_v35  ;;  %v1957_v56 = vadd.f32 %v3123_v33, %v1445_v16  ;;  %v2299_v46 = vadd.f32 %v2298_v23, %v2284_v61  ;;  %v3126_v48 = vadd.f32 %v3125_v43, %v3124_v36 }
 0x1da   : > { %v3063_v29 = vpop.f32.mrb[60].mxu0  ;;  %v2012_v53 = vadd.f32 %v3922_v24, %v1957_v56  ;;  %v1958_v11 = vadd.f32 %v3126_v48, %v1446_v22 }
 0x1db   : > { %v3064_v42 = vpop.f32.mrb[61].mxu0 }
 0x1dc   : > { %v3065_v44 = vadd.f32 %v3064_v42, %v3063_v29  ;;  %v3066_v47 = vpop.f32.mrb[62].mxu0  ;;  %v2300_v60 = vadd.f32 %v2299_v46, %v2012_v53  ;;  %v2013_v54 = vadd.f32 %v3922_v24, %v1958_v11  ;;  %v3127_v6 = vpop.f32.mrb[60].mxu1 }
 0x1dd   : > { %v3067_v50 = vpop.f32.mrb[63].mxu0  ;;  %v3128_v7 = vpop.f32.mrb[61].mxu1 }
 0x1de   : > { %v1447_v51 = vadd.f32 %v3065_v44, %v3915_v37  ;;  %v3068_v35 = vadd.f32 %v3067_v50, %v3066_v47  ;;  %v2286_v10 = vmul.f32 0.0, %v2013_v54  ;;  %v3129_v15 = vadd.f32 %v3128_v7, %v3127_v6  ;;  %v3130_v18 = vpop.f32.mrb[62].mxu1 }
 0x1df   : > { %v3131_v20 = vpop.f32.mrb[63].mxu1 }
 0x1e0   : > { %v1448_v59 = vadd.f32 %v3068_v35, %v3918_v62  ;;  %v1959_v34 = vadd.f32 %v3129_v15, %v1447_v51  ;;  %v2301_v32 = vadd.f32 %v2300_v60, %v2286_v10  ;;  %v3132_v38 = vadd.f32 %v3131_v20, %v3130_v18 }
 0x1e2   : > { %v2014_v37 = vadd.f32 %v3922_v24, %v1959_v34  ;;  %v1960_v52 = vadd.f32 %v3132_v38, %v1448_v59 }
 0x1e4   : > { %v2302_v57 = vadd.f32 %v2301_v32, %v2014_v37  ;;  %v2015_v63 = vadd.f32 %v3922_v24, %v1960_v52 }
 0x1e6   : > { %v2288_v5 = vmul.f32 0.0, %v2015_v63 }
 0x1e8   : > { %v2303_v62 = vadd.f32 %v2302_v57, %v2288_v5 }
 0x1ea   : > { %v2304_v0 = vrot.slane %v2303_v62, 4 }
 0x1ec   : > { %v2305_v1 = vadd.f32 %v2304_v0, %v2303_v62 }
 0x1ee   : > { %v2306_v30 = vrot.slane %v2305_v1, 2 }
 0x1f0   : > { %v2307_v3 = vadd.f32 %v2306_v30, %v2305_v1 }
 0x1f2   : > { %v2308_v4 = vrot.slane %v2307_v3, 1 }
 0x1f4   : > { %v2309_v8 = vadd.f32 %v2308_v4, %v2307_v3 }
 0x1f6   : > { %v2310_v12 = vmul.f32 0.015625, %v2309_v8 }
 0x1f8   : > { %v3984_v13 = vsub.f32 %v3929_v31, %v2310_v12  ;;  %v3987_v14 = vsub.f32 %v3926_v25, %v2310_v12  ;;  %v3990_v40 = vsub.f32 %v3935_v58, %v2310_v12  ;;  %v3993_v24 = vsub.f32 %v3940_v55, %v2310_v12 }
 0x1f9   : > { %v3996_v16 = vsub.f32 %v3945_v2, %v2310_v12  ;;  %v3999_v17 = vsub.f32 %v3950_v9, %v2310_v12  ;;  %v4002_v39 = vsub.f32 %v3955_v41, %v2310_v12  ;;  %v4005_v31 = vsub.f32 %v3960_v45, %v2310_v12 }
 0x1fa   : > { %v4008_v25 = vsub.f32 %v3965_v21, %v2310_v12  ;;  %v4011_v58 = vsub.f32 %v3970_v49, %v2310_v12  ;;  %v4013_v55 = vsub.f32 %v2010_v19, %v2310_v12  ;;  %v4015_v22 = vsub.f32 %v2011_v26, %v2310_v12 }
 0x1fb   : > { %v4017_v2 = vsub.f32 %v2012_v53, %v2310_v12  ;;  %v4019_v9 = vsub.f32 %v2013_v54, %v2310_v12  ;;  %v4021_v23 = vsub.f32 %v2014_v37, %v2310_v12  ;;  %v4023_v41 = vsub.f32 %v2015_v63, %v2310_v12 }
 0x1fc   : > { %v2328_v45 = vmul.f32 %v3987_v14, %v3987_v14  ;;  %v2327_v21 = vmul.f32 %v3984_v13, %v3984_v13  ;;  %v2330_v49 = vmul.f32 %v3993_v24, %v3993_v24  ;;  %v2329_v26 = vmul.f32 %v3990_v40, %v3990_v40 }
 0x1fd   : > { %v2332_v28 = vmul.f32 %v3999_v17, %v3999_v17  ;;  %v2331_v33 = vmul.f32 %v3996_v16, %v3996_v16  ;;  %v2334_v42 = vmul.f32 %v4005_v31, %v4005_v31  ;;  %v2333_v47 = vmul.f32 %v4002_v39, %v4002_v39 }
 0x1fe   : > { %v2344_v19 = vmul.f32 0.0, %v2328_v45  ;;  %v2346_v29 = vmul.f32 0.0, %v2330_v49  ;;  %v2336_v46 = vmul.f32 %v4011_v58, %v4011_v58  ;;  %v2335_v51 = vmul.f32 %v4008_v25, %v4008_v25 }
 0x1ff   : > { %v2348_v43 = vmul.f32 0.0, %v2332_v28  ;;  %v2350_v48 = vmul.f32 0.0, %v2334_v42  ;;  %v2338_v53 = vmul.f32 %v4015_v22, %v4015_v22  ;;  %v2337_v60 = vmul.f32 %v4013_v55, %v4013_v55 }
 0x200   : > { %v2359_v27 = vadd.f32 %v2344_v19, %v2327_v21  ;;  %v2352_v11 = vmul.f32 0.0, %v2336_v46  ;;  %v2340_v6 = vmul.f32 %v4019_v9, %v4019_v9  ;;  %v2339_v15 = vmul.f32 %v4017_v2, %v4017_v2 }
 0x201   : > { %v2354_v7 = vmul.f32 0.0, %v2338_v53  ;;  %v2342_v20 = vmul.f32 %v4023_v41, %v4023_v41  ;;  %v2341_v38 = vmul.f32 %v4021_v23, %v4021_v23 }
 0x202   : > { %v2360_v61 = vadd.f32 %v2359_v27, %v2329_v26  ;;  %v2356_v34 = vmul.f32 0.0, %v2340_v6 }
 0x203   : > { %v2358_v52 = vmul.f32 0.0, %v2342_v20 }
 0x204   : > { %v2361_v36 = vadd.f32 %v2360_v61, %v2346_v29 }
 0x206   : > { %v2362_v44 = vadd.f32 %v2361_v36, %v2331_v33 }
 0x208   : > { %v2363_v56 = vadd.f32 %v2362_v44, %v2348_v43 }
 0x20a   : > { %v2364_v50 = vadd.f32 %v2363_v56, %v2333_v47 }
 0x20c   : > { %v2365_v35 = vadd.f32 %v2364_v50, %v2350_v48 }
 0x20e   : > { %v2366_v59 = vadd.f32 %v2365_v35, %v2335_v51 }
 0x210   : > { %v2367_v54 = vadd.f32 %v2366_v59, %v2352_v11 }
 0x212   : > { %v2368_v10 = vadd.f32 %v2367_v54, %v2337_v60 }
 0x214   : > { %v2369_v18 = vadd.f32 %v2368_v10, %v2354_v7 }
 0x216   : > { %v2370_v32 = vadd.f32 %v2369_v18, %v2339_v15 }
 0x218   : > { %v2371_v37 = vadd.f32 %v2370_v32, %v2356_v34 }
 0x21a   : > { %v2372_v57 = vadd.f32 %v2371_v37, %v2341_v38 }
 0x21c   : > { %v2373_v63 = vadd.f32 %v2372_v57, %v2358_v52 }
 0x21e   : > { %v2374_v5 = vrot.slane %v2373_v63, 4 }
 0x220   : > { %v2375_v62 = vadd.f32 %v2374_v5, %v2373_v63 }
 0x222   : > { %v2376_v0 = vrot.slane %v2375_v62, 2 }
 0x224   : > { %v2377_v1 = vadd.f32 %v2376_v0, %v2375_v62 }
 0x226   : > { %v2378_v30 = vrot.slane %v2377_v1, 1 }
 0x228   : > { %v2379_v3 = vadd.f32 %v2378_v30, %v2377_v1 }
 0x22a   : > { %v2380_v4 = vmul.f32 0.015625, %v2379_v3 }
 0x22c   : > { %v2381_v8 = vadd.f32 1e-05, %v2380_v4 }
 0x22e   : > { %3320 = vrsqrt.f32 %v2381_v8 }
 0x238   : > { %v3321_v12 = vpop.eup %3320 }
 0x239   : > { %v2383_v45 = vmul.f32 %v3321_v12, %v3984_v13  ;;  %v2384_v21 = vmul.f32 %v3321_v12, %v3987_v14  ;;  %v2385_v49 = vmul.f32 %v3321_v12, %v3990_v40  ;;  %v2386_v19 = vmul.f32 %v3321_v12, %v3993_v24 }
 0x23a   : > { %v2387_v26 = vmul.f32 %v3321_v12, %v3996_v16  ;;  %v2388_v27 = vmul.f32 %v3321_v12, %v3999_v17  ;;  %v2389_v28 = vmul.f32 %v3321_v12, %v4002_v39  ;;  %v2390_v29 = vmul.f32 %v3321_v12, %v4005_v31 }
 0x23b   : > { %v2391_v61 = vmul.f32 %v3321_v12, %v4008_v25  ;;  %v2392_v33 = vmul.f32 %v3321_v12, %v4011_v58  ;;  %v2393_v13 = vmul.f32 %v3321_v12, %v4013_v55  ;;  %v2394_v14 = vmul.f32 %v3321_v12, %v4015_v22 }
 0x23c   : > { %v2395_v40 = vmul.f32 %v3321_v12, %v4017_v2  ;;  %v2396_v24 = vmul.f32 %v3321_v12, %v4019_v9  ;;  %v2397_v16 = vmul.f32 %v3321_v12, %v4021_v23  ;;  %v2398_v17 = vmul.f32 %v3321_v12, %v4023_v41 }
 0x23d   : > { %vm2399_vm1 = vcmp.gt.f32.partialorder %v2383_v45, 0.0  ;;  %vm2400_vm2 = vcmp.gt.f32.partialorder %v2384_v21, 0.0  ;;  %vm2401_vm3 = vcmp.gt.f32.partialorder %v2385_v49, 0.0  ;;  %vm2402_vm4 = vcmp.gt.f32.partialorder %v2386_v19, 0.0 }
 0x23e   : > { %vm2403_vm5 = vcmp.gt.f32.partialorder %v2387_v26, 0.0  ;;  %vm2404_vm6 = vcmp.gt.f32.partialorder %v2388_v27, 0.0  ;;  %vm2405_vm7 = vcmp.gt.f32.partialorder %v2389_v28, 0.0  ;;  %vm2406_vm8 = vcmp.gt.f32.partialorder %v2390_v29, 0.0 }
 0x23f   : > { %vm2407_vm9 = vcmp.gt.f32.partialorder %v2391_v61, 0.0  ;;  %vm2408_vm10 = vcmp.gt.f32.partialorder %v2392_v33, 0.0  ;;  %vm2409_vm11 = vcmp.gt.f32.partialorder %v2393_v13, 0.0  ;;  %vm2410_vm12 = vcmp.gt.f32.partialorder %v2394_v14, 0.0 }
 0x240   : > { %vm2411_vm13 = vcmp.gt.f32.partialorder %v2395_v40, 0.0  ;;  %vm2412_vm14 = vcmp.gt.f32.partialorder %v2396_v24, 0.0  ;;  %vm2413_vm15 = vcmp.gt.f32.partialorder %v2397_v16, 0.0  ;;  %vm2414_vm0 = vcmp.gt.f32.partialorder %v2398_v17, 0.0 }
 0x241   : > { %v2415_v39 = vmul.f32 0.2, %v2383_v45  ;;  %v2416_v31 = vmul.f32 0.2, %v2384_v21  ;;  %v2417_v25 = vmul.f32 0.2, %v2385_v49 }
 0x242   : > { %v2418_v58 = vmul.f32 0.2, %v2386_v19  ;;  %v2419_v55 = vmul.f32 0.2, %v2387_v26  ;;  %v2420_v22 = vmul.f32 0.2, %v2388_v27 }
 0x243   : > { %v2421_v2 = vmul.f32 0.2, %v2389_v28  ;;  %v2422_v9 = vmul.f32 0.2, %v2390_v29  ;;  %v2423_v23 = vmul.f32 0.2, %v2391_v61  ;;  %v2431_v41 = vsel %vm2399_vm1, %v2383_v45, %v2415_v39 }
 0x244   : > { %v2424_v36 = vmul.f32 0.2, %v2392_v33  ;;  %v2425_v42 = vmul.f32 0.2, %v2393_v13  ;;  %v2426_v43 = vmul.f32 0.2, %v2394_v14  ;;  %v2432_v44 = vsel %vm2400_vm2, %v2384_v21, %v2416_v31 }
 0x245   : > { %v2427_v47 = vmul.f32 0.2, %v2395_v40  ;;  %v2428_v56 = vmul.f32 0.2, %v2396_v24  ;;  %v2429_v46 = vmul.f32 0.2, %v2397_v16  ;;  %v2433_v48 = vsel %vm2401_vm3, %v2385_v49, %v2417_v25 }
 0x246   : > { %v2430_v50 = vmul.f32 0.2, %v2398_v17  ;;  %v2434_v51 = vsel %vm2402_vm4, %v2386_v19, %v2418_v58  ;;  %v2435_v35 = vsel %vm2403_vm5, %v2387_v26, %v2419_v55  ;;  %v2436_v53 = vsel %vm2404_vm6, %v2388_v27, %v2420_v22 }
 0x247   : > { %v2437_v11 = vsel %vm2405_vm7, %v2389_v28, %v2421_v2  ;;  %v2438_v59 = vsel %vm2406_vm8, %v2390_v29, %v2422_v9  ;;  %v2439_v60 = vsel %vm2407_vm9, %v2391_v61, %v2423_v23  ;;  %v2440_v54 = vsel %vm2408_vm10, %v2392_v33, %v2424_v36 }
 0x248   : > { %v2441_v6 = vsel %vm2409_vm11, %v2393_v13, %v2425_v42  ;;  %v2442_v7 = vsel %vm2410_vm12, %v2394_v14, %v2426_v43  ;;  %v2443_v10 = vsel %vm2411_vm13, %v2395_v40, %v2427_v47  ;;  %v2444_v15 = vsel %vm2412_vm14, %v2396_v24, %v2428_v56 }
 0x249   : > { %v2445_v18 = vsel %vm2413_vm15, %v2397_v16, %v2429_v46  ;;  %v2446_v20 = vsel %vm2414_vm0, %v2398_v17, %v2430_v50  ;;  %v2833_v34 = vpack.c.bf16 %v2432_v44, %v2431_v41  ;;  %v2838_v32 = vpack.c.bf16 %v2434_v51, %v2433_v48 }
 0x24a   : > { %v2843_v38 = vpack.c.bf16 %v2436_v53, %v2435_v35  ;;  %v2848_v37 = vpack.c.bf16 %v2438_v59, %v2437_v11  ;;  %v2853_v52 = vpack.c.bf16 %v2440_v54, %v2439_v60  ;;  %v2858_v57 = vpack.c.bf16 %v2442_v7, %v2441_v6 }
 0x24b   : > { %v2863_v63 = vpack.c.bf16 %v2444_v15, %v2443_v10  ;;  %v2868_v5 = vpack.c.bf16 %v2446_v20, %v2445_v18  ;;  %2834 = vst [vmem:[%s243_s24] sm:$0xff] %v2833_v34   ;;  %2870 = vst [vmem:[%s243_s24 + $0x8] sm:$0xff] %v2838_v32  }
 0x24c   : > { %2871 = vst [vmem:[%s243_s24 + $0x10] sm:$0xff] %v2843_v38   ;;  %2872 = vst [vmem:[%s243_s24 + $0x18] sm:$0xff] %v2848_v37  }
 0x24d   : > { %2873 = vst [vmem:[%s243_s24 + $0x20] sm:$0xff] %v2853_v52   ;;  %2874 = vst [vmem:[%s243_s24 + $0x28] sm:$0xff] %v2858_v57  }
 0x24e   : > { %2875 = vst [vmem:[%s243_s24 + $0x30] sm:$0xff] %v2863_v63   ;;  %2876 = vst [vmem:[%s243_s24 + $0x38] sm:$0xff] %v2868_v5  }
 0x24f   : > { %3421 = shalt.err (!%p3418_p2)
}
 0x250   : > { %s3422_s10 = scalar_lea.hbm %s4096_s26, 1024  ;;  %s3426_s29 = scalar_lea.hbm %s4150_s3, 2048 }
 0x251   : > { %p3423_p0 = scmp.ne.s32.totalorder %s4096_s26, %s3422_s10  ;;  %p3427_p6 = scmp.lt.u32.totalorder %s4096_s26, %s4150_s3 }
 0x252   : > { %p3428_p7 = scmp.lt.u32.totalorder %s3426_s29, %s3422_s10  ;;  %p3430_p8 = scmp.lt.u32.totalorder %s3422_s10, %s4096_s26 }
 0x253   : > { %p3424_p4 = pnand %p3423_p0, %p4165_p12 }
 0x254   : > { %p3429_p11 = por %p3428_p7, %p3427_p6 }
 0x255   : > { %p3425_p13 = pneg %p3424_p4 }
 0x256   : > { %p3431_p1 = por %p3430_p8, %p3429_p11 }
 0x258   : > { %p3432_p10 = pnand %p3431_p1, %p3425_p13 }
 0x25a   : > { %3435 = shalt.err (!%p3432_p10)
}
 0x25b   : > { %s3504_s22 = smov 64   ;;  %s3505_s24 = smov 4  }
 0x25c   : > { %3146 = dma.vmem_to_hbm [thread:$0]  (%p4165_p12), %s4098_s30, 1024, %s4096_s26, %s2528_s9, %s3504_s22, %s3504_s22, %s3505_s24  }
 0x25d PF: > { %s2557_s15 = sand.u32 1, %s3474_s12   ;;  %p4166_p3 = scmp.ne.s32.totalorder %s4158_s23, 0 }
 0x25e   : > { %p4167_p5 = scmp.ge.s32.totalorder %s3494_s17, 2  ;;  %s2558_s7 = scalar_lea.sflag [#allocation5], %s2557_s15 }
 0x260   : > { %p3160_p9 = pnand %p4167_p5, %p4166_p3 }
 0x262   : > { %3469 = dma.done.wait (!%p3160_p9), %s2558_s7, 1024  }
 0x263   : > { %3471 = vsyncadd (!%p3160_p9), %s2558_s7, 4294966272  ;;  %s20_s17 = sadd.s32 1, %s3494_s17   ;;  %s4168_s12 = smov %s3478_s13 }
 0x264   : > { %p17_p2 = scmp.ge.s32.totalorder %s20_s17, 4   ;;  %s4169_s13 = smov %s3482_s14 }
 0x265   : > { %s4170_s14 = smov %s3672_s4  ;;  %s4171_s15 = smov %s3490_s16 }
 0x266   : > { %s4172_s16 = smov %s4174_s18  ;;  %19 = sbr.rel (!%p17_p2) target bundleno = 7 (0x7), region = 90 }
 0x26d   :  { %2563 = vsyncpa [#allocation4], 1 }
 0x26e   :  { %2565 = vsyncpa [#allocation4 + $0x1], 1 }
 0x26f   :  { %2566 = vsyncpa [#allocation7], 1 }
 0x270   :  { %2567 = vsyncpa [#allocation5], 1 }
 0x271   :  { %2569 = vsyncpa [#allocation5 + $0x1], 1 }

// kernel: discriminator_forward.7
= control target key start
LH: loop header
LB: loop body
LE: loop exit
PB: predicated region body
PF: predicated region fallthrough
CT: control target
= control target key end

     0   :  { %s4267_s0 = inlined_call_operand.hbm [shape: bf16[2,48,512], index: 0, kind: input, shape index: {}]   ;;  %s4268_s1 = inlined_call_operand.hbm [shape: bf16[4,512,256], index: 1, kind: input, shape index: {}]   ;;  %s4269_s2 = inlined_call_operand.hbm [shape: f32[1,256], index: 2, kind: input, shape index: {}]   ;;  %s4270_s3 = inlined_call_operand.hbm [shape: bf16[2,32,256], index: 3, kind: output, shape index: {}]  }
   0x1   :  { %4285 = sst [smem:[#allocation22_spill]] %s4267_s0 }
   0x2   :  { %4286 = sst [smem:[#allocation23_spill]] %s4268_s1 }
   0x3   :  { %4287 = sst [smem:[#allocation24_spill]] %s4270_s3 }
   0x4   :  { %8 = vsyncpa [#allocation4], 0 }
   0x5   :  { %10 = vsyncpa [#allocation4 + $0x1], 0 }
   0x6   :  { %11 = vsyncpa [#allocation7], 0 }
   0x7   :  { %13 = vsyncpa [#allocation7 + $0x1], 0 }
   0x8   :  { %14 = vsyncpa [#allocation5], 0 }
   0x9   :  { %16 = vsyncpa [#allocation5 + $0x1], 0  ;;  %s3608_s12 = smov 0   ;;  %s3610_s13 = smov 0  }
   0xa   :  { %s3612_s14 = smov 0   ;;  %s3614_s15 = smov 0  }
   0xb   :  { %s3616_s16 = smov 0   ;;  %s3618_s17 = smov 0  }
   0xc   :  { %s3620_s18 = smov 0   ;;  %s3622_s19 = smov 0  }
   0xd   :  { %s3624_s20 = smov 0   ;;  %s3626_s21 = smov 0  }
   0xe   :  { %s3628_s22 = smov 0   ;;  %s3630_s23 = smov 0  }
   0xf   :  { %s3632_s24 = smov 0   ;;  %s3634_s25 = smov 0  }
  0x10 LB: > { %4288 = sst [smem:[#allocation13_spill]] %s3553_s20  ;;  %s31_s26 = sadd.s32 1, %s3565_s23  ;;  %s3573_s25 = sphi %s3634_s25, %s22_s25   ;;  %s3569_s24 = sphi %s3632_s24, %s4331_s24   ;;  %s3565_s23 = sphi %s3630_s23, %s4341_s23   ;;  %s3561_s22 = sphi %s3628_s22, %s4329_s22   ;;  %s3557_s21 = sphi %s3626_s21, %s4340_s21   ;;  %s3553_s20 = sphi %s3624_s20, %s4328_s20   ;;  %s3549_s19 = sphi %s3622_s19, %s4339_s19   ;;  %s3545_s18 = sphi %s3620_s18, %s4338_s18   ;;  %s3541_s17 = sphi %s3618_s17, %s4337_s17   ;;  %s3537_s16 = sphi %s3616_s16, %s4336_s16   ;;  %s3533_s15 = sphi %s3614_s15, %s4335_s15   ;;  %s3529_s14 = sphi %s3612_s14, %s4334_s14   ;;  %s3525_s13 = sphi %s3610_s13, %s4333_s13   ;;  %s3521_s12 = sphi %s3608_s12, %s4332_s12  }
  0x11   : > { %4289 = sst [smem:[#allocation14_spill]] %s3557_s21  ;;  %p4273_p0 = scmp.eq.s32.totalorder %s3573_s25, 0 }
  0x12   : > { %4290 = sst [smem:[#allocation15_spill]] %s3561_s22  ;;  %p3682_p1 = scmp.ge.s32.totalorder %s31_s26, 2 }
  0x13   : > { %4291 = sst [smem:[#allocation16_spill]] %s3569_s24  ;;  %p74_p2 = scmp.ne.s32.totalorder %s3541_s17, %s3537_s16 }
  0x14   : > { %p4272_p4 = scmp.lt.s32.totalorder %s3573_s25, 4  ;;  %s179_s29 = sand.u32 1, %s3573_s25  }
  0x15   : > { %p76_p5 = por %p74_p2, %p4273_p0  ;;  %s4271_s30 = sand.u32 1, %s3541_s17  }
  0x16   : > { %s2410_s4 = sshll.u32 %s4271_s30, 10  ;;  %s2411_s5 = sshll.u32 %s3565_s23, 6 }
  0x17   : > { %s4293_s1 = sld [smem:[#allocation23_spill]]  ;;  %s183_s9 = scalar_lea.vmem [#allocation6], %s2410_s4 }
  0x18   : > { %s189_s10 = sshll.u32 %s183_s9, 4  ;;  %p3706_p6 = pnand %p4272_p4, %p76_p5  ;;  %s3710_s10 = int_to_ptr.vmem [resolvable:$true] %s189_s10 }
  0x19   : > { %s3713_s30 = scalar_lea.sflag [#allocation7], %s179_s29 }
  0x1a   : > { %p4279_p9 = pneg %p3706_p6 }
  0x1d   : > { %s3702_s8 = scalar_lea.hbm %s4293_s1, %s2411_s5  ;;  %s3338_s7 = scalar_lea.hbm %s4293_s1, 32768 }
  0x1e   : > { %s3333_s5 = scalar_lea.hbm %s3702_s8, 16384  ;;  %p3339_p12 = scmp.lt.u32.totalorder %s3702_s8, %s4293_s1 }
  0x1f   : > { %p3334_p8 = scmp.ne.s32.totalorder %s3702_s8, %s3333_s5  ;;  %p3340_p13 = scmp.lt.u32.totalorder %s3338_s7, %s3333_s5 }
  0x20   : > { %p3342_p5 = scmp.lt.u32.totalorder %s3333_s5, %s3702_s8 }
  0x21   : > { %p3336_p10 = pnand %p4279_p9, %p3334_p8  ;;  %p3341_p2 = por %p3340_p13, %p3339_p12 }
  0x23   : > { %p3337_p11 = pneg %p3336_p10  ;;  %p3343_p4 = por %p3342_p5, %p3341_p2 }
  0x25   : > { %p3344_p3 = pnand %p3343_p4, %p3337_p11 }
  0x27   : > { %3347 = shalt.err (!%p3344_p3)
}
  0x28   : > { %s3348_s29 = scalar_lea.vmem %s3710_s10, 16384  ;;  %s3575_s4 = smov [#allocation6]  }
  0x29   : > { %p3349_p8 = scmp.ne.s32.totalorder %s3710_s10, %s3348_s29  ;;  %s3353_s6 = sshll.u32 %s3575_s4, 4  ;;  %s3354_s6 = int_to_ptr.vmem [resolvable:$false] %s3353_s6 }
  0x2a   : > { %s3355_s28 = scalar_lea.vmem %s3354_s6, 32768  ;;  %p3356_p7 = scmp.lt.s32.totalorder %s3710_s10, %s3354_s6 }
  0x2b   : > { %p3351_p10 = pnand %p3349_p8, %p4279_p9  ;;  %p3357_p12 = scmp.lt.s32.totalorder %s3355_s28, %s3348_s29 }
  0x2d   : > { %p3352_p0 = pneg %p3351_p10  ;;  %p3358_p13 = por %p3357_p12, %p3356_p7 }
  0x2f   : > { %p3359_p2 = pnand %p3358_p13, %p3352_p0 }
  0x31   : > { %3362 = shalt.err (!%p3359_p2)
}
  0x32   : > { %s3576_s5 = smov 128   ;;  %s3577_s7 = smov 64  }
  0x33   : > { %s3578_s9 = smov 4   ;;  %p214_p0 = scmp.lt.s32.totalorder %s3573_s25, 5 }
  0x34   : > { %3046 = dma.hbm_to_vmem [thread:$0]  (!%p3706_p6), %s3702_s8, 16384, %s3710_s10, %s3713_s30, %s3576_s5, %s3577_s7, %s3578_s9  }
  0x35   : > { %p4295_p3 = scmp.ge.s32.totalorder %s3573_s25, 1  ;;  %s3749_s4 = sadd.s32 4294967295, %s3573_s25  }
  0x36   : > { %s2406_s6 = sadd.s32 4294967294, %s3573_s25   ;;  %s4343_s26 = smov (%p3682_p1, %s31_s26), 0 }
  0x37   : > { %p3744_p4 = pnand %p4295_p3, %p214_p0  ;;  %4297 = sst [smem:[#allocation17_spill]] %s4343_s26 }
  0x38   : > { %s34_s28 = sadd.s32 1, %s3569_s24  ;;  %s41_s8 = sadd.s32 1, %s3553_s20 }
  0x39   : > { %s4296_s29 = scalar_select %p3744_p4, 1, 0 }
  0x3a   : > { %s4345_s28 = smov (!%p3682_p1, %s34_s28), %s3569_s24  ;;  %p48_p7 = scmp.ne.s32.totalorder %s3553_s20, %s3549_s19 }
  0x3b   : > { %p54_p11 = scmp.ne.s32.totalorder %s3549_s19, %s3545_s18  ;;  %p36_p5 = scmp.ge.s32.totalorder %s4345_s28, 2 }
  0x3c   : > { %p55_p8 = scmp.eq.s32.totalorder %s3749_s4, 0  ;;  %p4298_p10 = scmp.eq.s32.totalorder %s3573_s25, 0 }
  0x3d   : > { %s64_s5 = ssub.s32 %s3565_s23, %s4343_s26  ;;  %s4347_s28 = smov (%p36_p5, %s4345_s28), 0 }
  0x3e   : > { %p3770_p12 = por %p4298_p10, %p48_p7  ;;  %4300 = sst [smem:[#allocation18_spill]] %s4347_s28 }
  0x3f   : > { %p3778_p1 = por %p55_p8, %p54_p11  ;;  %p65_p13 = scmp.eq.s32.totalorder %s64_s5, 0 }
  0x40   : > { %s38_s18 = ssub.s32 %s3569_s24, %s4347_s28  ;;  %p4302_p2 = scmp.ne.s32.totalorder %s3537_s16, %s3533_s15 }
  0x41   : > { %s4301_s27 = scalar_select %p3778_p1, 1, 0 }
  0x42   : > { %p3787_p0 = por %p4302_p2, %p55_p8  ;;  %p39_p3 = scmp.eq.s32.totalorder %s38_s18, 0 }
  0x43   : > { %s118_s9 = sor.u32 %s64_s5, %s38_s18  ;;  %s4305_s1 = sadd.s32 1, %s3541_s17 }
  0x44   : > { %s4303_s7 = scalar_select %p3787_p0, 1, 0 }
  0x45   : > { %s3794_s26 = scalar_select %p65_p13, %s3541_s17, %s4305_s1  }
  0x46   : > { %4304 = sst [smem:[#allocation19_spill]] %s4303_s7  ;;  %p119_p7 = scmp.eq.s32.totalorder %s118_s9, 0 }
  0x47   : > { %4306 = sst [smem:[#allocation20_spill]] %s3794_s26  ;;  %s121_s21 = sadd.s32 1, %s3529_s14 }
  0x48   : > { %s3797_s3 = scalar_select %p39_p3, %s3553_s20, %s41_s8  }
  0x49   : > { %p131_p11 = scmp.ne.s32.totalorder %s3529_s14, %s3525_s13  ;;  %p132_p5 = scmp.eq.s32.totalorder %s3749_s4, 3 }
  0x4a   : > { %4307 = sst [smem:[#allocation21_spill]] %s3797_s3  ;;  %p137_p10 = scmp.ne.s32.totalorder %s3525_s13, %s3521_s12 }
  0x4b   : > { %s3804_s28 = scalar_select %p119_p7, %s3529_s14, %s121_s21  }
  0x4c   : > { %p3806_p8 = por %p132_p5, %p131_p11  ;;  %p138_p2 = scmp.eq.s32.totalorder %s2406_s6, 3 }
  0x4d   : > { %s158_s22 = sand.u32 1, %s3553_s20   ;;  %s3030_s1 = smul.u32 1536, %s3569_s24 }
  0x4e   : > { %s4308_s15 = scalar_select %p3806_p8, 1, 0 }
  0x4f   : > { %s3029_s7 = smul.u32 96, %s158_s22  ;;  %p3813_p9 = por %p138_p2, %p137_p10 }
  0x50   : > { %p4310_p13 = scmp.lt.s32.totalorder %s3573_s25, 4  ;;  %s4312_s0 = sld [smem:[#allocation22_spill]] }
  0x51   : > { %s4309_s5 = scalar_select %p3813_p9, 1, 0 }
  0x52   : > { %p3822_p3 = pnand %p4310_p13, %p3770_p12  ;;  %s162_s6 = scalar_lea.vmem [#allocation3], %s3029_s7 }
  0x53   : > { %s169_s3 = sshll.u32 %s162_s6, 4  ;;  %s3833_s10 = scalar_lea.sflag [#allocation4], %s158_s22  ;;  %s3831_s3 = int_to_ptr.vmem [resolvable:$true] %s169_s3 }
  0x54   : > { %p3365_p7 = pneg %p3822_p3 }
  0x56   : > { %s3829_s9 = scalar_lea.hbm %s4312_s0, %s3030_s1  ;;  %s3368_s18 = scalar_lea.hbm %s4312_s0, 3072 }
  0x57   : > { %s3363_s24 = scalar_lea.hbm %s3829_s9, 1536  ;;  %p3369_p10 = scmp.lt.u32.totalorder %s3829_s9, %s4312_s0 }
  0x58   : > { %p3364_p12 = scmp.ne.s32.totalorder %s3829_s9, %s3363_s24  ;;  %p3370_p2 = scmp.lt.u32.totalorder %s3368_s18, %s3363_s24 }
  0x59   : > { %p3372_p9 = scmp.lt.u32.totalorder %s3363_s24, %s3829_s9 }
  0x5a   : > { %p3366_p11 = pnand %p3365_p7, %p3364_p12  ;;  %p3371_p13 = por %p3370_p2, %p3369_p10 }
  0x5c   : > { %p3367_p5 = pneg %p3366_p11  ;;  %p3373_p8 = por %p3372_p9, %p3371_p13 }
  0x5e   : > { %p3374_p0 = pnand %p3373_p8, %p3367_p5 }
  0x60   : > { %3377 = shalt.err (!%p3374_p0)
}
  0x61   : > { %s3378_s22 = scalar_lea.vmem %s3831_s3, 1536  ;;  %s3579_s7 = smov [#allocation3]  }
  0x62   : > { %p3379_p12 = scmp.ne.s32.totalorder %s3831_s3, %s3378_s22  ;;  %s3383_s6 = sshll.u32 %s3579_s7, 4  ;;  %s3384_s6 = int_to_ptr.vmem [resolvable:$false] %s3383_s6 }
  0x63   : > { %s3385_s20 = scalar_lea.vmem %s3384_s6, 3072  ;;  %p3386_p4 = scmp.lt.s32.totalorder %s3831_s3, %s3384_s6 }
  0x64   : > { %p3381_p11 = pnand %p3379_p12, %p3365_p7  ;;  %p3387_p10 = scmp.lt.s32.totalorder %s3385_s20, %s3378_s22 }
  0x66   : > { %p3382_p1 = pneg %p3381_p11  ;;  %p3388_p2 = por %p3387_p10, %p3386_p4 }
  0x68   : > { %p3389_p9 = pnand %p3388_p2, %p3382_p1 }
  0x6a   : > { %3392 = shalt.err (!%p3389_p9)
}
  0x6b   : > { %s3580_s24 = smov 256   ;;  %s3581_s26 = smov 16  }
  0x6c   : > { %3043 = dma.hbm_to_vmem [thread:$0]  (!%p3822_p3), %s3829_s9, 1536, %s3831_s3, %s3833_s10, %s3580_s24, %s3580_s24, %s3581_s26  }
  0x6d   : > { %s2412_s1 = sshll.u32 %s3565_s23, 4  ;;  %s4313_s22 = sand.u32 1, %s3541_s17  }
  0x6e   : > { %s3865_s7 = scalar_lea.hbm %s4269_s2, %s2412_s1  ;;  %s202_s6 = scalar_lea.vmem [#allocation8], %s4313_s22 }
  0x6f   : > { %s209_s20 = sshll.u32 %s202_s6, 4  ;;  %s3393_s0 = scalar_lea.hbm %s3865_s7, 16  ;;  %s210_s20 = int_to_ptr.vmem [resolvable:$true] %s209_s20 }
  0x70   : > { %p3394_p4 = scmp.ne.s32.totalorder %s3865_s7, %s3393_s0  ;;  %p4314_p1 = pneg %p3706_p6 }
  0x71   : > { %s3398_s9 = scalar_lea.hbm %s4269_s2, 32  ;;  %p3399_p3 = scmp.lt.u32.totalorder %s3865_s7, %s4269_s2 }
  0x72   : > { %p3396_p0 = pnand %p3394_p4, %p4314_p1  ;;  %p3400_p7 = scmp.lt.u32.totalorder %s3398_s9, %s3393_s0 }
  0x73   : > { %p3402_p13 = scmp.lt.u32.totalorder %s3393_s0, %s3865_s7 }
  0x74   : > { %p3397_p8 = pneg %p3396_p0  ;;  %p3401_p5 = por %p3400_p7, %p3399_p3 }
  0x76   : > { %p3403_p12 = por %p3402_p13, %p3401_p5 }
  0x78   : > { %p3404_p11 = pnand %p3403_p12, %p3397_p8 }
  0x7a   : > { %3407 = shalt.err (!%p3404_p11)
}
  0x7b   : > { %s3408_s26 = scalar_lea.vmem %s210_s20, 16  ;;  %p4315_p2 = pmov %p4314_p1 }
  0x7c   : > { %p3409_p10 = scmp.ne.s32.totalorder %s210_s20, %s3408_s26  ;;  %s3582_s1 = smov [#allocation8]  }
  0x7d   : > { %s3413_s21 = sshll.u32 %s3582_s1, 4  ;;  %s3414_s21 = int_to_ptr.vmem [resolvable:$false] %s3413_s21 }
  0x7e   : > { %p3411_p9 = pnand %p3409_p10, %p4315_p2  ;;  %s3415_s18 = scalar_lea.vmem %s3414_s21, 32 }
  0x7f   : > { %p3416_p1 = scmp.lt.s32.totalorder %s210_s20, %s3414_s21  ;;  %p3417_p0 = scmp.lt.s32.totalorder %s3415_s18, %s3408_s26 }
  0x80   : > { %p3412_p4 = pneg %p3411_p9 }
  0x81   : > { %p3418_p3 = por %p3417_p0, %p3416_p1 }
  0x83   : > { %p3419_p7 = pnand %p3418_p3, %p3412_p4 }
  0x85   : > { %3422 = shalt.err (!%p3419_p7)
}
  0x86   : > { %3049 = dma.hbm_to_vmem [thread:$0]  (!%p3706_p6), %s3865_s7, 16, %s210_s20, %s3713_s30  }
  0x87   : > { %p4316_p8 = scmp.ne.s32.totalorder %s4296_s29, 0 }
  0x88   : > { %s220_s0 = sand.u32 (!%p4316_p8), 1, %s3549_s19   ;;  %p4317_p5 = scmp.ne.s32.totalorder (!%p4316_p8), %s4301_s27, 0 }
  0x89   : > { %218 = sbr.rel (%p4316_p8) target bundleno = 597 (0x255), region = 32  ;;  %s221_s6 = scalar_lea.sflag (!%p4316_p8), [#allocation4], %s220_s0 }
  0x8a   : > { %s3031_s22 = smul.u32 (!%p4316_p8), 96, %s220_s0 }
  0x8c   : > { %s3892_s3 = scalar_lea.vmem (!%p4316_p8), [#allocation3], %s3031_s22 }
  0x90   : > { %3508 = dma.done.wait (%p4317_p5), %s221_s6, 1536  }
  0x91   : > { %3510 = vsyncadd (%p4317_p5), %s221_s6, 4294965760  ;;  %s4318_s11 = sld [smem:[#allocation19_spill]]  ;;  %s229_s30 = sand.u32 1, %s3749_s4  }
  0x92   : > { %s231_s7 = sand.u32 1, %s3537_s16   ;;  %s230_s20 = scalar_lea.sflag [#allocation7], %s229_s30 }
  0x93   : > { %s2414_s29 = sshll.u32 %s231_s7, 10 }
  0x94   : > { %s3902_s8 = scalar_lea.vmem [#allocation6], %s2414_s29 }
  0x97   : > { %p4319_p6 = scmp.ne.s32.totalorder %s4318_s11, 0 }
  0x99   : > { %3512 = dma.done.wait (%p4319_p6), %s230_s20, 16400  }
  0x9a   : > { %3514 = vsyncadd (%p4319_p6), %s230_s20, 4294950896  ;;  %v3177_v0 = vld [vmem:[%s3902_s8 + $0x40] sm:$0xff]   ;;  %v3181_v4 = vld [vmem:[%s3902_s8 + $0x48] sm:$0xff]   ;;  %vm797_vm0 = vsmask.f32 7424  ;;  %s241_s4 = scalar_lea.vmem [#allocation8], %s231_s7 }
  0x9b   : > { %v3178_v1 = vld [vmem:[%s3902_s8 + $0xc0] sm:$0xff]   ;;  %2805 = vmatprep.subr.bf16.mxu0 %v3177_v0  ;;  %v3182_v5 = vld [vmem:[%s3902_s8 + $0xc8] sm:$0xff]   ;;  %v3185_v8 = vld [vmem:[%s3902_s8 + $0x50] sm:$0xff]   ;;  %s4320_s27 = sld [smem:[#allocation15_spill]]  ;;  %s4321_s9 = sld [smem:[#allocation14_spill]] }
  0x9c   : > { %v3179_v2 = vld [vmem:[%s3902_s8] sm:$0xff]   ;;  %2833 = vmatprep.subr.bf16.mxu1 %v3178_v1  ;;  %v3183_v6 = vld [vmem:[%s3902_s8 + $0x8] sm:$0xff]   ;;  %v3186_v9 = vld [vmem:[%s3902_s8 + $0xd0] sm:$0xff]   ;;  %s270_s10 = sand.u32 1, %s3525_s13   ;;  %p4323_p12 = scmp.ne.s32.totalorder %s4308_s15, 0 }
  0x9d   : > { %v3180_v3 = vld [vmem:[%s3902_s8 + $0x80] sm:$0xff]   ;;  %2806 = vmatpush3.bf16.msra.mxu0 %v3179_v2  ;;  %v3184_v7 = vld [vmem:[%s3902_s8 + $0x88] sm:$0xff]   ;;  %v3187_v10 = vld [vmem:[%s3902_s8 + $0x10] sm:$0xff]   ;;  %s2415_s24 = sshll.u32 %s270_s10, 4  ;;  %s4191_s30 = scalar_lea.sflag [#allocation5], %s270_s10 }
  0x9e   : > { %2834 = vmatpush3.bf16.msra.mxu1 %v3180_v3  ;;  %2807 = vmatprep.subr.bf16.mxu0 %v3181_v4  ;;  %v3188_v11 = vld [vmem:[%s3902_s8 + $0x90] sm:$0xff]   ;;  %v3189_v12 = vld [vmem:[%s3902_s8 + $0x58] sm:$0xff]   ;;  %v3193_v16 = vld [vmem:[%s3902_s8 + $0x60] sm:$0xff]   ;;  %s272_s18 = scalar_lea.vmem [#allocation9], %s2415_s24  ;;  %s3584_s29 = smov [#allocation9]  }
  0x9f   : > { %2835 = vmatprep.subr.bf16.mxu1 %v3182_v5  ;;  %v3190_v13 = vld [vmem:[%s3902_s8 + $0xd8] sm:$0xff]   ;;  %v3194_v17 = vld [vmem:[%s3902_s8 + $0xe0] sm:$0xff]   ;;  %v3197_v20 = vld [vmem:[%s3902_s8 + $0x68] sm:$0xff]   ;;  %s2279_s0 = sshll.u32 %s272_s18, 4  ;;  %s3427_s20 = sshll.u32 %s3584_s29, 4  ;;  %s4187_s0 = int_to_ptr.vmem [resolvable:$true] %s2279_s0  ;;  %s3428_s20 = int_to_ptr.vmem [resolvable:$false] %s3427_s20 }
  0xa0   : > { %v3191_v14 = vld [vmem:[%s3902_s8 + $0x18] sm:$0xff]   ;;  %v3195_v18 = vld [vmem:[%s3902_s8 + $0x20] sm:$0xff]   ;;  %v3198_v21 = vld [vmem:[%s3902_s8 + $0xe8] sm:$0xff]   ;;  %s3423_s7 = scalar_lea.vmem %s4187_s0, 256  ;;  %p3430_p2 = scmp.lt.s32.totalorder %s4187_s0, %s3428_s20 }
  0xa1   : > { %2808 = vmatpush3.bf16.msra.mxu0 %v3183_v6  ;;  %v3192_v15 = vld [vmem:[%s3902_s8 + $0x98] sm:$0xff]   ;;  %v3196_v19 = vld [vmem:[%s3902_s8 + $0xa0] sm:$0xff]   ;;  %v3199_v22 = vld [vmem:[%s3902_s8 + $0x28] sm:$0xff]   ;;  %s2786_s26 = sshll.u32 %s4320_s27, 3  ;;  %p3424_p13 = scmp.ne.s32.totalorder %s4187_s0, %s3423_s7 }
  0xa2   : > { %2836 = vmatpush3.bf16.msra.mxu1 %v3184_v7  ;;  %2809 = vmatprep.subr.bf16.mxu0 %v3185_v8  ;;  %v3200_v23 = vld [vmem:[%s3902_s8 + $0xa8] sm:$0xff]   ;;  %v3201_v24 = vld [vmem:[%s3902_s8 + $0x70] sm:$0xff]   ;;  %v3205_v28 = vld [vmem:[%s3902_s8 + $0x78] sm:$0xff]   ;;  %s2276_s1 = sadd.s32 %s4321_s9, %s2786_s26 }
  0xa3   : > { %2837 = vmatprep.subr.bf16.mxu1 %v3186_v9  ;;  %v3202_v25 = vld [vmem:[%s3902_s8 + $0xf0] sm:$0xff]   ;;  %v3206_v29 = vld [vmem:[%s3902_s8 + $0xf8] sm:$0xff]   ;;  %v274_v32 = vld [vmem:[%s3892_s3] sm:$0xff]  ;;  %s2787_s21 = sshll.u32 %s2276_s1, 6  ;;  %p3425_p11 = pnand %p3424_p13, %p4323_p12 }
  0xa4   : > { %v3203_v26 = vld [vmem:[%s3902_s8 + $0x30] sm:$0xff]   ;;  %v3207_v30 = vld [vmem:[%s3902_s8 + $0x38] sm:$0xff]   ;;  %v275_v34 = vld [vmem:[%s3892_s3 + $0x8] sm:$0xff] }
  0xa5   : > { %2810 = vmatpush3.bf16.msra.mxu0 %v3187_v10  ;;  %v3204_v27 = vld [vmem:[%s3902_s8 + $0xb0] sm:$0xff]   ;;  %v3208_v31 = vld [vmem:[%s3902_s8 + $0xb8] sm:$0xff]   ;;  %v3213_v40 = vld [vmem:[%s3902_s8 + $0x140] sm:$0xff]   ;;  %p3426_p10 = pneg %p3425_p11 }
  0xa6   : > { %2838 = vmatpush3.bf16.msra.mxu1 %v3188_v11  ;;  %2811 = vmatprep.subr.bf16.mxu0 %v3189_v12  ;;  %v3942_v33 = vld [vmem:[%s3892_s3 + $0x10] sm:$0xff]  ;;  %v3952_v37 = vld [vmem:[%s3892_s3 + $0x18] sm:$0xff]  ;;  %v3214_v41 = vld [vmem:[%s3902_s8 + $0x1c0] sm:$0xff]  }
  0xa7   : > { %2839 = vmatprep.subr.bf16.mxu1 %v3190_v13  ;;  %v3946_v35 = vcombine.low %v274_v32, %v3942_v33  ;;  %v3949_v36 = vcombine.high %v274_v32, %v3942_v33  ;;  %v3955_v38 = vcombine.low %v275_v34, %v3952_v37  ;;  %v3958_v39 = vcombine.high %v275_v34, %v3952_v37  ;;  %v3215_v42 = vld [vmem:[%s3902_s8 + $0x100] sm:$0xff]   ;;  %v3217_v44 = vld [vmem:[%s3902_s8 + $0x148] sm:$0xff]   ;;  %v3221_v48 = vld [vmem:[%s3902_s8 + $0x150] sm:$0xff]  }
  0xa8   : > { %v3216_v43 = vld [vmem:[%s3902_s8 + $0x180] sm:$0xff]   ;;  %v3218_v45 = vld [vmem:[%s3902_s8 + $0x1c8] sm:$0xff]   ;;  %v3222_v49 = vld [vmem:[%s3902_s8 + $0x1d0] sm:$0xff]  }
  0xa9   : > { %2812 = vmatpush3.bf16.msra.mxu0 %v3191_v14  ;;  %610 = vmatprep.mubr.bf16.mxu0 %v3949_v36  ;;  %v3219_v46 = vld [vmem:[%s3902_s8 + $0x108] sm:$0xff]   ;;  %v3223_v50 = vld [vmem:[%s3902_s8 + $0x110] sm:$0xff]   ;;  %v3225_v52 = vld [vmem:[%s3902_s8 + $0x158] sm:$0xff]   ;;  %v811_v56 = vshrl.u32 %v3949_v36, 16  ;;  %v813_v58 = vshll.u32 %v3949_v36, 16  ;;  %v837_v60 = vshll.u32 %v3958_v39, 16 }
  0xaa   : > { %2840 = vmatpush3.bf16.msra.mxu1 %v3192_v15  ;;  %2813 = vmatprep.subr.bf16.mxu0 %v3193_v16  ;;  %v3220_v47 = vld [vmem:[%s3902_s8 + $0x188] sm:$0xff]   ;;  %v3224_v51 = vld [vmem:[%s3902_s8 + $0x190] sm:$0xff]   ;;  %v3226_v53 = vld [vmem:[%s3902_s8 + $0x1d8] sm:$0xff]   ;;  %v801_v62 = vshll.u32 %v3946_v35, 16  ;;  %v825_v0 = vshll.u32 %v3955_v38, 16  ;;  %v835_v6 = vshrl.u32 %v3958_v39, 16 }
  0xab   : > { %2841 = vmatprep.subr.bf16.mxu1 %v3194_v17  ;;  %659 = vmatprep.mubr.bf16.mxu1 %v3958_v39  ;;  %v3227_v54 = vld [vmem:[%s3902_s8 + $0x118] sm:$0xff]   ;;  %v3229_v57 = vld [vmem:[%s3902_s8 + $0x160] sm:$0xff]   ;;  %v3233_v1 = vld [vmem:[%s3902_s8 + $0x168] sm:$0xff]   ;;  %v815_v2 = vrot.slane %v813_v58, 1  ;;  %v839_v7 = vrot.slane %v837_v60, 1  ;;  %v799_v8 = vshrl.u32 %v3946_v35, 16 }
  0xac   : > { %v3228_v55 = vld [vmem:[%s3902_s8 + $0x198] sm:$0xff]   ;;  %v3230_v59 = vld [vmem:[%s3902_s8 + $0x1e0] sm:$0xff]   ;;  %v3234_v3 = vld [vmem:[%s3902_s8 + $0x1e8] sm:$0xff]   ;;  %v803_v13 = vrot.slane %v801_v62, 1  ;;  %v823_v14 = vshrl.u32 %v3955_v38, 16 }
  0xad   : > { %2814 = vmatpush3.bf16.msra.mxu0 %v3195_v18  ;;  %v3231_v61 = vld [vmem:[%s3902_s8 + $0x120] sm:$0xff]   ;;  %v3995_v5 = vld [vmem:[%s3892_s3 + $0x30] sm:$0xff]  ;;  %v4004_v10 = vld [vmem:[%s3892_s3 + $0x28] sm:$0xff]  ;;  %v827_v18 = vrot.slane %v825_v0, 1 }
  0xae   : > { %2842 = vmatpush3.bf16.msra.mxu1 %v3196_v19  ;;  %2815 = vmatprep.subr.bf16.mxu0 %v3197_v20  ;;  %v3232_v63 = vld [vmem:[%s3902_s8 + $0x1a0] sm:$0xff]   ;;  %v4007_v11 = vld [vmem:[%s3892_s3 + $0x38] sm:$0xff]  ;;  %v3237_v16 = vld [vmem:[%s3902_s8 + $0x128] sm:$0xff]   ;;  %v816_v20 = vor.u32 %v815_v2, %v811_v56 }
  0xaf   : > { %2843 = vmatprep.subr.bf16.mxu1 %v3198_v21  ;;  %v3992_v4 = vld [vmem:[%s3892_s3 + $0x20] sm:$0xff]  ;;  %v4016_v15 = vcombine.high %v4004_v10, %v4007_v11  ;;  %v4021_v17 = vcombine.low %v4004_v10, %v4007_v11  ;;  %v3238_v19 = vld [vmem:[%s3902_s8 + $0x1a8] sm:$0xff]   ;;  %v3245_v32 = vld [vmem:[%s3902_s8 + $0x178] sm:$0xff]  }
  0xb0   : > { %v4001_v9 = vcombine.high %v3992_v4, %v3995_v5  ;;  %v4011_v12 = vcombine.low %v3992_v4, %v3995_v5  ;;  %v3256_v56 = vld [vmem:[%s3902_s8 + $0x288] sm:$0xff]   ;;  %v3261_v0 = vld [vmem:[%s3902_s8 + $0x250] sm:$0xff]  }
  0xb1   : > { %2816 = vmatpush3.bf16.msra.mxu0 %v3199_v22  ;;  %v3241_v22 = vld [vmem:[%s3902_s8 + $0x170] sm:$0xff]   ;;  %v830_v36 = vshll.u32 %v4021_v17, 16  ;;  %v862_v58 = vshrl.u32 %v4021_v17, 16  ;;  %v689_v60 = vld [vmem:[%s3892_s3 + $0x48] sm:$0x11] }
  0xb2   : > { %2844 = vmatpush3.bf16.msra.mxu1 %v3200_v23  ;;  %2817 = vmatprep.subr.bf16.mxu0 %v3201_v24  ;;  %v818_v21 = vshll.u32 %v4001_v9, 16  ;;  %v840_v23 = vor.u32 %v839_v7, %v835_v6  ;;  %v842_v24 = vshll.u32 %v4016_v15, 16  ;;  %v2531_v62 = vcombine.high %v689_v60, %v689_v60  ;;  %v3262_v7 = vld [vmem:[%s3902_s8 + $0x2d0] sm:$0xff]  }
  0xb3   : > { %2845 = vmatprep.subr.bf16.mxu1 %v3202_v25  ;;  %v3242_v25 = vld [vmem:[%s3902_s8 + $0x1f0] sm:$0xff]  }
  0xb5   : > { %2818 = vmatpush3.bf16.msra.mxu0 %v3203_v26  ;;  %v820_v26 = vrot.slane %v818_v21, 1 }
  0xb6   : > { %2846 = vmatpush3.bf16.msra.mxu1 %v3204_v27  ;;  %2819 = vmatprep.subr.bf16.mxu0 %v3205_v28  ;;  %v3243_v27 = vld [vmem:[%s3902_s8 + $0x130] sm:$0xff]   ;;  %v844_v28 = vrot.slane %v842_v24, 1 }
  0xb7   : > { %2847 = vmatprep.subr.bf16.mxu1 %v3206_v29  ;;  %v3244_v29 = vld [vmem:[%s3902_s8 + $0x1b0] sm:$0xff]  }
  0xb8   : > { %v845_v34 = vsel %vm797_vm0, %v840_v23, %v844_v28  ;;  %v3266_v23 = vld [vmem:[%s3902_s8 + $0x2d8] sm:$0xff]  }
  0xb9   : > { %2820 = vmatpush3.bf16.msra.mxu0 %v3207_v30  ;;  %v821_v30 = vsel %vm797_vm0, %v816_v20, %v820_v26 }
  0xba   : > { %2848 = vmatpush3.bf16.msra.mxu1 %v3208_v31  ;;  %2861 = vmatprep.subr.bf16.mxu0 %v3213_v40  ;;  %v806_v31 = vshll.u32 %v4011_v12, 16  ;;  %v828_v40 = vor.u32 %v827_v18, %v823_v14  ;;  %v3265_v18 = vld [vmem:[%s3902_s8 + $0x258] sm:$0xff]  }
  0xbb   : > { %2889 = vmatprep.subr.bf16.mxu1 %v3214_v41  ;;  %v3247_v41 = vld [vmem:[%s3902_s8 + $0x138] sm:$0xff]  }
  0xbc   : > { %611 = vmatmul.mubr.bf16.vlgmr.msra.gmra.mrb[0].mxu0 %v3946_v35  ;;  %v804_v35 = vor.u32 %v803_v13, %v799_v8  ;;  %v808_v39 = vrot.slane %v806_v31, 1  ;;  %v3263_v8 = vld [vmem:[%s3902_s8 + $0x210] sm:$0xff]   ;;  %v3270_v31 = vld [vmem:[%s3902_s8 + $0x2e0] sm:$0xff]  }
  0xbd   : > { %660 = vmatmul.mubr.bf16.vlgmr.msra.gmra.mrb[0].mxu1 %v3955_v38  ;;  %2862 = vmatpush3.bf16.msra.mxu0 %v3215_v42  ;;  %v3246_v38 = vld [vmem:[%s3902_s8 + $0x1f8] sm:$0xff]   ;;  %v832_v42 = vrot.slane %v830_v36, 1  ;;  %v3274_v36 = vld [vmem:[%s3902_s8 + $0x2e8] sm:$0xff]  }
  0xbe   : > { %2890 = vmatpush3.bf16.msra.mxu1 %v3216_v43  ;;  %2863 = vmatprep.subr.bf16.mxu0 %v3217_v44  ;;  %v3248_v43 = vld [vmem:[%s3902_s8 + $0x1b8] sm:$0xff]   ;;  %v809_v44 = vsel %vm797_vm0, %v804_v35, %v808_v39  ;;  %v3273_v35 = vld [vmem:[%s3902_s8 + $0x268] sm:$0xff]  }
  0xbf   : > { %2891 = vmatprep.subr.bf16.mxu1 %v3218_v45  ;;  %618 = vmatprep.mubr.bf16.mxu0 %v4001_v9  ;;  %v3249_v45 = vld [vmem:[%s3902_s8 + $0x240] sm:$0xff]   ;;  %v864_v13 = vor.u32 %v862_v58, %v832_v42 }
  0xc0   : > { %667 = vmatprep.mubr.bf16.mxu1 %v4016_v15  ;;  %v1194_v58 = vld [vmem:[%s3892_s3 + $0x40] sm:$0xff] }
  0xc1   : > { %2864 = vmatpush3.bf16.msra.mxu0 %v3219_v46  ;;  %v833_v46 = vsel %vm797_vm0, %v828_v40, %v832_v42  ;;  %v3277_v40 = vld [vmem:[%s3902_s8 + $0x270] sm:$0xff]  }
  0xc2   : > { %2892 = vmatpush3.bf16.msra.mxu1 %v3220_v47  ;;  %2865 = vmatprep.subr.bf16.mxu0 %v3221_v48  ;;  %v3250_v47 = vld [vmem:[%s3902_s8 + $0x2c0] sm:$0xff]   ;;  %v3279_v42 = vld [vmem:[%s3902_s8 + $0x230] sm:$0xff]  }
  0xc3   : > { %2893 = vmatprep.subr.bf16.mxu1 %v3222_v49  ;;  %v3251_v48 = vld [vmem:[%s3902_s8 + $0x200] sm:$0xff]  }
  0xc4   : > { %619 = vmatmul.mubr.bf16.gmra.mrb[4].mxu0 %v4011_v12  ;;  %v3252_v49 = vld [vmem:[%s3902_s8 + $0x280] sm:$0xff]  }
  0xc5   : > { %2866 = vmatpush3.bf16.msra.mxu0 %v3223_v50  ;;  %668 = vmatmul.mubr.bf16.gmra.mrb[4].mxu1 %v4021_v17  ;;  %v3253_v50 = vld [vmem:[%s3902_s8 + $0x248] sm:$0xff]   ;;  %v3264_v17 = vld [vmem:[%s3902_s8 + $0x290] sm:$0xff]  }
  0xc6   : > { %2894 = vmatpush3.bf16.msra.mxu1 %v3224_v51  ;;  %2867 = vmatprep.subr.bf16.mxu0 %v3225_v52  ;;  %v854_v51 = vshrl.u32 %v4001_v9, 16  ;;  %v3254_v52 = vld [vmem:[%s3902_s8 + $0x2c8] sm:$0xff]  }
  0xc7   : > { %2895 = vmatprep.subr.bf16.mxu1 %v3226_v53  ;;  %1110 = vmatprep.mubr.bf16.mxu0 %v821_v30  ;;  %v870_v53 = vshrl.u32 %v4016_v15, 16  ;;  %v3269_v30 = vld [vmem:[%s3902_s8 + $0x260] sm:$0xff]  }
  0xc8   : > { %1159 = vmatprep.mubr.bf16.mxu1 %v845_v34  ;;  %v3272_v34 = vld [vmem:[%s3902_s8 + $0x2a0] sm:$0xff]  }
  0xc9   : > { %2868 = vmatpush3.bf16.msra.mxu0 %v3227_v54  ;;  %v3255_v54 = vld [vmem:[%s3902_s8 + $0x208] sm:$0xff]   ;;  %v872_v9 = vor.u32 %v870_v53, %v844_v28  ;;  %v3268_v28 = vld [vmem:[%s3902_s8 + $0x298] sm:$0xff]   ;;  %v3292_v53 = vld [vmem:[%s3902_s8 + $0x380] sm:$0xff]  }
  0xca   : > { %2896 = vmatpush3.bf16.msra.mxu1 %v3228_v55  ;;  %2869 = vmatprep.subr.bf16.mxu0 %v3229_v57  ;;  %v846_v55 = vshrl.u32 %v4011_v12, 16  ;;  %v688_v57 = vld [vmem:[%s3892_s3 + $0x40] sm:$0x11]  ;;  %v874_v12 = vshll.u32 %v2531_v62, 16  ;;  %v4119_v62 = vcombine.low %v3995_v5, %v1194_v58 }
  0xcb   : > { %2897 = vmatprep.subr.bf16.mxu1 %v3230_v59  ;;  %v2529_v59 = vcombine.high %v688_v57, %v688_v57 }
  0xcd   : > { %2870 = vmatpush3.bf16.msra.mxu0 %v3231_v61  ;;  %v2528_v61 = vcombine.low %v688_v57, %v688_v57  ;;  %v858_v2 = vshll.u32 %v2529_v59, 16  ;;  %v1195_v59 = vld [vmem:[%s3892_s3 + $0x48] sm:$0xff] }
  0xce   : > { %2898 = vmatpush3.bf16.msra.mxu1 %v3232_v63  ;;  %2871 = vmatprep.subr.bf16.mxu0 %v3233_v1  ;;  %v2530_v63 = vcombine.low %v689_v60, %v689_v60  ;;  %v856_v1 = vor.u32 %v854_v51, %v820_v26  ;;  %v3267_v26 = vld [vmem:[%s3902_s8 + $0x218] sm:$0xff]   ;;  %v3290_v51 = vld [vmem:[%s3902_s8 + $0x3c0] sm:$0xff]   ;;  %v4113_v60 = vcombine.high %v3995_v5, %v1194_v58  ;;  %v3304_v5 = vld [vmem:[%s3902_s8 + $0x390] sm:$0xff]  }
  0xcf   : > { %2899 = vmatprep.subr.bf16.mxu1 %v3234_v3  ;;  %v848_v3 = vor.u32 %v846_v55, %v808_v39  ;;  %v850_v6 = vshll.u32 %v2528_v61, 16  ;;  %v860_v15 = vrot.slane %v858_v2, 1  ;;  %v3276_v39 = vld [vmem:[%s3902_s8 + $0x2a8] sm:$0xff]   ;;  %v4116_v61 = vcombine.high %v4007_v11, %v1195_v59  ;;  %v3303_v2 = vld [vmem:[%s3902_s8 + $0x310] sm:$0xff]  }
  0xd0   : > { %v866_v14 = vshll.u32 %v2530_v63, 16  ;;  %v3301_v63 = vld [vmem:[%s3902_s8 + $0x350] sm:$0xff]  }
  0xd1   : > { %2872 = vmatpush3.bf16.msra.mxu0 %v3237_v16  ;;  %v852_v16 = vrot.slane %v850_v6, 1  ;;  %v861_v21 = vsel %vm797_vm0, %v856_v1, %v860_v15  ;;  %v3302_v1 = vld [vmem:[%s3902_s8 + $0x3d0] sm:$0xff]   ;;  %v1740_v6 = vshll.u32 %v4113_v60, 16  ;;  %v3310_v15 = vld [vmem:[%s3902_s8 + $0x3e0] sm:$0xff]  }
  0xd2   : > { %2900 = vmatpush3.bf16.msra.mxu1 %v3238_v19  ;;  %2873 = vmatprep.subr.bf16.mxu0 %v3241_v22  ;;  %v876_v19 = vrot.slane %v874_v12, 1  ;;  %v868_v20 = vrot.slane %v866_v14, 1  ;;  %v3309_v14 = vld [vmem:[%s3902_s8 + $0x360] sm:$0xff]  }
  0xd3   : > { %2901 = vmatprep.subr.bf16.mxu1 %v3242_v25  ;;  %v853_v22 = vsel %vm797_vm0, %v848_v3, %v852_v16  ;;  %v3311_v16 = vld [vmem:[%s3902_s8 + $0x320] sm:$0xff]  }
  0xd4   : > { %v877_v24 = vsel %vm797_vm0, %v872_v9, %v876_v19  ;;  %v869_v25 = vsel %vm797_vm0, %v864_v13, %v868_v20  ;;  %v3307_v9 = vld [vmem:[%s3902_s8 + $0x318] sm:$0xff]   ;;  %v3313_v19 = vld [vmem:[%s3902_s8 + $0x368] sm:$0xff]  }
  0xd5   : > { %2874 = vmatpush3.bf16.msra.mxu0 %v3243_v27  ;;  %v4071_v27 = vcombine.high %v3942_v33, %v3992_v4  ;;  %v3308_v13 = vld [vmem:[%s3902_s8 + $0x398] sm:$0xff]   ;;  %v3314_v20 = vld [vmem:[%s3902_s8 + $0x3e8] sm:$0xff]  }
  0xd6   : > { %2902 = vmatpush3.bf16.msra.mxu1 %v3244_v29  ;;  %2875 = vmatprep.subr.bf16.mxu0 %v3245_v32  ;;  %v2631_v29 = vcombine.high %v3952_v37, %v4004_v10  ;;  %v3271_v32 = vld [vmem:[%s3902_s8 + $0x220] sm:$0xff]  }
  0xd7   : > { %2903 = vmatprep.subr.bf16.mxu1 %v3246_v38  ;;  %v3275_v38 = vld [vmem:[%s3902_s8 + $0x228] sm:$0xff]   ;;  %v1733_v55 = vshrl.u32 %v4071_v27, 16 }
  0xd9   : > { %2876 = vmatpush3.bf16.msra.mxu0 %v3247_v41  ;;  %v3278_v41 = vld [vmem:[%s3902_s8 + $0x2f0] sm:$0xff]  }
  0xda   : > { %2904 = vmatpush3.bf16.msra.mxu1 %v3248_v43  ;;  %2917 = vmatprep.subr.bf16.mxu0 %v3249_v45  ;;  %v3280_v43 = vld [vmem:[%s3902_s8 + $0x2b0] sm:$0xff]   ;;  %v3282_v45 = vld [vmem:[%s3902_s8 + $0x2f8] sm:$0xff]  }
  0xdb   : > { %2945 = vmatprep.subr.bf16.mxu1 %v3250_v47  ;;  %v3284_v47 = vld [vmem:[%s3902_s8 + $0x2b8] sm:$0xff]  }
  0xdc   : > { %1111 = vmatmul.mubr.bf16.vlgmr.msra.gmra.mrb[8].mxu0 %v809_v44  ;;  %v3281_v44 = vld [vmem:[%s3902_s8 + $0x278] sm:$0xff]  }
  0xdd   : > { %1160 = vmatmul.mubr.bf16.vlgmr.msra.gmra.mrb[8].mxu1 %v833_v46  ;;  %2918 = vmatpush3.bf16.msra.mxu0 %v3251_v48  ;;  %v3283_v46 = vld [vmem:[%s3902_s8 + $0x238] sm:$0xff]   ;;  %v4095_v48 = vcombine.low %v3942_v33, %v3992_v4  ;;  %v3293_v33 = vld [vmem:[%s3902_s8 + $0x348] sm:$0xff]  }
  0xde   : > { %2946 = vmatpush3.bf16.msra.mxu1 %v3252_v49  ;;  %2919 = vmatprep.subr.bf16.mxu0 %v3253_v50  ;;  %v2630_v49 = vcombine.low %v3952_v37, %v4004_v10  ;;  %v3289_v50 = vld [vmem:[%s3902_s8 + $0x340] sm:$0xff]   ;;  %v3294_v37 = vld [vmem:[%s3902_s8 + $0x3c8] sm:$0xff]  }
  0xdf   : > { %2947 = vmatprep.subr.bf16.mxu1 %v3254_v52  ;;  %1118 = vmatprep.mubr.bf16.mxu0 %v861_v21  ;;  %v3291_v52 = vld [vmem:[%s3902_s8 + $0x300] sm:$0xff]   ;;  %v3295_v4 = vld [vmem:[%s3902_s8 + $0x308] sm:$0xff]   ;;  %v1721_v21 = vshrl.u32 %v4095_v48, 16 }
  0xe0   : > { %1167 = vmatprep.mubr.bf16.mxu1 %v877_v24  ;;  %v3316_v24 = vld [vmem:[%s3902_s8 + $0x3a8] sm:$0xff]  }
  0xe1   : > { %2920 = vmatpush3.bf16.msra.mxu0 %v3255_v54  ;;  %v1735_v54 = vshll.u32 %v4071_v27, 16 }
  0xe2   : > { %2948 = vmatpush3.bf16.msra.mxu1 %v3256_v56  ;;  %2921 = vmatprep.subr.bf16.mxu0 %v3261_v0  ;;  %v3296_v56 = vld [vmem:[%s3902_s8 + $0x388] sm:$0xff]   ;;  %v4123_v0 = vcombine.low %v4007_v11, %v1195_v59  ;;  %v3305_v11 = vld [vmem:[%s3902_s8 + $0x358] sm:$0xff]  }
  0xe3   : > { %2949 = vmatprep.subr.bf16.mxu1 %v3262_v7  ;;  %v1737_v57 = vrot.slane %v1735_v54, 1  ;;  %v1742_v7 = vrot.slane %v1740_v6, 1 }
  0xe4   : > { %1119 = vmatmul.mubr.bf16.gmra.mrb[12].mxu0 %v853_v22  ;;  %v3315_v22 = vld [vmem:[%s3902_s8 + $0x328] sm:$0xff]  }
  0xe5   : > { %2922 = vmatpush3.bf16.msra.mxu0 %v3263_v8  ;;  %1168 = vmatmul.mubr.bf16.gmra.mrb[12].mxu1 %v869_v25  ;;  %v1738_v3 = vor.u32 %v1737_v57, %v1733_v55  ;;  %v3306_v8 = vld [vmem:[%s3902_s8 + $0x3d8] sm:$0xff]   ;;  %v1728_v25 = vshll.u32 %v4119_v62, 16 }
  0xe6   : > { %2950 = vmatpush3.bf16.msra.mxu1 %v3264_v17  ;;  %2923 = vmatprep.subr.bf16.mxu0 %v3265_v18  ;;  %v1723_v17 = vshll.u32 %v4095_v48, 16  ;;  %v3312_v18 = vld [vmem:[%s3902_s8 + $0x3a0] sm:$0xff]  }
  0xe7   : > { %2951 = vmatprep.subr.bf16.mxu1 %v3266_v23  ;;  %1525 = vmatprep.mubr.bf16.mxu0 %v4071_v27  ;;  %v1743_v12 = vsel %vm797_vm0, %v1738_v3, %v1742_v7  ;;  %v3318_v27 = vld [vmem:[%s3902_s8 + $0x3f0] sm:$0xff]  }
  0xe8   : > { %1574 = vmatprep.mubr.bf16.mxu1 %v2631_v29  ;;  %v1725_v23 = vrot.slane %v1723_v17, 1  ;;  %v1764_v29 = vshll.u32 %v4116_v61, 16 }
  0xe9   : > { %2924 = vmatpush3.bf16.msra.mxu0 %v3267_v26  ;;  %v3317_v26 = vld [vmem:[%s3902_s8 + $0x370] sm:$0xff]  }
  0xea   : > { %2952 = vmatpush3.bf16.msra.mxu1 %v3268_v28  ;;  %2925 = vmatprep.subr.bf16.mxu0 %v3269_v30  ;;  %v3319_v28 = vld [vmem:[%s3902_s8 + $0x330] sm:$0xff]  }
  0xeb   : > { %2953 = vmatprep.subr.bf16.mxu1 %v3270_v31  ;;  %v3320_v30 = vld [vmem:[%s3902_s8 + $0x3b0] sm:$0xff]   ;;  %v1726_v31 = vor.u32 %v1725_v23, %v1721_v21 }
  0xed   : > { %2926 = vmatpush3.bf16.msra.mxu0 %v3271_v32  ;;  %v1730_v32 = vrot.slane %v1728_v25, 1 }
  0xee   : > { %2954 = vmatpush3.bf16.msra.mxu1 %v3272_v34  ;;  %2927 = vmatprep.subr.bf16.mxu0 %v3273_v35  ;;  %v3321_v34 = vld [vmem:[%s3902_s8 + $0x378] sm:$0xff]   ;;  %v1776_v35 = vshrl.u32 %v4113_v60, 16 }
  0xef   : > { %2955 = vmatprep.subr.bf16.mxu1 %v3274_v36  ;;  %v3322_v36 = vld [vmem:[%s3902_s8 + $0x3f8] sm:$0xff]  }
  0xf1   : > { %2928 = vmatpush3.bf16.msra.mxu0 %v3275_v38  ;;  %v3323_v38 = vld [vmem:[%s3902_s8 + $0x338] sm:$0xff]  }
  0xf2   : > { %2956 = vmatpush3.bf16.msra.mxu1 %v3276_v39  ;;  %2929 = vmatprep.subr.bf16.mxu0 %v3277_v40  ;;  %v3324_v39 = vld [vmem:[%s3902_s8 + $0x3b8] sm:$0xff]   ;;  %s3429_s8 = scalar_lea.vmem %s3428_s20, 512 }
  0xf3   : > { %2957 = vmatprep.subr.bf16.mxu1 %v3278_v41  ;;  %v1604_v40 = vld [vmem:[%s3892_s3 + $0x18] sm:$0xff]  ;;  %v1766_v41 = vrot.slane %v1764_v29, 1  ;;  %p3431_p9 = scmp.lt.s32.totalorder %s3429_s8, %s3423_s7 }
  0xf5   : > { %2930 = vmatpush3.bf16.msra.mxu0 %v3279_v42  ;;  %v1731_v42 = vsel %vm797_vm0, %v1726_v31, %v1730_v32  ;;  %p3432_p4 = por %p3431_p9, %p3430_p2 }
  0xf6   : > { %2958 = vmatpush3.bf16.msra.mxu1 %v3280_v43  ;;  %2931 = vmatprep.subr.bf16.mxu0 %v3281_v44  ;;  %v1752_v43 = vshll.u32 %v4123_v0, 16  ;;  %v2734_v44 = vcombine.low %v1604_v40, %v4004_v10 }
  0xf7   : > { %2959 = vmatprep.subr.bf16.mxu1 %v3282_v45  ;;  %v2735_v45 = vcombine.high %v1604_v40, %v4004_v10  ;;  %p3433_p1 = pnand %p3432_p4, %p3426_p10 }
  0xf9   : > { %2932 = vmatpush3.bf16.msra.mxu0 %v3283_v46  ;;  %v1611_v46 = vld [vmem:[%s3892_s3 + $0x50] sm:$0x11]  ;;  %v1757_v54 = vshrl.u32 %v2735_v45, 16 }
  0xfa   : > { %2960 = vmatpush3.bf16.msra.mxu1 %v3284_v47  ;;  %2973 = vmatprep.subr.bf16.mxu0 %v3289_v50  ;;  %v1778_v47 = vor.u32 %v1776_v35, %v1742_v7  ;;  %v2741_v50 = vcombine.high %v1611_v46, %v1611_v46 }
  0xfb   : > { %3001 = vmatprep.subr.bf16.mxu1 %v3290_v51 }
  0xfc   : > { %1526 = vmatmul.mubr.bf16.vlgmr.msra.gmra.mrb[16].mxu0 %v4095_v48  ;;  %v1612_v48 = vld [vmem:[%s3892_s3 + $0x58] sm:$0x11]  ;;  %v1780_v55 = vshll.u32 %v2741_v50, 16  ;;  %s4322_s3 = sld [smem:[#allocation24_spill]] }
  0xfd   : > { %1575 = vmatmul.mubr.bf16.vlgmr.msra.gmra.mrb[16].mxu1 %v2630_v49  ;;  %2974 = vmatpush3.bf16.msra.mxu0 %v3291_v52  ;;  %v1792_v49 = vshrl.u32 %v4116_v61, 16  ;;  %v2743_v51 = vcombine.high %v1612_v48, %v1612_v48  ;;  %v2740_v52 = vcombine.low %v1611_v46, %v1611_v46  ;;  %v2742_v10 = vcombine.low %v1612_v48, %v1612_v48 }
  0xfe   : > { %3002 = vmatpush3.bf16.msra.mxu1 %v3292_v53  ;;  %2975 = vmatprep.subr.bf16.mxu0 %v3293_v33  ;;  %v1768_v53 = vshrl.u32 %v4119_v62, 16  ;;  %v1759_v33 = vshll.u32 %v2735_v45, 16 }
  0xff   : > { %3003 = vmatprep.subr.bf16.mxu1 %v3294_v37  ;;  %1533 = vmatprep.mubr.bf16.mxu0 %v4113_v60  ;;  %v1745_v37 = vshrl.u32 %v2734_v44, 16  ;;  %v1772_v57 = vshll.u32 %v2740_v52, 16  ;;  %v1754_v60 = vrot.slane %v1752_v43, 1  ;;  %v1788_v7 = vshll.u32 %v2742_v10, 16 }
 0x100   : > { %1582 = vmatprep.mubr.bf16.mxu1 %v4116_v61  ;;  %v1761_v58 = vrot.slane %v1759_v33, 1  ;;  %v1794_v61 = vor.u32 %v1792_v49, %v1766_v41 }
 0x101   : > { %2976 = vmatpush3.bf16.msra.mxu0 %v3295_v4  ;;  %v1747_v4 = vshll.u32 %v2734_v44, 16  ;;  %v1774_v3 = vrot.slane %v1772_v57, 1 }
 0x102   : > { %3004 = vmatpush3.bf16.msra.mxu1 %v3296_v56  ;;  %2977 = vmatprep.subr.bf16.mxu0 %v3301_v63  ;;  %v1796_v56 = vshll.u32 %v2743_v51, 16  ;;  %v1782_v63 = vrot.slane %v1780_v55, 1  ;;  %v1762_v6 = vor.u32 %v1761_v58, %v1757_v54  ;;  %s4185_s11 = scalar_lea.hbm %s4322_s3, %s2787_s21 }
 0x103   : > { %3005 = vmatprep.subr.bf16.mxu1 %v3302_v1  ;;  %v1749_v59 = vrot.slane %v1747_v4, 1 }
 0x104   : > { %1534 = vmatmul.mubr.bf16.gmra.mrb[20].mxu0 %v4119_v62  ;;  %v1798_v1 = vrot.slane %v1796_v56, 1  ;;  %v1783_v62 = vsel %vm797_vm0, %v1778_v47, %v1782_v63 }
 0x105   : > { %1583 = vmatmul.mubr.bf16.gmra.mrb[20].mxu1 %v4123_v0  ;;  %2978 = vmatpush3.bf16.msra.mxu0 %v3303_v2  ;;  %v1770_v2 = vor.u32 %v1768_v53, %v1730_v32 }
 0x106   : > { %3006 = vmatpush3.bf16.msra.mxu1 %v3304_v5  ;;  %2979 = vmatprep.subr.bf16.mxu0 %v3305_v11  ;;  %v1750_v5 = vor.u32 %v1749_v59, %v1745_v37  ;;  %v1784_v11 = vshrl.u32 %v4123_v0, 16 }
 0x107   : > { %3007 = vmatprep.subr.bf16.mxu1 %v3306_v8  ;;  %2032 = vmatprep.mubr.bf16.mxu0 %v1743_v12  ;;  %v1767_v8 = vsel %vm797_vm0, %v1762_v6, %v1766_v41  ;;  %v1799_v12 = vsel %vm797_vm0, %v1794_v61, %v1798_v1 }
 0x108   : > { %2081 = vmatprep.mubr.bf16.mxu1 %v1767_v8 }
 0x109   : > { %2980 = vmatpush3.bf16.msra.mxu0 %v3307_v9  ;;  %v1755_v9 = vsel %vm797_vm0, %v1750_v5, %v1754_v60 }
 0x10a   : > { %3008 = vmatpush3.bf16.msra.mxu1 %v3308_v13  ;;  %2981 = vmatprep.subr.bf16.mxu0 %v3309_v14  ;;  %v1775_v13 = vsel %vm797_vm0, %v1770_v2, %v1774_v3  ;;  %v1786_v14 = vor.u32 %v1784_v11, %v1754_v60 }
 0x10b   : > { %3009 = vmatprep.subr.bf16.mxu1 %v3310_v15  ;;  %v1790_v15 = vrot.slane %v1788_v7, 1 }
 0x10d   : > { %2982 = vmatpush3.bf16.msra.mxu0 %v3311_v16  ;;  %v1791_v16 = vsel %vm797_vm0, %v1786_v14, %v1790_v15 }
 0x10e   : > { %3010 = vmatpush3.bf16.msra.mxu1 %v3312_v18  ;;  %2983 = vmatprep.subr.bf16.mxu0 %v3313_v19 }
 0x10f   : > { %3011 = vmatprep.subr.bf16.mxu1 %v3314_v20 }
 0x111   : > { %2984 = vmatpush3.bf16.msra.mxu0 %v3315_v22 }
 0x112   : > { %3012 = vmatpush3.bf16.msra.mxu1 %v3316_v24  ;;  %2985 = vmatprep.subr.bf16.mxu0 %v3317_v26 }
 0x113   : > { %3013 = vmatprep.subr.bf16.mxu1 %v3318_v27 }
 0x115   : > { %2986 = vmatpush3.bf16.msra.mxu0 %v3319_v28 }
 0x116   : > { %3014 = vmatpush3.bf16.msra.mxu1 %v3320_v30  ;;  %2987 = vmatprep.subr.bf16.mxu0 %v3321_v34 }
 0x117   : > { %3015 = vmatprep.subr.bf16.mxu1 %v3322_v36 }
 0x119   : > { %2988 = vmatpush3.bf16.msra.mxu0 %v3323_v38 }
 0x11a   : > { %3016 = vmatpush3.bf16.msra.mxu1 %v3324_v39 }
 0x11c   : > { %2033 = vmatmul.mubr.bf16.vlgmr.msra.gmra.mrb[24].mxu0 %v1731_v42 }
 0x11d   : > { %2040 = vmatprep.mubr.bf16.mxu0 %v1783_v62  ;;  %2082 = vmatmul.mubr.bf16.vlgmr.msra.gmra.mrb[24].mxu1 %v1755_v9 }
 0x11e   : > { %2089 = vmatprep.mubr.bf16.mxu1 %v1799_v12 }
 0x124   : > { %2041 = vmatmul.mubr.bf16.gmra.mrb[28].mxu0 %v1775_v13 }
 0x125   : > { %2090 = vmatmul.mubr.bf16.gmra.mrb[28].mxu1 %v1791_v16 }
 0x18f   : > { %v2821_v0 = vpop.f32.mrb[0].mxu0 }
 0x190   : > { %v2849_v17 = vpop.f32.mrb[0].mxu1  ;;  %v2822_v18 = vpop.f32.mrb[1].mxu0 }
 0x191   : > { %v2823_v19 = vadd.f32 %v2822_v18, %v2821_v0  ;;  %v2850_v20 = vpop.f32.mrb[1].mxu1  ;;  %v2824_v21 = vpop.f32.mrb[2].mxu0 }
 0x192   : > { %v2851_v22 = vadd.f32 %v2850_v20, %v2849_v17  ;;  %v2852_v23 = vpop.f32.mrb[2].mxu1  ;;  %v2825_v24 = vpop.f32.mrb[3].mxu0 }
 0x193   : > { %v2826_v25 = vadd.f32 %v2825_v24, %v2824_v21  ;;  %v2853_v26 = vpop.f32.mrb[3].mxu1 }
 0x194   : > { %v662_v27 = vadd.f32 %v2851_v22, %v2823_v19  ;;  %v2854_v28 = vadd.f32 %v2853_v26, %v2852_v23 }
 0x196   : > { %v665_v29 = vadd.f32 %v2854_v28, %v2826_v25 }
 0x197   : > { %v2827_v30 = vpop.f32.mrb[4].mxu0 }
 0x198   : > { %v2855_v31 = vpop.f32.mrb[4].mxu1  ;;  %v2828_v32 = vpop.f32.mrb[5].mxu0 }
 0x199   : > { %v2829_v34 = vadd.f32 %v2828_v32, %v2827_v30  ;;  %v2856_v35 = vpop.f32.mrb[5].mxu1  ;;  %v2830_v36 = vpop.f32.mrb[6].mxu0 }
 0x19a   : > { %v2857_v38 = vadd.f32 %v2856_v35, %v2855_v31  ;;  %v2858_v39 = vpop.f32.mrb[6].mxu1  ;;  %v2831_v40 = vpop.f32.mrb[7].mxu0 }
 0x19b   : > { %v2832_v41 = vadd.f32 %v2831_v40, %v2830_v36  ;;  %v2859_v42 = vpop.f32.mrb[7].mxu1 }
 0x19c   : > { %v670_v43 = vadd.f32 %v2857_v38, %v2829_v34  ;;  %v2860_v44 = vadd.f32 %v2859_v42, %v2858_v39 }
 0x19e   : > { %v673_v45 = vadd.f32 %v2860_v44, %v2832_v41 }
 0x1af   : > { %v2877_v46 = vpop.f32.mrb[8].mxu0 }
 0x1b0   : > { %v2905_v47 = vpop.f32.mrb[8].mxu1  ;;  %v2878_v48 = vpop.f32.mrb[9].mxu0 }
 0x1b1   : > { %v2879_v49 = vadd.f32 %v2878_v48, %v2877_v46  ;;  %v2906_v50 = vpop.f32.mrb[9].mxu1  ;;  %v2880_v51 = vpop.f32.mrb[10].mxu0  ;;  %v2125_v46 = vlaneseq }
 0x1b2   : > { %v2907_v52 = vadd.f32 %v2906_v50, %v2905_v47  ;;  %v2908_v53 = vpop.f32.mrb[10].mxu1  ;;  %v2881_v54 = vpop.f32.mrb[11].mxu0 }
 0x1b3   : > { %v2882_v33 = vadd.f32 %v2881_v54, %v2880_v51  ;;  %v2909_v37 = vpop.f32.mrb[11].mxu1  ;;  %v2126_v47 = vshrl.u32 %v2125_v46, 7 }
 0x1b4   : > { %v1162_v4 = vadd.f32 %v2907_v52, %v2879_v49  ;;  %v2910_v55 = vadd.f32 %v2909_v37, %v2908_v53 }
 0x1b5   : > { %v2127_v53 = vadd.s32 8, %v2126_v47 }
 0x1b6   : > { %v1180_v56 = vadd.f32 %v1162_v4, %v662_v27  ;;  %v1165_v57 = vadd.f32 %v2910_v55, %v2882_v33  ;;  %v2134_v4 = vand.u32 7, %v2126_v47 }
 0x1b7   : > { %v2883_v58 = vpop.f32.mrb[12].mxu0  ;;  %v2141_v55 = vand.u32 7, %v2127_v53 }
 0x1b8   : > { %v1181_v10 = vadd.f32 %v1165_v57, %v665_v29  ;;  %v2911_v59 = vpop.f32.mrb[12].mxu1  ;;  %v2884_v60 = vpop.f32.mrb[13].mxu0  ;;  %vm2178_vm1 = vcmp.lt.s32.totalorder %v2134_v4, 4 }
 0x1b9   : > { %v2885_v61 = vadd.f32 %v2884_v60, %v2883_v58  ;;  %v2912_v63 = vpop.f32.mrb[13].mxu1  ;;  %v2886_v1 = vpop.f32.mrb[14].mxu0  ;;  %v2128_v60 = vadd.s32 16, %v2126_v47  ;;  %vm2179_vm2 = vcmp.lt.s32.totalorder %v2141_v55, 4 }
 0x1ba   : > { %v2913_v2 = vadd.f32 %v2912_v63, %v2911_v59  ;;  %v2914_v3 = vpop.f32.mrb[14].mxu1  ;;  %v2887_v6 = vpop.f32.mrb[15].mxu0 }
 0x1bb   : > { %v2888_v5 = vadd.f32 %v2887_v6, %v2886_v1  ;;  %v2915_v62 = vpop.f32.mrb[15].mxu1 }
 0x1bc   : > { %v1170_v11 = vadd.f32 %v2913_v2, %v2885_v61  ;;  %v2916_v7 = vadd.f32 %v2915_v62, %v2914_v3  ;;  %v2776_v3 = vld [vmem:[%s241_s4] ss:$0 sm:$0xff] }
 0x1be   : > { %v1182_v8 = vadd.f32 %v1170_v11, %v670_v43  ;;  %v1173_v9 = vadd.f32 %v2916_v7, %v2888_v5  ;;  %v2129_v7 = vadd.s32 24, %v2126_v47 }
 0x1c0   : > { %v1183_v12 = vadd.f32 %v1173_v9, %v673_v45 }
 0x1cf   : > { %v2933_v13 = vpop.f32.mrb[16].mxu0 }
 0x1d0   : > { %v2961_v14 = vpop.f32.mrb[16].mxu1  ;;  %v2934_v15 = vpop.f32.mrb[17].mxu0 }
 0x1d1   : > { %v2962_v16 = vpop.f32.mrb[17].mxu1  ;;  %v2935_v0 = vadd.f32 %v2934_v15, %v2933_v13  ;;  %v2936_v18 = vpop.f32.mrb[18].mxu0 }
 0x1d2   : > { %v2963_v17 = vadd.f32 %v2962_v16, %v2961_v14  ;;  %v2964_v19 = vpop.f32.mrb[18].mxu1  ;;  %v2937_v20 = vpop.f32.mrb[19].mxu0  ;;  %v3583_v14 = vmov 0.0  }
 0x1d3   : > { %v2965_v21 = vpop.f32.mrb[19].mxu1  ;;  %v2938_v23 = vadd.f32 %v2937_v20, %v2936_v18  ;;  %v2777_v15 = vsel %vm2178_vm1, 1.0, %v3583_v14  ;;  %v2778_v16 = vsel %vm2179_vm2, 1.0, %v3583_v14  ;;  %v2155_v20 = vand.u32 7, %v2129_v7 }
 0x1d4   : > { %v1577_v22 = vadd.f32 %v2963_v17, %v2935_v0  ;;  %v2966_v24 = vadd.f32 %v2965_v21, %v2964_v19 }
 0x1d5   : > { %vm2181_vm4 = vcmp.lt.s32.totalorder %v2155_v20, 4 }
 0x1d6   : > { %v1595_v25 = vadd.f32 %v1577_v22, %v1180_v56  ;;  %v1580_v26 = vadd.f32 %v2966_v24, %v2938_v23 }
 0x1d7   : > { %v2939_v28 = vpop.f32.mrb[20].mxu0 }
 0x1d8   : > { %v1596_v27 = vadd.f32 %v1580_v26, %v1181_v10  ;;  %v2967_v29 = vpop.f32.mrb[20].mxu1  ;;  %v2940_v30 = vpop.f32.mrb[21].mxu0 }
 0x1d9   : > { %v2968_v31 = vpop.f32.mrb[21].mxu1  ;;  %v2941_v32 = vadd.f32 %v2940_v30, %v2939_v28  ;;  %v2942_v35 = vpop.f32.mrb[22].mxu0 }
 0x1da   : > { %v2969_v34 = vadd.f32 %v2968_v31, %v2967_v29  ;;  %v2970_v36 = vpop.f32.mrb[22].mxu1  ;;  %v2943_v38 = vpop.f32.mrb[23].mxu0 }
 0x1db   : > { %v2971_v39 = vpop.f32.mrb[23].mxu1  ;;  %v2944_v41 = vadd.f32 %v2943_v38, %v2942_v35 }
 0x1dc   : > { %v1585_v40 = vadd.f32 %v2969_v34, %v2941_v32  ;;  %v2972_v42 = vadd.f32 %v2971_v39, %v2970_v36  ;;  %v2780_v32 = vsel %vm2181_vm4, 1.0, %v3583_v14 }
 0x1de   : > { %v1597_v43 = vadd.f32 %v1585_v40, %v1182_v8  ;;  %v1588_v44 = vadd.f32 %v2972_v42, %v2944_v41  ;;  %v2148_v8 = vand.u32 7, %v2128_v60 }
 0x1e0   : > { %v1598_v45 = vadd.f32 %v1588_v44, %v1183_v12  ;;  %vm2180_vm3 = vcmp.lt.s32.totalorder %v2148_v8, 4 }
 0x1ef   : > { %v2989_v48 = vpop.f32.mrb[24].mxu0 }
 0x1f0   : > { %v2990_v49 = vpop.f32.mrb[25].mxu0  ;;  %v3017_v33 = vpop.f32.mrb[24].mxu1 }
 0x1f1   : > { %v2991_v50 = vadd.f32 %v2990_v49, %v2989_v48  ;;  %v2992_v51 = vpop.f32.mrb[26].mxu0  ;;  %v3018_v37 = vpop.f32.mrb[25].mxu1 }
 0x1f2   : > { %v2993_v52 = vpop.f32.mrb[27].mxu0  ;;  %v3019_v56 = vadd.f32 %v3018_v37, %v3017_v33  ;;  %v3020_v57 = vpop.f32.mrb[26].mxu1 }
 0x1f3   : > { %v2994_v54 = vadd.f32 %v2993_v52, %v2992_v51  ;;  %v3021_v58 = vpop.f32.mrb[27].mxu1 }
 0x1f4   : > { %v2084_v61 = vadd.f32 %v3019_v56, %v2991_v50  ;;  %v3022_v63 = vadd.f32 %v3021_v58, %v3020_v57 }
 0x1f6   : > { %v2102_v5 = vadd.f32 %v2084_v61, %v1595_v25  ;;  %v2087_v62 = vadd.f32 %v3022_v63, %v2994_v54 }
 0x1f7   : > { %v2995_v10 = vpop.f32.mrb[28].mxu0 }
 0x1f8   : > { %v2996_v59 = vpop.f32.mrb[29].mxu0  ;;  %v2121_v9 = vadd.f32 %v2776_v3, %v2102_v5  ;;  %v2103_v12 = vadd.f32 %v2087_v62, %v1596_v27  ;;  %v3023_v13 = vpop.f32.mrb[28].mxu1  ;;  %v2779_v27 = vsel %vm2180_vm3, 1.0, %v3583_v14 }
 0x1f9   : > { %v2997_v1 = vadd.f32 %v2996_v59, %v2995_v10  ;;  %v2998_v2 = vpop.f32.mrb[30].mxu0  ;;  %v3024_v0 = vpop.f32.mrb[29].mxu1 }
 0x1fa   : > { %v2999_v6 = vpop.f32.mrb[31].mxu0  ;;  %v2122_v17 = vadd.f32 %v2776_v3, %v2103_v12  ;;  %v3025_v18 = vadd.f32 %v3024_v0, %v3023_v13  ;;  %v3026_v19 = vpop.f32.mrb[30].mxu1  ;;  %v2190_v22 = vmul.f32 %v2777_v15, %v2121_v9 }
 0x1fb   : > { %v3000_v11 = vadd.f32 %v2999_v6, %v2998_v2  ;;  %v3027_v21 = vpop.f32.mrb[31].mxu1 }
 0x1fc   : > { %v2191_v23 = vmul.f32 %v2778_v16, %v2122_v17  ;;  %v2092_v24 = vadd.f32 %v3025_v18, %v2997_v1  ;;  %v3028_v25 = vadd.f32 %v3027_v21, %v3026_v19 }
 0x1fe   : > { %v2194_v26 = vadd.f32 %v2191_v23, %v2190_v22  ;;  %v2104_v28 = vadd.f32 %v2092_v24, %v1597_v43  ;;  %v2095_v29 = vadd.f32 %v3028_v25, %v3000_v11 }
 0x200   : > { %v2123_v30 = vadd.f32 %v2776_v3, %v2104_v28  ;;  %v2105_v31 = vadd.f32 %v2095_v29, %v1598_v45 }
 0x202   : > { %v2192_v34 = vmul.f32 %v2779_v27, %v2123_v30  ;;  %v2124_v35 = vadd.f32 %v2776_v3, %v2105_v31 }
 0x204   : > { %v2195_v36 = vadd.f32 %v2194_v26, %v2192_v34  ;;  %v2193_v38 = vmul.f32 %v2780_v32, %v2124_v35 }
 0x206   : > { %v2196_v39 = vadd.f32 %v2195_v36, %v2193_v38 }
 0x208   : > { %v2197_v40 = vrot.slane %v2196_v39, 4 }
 0x20a   : > { %v2198_v41 = vadd.f32 %v2197_v40, %v2196_v39 }
 0x20c   : > { %v2199_v42 = vrot.slane %v2198_v41, 2 }
 0x20e   : > { %v2200_v44 = vadd.f32 %v2199_v42, %v2198_v41 }
 0x210   : > { %v2201_v46 = vrot.slane %v2200_v44, 1 }
 0x212   : > { %v2202_v47 = vadd.f32 %v2201_v46, %v2200_v44 }
 0x214   : > { %v2203_v48 = vmul.f32 0.0625, %v2202_v47 }
 0x216   : > { %v2204_v49 = vsub.f32 %v2121_v9, %v2203_v48  ;;  %v2205_v43 = vsub.f32 %v2122_v17, %v2203_v48  ;;  %v2206_v50 = vsub.f32 %v2123_v30, %v2203_v48  ;;  %v2207_v51 = vsub.f32 %v2124_v35, %v2203_v48 }
 0x218   : > { %v2208_v52 = vmul.f32 %v2204_v49, %v2204_v49  ;;  %v2209_v53 = vmul.f32 %v2205_v43, %v2205_v43  ;;  %v2210_v45 = vmul.f32 %v2206_v50, %v2206_v50  ;;  %v2211_v54 = vmul.f32 %v2207_v51, %v2207_v51 }
 0x21a   : > { %v2212_v33 = vmul.f32 %v2777_v15, %v2208_v52  ;;  %v2213_v37 = vmul.f32 %v2778_v16, %v2209_v53  ;;  %v2214_v4 = vmul.f32 %v2779_v27, %v2210_v45  ;;  %v2215_v56 = vmul.f32 %v2780_v32, %v2211_v54 }
 0x21c   : > { %v2216_v55 = vadd.f32 %v2213_v37, %v2212_v33 }
 0x21e   : > { %v2217_v57 = vadd.f32 %v2216_v55, %v2214_v4 }
 0x220   : > { %v2218_v10 = vadd.f32 %v2217_v57, %v2215_v56 }
 0x222   : > { %v2219_v58 = vrot.slane %v2218_v10, 4 }
 0x224   : > { %v2220_v59 = vadd.f32 %v2219_v58, %v2218_v10 }
 0x226   : > { %v2221_v60 = vrot.slane %v2220_v59, 2 }
 0x228   : > { %v2222_v61 = vadd.f32 %v2221_v60, %v2220_v59 }
 0x22a   : > { %v2223_v63 = vrot.slane %v2222_v61, 1 }
 0x22c   : > { %v2224_v1 = vadd.f32 %v2223_v63, %v2222_v61 }
 0x22e   : > { %v2225_v2 = vmul.f32 0.0625, %v2224_v1 }
 0x230   : > { %v2226_v3 = vadd.f32 1e-05, %v2225_v2 }
 0x232   : > { %3331 = vrsqrt.f32 %v2226_v3 }
 0x23c   : > { %v3332_v6 = vpop.eup %3331 }
 0x23d   : > { %v2228_v5 = vmul.f32 %v3332_v6, %v2204_v49  ;;  %v2229_v62 = vmul.f32 %v3332_v6, %v2205_v43  ;;  %v2230_v11 = vmul.f32 %v3332_v6, %v2206_v50  ;;  %v2231_v7 = vmul.f32 %v3332_v6, %v2207_v51 }
 0x23f   : > { %vm2234_vm5 = vcmp.gt.f32.partialorder %v2230_v11, 0.0  ;;  %vm2235_vm6 = vcmp.gt.f32.partialorder %v2231_v7, 0.0  ;;  %v2236_v8 = vmul.f32 0.2, %v2228_v5  ;;  %v2237_v9 = vmul.f32 0.2, %v2229_v62 }
 0x240   : > { %v2238_v12 = vmul.f32 0.2, %v2230_v11  ;;  %v2239_v13 = vmul.f32 0.2, %v2231_v7  ;;  %vm2232_vm7 = vcmp.gt.f32.partialorder %v2228_v5, 0.0  ;;  %vm2233_vm8 = vcmp.gt.f32.partialorder %v2229_v62, 0.0 }
 0x241   : > { %v2240_v14 = vsel %vm2232_vm7, %v2228_v5, %v2236_v8  ;;  %v2241_v15 = vsel %vm2233_vm8, %v2229_v62, %v2237_v9 }
 0x242   : > { %v2242_v16 = vsel %vm2234_vm5, %v2230_v11, %v2238_v12  ;;  %v2243_v0 = vsel %vm2235_vm6, %v2231_v7, %v2239_v13  ;;  %v2797_v17 = vpack.c.bf16 %v2241_v15, %v2240_v14 }
 0x243   : > { %v2802_v18 = vpack.c.bf16 %v2243_v0, %v2242_v16 }
 0x244   : > { %2798 = vst [vmem:[%s272_s18] sm:$0xff] %v2797_v17  }
 0x245   : > { %2804 = vst [vmem:[%s272_s18 + $0x8] sm:$0xff] %v2802_v18  }
 0x246   : > { %3436 = shalt.err (!%p3433_p1)
}
 0x247   : > { %s3437_s4 = scalar_lea.hbm %s4185_s11, 256  ;;  %s3441_s10 = scalar_lea.hbm %s4322_s3, 1024 }
 0x248   : > { %p3438_p0 = scmp.ne.s32.totalorder %s4185_s11, %s3437_s4  ;;  %p3442_p8 = scmp.lt.u32.totalorder %s4185_s11, %s4322_s3 }
 0x249   : > { %p3443_p5 = scmp.lt.u32.totalorder %s3441_s10, %s3437_s4  ;;  %p3445_p13 = scmp.lt.u32.totalorder %s3437_s4, %s4185_s11 }
 0x24a   : > { %p3439_p3 = pnand %p3438_p0, %p4323_p12 }
 0x24b   : > { %p3444_p6 = por %p3443_p5, %p3442_p8 }
 0x24c   : > { %p3440_p7 = pneg %p3439_p3 }
 0x24d   : > { %p3446_p11 = por %p3445_p13, %p3444_p6 }
 0x24f   : > { %p3447_p10 = pnand %p3446_p11, %p3440_p7 }
 0x251   : > { %3450 = shalt.err (!%p3447_p10)
}
 0x252   : > { %s3585_s1 = smov 64   ;;  %s3586_s21 = smov 128  }
 0x253   : > { %s3587_s18 = smov 4  }
 0x254   : > { %3038 = dma.vmem_to_hbm [thread:$0]  (%p4323_p12), %s4187_s0, 256, %s4185_s11, %s4191_s30, %s3585_s1, %s3586_s21, %s3587_s18  }
 0x255 PF: > { %p3055_p2 = scmp.ge.s32.totalorder %s3573_s25, 2  ;;  %s2294_s22 = sand.u32 1, %s3521_s12  }
 0x256   : > { %p4324_p9 = scmp.ne.s32.totalorder %s4309_s5, 0  ;;  %s2295_s6 = scalar_lea.sflag [#allocation5], %s2294_s22 }
 0x258   : > { %p3051_p4 = pnand %p3055_p2, %p4324_p9 }
 0x25a   : > { %3516 = dma.done.wait (!%p3051_p4), %s2295_s6, 256  }
 0x25b   : > { %3518 = vsyncadd (!%p3051_p4), %s2295_s6, 4294967040  ;;  %s22_s25 = sadd.s32 1, %s3573_s25   ;;  %s4326_s0 = sld [smem:[#allocation20_spill]] }
 0x25c   : > { %p4220_p1 = scmp.ge.s32.totalorder %s22_s25, 6   ;;  %s4327_s11 = sld [smem:[#allocation13_spill]] }
 0x25d   : > { %s4328_s20 = sld [smem:[#allocation21_spill]]  ;;  %s4329_s22 = sld [smem:[#allocation16_spill]] }
 0x25e   : > { %s4330_s5 = sld [smem:[#allocation17_spill]]  ;;  %s4331_s24 = sld [smem:[#allocation18_spill]] }
 0x25f   : > { %s4332_s12 = smov %s3525_s13  ;;  %s4333_s13 = smov %s3529_s14 }
 0x260   : > { %s4334_s14 = smov %s3804_s28  ;;  %s4335_s15 = smov %s3537_s16 }
 0x261   : > { %s4336_s16 = smov %s3541_s17  ;;  %s4337_s17 = smov %s4326_s0 }
 0x262   : > { %s4338_s18 = smov %s3549_s19  ;;  %s4339_s19 = smov %s4327_s11 }
 0x263   : > { %s4340_s21 = smov %s3565_s23  ;;  %21 = sbr.rel (!%p4220_p1) target bundleno = 16 (0x10), region = 104 }
 0x264   : > { %s4341_s23 = smov %s4330_s5 }
 0x26a   :  { %2300 = vsyncpa [#allocation4], 1 }
 0x26b   :  { %2302 = vsyncpa [#allocation4 + $0x1], 1 }
 0x26c   :  { %2303 = vsyncpa [#allocation7], 1 }
 0x26d   :  { %2305 = vsyncpa [#allocation7 + $0x1], 1 }
 0x26e   :  { %2306 = vsyncpa [#allocation5], 1 }
 0x26f   :  { %2308 = vsyncpa [#allocation5 + $0x1], 1 }

// kernel: discriminator_forward.8
= control target key start
LH: loop header
LB: loop body
LE: loop exit
PB: predicated region body
PF: predicated region fallthrough
CT: control target
= control target key end

     0   :  { %s6201_s0 = inlined_call_operand.hbm [shape: bf16[2,32,1024], index: 0, kind: input, shape index: {}]   ;;  %s6202_s1 = inlined_call_operand.hbm [shape: bf16[4,1024,512], index: 1, kind: input, shape index: {}]   ;;  %s6203_s2 = inlined_call_operand.hbm [shape: f32[1,512], index: 2, kind: input, shape index: {}]   ;;  %s6204_s3 = inlined_call_operand.hbm [shape: bf16[2,16,512], index: 3, kind: output, shape index: {}]  }
   0x1   :  { %6217 = sst [smem:[#allocation22_spill]] %s6201_s0 }
   0x2   :  { %6218 = sst [smem:[#allocation23_spill]] %s6202_s1 }
   0x3   :  { %6219 = sst [smem:[#allocation24_spill]] %s6204_s3 }
   0x4   :  { %8 = vsyncpa [#allocation4], 0 }
   0x5   :  { %10 = vsyncpa [#allocation4 + $0x1], 0 }
   0x6   :  { %11 = vsyncpa [#allocation7], 0 }
   0x7   :  { %13 = vsyncpa [#allocation7 + $0x1], 0 }
   0x8   :  { %14 = vsyncpa [#allocation5], 0 }
   0x9   :  { %16 = vsyncpa [#allocation5 + $0x1], 0  ;;  %s5429_s12 = smov 0   ;;  %s5431_s13 = smov 0  }
   0xa   :  { %s5433_s14 = smov 0   ;;  %s5435_s15 = smov 0  }
   0xb   :  { %s5437_s16 = smov 0   ;;  %s5439_s17 = smov 0  }
   0xc   :  { %s5441_s18 = smov 0   ;;  %s5443_s19 = smov 0  }
   0xd   :  { %s5445_s20 = smov 0   ;;  %s5447_s21 = smov 0  }
   0xe   :  { %s5449_s22 = smov 0   ;;  %s5451_s23 = smov 0  }
   0xf   :  { %s5453_s24 = smov 0   ;;  %s5455_s25 = smov 0  }
  0x10 LB: > { %6220 = sst [smem:[#allocation13_spill]] %s5374_s20  ;;  %s31_s26 = sadd.s32 1, %s5386_s23  ;;  %s5394_s25 = sphi %s5455_s25, %s22_s25   ;;  %s5390_s24 = sphi %s5453_s24, %s6263_s24   ;;  %s5386_s23 = sphi %s5451_s23, %s6275_s23   ;;  %s5382_s22 = sphi %s5449_s22, %s6261_s22   ;;  %s5378_s21 = sphi %s5447_s21, %s6274_s21   ;;  %s5374_s20 = sphi %s5445_s20, %s6273_s20   ;;  %s5370_s19 = sphi %s5443_s19, %s6272_s19   ;;  %s5366_s18 = sphi %s5441_s18, %s6271_s18   ;;  %s5362_s17 = sphi %s5439_s17, %s6270_s17   ;;  %s5358_s16 = sphi %s5437_s16, %s6269_s16   ;;  %s5354_s15 = sphi %s5435_s15, %s6268_s15   ;;  %s5350_s14 = sphi %s5433_s14, %s6267_s14   ;;  %s5346_s13 = sphi %s5431_s13, %s6266_s13   ;;  %s5342_s12 = sphi %s5429_s12, %s6265_s12  }
  0x11   : > { %6221 = sst [smem:[#allocation14_spill]] %s5378_s21  ;;  %p6207_p0 = scmp.eq.s32.totalorder %s5394_s25, 0 }
  0x12   : > { %6222 = sst [smem:[#allocation15_spill]] %s5382_s22  ;;  %p5503_p1 = scmp.ge.s32.totalorder %s31_s26, 4 }
  0x13   : > { %6223 = sst [smem:[#allocation16_spill]] %s5390_s24  ;;  %p74_p2 = scmp.ne.s32.totalorder %s5362_s17, %s5358_s16 }
  0x14   : > { %p6206_p4 = scmp.lt.s32.totalorder %s5394_s25, 8  ;;  %s179_s29 = sand.u32 1, %s5394_s25  }
  0x15   : > { %p76_p5 = por %p74_p2, %p6207_p0  ;;  %s6205_s30 = sand.u32 1, %s5362_s17  }
  0x16   : > { %s3670_s4 = sshll.u32 %s6205_s30, 11  ;;  %s3671_s5 = sshll.u32 %s5386_s23, 6 }
  0x17   : > { %s6225_s1 = sld [smem:[#allocation23_spill]]  ;;  %s183_s9 = scalar_lea.vmem [#allocation6], %s3670_s4 }
  0x18   : > { %s189_s10 = sshll.u32 %s183_s9, 4  ;;  %p5527_p6 = pnand %p6206_p4, %p76_p5  ;;  %s5531_s10 = int_to_ptr.vmem [resolvable:$true] %s189_s10 }
  0x19   : > { %s5534_s30 = scalar_lea.sflag [#allocation7], %s179_s29 }
  0x1a   : > { %p6213_p9 = pneg %p5527_p6 }
  0x1d   : > { %s5523_s8 = scalar_lea.hbm %s6225_s1, %s3671_s5  ;;  %s5159_s7 = scalar_lea.hbm %s6225_s1, 131072 }
  0x1e   : > { %s5154_s5 = scalar_lea.hbm %s5523_s8, 32768  ;;  %p5160_p12 = scmp.lt.u32.totalorder %s5523_s8, %s6225_s1 }
  0x1f   : > { %p5155_p8 = scmp.ne.s32.totalorder %s5523_s8, %s5154_s5  ;;  %p5161_p13 = scmp.lt.u32.totalorder %s5159_s7, %s5154_s5 }
  0x20   : > { %p5163_p5 = scmp.lt.u32.totalorder %s5154_s5, %s5523_s8 }
  0x21   : > { %p5157_p10 = pnand %p6213_p9, %p5155_p8  ;;  %p5162_p2 = por %p5161_p13, %p5160_p12 }
  0x23   : > { %p5158_p11 = pneg %p5157_p10  ;;  %p5164_p4 = por %p5163_p5, %p5162_p2 }
  0x25   : > { %p5165_p3 = pnand %p5164_p4, %p5158_p11 }
  0x27   : > { %5168 = shalt.err (!%p5165_p3)
}
  0x28   : > { %s5169_s29 = scalar_lea.vmem %s5531_s10, 32768  ;;  %s5396_s4 = smov [#allocation6]  }
  0x29   : > { %p5170_p8 = scmp.ne.s32.totalorder %s5531_s10, %s5169_s29  ;;  %s5174_s6 = sshll.u32 %s5396_s4, 4  ;;  %s5175_s6 = int_to_ptr.vmem [resolvable:$false] %s5174_s6 }
  0x2a   : > { %s5176_s28 = scalar_lea.vmem %s5175_s6, 65536  ;;  %p5177_p7 = scmp.lt.s32.totalorder %s5531_s10, %s5175_s6 }
  0x2b   : > { %p5172_p10 = pnand %p5170_p8, %p6213_p9  ;;  %p5178_p12 = scmp.lt.s32.totalorder %s5176_s28, %s5169_s29 }
  0x2d   : > { %p5173_p0 = pneg %p5172_p10  ;;  %p5179_p13 = por %p5178_p12, %p5177_p7 }
  0x2f   : > { %p5180_p2 = pnand %p5179_p13, %p5173_p0 }
  0x31   : > { %5183 = shalt.err (!%p5180_p2)
}
  0x32   : > { %s5397_s5 = smov 256   ;;  %s5398_s7 = smov 64  }
  0x33   : > { %s5399_s9 = smov 4   ;;  %p214_p0 = scmp.lt.s32.totalorder %s5394_s25, 9 }
  0x34   : > { %4749 = dma.hbm_to_vmem [thread:$0]  (!%p5527_p6), %s5523_s8, 32768, %s5531_s10, %s5534_s30, %s5397_s5, %s5398_s7, %s5399_s9  }
  0x35   : > { %p6227_p3 = scmp.ge.s32.totalorder %s5394_s25, 1  ;;  %s5570_s4 = sadd.s32 4294967295, %s5394_s25  }
  0x36   : > { %s3664_s6 = sadd.s32 4294967294, %s5394_s25   ;;  %s6277_s26 = smov (%p5503_p1, %s31_s26), 0 }
  0x37   : > { %p5565_p4 = pnand %p6227_p3, %p214_p0  ;;  %6229 = sst [smem:[#allocation17_spill]] %s6277_s26 }
  0x38   : > { %s34_s28 = sadd.s32 1, %s5390_s24  ;;  %s41_s8 = sadd.s32 1, %s5374_s20 }
  0x39   : > { %s6228_s29 = scalar_select %p5565_p4, 1, 0 }
  0x3a   : > { %s6279_s28 = smov (!%p5503_p1, %s34_s28), %s5390_s24  ;;  %p48_p7 = scmp.ne.s32.totalorder %s5374_s20, %s5370_s19 }
  0x3b   : > { %p54_p11 = scmp.ne.s32.totalorder %s5370_s19, %s5366_s18  ;;  %p36_p5 = scmp.ge.s32.totalorder %s6279_s28, 2 }
  0x3c   : > { %p55_p8 = scmp.eq.s32.totalorder %s5570_s4, 0  ;;  %p6230_p10 = scmp.eq.s32.totalorder %s5394_s25, 0 }
  0x3d   : > { %s64_s5 = ssub.s32 %s5386_s23, %s6277_s26  ;;  %s6281_s28 = smov (%p36_p5, %s6279_s28), 0 }
  0x3e   : > { %p5591_p12 = por %p6230_p10, %p48_p7  ;;  %6232 = sst [smem:[#allocation18_spill]] %s6281_s28 }
  0x3f   : > { %p5599_p1 = por %p55_p8, %p54_p11  ;;  %p65_p13 = scmp.eq.s32.totalorder %s64_s5, 0 }
  0x40   : > { %s38_s18 = ssub.s32 %s5390_s24, %s6281_s28  ;;  %p6234_p2 = scmp.ne.s32.totalorder %s5358_s16, %s5354_s15 }
  0x41   : > { %s6233_s27 = scalar_select %p5599_p1, 1, 0 }
  0x42   : > { %p5608_p0 = por %p6234_p2, %p55_p8  ;;  %p39_p3 = scmp.eq.s32.totalorder %s38_s18, 0 }
  0x43   : > { %s118_s9 = sor.u32 %s64_s5, %s38_s18  ;;  %s6236_s1 = sadd.s32 1, %s5362_s17 }
  0x44   : > { %s6235_s7 = scalar_select %p5608_p0, 1, 0 }
  0x45   : > { %s5615_s26 = scalar_select %p65_p13, %s5362_s17, %s6236_s1  }
  0x46   : > { %s5618_s3 = scalar_select %p39_p3, %s5374_s20, %s41_s8  }
  0x47   : > { %6237 = sst [smem:[#allocation19_spill]] %s5615_s26  ;;  %p119_p7 = scmp.eq.s32.totalorder %s118_s9, 0 }
  0x48   : > { %6238 = sst [smem:[#allocation20_spill]] %s5618_s3  ;;  %s121_s21 = sadd.s32 1, %s5350_s14 }
  0x49   : > { %p131_p11 = scmp.ne.s32.totalorder %s5350_s14, %s5346_s13  ;;  %p132_p5 = scmp.eq.s32.totalorder %s5570_s4, 7 }
  0x4a   : > { %s5625_s15 = scalar_select %p119_p7, %s5350_s14, %s121_s21  }
  0x4b   : > { %p5627_p8 = por %p132_p5, %p131_p11  ;;  %p137_p10 = scmp.ne.s32.totalorder %s5346_s13, %s5342_s12 }
  0x4c   : > { %6239 = sst [smem:[#allocation21_spill]] %s5625_s15  ;;  %p138_p2 = scmp.eq.s32.totalorder %s3664_s6, 7 }
  0x4d   : > { %s6240_s28 = scalar_select %p5627_p8, 1, 0 }
  0x4e   : > { %s158_s5 = sand.u32 1, %s5374_s20   ;;  %p5634_p13 = por %p138_p2, %p137_p10 }
  0x4f   : > { %s3667_s1 = sshll.u32 %s158_s5, 7  ;;  %s4375_s18 = sshll.u32 %s5390_s24, 11 }
  0x50   : > { %s6241_s8 = scalar_select %p5634_p13, 1, 0 }
  0x51   : > { %s162_s9 = scalar_lea.vmem [#allocation3], %s3667_s1  ;;  %s6242_s0 = sld [smem:[#allocation22_spill]] }
  0x52   : > { %s169_s3 = sshll.u32 %s162_s9, 4  ;;  %p6243_p3 = scmp.lt.s32.totalorder %s5394_s25, 8  ;;  %s5644_s3 = int_to_ptr.vmem [resolvable:$true] %s169_s3 }
  0x53   : > { %s3672_s1 = sshll.u32 %s5386_s23, 4  ;;  %s5655_s9 = scalar_lea.sflag [#allocation4], %s158_s5 }
  0x54   : > { %p5650_p7 = pnand %p6243_p3, %p5591_p12 }
  0x56   : > { %p5186_p5 = pneg %p5650_p7 }
  0x57   : > { %s5642_s21 = scalar_lea.hbm %s6242_s0, %s4375_s18  ;;  %s5189_s18 = scalar_lea.hbm %s6242_s0, 4096 }
  0x58   : > { %s5184_s22 = scalar_lea.hbm %s5642_s21, 2048  ;;  %p5190_p12 = scmp.lt.u32.totalorder %s5642_s21, %s6242_s0 }
  0x59   : > { %p5185_p11 = scmp.ne.s32.totalorder %s5642_s21, %s5184_s22  ;;  %p5191_p3 = scmp.lt.u32.totalorder %s5189_s18, %s5184_s22 }
  0x5a   : > { %p5193_p13 = scmp.lt.u32.totalorder %s5184_s22, %s5642_s21 }
  0x5b   : > { %p5187_p10 = pnand %p5186_p5, %p5185_p11  ;;  %p5192_p9 = por %p5191_p3, %p5190_p12 }
  0x5d   : > { %p5188_p2 = pneg %p5187_p10  ;;  %p5194_p8 = por %p5193_p13, %p5192_p9 }
  0x5f   : > { %p5195_p0 = pnand %p5194_p8, %p5188_p2 }
  0x61   : > { %5198 = shalt.err (!%p5195_p0)
}
  0x62   : > { %s5199_s5 = scalar_lea.vmem %s5644_s3, 2048  ;;  %s5400_s26 = smov [#allocation3]  }
  0x63   : > { %p5200_p11 = scmp.ne.s32.totalorder %s5644_s3, %s5199_s5  ;;  %s5204_s10 = sshll.u32 %s5400_s26, 4  ;;  %s5205_s10 = int_to_ptr.vmem [resolvable:$false] %s5204_s10 }
  0x64   : > { %s5206_s20 = scalar_lea.vmem %s5205_s10, 4096  ;;  %p5207_p4 = scmp.lt.s32.totalorder %s5644_s3, %s5205_s10 }
  0x65   : > { %p5202_p10 = pnand %p5200_p11, %p5186_p5  ;;  %p5208_p12 = scmp.lt.s32.totalorder %s5206_s20, %s5199_s5 }
  0x67   : > { %p5203_p1 = pneg %p5202_p10  ;;  %p5209_p3 = por %p5208_p12, %p5207_p4 }
  0x69   : > { %p5210_p9 = pnand %p5209_p3, %p5203_p1 }
  0x6b   : > { %5213 = shalt.err (!%p5210_p9)
}
  0x6c   : > { %s5401_s24 = smov 512   ;;  %s5402_s22 = smov 32  }
  0x6d   : > { %4746 = dma.hbm_to_vmem [thread:$0]  (!%p5650_p7), %s5642_s21, 2048, %s5644_s3, %s5655_s9, %s5401_s24, %s5401_s24, %s5402_s22  }
  0x6e   : > { %s5688_s10 = scalar_lea.hbm %s6203_s2, %s3672_s1  ;;  %s6245_s5 = sand.u32 1, %s5362_s17  }
  0x6f   : > { %s202_s20 = scalar_lea.vmem [#allocation8], %s6245_s5  ;;  %s5214_s15 = scalar_lea.hbm %s5688_s10, 16 }
  0x70   : > { %s209_s0 = sshll.u32 %s202_s20, 4  ;;  %p5215_p4 = scmp.ne.s32.totalorder %s5688_s10, %s5214_s15  ;;  %s210_s0 = int_to_ptr.vmem [resolvable:$true] %s209_s0 }
  0x71   : > { %p6246_p1 = pneg %p5527_p6  ;;  %s5219_s6 = scalar_lea.hbm %s6203_s2, 64 }
  0x72   : > { %p5220_p13 = scmp.lt.u32.totalorder %s5688_s10, %s6203_s2  ;;  %p5221_p7 = scmp.lt.u32.totalorder %s5219_s6, %s5214_s15 }
  0x73   : > { %p5217_p0 = pnand %p5215_p4, %p6246_p1  ;;  %p5223_p2 = scmp.lt.u32.totalorder %s5214_s15, %s5688_s10 }
  0x74   : > { %p5222_p5 = por %p5221_p7, %p5220_p13 }
  0x75   : > { %p5218_p8 = pneg %p5217_p0 }
  0x76   : > { %p5224_p11 = por %p5223_p2, %p5222_p5 }
  0x78   : > { %p5225_p10 = pnand %p5224_p11, %p5218_p8 }
  0x7a   : > { %5228 = shalt.err (!%p5225_p10)
}
  0x7b   : > { %s5229_s24 = scalar_lea.vmem %s210_s0, 16  ;;  %p6247_p3 = pmov %p6246_p1 }
  0x7c   : > { %p5230_p12 = scmp.ne.s32.totalorder %s210_s0, %s5229_s24  ;;  %s5403_s22 = smov [#allocation8]  }
  0x7d   : > { %s5234_s18 = sshll.u32 %s5403_s22, 4  ;;  %s5235_s18 = int_to_ptr.vmem [resolvable:$false] %s5234_s18 }
  0x7e   : > { %p5232_p9 = pnand %p5230_p12, %p6247_p3  ;;  %s5236_s26 = scalar_lea.vmem %s5235_s18, 32 }
  0x7f   : > { %p5237_p1 = scmp.lt.s32.totalorder %s210_s0, %s5235_s18  ;;  %p5238_p0 = scmp.lt.s32.totalorder %s5236_s26, %s5229_s24 }
  0x80   : > { %p5233_p4 = pneg %p5232_p9 }
  0x81   : > { %p5239_p7 = por %p5238_p0, %p5237_p1 }
  0x83   : > { %p5240_p13 = pnand %p5239_p7, %p5233_p4 }
  0x85   : > { %5243 = shalt.err (!%p5240_p13)
}
  0x86   : > { %4752 = dma.hbm_to_vmem [thread:$0]  (!%p5527_p6), %s5688_s10, 16, %s210_s0, %s5534_s30  }
  0x87   : > { %p6248_p8 = scmp.ne.s32.totalorder %s6228_s29, 0 }
  0x88   : > { %s220_s15 = sand.u32 (!%p6248_p8), 1, %s5370_s19   ;;  %p6249_p5 = scmp.ne.s32.totalorder (!%p6248_p8), %s6233_s27, 0 }
  0x89   : > { %218 = sbr.rel (%p6248_p8) target bundleno = 709 (0x2c5), region = 32  ;;  %s3674_s5 = sshll.u32 (!%p6248_p8), %s220_s15, 7 }
  0x8a   : > { %s221_s20 = scalar_lea.sflag (!%p6248_p8), [#allocation4], %s220_s15  ;;  %s5715_s3 = scalar_lea.vmem (!%p6248_p8), [#allocation3], %s3674_s5 }
  0x90   : > { %5329 = dma.done.wait (%p6249_p5), %s221_s20, 2048  }
  0x91   : > { %5331 = vsyncadd (%p6249_p5), %s221_s20, 4294965248  ;;  %s229_s0 = sand.u32 1, %s5570_s4   ;;  %s231_s30 = sand.u32 1, %s5358_s16  }
  0x92   : > { %s3675_s11 = sshll.u32 %s231_s30, 11  ;;  %s230_s29 = scalar_lea.sflag [#allocation7], %s229_s0 }
  0x93   : > { %s5725_s10 = scalar_lea.vmem [#allocation6], %s3675_s11  ;;  %p6250_p6 = scmp.ne.s32.totalorder %s6235_s7, 0 }
  0x95   : > { %5333 = dma.done.wait (%p6250_p6), %s230_s29, 32784  }
  0x96   : > { %5335 = vsyncadd (%p6250_p6), %s230_s29, 4294934512  ;;  %v4880_v0 = vld [vmem:[%s5725_s10 + $0x40] sm:$0xff]   ;;  %v4884_v4 = vld [vmem:[%s5725_s10 + $0x48] sm:$0xff]   ;;  %vm1193_vm0 = vsmask.f32 7424  ;;  %s241_s4 = scalar_lea.vmem [#allocation8], %s231_s30 }
  0x97   : > { %v4881_v1 = vld [vmem:[%s5725_s10 + $0xc0] sm:$0xff]   ;;  %4383 = vmatprep.subr.bf16.mxu0 %v4880_v0  ;;  %v4885_v5 = vld [vmem:[%s5725_s10 + $0xc8] sm:$0xff]   ;;  %v4888_v8 = vld [vmem:[%s5725_s10 + $0x50] sm:$0xff]   ;;  %s6251_s27 = sld [smem:[#allocation15_spill]]  ;;  %s6252_s7 = sld [smem:[#allocation14_spill]] }
  0x98   : > { %v4882_v2 = vld [vmem:[%s5725_s10] sm:$0xff]   ;;  %4405 = vmatprep.subr.bf16.mxu1 %v4881_v1  ;;  %v4886_v6 = vld [vmem:[%s5725_s10 + $0x8] sm:$0xff]   ;;  %v4889_v9 = vld [vmem:[%s5725_s10 + $0xd0] sm:$0xff]   ;;  %s270_s21 = sand.u32 1, %s5346_s13   ;;  %s6253_s5 = sld [smem:[#allocation24_spill]] }
  0x99   : > { %v4883_v3 = vld [vmem:[%s5725_s10 + $0x80] sm:$0xff]   ;;  %4384 = vmatpush3.bf16.msra.mxu0 %v4882_v2  ;;  %v4887_v7 = vld [vmem:[%s5725_s10 + $0x88] sm:$0xff]   ;;  %v4890_v10 = vld [vmem:[%s5725_s10 + $0x10] sm:$0xff]   ;;  %s3676_s1 = sshll.u32 %s270_s21, 3  ;;  %p6254_p11 = scmp.ne.s32.totalorder %s6240_s28, 0 }
  0x9a   : > { %4406 = vmatpush3.bf16.msra.mxu1 %v4883_v3  ;;  %4385 = vmatprep.subr.bf16.mxu0 %v4884_v4  ;;  %v4891_v11 = vld [vmem:[%s5725_s10 + $0x90] sm:$0xff]   ;;  %v4892_v12 = vld [vmem:[%s5725_s10 + $0x58] sm:$0xff]   ;;  %v4896_v16 = vld [vmem:[%s5725_s10 + $0x60] sm:$0xff]   ;;  %s272_s22 = scalar_lea.vmem [#allocation9], %s3676_s1  ;;  %s5405_s30 = smov [#allocation9]  }
  0x9b   : > { %4407 = vmatprep.subr.bf16.mxu1 %v4885_v5  ;;  %v4893_v13 = vld [vmem:[%s5725_s10 + $0xd8] sm:$0xff]   ;;  %v4897_v17 = vld [vmem:[%s5725_s10 + $0xe0] sm:$0xff]   ;;  %v4900_v20 = vld [vmem:[%s5725_s10 + $0x68] sm:$0xff]   ;;  %s3537_s18 = sshll.u32 %s272_s22, 4  ;;  %s5248_s11 = sshll.u32 %s5405_s30, 4  ;;  %s6123_s18 = int_to_ptr.vmem [resolvable:$true] %s3537_s18  ;;  %s5249_s11 = int_to_ptr.vmem [resolvable:$false] %s5248_s11 }
  0x9c   : > { %v4894_v14 = vld [vmem:[%s5725_s10 + $0x18] sm:$0xff]   ;;  %v4898_v18 = vld [vmem:[%s5725_s10 + $0x20] sm:$0xff]   ;;  %v4901_v21 = vld [vmem:[%s5725_s10 + $0xe8] sm:$0xff]   ;;  %s5244_s0 = scalar_lea.vmem %s6123_s18, 128  ;;  %s5250_s29 = scalar_lea.vmem %s5249_s11, 256 }
  0x9d   : > { %4386 = vmatpush3.bf16.msra.mxu0 %v4886_v6  ;;  %v4895_v15 = vld [vmem:[%s5725_s10 + $0x98] sm:$0xff]   ;;  %v4899_v19 = vld [vmem:[%s5725_s10 + $0xa0] sm:$0xff]   ;;  %v4902_v22 = vld [vmem:[%s5725_s10 + $0x28] sm:$0xff]   ;;  %s4371_s6 = sshll.u32 %s6251_s27, 3  ;;  %p5245_p2 = scmp.ne.s32.totalorder %s6123_s18, %s5244_s0 }
  0x9e   : > { %4408 = vmatpush3.bf16.msra.mxu1 %v4887_v7  ;;  %4387 = vmatprep.subr.bf16.mxu0 %v4888_v8  ;;  %v4903_v23 = vld [vmem:[%s5725_s10 + $0xa8] sm:$0xff]   ;;  %v4904_v24 = vld [vmem:[%s5725_s10 + $0x70] sm:$0xff]   ;;  %v4908_v28 = vld [vmem:[%s5725_s10 + $0x78] sm:$0xff]   ;;  %s3534_s9 = sadd.s32 %s6252_s7, %s4371_s6  ;;  %p5251_p3 = scmp.lt.s32.totalorder %s6123_s18, %s5249_s11 }
  0x9f   : > { %4409 = vmatprep.subr.bf16.mxu1 %v4889_v9  ;;  %v4905_v25 = vld [vmem:[%s5725_s10 + $0xf0] sm:$0xff]   ;;  %v4909_v29 = vld [vmem:[%s5725_s10 + $0xf8] sm:$0xff]   ;;  %v274_v32 = vld [vmem:[%s5715_s3] sm:$0xff]  ;;  %s4372_s24 = sshll.u32 %s3534_s9, 6  ;;  %p5246_p10 = pnand %p5245_p2, %p6254_p11 }
  0xa0   : > { %v4906_v26 = vld [vmem:[%s5725_s10 + $0x30] sm:$0xff]   ;;  %v4910_v30 = vld [vmem:[%s5725_s10 + $0x38] sm:$0xff]   ;;  %v278_v33 = vld [vmem:[%s5715_s3 + $0x20] sm:$0xff]  ;;  %s6121_s20 = scalar_lea.hbm %s6253_s5, %s4372_s24  ;;  %p5252_p9 = scmp.lt.s32.totalorder %s5250_s29, %s5244_s0 }
  0xa1   : > { %4388 = vmatpush3.bf16.msra.mxu0 %v4890_v10  ;;  %v4907_v27 = vld [vmem:[%s5725_s10 + $0xb0] sm:$0xff]   ;;  %v4911_v31 = vld [vmem:[%s5725_s10 + $0xb8] sm:$0xff]   ;;  %v275_v34 = vld [vmem:[%s5715_s3 + $0x8] sm:$0xff]  ;;  %v5766_v35 = vcombine.low %v274_v32, %v278_v33  ;;  %v5768_v36 = vcombine.high %v274_v32, %v278_v33  ;;  %p5247_p12 = pneg %p5246_p10 }
  0xa2   : > { %4410 = vmatpush3.bf16.msra.mxu1 %v4891_v11  ;;  %4389 = vmatprep.subr.bf16.mxu0 %v4892_v12  ;;  %v279_v37 = vld [vmem:[%s5715_s3 + $0x28] sm:$0xff]  ;;  %v4912_v40 = vld [vmem:[%s5725_s10 + $0x140] sm:$0xff]   ;;  %v4920_v48 = vld [vmem:[%s5725_s10 + $0x150] sm:$0xff]   ;;  %p5253_p4 = por %p5252_p9, %p5251_p3 }
  0xa3   : > { %4411 = vmatprep.subr.bf16.mxu1 %v4893_v13  ;;  %v5771_v38 = vcombine.low %v275_v34, %v279_v37  ;;  %v5773_v39 = vcombine.high %v275_v34, %v279_v37  ;;  %866 = vmatprep.mubr.bf16.mxu0 %v5768_v36  ;;  %v4913_v41 = vld [vmem:[%s5725_s10 + $0x1c0] sm:$0xff]   ;;  %v4916_v44 = vld [vmem:[%s5725_s10 + $0x148] sm:$0xff]   ;;  %v4921_v49 = vld [vmem:[%s5725_s10 + $0x1d0] sm:$0xff]  }
  0xa4   : > { %v4914_v42 = vld [vmem:[%s5725_s10 + $0x100] sm:$0xff]   ;;  %v4917_v45 = vld [vmem:[%s5725_s10 + $0x1c8] sm:$0xff]   ;;  %v4922_v50 = vld [vmem:[%s5725_s10 + $0x110] sm:$0xff]   ;;  %p5254_p1 = pnand %p5253_p4, %p5247_p12 }
  0xa5   : > { %4390 = vmatpush3.bf16.msra.mxu0 %v4894_v14  ;;  %907 = vmatprep.mubr.bf16.mxu1 %v5773_v39  ;;  %v4915_v43 = vld [vmem:[%s5725_s10 + $0x180] sm:$0xff]   ;;  %v4918_v46 = vld [vmem:[%s5725_s10 + $0x108] sm:$0xff]   ;;  %v4923_v51 = vld [vmem:[%s5725_s10 + $0x190] sm:$0xff]  }
  0xa6   : > { %4412 = vmatpush3.bf16.msra.mxu1 %v4895_v15  ;;  %4391 = vmatprep.subr.bf16.mxu0 %v4896_v16  ;;  %v4919_v47 = vld [vmem:[%s5725_s10 + $0x188] sm:$0xff]   ;;  %v4924_v52 = vld [vmem:[%s5725_s10 + $0x158] sm:$0xff]   ;;  %v4928_v56 = vld [vmem:[%s5725_s10 + $0x160] sm:$0xff]  }
  0xa7   : > { %4413 = vmatprep.subr.bf16.mxu1 %v4897_v17  ;;  %v4925_v53 = vld [vmem:[%s5725_s10 + $0x1d8] sm:$0xff]   ;;  %v4929_v57 = vld [vmem:[%s5725_s10 + $0x1e0] sm:$0xff]   ;;  %v4932_v60 = vld [vmem:[%s5725_s10 + $0x168] sm:$0xff]  }
  0xa8   : > { %v4926_v54 = vld [vmem:[%s5725_s10 + $0x118] sm:$0xff]   ;;  %v4930_v58 = vld [vmem:[%s5725_s10 + $0x120] sm:$0xff]   ;;  %v4933_v61 = vld [vmem:[%s5725_s10 + $0x1e8] sm:$0xff]  }
  0xa9   : > { %4392 = vmatpush3.bf16.msra.mxu0 %v4898_v18  ;;  %v4927_v55 = vld [vmem:[%s5725_s10 + $0x198] sm:$0xff]   ;;  %v4931_v59 = vld [vmem:[%s5725_s10 + $0x1a0] sm:$0xff]   ;;  %v4934_v62 = vld [vmem:[%s5725_s10 + $0x128] sm:$0xff]  }
  0xaa   : > { %4414 = vmatpush3.bf16.msra.mxu1 %v4899_v19  ;;  %4393 = vmatprep.subr.bf16.mxu0 %v4900_v20  ;;  %v4935_v63 = vld [vmem:[%s5725_s10 + $0x1a8] sm:$0xff]   ;;  %v4936_v0 = vld [vmem:[%s5725_s10 + $0x170] sm:$0xff]   ;;  %v4940_v4 = vld [vmem:[%s5725_s10 + $0x178] sm:$0xff]  }
  0xab   : > { %4415 = vmatprep.subr.bf16.mxu1 %v4901_v21  ;;  %v4937_v1 = vld [vmem:[%s5725_s10 + $0x1f0] sm:$0xff]   ;;  %v4941_v5 = vld [vmem:[%s5725_s10 + $0x1f8] sm:$0xff]   ;;  %v4944_v16 = vld [vmem:[%s5725_s10 + $0x240] sm:$0xff]  }
  0xac   : > { %v4938_v2 = vld [vmem:[%s5725_s10 + $0x130] sm:$0xff]   ;;  %v4942_v6 = vld [vmem:[%s5725_s10 + $0x138] sm:$0xff]   ;;  %v4945_v17 = vld [vmem:[%s5725_s10 + $0x2c0] sm:$0xff]  }
  0xad   : > { %4394 = vmatpush3.bf16.msra.mxu0 %v4902_v22  ;;  %v4939_v3 = vld [vmem:[%s5725_s10 + $0x1b0] sm:$0xff]   ;;  %v4943_v7 = vld [vmem:[%s5725_s10 + $0x1b8] sm:$0xff]   ;;  %v4946_v18 = vld [vmem:[%s5725_s10 + $0x200] sm:$0xff]  }
  0xae   : > { %4416 = vmatpush3.bf16.msra.mxu1 %v4903_v23  ;;  %4395 = vmatprep.subr.bf16.mxu0 %v4904_v24  ;;  %v276_v8 = vld [vmem:[%s5715_s3 + $0x10] sm:$0xff]  ;;  %v277_v12 = vld [vmem:[%s5715_s3 + $0x18] sm:$0xff]  ;;  %v4947_v19 = vld [vmem:[%s5725_s10 + $0x280] sm:$0xff]  }
  0xaf   : > { %4417 = vmatprep.subr.bf16.mxu1 %v4905_v25  ;;  %v280_v9 = vld [vmem:[%s5715_s3 + $0x30] sm:$0xff]  ;;  %v281_v13 = vld [vmem:[%s5715_s3 + $0x38] sm:$0xff]  ;;  %v4948_v20 = vld [vmem:[%s5725_s10 + $0x248] sm:$0xff]  }
  0xb0   : > { %v5813_v10 = vcombine.low %v276_v8, %v280_v9  ;;  %v5815_v11 = vcombine.high %v276_v8, %v280_v9  ;;  %v5819_v14 = vcombine.low %v277_v12, %v281_v13  ;;  %v5821_v15 = vcombine.high %v277_v12, %v281_v13  ;;  %v4949_v21 = vld [vmem:[%s5725_s10 + $0x2c8] sm:$0xff]   ;;  %v4952_v24 = vld [vmem:[%s5725_s10 + $0x250] sm:$0xff]   ;;  %v4960_v32 = vld [vmem:[%s5725_s10 + $0x260] sm:$0xff]  }
  0xb1   : > { %4396 = vmatpush3.bf16.msra.mxu0 %v4906_v26  ;;  %v4950_v22 = vld [vmem:[%s5725_s10 + $0x208] sm:$0xff]   ;;  %v4953_v25 = vld [vmem:[%s5725_s10 + $0x2d0] sm:$0xff]   ;;  %v4961_v33 = vld [vmem:[%s5725_s10 + $0x2e0] sm:$0xff]  }
  0xb2   : > { %4418 = vmatpush3.bf16.msra.mxu1 %v4907_v27  ;;  %4397 = vmatprep.subr.bf16.mxu0 %v4908_v28  ;;  %v4951_v23 = vld [vmem:[%s5725_s10 + $0x288] sm:$0xff]   ;;  %v4954_v26 = vld [vmem:[%s5725_s10 + $0x210] sm:$0xff]   ;;  %v4956_v28 = vld [vmem:[%s5725_s10 + $0x258] sm:$0xff]  }
  0xb3   : > { %4419 = vmatprep.subr.bf16.mxu1 %v4909_v29  ;;  %v4955_v27 = vld [vmem:[%s5725_s10 + $0x290] sm:$0xff]   ;;  %v4957_v29 = vld [vmem:[%s5725_s10 + $0x2d8] sm:$0xff]   ;;  %v4962_v34 = vld [vmem:[%s5725_s10 + $0x220] sm:$0xff]  }
  0xb4   : > { %v4963_v37 = vld [vmem:[%s5725_s10 + $0x2a0] sm:$0xff]  }
  0xb5   : > { %4398 = vmatpush3.bf16.msra.mxu0 %v4910_v30  ;;  %v4958_v30 = vld [vmem:[%s5725_s10 + $0x218] sm:$0xff]  }
  0xb6   : > { %4420 = vmatpush3.bf16.msra.mxu1 %v4911_v31  ;;  %4427 = vmatprep.subr.bf16.mxu0 %v4912_v40  ;;  %v4959_v31 = vld [vmem:[%s5725_s10 + $0x298] sm:$0xff]   ;;  %v1209_v40 = vshll.u32 %v5768_v36, 16 }
  0xb7   : > { %4449 = vmatprep.subr.bf16.mxu1 %v4913_v41  ;;  %v4964_v41 = vld [vmem:[%s5725_s10 + $0x268] sm:$0xff]  }
  0xb8   : > { %867 = vmatmul.mubr.bf16.vlgmr.msra.gmra.mrb[0].mxu0 %v5766_v35 }
  0xb9   : > { %908 = vmatmul.mubr.bf16.vlgmr.msra.gmra.mrb[0].mxu1 %v5771_v38  ;;  %4428 = vmatpush3.bf16.msra.mxu0 %v4914_v42  ;;  %v4965_v42 = vld [vmem:[%s5725_s10 + $0x2e8] sm:$0xff]  }
  0xba   : > { %4450 = vmatpush3.bf16.msra.mxu1 %v4915_v43  ;;  %4429 = vmatprep.subr.bf16.mxu0 %v4916_v44  ;;  %v1207_v43 = vshrl.u32 %v5768_v36, 16  ;;  %v4966_v44 = vld [vmem:[%s5725_s10 + $0x228] sm:$0xff]   ;;  %v4970_v36 = vld [vmem:[%s5725_s10 + $0x230] sm:$0xff]  }
  0xbb   : > { %4451 = vmatprep.subr.bf16.mxu1 %v4917_v45  ;;  %948 = vmatprep.mubr.bf16.mxu0 %v5815_v11  ;;  %v1231_v45 = vshrl.u32 %v5773_v39, 16 }
  0xbc   : > { %989 = vmatprep.mubr.bf16.mxu1 %v5821_v15 }
  0xbd   : > { %4430 = vmatpush3.bf16.msra.mxu0 %v4918_v46  ;;  %v4967_v46 = vld [vmem:[%s5725_s10 + $0x2a8] sm:$0xff]  }
  0xbe   : > { %4452 = vmatpush3.bf16.msra.mxu1 %v4919_v47  ;;  %4431 = vmatprep.subr.bf16.mxu0 %v4920_v48  ;;  %v1211_v47 = vrot.slane %v1209_v40, 1  ;;  %v4968_v48 = vld [vmem:[%s5725_s10 + $0x270] sm:$0xff]   ;;  %v4994_v40 = vld [vmem:[%s5725_s10 + $0x318] sm:$0xff]  }
  0xbf   : > { %4453 = vmatprep.subr.bf16.mxu1 %v4921_v49  ;;  %v1233_v49 = vshll.u32 %v5773_v39, 16 }
  0xc1   : > { %4432 = vmatpush3.bf16.msra.mxu0 %v4922_v50  ;;  %v4969_v50 = vld [vmem:[%s5725_s10 + $0x2f0] sm:$0xff]   ;;  %v1235_v39 = vrot.slane %v1233_v49, 1  ;;  %v1255_v49 = vshrl.u32 %v5815_v11, 16 }
  0xc2   : > { %4454 = vmatpush3.bf16.msra.mxu1 %v4923_v51  ;;  %4433 = vmatprep.subr.bf16.mxu0 %v4924_v52  ;;  %v1195_v51 = vshrl.u32 %v5766_v35, 16  ;;  %v1197_v52 = vshll.u32 %v5766_v35, 16  ;;  %v4975_v35 = vld [vmem:[%s5725_s10 + $0x2b8] sm:$0xff]  }
  0xc3   : > { %4455 = vmatprep.subr.bf16.mxu1 %v4925_v53  ;;  %v4971_v53 = vld [vmem:[%s5725_s10 + $0x2b0] sm:$0xff]   ;;  %v1236_v8 = vor.u32 %v1235_v39, %v1231_v45  ;;  %v4999_v45 = vld [vmem:[%s5725_s10 + $0x3a0] sm:$0xff]   ;;  %v1243_v39 = vshrl.u32 %v5813_v10, 16 }
  0xc5   : > { %4434 = vmatpush3.bf16.msra.mxu0 %v4926_v54  ;;  %v1221_v54 = vshll.u32 %v5771_v38, 16 }
  0xc6   : > { %4456 = vmatpush3.bf16.msra.mxu1 %v4927_v55  ;;  %4435 = vmatprep.subr.bf16.mxu0 %v4928_v56  ;;  %v4972_v55 = vld [vmem:[%s5725_s10 + $0x278] sm:$0xff]  }
  0xc7   : > { %4457 = vmatprep.subr.bf16.mxu1 %v4929_v57  ;;  %v4973_v56 = vld [vmem:[%s5725_s10 + $0x2f8] sm:$0xff]   ;;  %v1219_v57 = vshrl.u32 %v5771_v38, 16  ;;  %v1212_v38 = vor.u32 %v1211_v47, %v1207_v43  ;;  %v4997_v43 = vld [vmem:[%s5725_s10 + $0x3e0] sm:$0xff]   ;;  %v5000_v47 = vld [vmem:[%s5725_s10 + $0x368] sm:$0xff]  }
  0xc9   : > { %4436 = vmatpush3.bf16.msra.mxu0 %v4930_v58  ;;  %v4974_v58 = vld [vmem:[%s5725_s10 + $0x238] sm:$0xff]  }
  0xca   : > { %4458 = vmatpush3.bf16.msra.mxu1 %v4931_v59  ;;  %4437 = vmatprep.subr.bf16.mxu0 %v4932_v60  ;;  %v1199_v59 = vrot.slane %v1197_v52, 1  ;;  %v1008_v60 = vld [vmem:[%s5715_s3 + $0x40] sm:$0x11] }
  0xcb   : > { %4459 = vmatprep.subr.bf16.mxu1 %v4933_v61  ;;  %v1223_v61 = vrot.slane %v1221_v54, 1  ;;  %v1281_v54 = vshll.u32 %v5821_v15, 16 }
  0xcd   : > { %4438 = vmatpush3.bf16.msra.mxu0 %v4934_v62  ;;  %v3886_v62 = vcombine.high %v1008_v60, %v1008_v60  ;;  %v1224_v12 = vor.u32 %v1223_v61, %v1219_v57  ;;  %v5007_v57 = vld [vmem:[%s5725_s10 + $0x3b0] sm:$0xff]   ;;  %v5010_v61 = vld [vmem:[%s5725_s10 + $0x338] sm:$0xff]  }
  0xce   : > { %4460 = vmatpush3.bf16.msra.mxu1 %v4935_v63  ;;  %4439 = vmatprep.subr.bf16.mxu0 %v4936_v0  ;;  %v1009_v63 = vld [vmem:[%s5715_s3 + $0x48] sm:$0x11]  ;;  %v3885_v0 = vcombine.low %v1008_v60, %v1008_v60  ;;  %v1267_v60 = vshrl.u32 %v5819_v14, 16 }
  0xcf   : > { %4461 = vmatprep.subr.bf16.mxu1 %v4937_v1  ;;  %v3888_v1 = vcombine.high %v1009_v63, %v1009_v63 }
  0xd1   : > { %4440 = vmatpush3.bf16.msra.mxu0 %v4938_v2  ;;  %v3887_v2 = vcombine.low %v1009_v63, %v1009_v63  ;;  %v1238_v9 = vshll.u32 %v3888_v1, 16  ;;  %v5011_v63 = vld [vmem:[%s5725_s10 + $0x3b8] sm:$0xff]  }
  0xd2   : > { %4462 = vmatpush3.bf16.msra.mxu1 %v4939_v3  ;;  %4441 = vmatprep.subr.bf16.mxu0 %v4940_v4  ;;  %v4980_v3 = vld [vmem:[%s5725_s10 + $0x340] sm:$0xff]   ;;  %v1214_v4 = vshll.u32 %v3886_v62, 16  ;;  %v1011_v1 = vld [vmem:[%s5715_s3 + $0x58] sm:$0x11] }
  0xd3   : > { %4463 = vmatprep.subr.bf16.mxu1 %v4941_v5  ;;  %v1200_v5 = vor.u32 %v1199_v59, %v1195_v51  ;;  %v1226_v13 = vshll.u32 %v3887_v2, 16  ;;  %v1279_v51 = vshrl.u32 %v5821_v15, 16  ;;  %v5008_v59 = vld [vmem:[%s5725_s10 + $0x378] sm:$0xff]  }
  0xd4   : > { %v5009_v15 = vld [vmem:[%s5725_s10 + $0x3f8] sm:$0xff]  }
  0xd5   : > { %4442 = vmatpush3.bf16.msra.mxu0 %v4942_v6  ;;  %v1202_v6 = vshll.u32 %v3885_v0, 16  ;;  %v1010_v0 = vld [vmem:[%s5715_s3 + $0x50] sm:$0x11] }
  0xd6   : > { %4464 = vmatpush3.bf16.msra.mxu1 %v4943_v7  ;;  %4471 = vmatprep.subr.bf16.mxu0 %v4944_v16  ;;  %v4981_v7 = vld [vmem:[%s5725_s10 + $0x3c0] sm:$0xff]   ;;  %v3890_v2 = vcombine.high %v1010_v0, %v1010_v0 }
  0xd7   : > { %4493 = vmatprep.subr.bf16.mxu1 %v4945_v17  ;;  %v4982_v16 = vld [vmem:[%s5725_s10 + $0x300] sm:$0xff]   ;;  %v1216_v17 = vrot.slane %v1214_v4, 1 }
  0xd8   : > { %949 = vmatmul.mubr.bf16.vlgmr.msra.gmra.mrb[4].mxu0 %v5813_v10  ;;  %v5016_v4 = vld [vmem:[%s5725_s10 + $0x440] sm:$0xff]  }
  0xd9   : > { %990 = vmatmul.mubr.bf16.vlgmr.msra.gmra.mrb[4].mxu1 %v5819_v14  ;;  %4472 = vmatpush3.bf16.msra.mxu0 %v4946_v18  ;;  %v1204_v18 = vrot.slane %v1202_v6, 1  ;;  %v3891_v6 = vcombine.low %v1011_v1, %v1011_v1 }
  0xda   : > { %4494 = vmatpush3.bf16.msra.mxu1 %v4947_v19  ;;  %4473 = vmatprep.subr.bf16.mxu0 %v4948_v20  ;;  %v4983_v19 = vld [vmem:[%s5725_s10 + $0x380] sm:$0xff]   ;;  %v4984_v20 = vld [vmem:[%s5725_s10 + $0x348] sm:$0xff]  }
  0xdb   : > { %4495 = vmatprep.subr.bf16.mxu1 %v4949_v21  ;;  %v1240_v21 = vrot.slane %v1238_v9, 1 }
  0xdd   : > { %4474 = vmatpush3.bf16.msra.mxu0 %v4950_v22  ;;  %v1228_v22 = vrot.slane %v1226_v13, 1 }
  0xde   : > { %4496 = vmatpush3.bf16.msra.mxu1 %v4951_v23  ;;  %4475 = vmatprep.subr.bf16.mxu0 %v4952_v24  ;;  %v1217_v23 = vsel %vm1193_vm0, %v1212_v38, %v1216_v17  ;;  %v1205_v24 = vsel %vm1193_vm0, %v1200_v5, %v1204_v18  ;;  %v3889_v38 = vcombine.low %v1010_v0, %v1010_v0  ;;  %v1274_v17 = vshll.u32 %v3891_v6, 16  ;;  %v5018_v18 = vld [vmem:[%s5725_s10 + $0x400] sm:$0xff]   ;;  %v5058_v6 = vld [vmem:[%s5725_s10 + $0x510] sm:$0xff]  }
  0xdf   : > { %4497 = vmatprep.subr.bf16.mxu1 %v4953_v25  ;;  %v4985_v25 = vld [vmem:[%s5725_s10 + $0x3c8] sm:$0xff]   ;;  %1714 = vmatprep.mubr.bf16.mxu0 %v1217_v23  ;;  %v5050_v0 = vld [vmem:[%s5725_s10 + $0x500] sm:$0xff]  }
  0xe0   : > { %v1250_v13 = vshll.u32 %v3889_v38, 16  ;;  %v5020_v23 = vld [vmem:[%s5725_s10 + $0x448] sm:$0xff]  }
  0xe1   : > { %4476 = vmatpush3.bf16.msra.mxu0 %v4954_v26  ;;  %v1241_v26 = vsel %vm1193_vm0, %v1236_v8, %v1240_v21  ;;  %v1262_v8 = vshll.u32 %v3890_v2, 16  ;;  %v5052_v2 = vld [vmem:[%s5725_s10 + $0x548] sm:$0xff]  }
  0xe2   : > { %4498 = vmatpush3.bf16.msra.mxu1 %v4955_v27  ;;  %4477 = vmatprep.subr.bf16.mxu0 %v4956_v28  ;;  %v1229_v27 = vsel %vm1193_vm0, %v1224_v12, %v1228_v22  ;;  %v4986_v28 = vld [vmem:[%s5725_s10 + $0x308] sm:$0xff]   ;;  %v1252_v22 = vrot.slane %v1250_v13, 1  ;;  %v5063_v13 = vld [vmem:[%s5725_s10 + $0x598] sm:$0xff]  }
  0xe3   : > { %4499 = vmatprep.subr.bf16.mxu1 %v4957_v29  ;;  %1755 = vmatprep.mubr.bf16.mxu1 %v1241_v26  ;;  %v4987_v29 = vld [vmem:[%s5725_s10 + $0x388] sm:$0xff]  }
  0xe4   : > { %v5054_v38 = vld [vmem:[%s5725_s10 + $0x508] sm:$0xff]  }
  0xe5   : > { %4478 = vmatpush3.bf16.msra.mxu0 %v4958_v30  ;;  %v4988_v30 = vld [vmem:[%s5725_s10 + $0x350] sm:$0xff]  }
  0xe6   : > { %4500 = vmatpush3.bf16.msra.mxu1 %v4959_v31  ;;  %4479 = vmatprep.subr.bf16.mxu0 %v4960_v32  ;;  %v4989_v31 = vld [vmem:[%s5725_s10 + $0x3d0] sm:$0xff]  }
  0xe7   : > { %4501 = vmatprep.subr.bf16.mxu1 %v4961_v33  ;;  %v4990_v32 = vld [vmem:[%s5725_s10 + $0x310] sm:$0xff]  }
  0xe8   : > { %v4991_v33 = vld [vmem:[%s5725_s10 + $0x390] sm:$0xff]  }
  0xe9   : > { %4480 = vmatpush3.bf16.msra.mxu0 %v4962_v34  ;;  %v4992_v34 = vld [vmem:[%s5725_s10 + $0x358] sm:$0xff]  }
  0xea   : > { %4502 = vmatpush3.bf16.msra.mxu1 %v4963_v37  ;;  %4481 = vmatprep.subr.bf16.mxu0 %v4964_v41  ;;  %v4993_v37 = vld [vmem:[%s5725_s10 + $0x3d8] sm:$0xff]  }
  0xeb   : > { %4503 = vmatprep.subr.bf16.mxu1 %v4965_v42  ;;  %v4995_v41 = vld [vmem:[%s5725_s10 + $0x398] sm:$0xff]   ;;  %v4996_v42 = vld [vmem:[%s5725_s10 + $0x360] sm:$0xff]  }
  0xed   : > { %4482 = vmatpush3.bf16.msra.mxu0 %v4966_v44  ;;  %v4998_v44 = vld [vmem:[%s5725_s10 + $0x320] sm:$0xff]  }
  0xee   : > { %4504 = vmatpush3.bf16.msra.mxu1 %v4967_v46  ;;  %4483 = vmatprep.subr.bf16.mxu0 %v4968_v48  ;;  %v1257_v46 = vshll.u32 %v5815_v11, 16  ;;  %v5001_v48 = vld [vmem:[%s5725_s10 + $0x3e8] sm:$0xff]   ;;  %v5006_v11 = vld [vmem:[%s5725_s10 + $0x330] sm:$0xff]  }
  0xef   : > { %4505 = vmatprep.subr.bf16.mxu1 %v4969_v50  ;;  %v5002_v50 = vld [vmem:[%s5725_s10 + $0x328] sm:$0xff]  }
  0xf0   : > { %v1259_v52 = vrot.slane %v1257_v46, 1  ;;  %v5034_v46 = vld [vmem:[%s5725_s10 + $0x420] sm:$0xff]  }
  0xf1   : > { %4484 = vmatpush3.bf16.msra.mxu0 %v4970_v36  ;;  %v5003_v36 = vld [vmem:[%s5725_s10 + $0x3a8] sm:$0xff]  }
  0xf2   : > { %4506 = vmatpush3.bf16.msra.mxu1 %v4971_v53  ;;  %4485 = vmatprep.subr.bf16.mxu0 %v4972_v55  ;;  %v5004_v53 = vld [vmem:[%s5725_s10 + $0x370] sm:$0xff]   ;;  %v1260_v5 = vor.u32 %v1259_v52, %v1255_v49  ;;  %v5037_v49 = vld [vmem:[%s5725_s10 + $0x4e8] sm:$0xff]  }
  0xf3   : > { %4507 = vmatprep.subr.bf16.mxu1 %v4973_v56  ;;  %v5005_v55 = vld [vmem:[%s5725_s10 + $0x3f0] sm:$0xff]   ;;  %v1245_v56 = vshll.u32 %v5813_v10, 16 }
  0xf4   : > { %v5041_v52 = vld [vmem:[%s5725_s10 + $0x4f0] sm:$0xff]  }
  0xf5   : > { %4486 = vmatpush3.bf16.msra.mxu0 %v4974_v58  ;;  %v1269_v58 = vshll.u32 %v5819_v14, 16  ;;  %v1247_v62 = vrot.slane %v1245_v56, 1  ;;  %v5047_v56 = vld [vmem:[%s5725_s10 + $0x4b8] sm:$0xff]  }
  0xf6   : > { %4508 = vmatpush3.bf16.msra.mxu1 %v4975_v35  ;;  %4515 = vmatprep.subr.bf16.mxu0 %v4980_v3  ;;  %v1283_v35 = vrot.slane %v1281_v54, 1  ;;  %v3892_v3 = vcombine.high %v1011_v1, %v1011_v1  ;;  %v5043_v54 = vld [vmem:[%s5725_s10 + $0x4b0] sm:$0xff]   ;;  %v5051_v1 = vld [vmem:[%s5725_s10 + $0x580] sm:$0xff]  }
  0xf7   : > { %4537 = vmatprep.subr.bf16.mxu1 %v4981_v7  ;;  %v1271_v10 = vrot.slane %v1269_v58, 1  ;;  %v5017_v7 = vld [vmem:[%s5725_s10 + $0x4c0] sm:$0xff]   ;;  %v1248_v12 = vor.u32 %v1247_v62, %v1243_v39  ;;  %v5045_v39 = vld [vmem:[%s5725_s10 + $0x4f8] sm:$0xff]  }
  0xf8   : > { %1715 = vmatmul.mubr.bf16.vlgmr.msra.gmra.mrb[8].mxu0 %v1205_v24  ;;  %v1284_v14 = vor.u32 %v1283_v35, %v1279_v51  ;;  %v1286_v9 = vshll.u32 %v3892_v3, 16  ;;  %v1276_v24 = vrot.slane %v1274_v17, 1  ;;  %v5039_v51 = vld [vmem:[%s5725_s10 + $0x4a8] sm:$0xff]   ;;  %v1856_v58 = vld [vmem:[%s5715_s3 + $0x40] sm:$0xff] }
  0xf9   : > { %1756 = vmatmul.mubr.bf16.vlgmr.msra.gmra.mrb[8].mxu1 %v1229_v27  ;;  %4516 = vmatpush3.bf16.msra.mxu0 %v4982_v16  ;;  %v1272_v16 = vor.u32 %v1271_v10, %v1267_v60  ;;  %v1853_v35 = vld [vmem:[%s5715_s3 + $0x28] sm:$0xff]  ;;  %v5049_v62 = vld [vmem:[%s5725_s10 + $0x5c0] sm:$0xff]  }
  0xfa   : > { %4538 = vmatpush3.bf16.msra.mxu1 %v4983_v19  ;;  %4517 = vmatprep.subr.bf16.mxu0 %v4984_v20  ;;  %v5019_v19 = vld [vmem:[%s5725_s10 + $0x480] sm:$0xff]   ;;  %v1264_v20 = vrot.slane %v1262_v8, 1  ;;  %v1288_v21 = vrot.slane %v1286_v9, 1  ;;  %v5053_v3 = vld [vmem:[%s5725_s10 + $0x5c8] sm:$0xff]   ;;  %v5060_v8 = vld [vmem:[%s5725_s10 + $0x558] sm:$0xff]  }
  0xfb   : > { %4539 = vmatprep.subr.bf16.mxu1 %v4985_v25  ;;  %v5021_v25 = vld [vmem:[%s5725_s10 + $0x4c8] sm:$0xff]   ;;  %v5061_v9 = vld [vmem:[%s5725_s10 + $0x5d8] sm:$0xff]   ;;  %v5065_v17 = vld [vmem:[%s5725_s10 + $0x5e0] sm:$0xff]  }
  0xfc   : > { %v1265_v26 = vsel %vm1193_vm0, %v1260_v5, %v1264_v20  ;;  %v1289_v27 = vsel %vm1193_vm0, %v1284_v14, %v1288_v21  ;;  %v5056_v5 = vld [vmem:[%s5725_s10 + $0x550] sm:$0xff]   ;;  %v5068_v20 = vld [vmem:[%s5725_s10 + $0x568] sm:$0xff]  }
  0xfd   : > { %4518 = vmatpush3.bf16.msra.mxu0 %v4986_v28  ;;  %v1253_v28 = vsel %vm1193_vm0, %v1248_v12, %v1252_v22  ;;  %1796 = vmatprep.mubr.bf16.mxu0 %v1265_v26  ;;  %v5057_v14 = vld [vmem:[%s5725_s10 + $0x5d0] sm:$0xff]   ;;  %v5062_v12 = vld [vmem:[%s5725_s10 + $0x518] sm:$0xff]   ;;  %v5069_v21 = vld [vmem:[%s5725_s10 + $0x5e8] sm:$0xff]  }
  0xfe   : > { %4540 = vmatpush3.bf16.msra.mxu1 %v4987_v29  ;;  %4519 = vmatprep.subr.bf16.mxu0 %v4988_v30  ;;  %v1277_v29 = vsel %vm1193_vm0, %v1272_v16, %v1276_v24  ;;  %v5022_v30 = vld [vmem:[%s5725_s10 + $0x408] sm:$0xff]   ;;  %v5064_v16 = vld [vmem:[%s5725_s10 + $0x560] sm:$0xff]   ;;  %v5072_v24 = vld [vmem:[%s5725_s10 + $0x570] sm:$0xff]  }
  0xff   : > { %4541 = vmatprep.subr.bf16.mxu1 %v4989_v31  ;;  %1837 = vmatprep.mubr.bf16.mxu1 %v1289_v27  ;;  %v5023_v31 = vld [vmem:[%s5725_s10 + $0x488] sm:$0xff]   ;;  %v5074_v26 = vld [vmem:[%s5725_s10 + $0x530] sm:$0xff]  }
 0x100   : > { %v5070_v22 = vld [vmem:[%s5725_s10 + $0x528] sm:$0xff]   ;;  %v5075_v27 = vld [vmem:[%s5725_s10 + $0x5b0] sm:$0xff]  }
 0x101   : > { %4520 = vmatpush3.bf16.msra.mxu0 %v4990_v32  ;;  %v5024_v32 = vld [vmem:[%s5725_s10 + $0x450] sm:$0xff]  }
 0x102   : > { %4542 = vmatpush3.bf16.msra.mxu1 %v4991_v33  ;;  %4521 = vmatprep.subr.bf16.mxu0 %v4992_v34  ;;  %v5025_v33 = vld [vmem:[%s5725_s10 + $0x4d0] sm:$0xff]  }
 0x103   : > { %4543 = vmatprep.subr.bf16.mxu1 %v4993_v37  ;;  %v5026_v34 = vld [vmem:[%s5725_s10 + $0x410] sm:$0xff]  }
 0x104   : > { %v5027_v37 = vld [vmem:[%s5725_s10 + $0x490] sm:$0xff]  }
 0x105   : > { %4522 = vmatpush3.bf16.msra.mxu0 %v4994_v40  ;;  %v5028_v40 = vld [vmem:[%s5725_s10 + $0x458] sm:$0xff]  }
 0x106   : > { %4544 = vmatpush3.bf16.msra.mxu1 %v4995_v41  ;;  %4523 = vmatprep.subr.bf16.mxu0 %v4996_v42  ;;  %v5029_v41 = vld [vmem:[%s5725_s10 + $0x4d8] sm:$0xff]  }
 0x107   : > { %4545 = vmatprep.subr.bf16.mxu1 %v4997_v43  ;;  %v5030_v42 = vld [vmem:[%s5725_s10 + $0x418] sm:$0xff]  }
 0x108   : > { %v5031_v43 = vld [vmem:[%s5725_s10 + $0x498] sm:$0xff]  }
 0x109   : > { %4524 = vmatpush3.bf16.msra.mxu0 %v4998_v44  ;;  %v5032_v44 = vld [vmem:[%s5725_s10 + $0x460] sm:$0xff]  }
 0x10a   : > { %4546 = vmatpush3.bf16.msra.mxu1 %v4999_v45  ;;  %4525 = vmatprep.subr.bf16.mxu0 %v5000_v47  ;;  %v5033_v45 = vld [vmem:[%s5725_s10 + $0x4e0] sm:$0xff]  }
 0x10b   : > { %4547 = vmatprep.subr.bf16.mxu1 %v5001_v48  ;;  %v5035_v47 = vld [vmem:[%s5725_s10 + $0x4a0] sm:$0xff]   ;;  %v5036_v48 = vld [vmem:[%s5725_s10 + $0x468] sm:$0xff]  }
 0x10d   : > { %4526 = vmatpush3.bf16.msra.mxu0 %v5002_v50  ;;  %v5038_v50 = vld [vmem:[%s5725_s10 + $0x428] sm:$0xff]  }
 0x10e   : > { %4548 = vmatpush3.bf16.msra.mxu1 %v5003_v36  ;;  %4527 = vmatprep.subr.bf16.mxu0 %v5004_v53  ;;  %v5040_v36 = vld [vmem:[%s5725_s10 + $0x470] sm:$0xff]  }
 0x10f   : > { %4549 = vmatprep.subr.bf16.mxu1 %v5005_v55  ;;  %v5042_v53 = vld [vmem:[%s5725_s10 + $0x430] sm:$0xff]   ;;  %v5044_v55 = vld [vmem:[%s5725_s10 + $0x478] sm:$0xff]  }
 0x111   : > { %4528 = vmatpush3.bf16.msra.mxu0 %v5006_v11  ;;  %v5046_v11 = vld [vmem:[%s5725_s10 + $0x438] sm:$0xff]  }
 0x112   : > { %4550 = vmatpush3.bf16.msra.mxu1 %v5007_v57  ;;  %4529 = vmatprep.subr.bf16.mxu0 %v5008_v59  ;;  %v1852_v57 = vld [vmem:[%s5715_s3 + $0x20] sm:$0xff] }
 0x113   : > { %4551 = vmatprep.subr.bf16.mxu1 %v5009_v15  ;;  %v5953_v59 = vcombine.high %v1852_v57, %v1856_v58  ;;  %v1857_v15 = vld [vmem:[%s5715_s3 + $0x48] sm:$0xff] }
 0x114   : > { %v5957_v60 = vcombine.high %v1853_v35, %v1857_v15  ;;  %v5964_v10 = vcombine.low %v1853_v35, %v1857_v15  ;;  %v5098_v35 = vld [vmem:[%s5725_s10 + $0x620] sm:$0xff]  }
 0x115   : > { %4530 = vmatpush3.bf16.msra.mxu0 %v5010_v61  ;;  %v5048_v61 = vld [vmem:[%s5725_s10 + $0x540] sm:$0xff]   ;;  %v2791_v15 = vshll.u32 %v5953_v59, 16 }
 0x116   : > { %4552 = vmatpush3.bf16.msra.mxu1 %v5011_v63  ;;  %4559 = vmatprep.subr.bf16.mxu0 %v5016_v4  ;;  %v5962_v63 = vcombine.low %v1852_v57, %v1856_v58  ;;  %v5055_v4 = vld [vmem:[%s5725_s10 + $0x588] sm:$0xff]   ;;  %v5096_v57 = vld [vmem:[%s5725_s10 + $0x660] sm:$0xff]  }
 0x117   : > { %4581 = vmatprep.subr.bf16.mxu1 %v5017_v7  ;;  %v5059_v7 = vld [vmem:[%s5725_s10 + $0x590] sm:$0xff]   ;;  %v5097_v58 = vld [vmem:[%s5725_s10 + $0x6e0] sm:$0xff]  }
 0x118   : > { %1797 = vmatmul.mubr.bf16.vlgmr.msra.gmra.mrb[12].mxu0 %v1253_v28  ;;  %v5076_v28 = vld [vmem:[%s5725_s10 + $0x578] sm:$0xff]  }
 0x119   : > { %1838 = vmatmul.mubr.bf16.vlgmr.msra.gmra.mrb[12].mxu1 %v1277_v29  ;;  %4560 = vmatpush3.bf16.msra.mxu0 %v5018_v18  ;;  %v5066_v18 = vld [vmem:[%s5725_s10 + $0x520] sm:$0xff]   ;;  %v5077_v29 = vld [vmem:[%s5725_s10 + $0x5f8] sm:$0xff]  }
 0x11a   : > { %4582 = vmatpush3.bf16.msra.mxu1 %v5019_v19  ;;  %4561 = vmatprep.subr.bf16.mxu0 %v5020_v23  ;;  %v5067_v19 = vld [vmem:[%s5725_s10 + $0x5a0] sm:$0xff]   ;;  %v5071_v23 = vld [vmem:[%s5725_s10 + $0x5a8] sm:$0xff]  }
 0x11b   : > { %4583 = vmatprep.subr.bf16.mxu1 %v5021_v25  ;;  %2445 = vmatprep.mubr.bf16.mxu0 %v5953_v59  ;;  %v5073_v25 = vld [vmem:[%s5725_s10 + $0x5f0] sm:$0xff]  }
 0x11c   : > { %2486 = vmatprep.mubr.bf16.mxu1 %v5957_v60 }
 0x11d   : > { %4562 = vmatpush3.bf16.msra.mxu0 %v5022_v30  ;;  %v5078_v30 = vld [vmem:[%s5725_s10 + $0x538] sm:$0xff]  }
 0x11e   : > { %4584 = vmatpush3.bf16.msra.mxu1 %v5023_v31  ;;  %4563 = vmatprep.subr.bf16.mxu0 %v5024_v32  ;;  %v5079_v31 = vld [vmem:[%s5725_s10 + $0x5b8] sm:$0xff]   ;;  %v1854_v32 = vld [vmem:[%s5715_s3 + $0x30] sm:$0xff] }
 0x11f   : > { %4585 = vmatprep.subr.bf16.mxu1 %v5025_v33  ;;  %v1858_v33 = vld [vmem:[%s5715_s3 + $0x50] sm:$0xff] }
 0x121   : > { %4564 = vmatpush3.bf16.msra.mxu0 %v5026_v34  ;;  %v1855_v34 = vld [vmem:[%s5715_s3 + $0x38] sm:$0xff] }
 0x122   : > { %4586 = vmatpush3.bf16.msra.mxu1 %v5027_v37  ;;  %4565 = vmatprep.subr.bf16.mxu0 %v5028_v40  ;;  %v1859_v37 = vld [vmem:[%s5715_s3 + $0x58] sm:$0xff]  ;;  %v6003_v40 = vcombine.high %v1854_v32, %v1858_v33 }
 0x123   : > { %4587 = vmatprep.subr.bf16.mxu1 %v5029_v41  ;;  %v6005_v41 = vcombine.high %v1855_v34, %v1859_v37 }
 0x125   : > { %4566 = vmatpush3.bf16.msra.mxu0 %v5030_v42  ;;  %v5080_v42 = vld [vmem:[%s5725_s10 + $0x640] sm:$0xff]  }
 0x126   : > { %4588 = vmatpush3.bf16.msra.mxu1 %v5031_v43  ;;  %4567 = vmatprep.subr.bf16.mxu0 %v5032_v44  ;;  %v6008_v43 = vcombine.low %v1854_v32, %v1858_v33  ;;  %v6010_v44 = vcombine.low %v1855_v34, %v1859_v37 }
 0x127   : > { %4589 = vmatprep.subr.bf16.mxu1 %v5033_v45  ;;  %v5081_v45 = vld [vmem:[%s5725_s10 + $0x6c0] sm:$0xff]  }
 0x129   : > { %4568 = vmatpush3.bf16.msra.mxu0 %v5034_v46  ;;  %v5082_v46 = vld [vmem:[%s5725_s10 + $0x600] sm:$0xff]  }
 0x12a   : > { %4590 = vmatpush3.bf16.msra.mxu1 %v5035_v47  ;;  %4569 = vmatprep.subr.bf16.mxu0 %v5036_v48  ;;  %v5083_v47 = vld [vmem:[%s5725_s10 + $0x680] sm:$0xff]   ;;  %v5084_v48 = vld [vmem:[%s5725_s10 + $0x648] sm:$0xff]  }
 0x12b   : > { %4591 = vmatprep.subr.bf16.mxu1 %v5037_v49  ;;  %v5085_v49 = vld [vmem:[%s5725_s10 + $0x6c8] sm:$0xff]  }
 0x12d   : > { %4570 = vmatpush3.bf16.msra.mxu0 %v5038_v50  ;;  %v5086_v50 = vld [vmem:[%s5725_s10 + $0x608] sm:$0xff]  }
 0x12e   : > { %4592 = vmatpush3.bf16.msra.mxu1 %v5039_v51  ;;  %4571 = vmatprep.subr.bf16.mxu0 %v5040_v36  ;;  %v5087_v51 = vld [vmem:[%s5725_s10 + $0x688] sm:$0xff]   ;;  %v5088_v36 = vld [vmem:[%s5725_s10 + $0x650] sm:$0xff]  }
 0x12f   : > { %4593 = vmatprep.subr.bf16.mxu1 %v5041_v52  ;;  %v5089_v52 = vld [vmem:[%s5725_s10 + $0x6d0] sm:$0xff]  }
 0x131   : > { %4572 = vmatpush3.bf16.msra.mxu0 %v5042_v53  ;;  %v5090_v53 = vld [vmem:[%s5725_s10 + $0x610] sm:$0xff]  }
 0x132   : > { %4594 = vmatpush3.bf16.msra.mxu1 %v5043_v54  ;;  %4573 = vmatprep.subr.bf16.mxu0 %v5044_v55  ;;  %v5091_v54 = vld [vmem:[%s5725_s10 + $0x690] sm:$0xff]   ;;  %v5092_v55 = vld [vmem:[%s5725_s10 + $0x658] sm:$0xff]  }
 0x133   : > { %4595 = vmatprep.subr.bf16.mxu1 %v5045_v39  ;;  %v5093_v39 = vld [vmem:[%s5725_s10 + $0x6d8] sm:$0xff]  }
 0x135   : > { %4574 = vmatpush3.bf16.msra.mxu0 %v5046_v11  ;;  %v5094_v11 = vld [vmem:[%s5725_s10 + $0x618] sm:$0xff]  }
 0x136   : > { %4596 = vmatpush3.bf16.msra.mxu1 %v5047_v56  ;;  %4603 = vmatprep.subr.bf16.mxu0 %v5048_v61  ;;  %v5095_v56 = vld [vmem:[%s5725_s10 + $0x698] sm:$0xff]   ;;  %v5099_v61 = vld [vmem:[%s5725_s10 + $0x6a0] sm:$0xff]  }
 0x137   : > { %4625 = vmatprep.subr.bf16.mxu1 %v5049_v62  ;;  %v5100_v62 = vld [vmem:[%s5725_s10 + $0x668] sm:$0xff]  }
 0x138   : > { %2446 = vmatmul.mubr.bf16.vlgmr.msra.gmra.mrb[16].mxu0 %v5962_v63 }
 0x139   : > { %2487 = vmatmul.mubr.bf16.vlgmr.msra.gmra.mrb[16].mxu1 %v5964_v10  ;;  %4604 = vmatpush3.bf16.msra.mxu0 %v5050_v0  ;;  %v2789_v0 = vshrl.u32 %v5953_v59, 16  ;;  %v5105_v59 = vld [vmem:[%s5725_s10 + $0x6f0] sm:$0xff]  }
 0x13a   : > { %4626 = vmatpush3.bf16.msra.mxu1 %v5051_v1  ;;  %4605 = vmatprep.subr.bf16.mxu0 %v5052_v2  ;;  %v5101_v1 = vld [vmem:[%s5725_s10 + $0x6e8] sm:$0xff]   ;;  %v2813_v2 = vshrl.u32 %v5957_v60, 16 }
 0x13b   : > { %4627 = vmatprep.subr.bf16.mxu1 %v5053_v3  ;;  %2527 = vmatprep.mubr.bf16.mxu0 %v6003_v40  ;;  %v5102_v3 = vld [vmem:[%s5725_s10 + $0x628] sm:$0xff]  }
 0x13c   : > { %2568 = vmatprep.mubr.bf16.mxu1 %v6005_v41 }
 0x13d   : > { %4606 = vmatpush3.bf16.msra.mxu0 %v5054_v38  ;;  %v2793_v38 = vrot.slane %v2791_v15, 1  ;;  %v5129_v15 = vld [vmem:[%s5725_s10 + $0x7d8] sm:$0xff]  }
 0x13e   : > { %4628 = vmatpush3.bf16.msra.mxu1 %v5055_v4  ;;  %4607 = vmatprep.subr.bf16.mxu0 %v5056_v5  ;;  %v5103_v4 = vld [vmem:[%s5725_s10 + $0x6a8] sm:$0xff]   ;;  %v2815_v5 = vshll.u32 %v5957_v60, 16  ;;  %v5108_v60 = vld [vmem:[%s5725_s10 + $0x678] sm:$0xff]  }
 0x13f   : > { %4629 = vmatprep.subr.bf16.mxu1 %v5057_v14  ;;  %v5104_v14 = vld [vmem:[%s5725_s10 + $0x670] sm:$0xff]  }
 0x141   : > { %4608 = vmatpush3.bf16.msra.mxu0 %v5058_v6  ;;  %v2777_v6 = vshrl.u32 %v5962_v63, 16 }
 0x142   : > { %4630 = vmatpush3.bf16.msra.mxu1 %v5059_v7  ;;  %4609 = vmatprep.subr.bf16.mxu0 %v5060_v8  ;;  %v2779_v7 = vshll.u32 %v5962_v63, 16  ;;  %v5106_v8 = vld [vmem:[%s5725_s10 + $0x630] sm:$0xff]   ;;  %v5110_v63 = vld [vmem:[%s5725_s10 + $0x638] sm:$0xff]  }
 0x143   : > { %4631 = vmatprep.subr.bf16.mxu1 %v5061_v9  ;;  %v2803_v9 = vshll.u32 %v5964_v10, 16 }
 0x145   : > { %4610 = vmatpush3.bf16.msra.mxu0 %v5062_v12  ;;  %v5107_v12 = vld [vmem:[%s5725_s10 + $0x6b0] sm:$0xff]  }
 0x146   : > { %4632 = vmatpush3.bf16.msra.mxu1 %v5063_v13  ;;  %4611 = vmatprep.subr.bf16.mxu0 %v5064_v16  ;;  %v2817_v13 = vrot.slane %v2815_v5, 1  ;;  %v2801_v16 = vshrl.u32 %v5964_v10, 16  ;;  %v5116_v10 = vld [vmem:[%s5725_s10 + $0x740] sm:$0xff]  }
 0x147   : > { %4633 = vmatprep.subr.bf16.mxu1 %v5065_v17  ;;  %v5109_v17 = vld [vmem:[%s5725_s10 + $0x6f8] sm:$0xff]   ;;  %v5133_v5 = vld [vmem:[%s5725_s10 + $0x7e0] sm:$0xff]  }
 0x149   : > { %4612 = vmatpush3.bf16.msra.mxu0 %v5066_v18  ;;  %v2781_v18 = vrot.slane %v2779_v7, 1 }
 0x14a   : > { %4634 = vmatpush3.bf16.msra.mxu1 %v5067_v19  ;;  %4613 = vmatprep.subr.bf16.mxu0 %v5068_v20  ;;  %v2805_v19 = vrot.slane %v2803_v9, 1  ;;  %v5111_v20 = vld [vmem:[%s5725_s10 + $0x6b8] sm:$0xff]  }
 0x14b   : > { %4635 = vmatprep.subr.bf16.mxu1 %v5069_v21  ;;  %v2591_v21 = vld [vmem:[%s5715_s3 + $0x60] sm:$0x11] }
 0x14d   : > { %4614 = vmatpush3.bf16.msra.mxu0 %v5070_v22  ;;  %v2794_v22 = vor.u32 %v2793_v38, %v2789_v0 }
 0x14e   : > { %4636 = vmatpush3.bf16.msra.mxu1 %v5071_v23  ;;  %4615 = vmatprep.subr.bf16.mxu0 %v5072_v24  ;;  %v2592_v23 = vld [vmem:[%s5715_s3 + $0x68] sm:$0x11]  ;;  %v4294_v24 = vcombine.high %v2591_v21, %v2591_v21 }
 0x14f   : > { %4637 = vmatprep.subr.bf16.mxu1 %v5073_v25  ;;  %v4296_v25 = vcombine.high %v2592_v23, %v2592_v23 }
 0x150   : > { %v2796_v32 = vshll.u32 %v4294_v24, 16  ;;  %v2861_v24 = vshrl.u32 %v6005_v41, 16 }
 0x151   : > { %4616 = vmatpush3.bf16.msra.mxu0 %v5074_v26  ;;  %v4293_v26 = vcombine.low %v2591_v21, %v2591_v21  ;;  %v2820_v33 = vshll.u32 %v4296_v25, 16  ;;  %v5141_v25 = vld [vmem:[%s5725_s10 + $0x7f0] sm:$0xff]  }
 0x152   : > { %4638 = vmatpush3.bf16.msra.mxu1 %v5075_v27  ;;  %4617 = vmatprep.subr.bf16.mxu0 %v5076_v28  ;;  %v4295_v27 = vcombine.low %v2592_v23, %v2592_v23  ;;  %v2818_v28 = vor.u32 %v2817_v13, %v2813_v2  ;;  %v5136_v13 = vld [vmem:[%s5725_s10 + $0x768] sm:$0xff]   ;;  %v5140_v23 = vld [vmem:[%s5725_s10 + $0x770] sm:$0xff]  }
 0x153   : > { %4639 = vmatprep.subr.bf16.mxu1 %v5077_v29  ;;  %v2782_v29 = vor.u32 %v2781_v18, %v2777_v6  ;;  %v2784_v34 = vshll.u32 %v4293_v26, 16  ;;  %v2863_v26 = vshll.u32 %v6005_v41, 16 }
 0x154   : > { %v2808_v37 = vshll.u32 %v4295_v27, 16  ;;  %v5142_v27 = vld [vmem:[%s5725_s10 + $0x730] sm:$0xff]  }
 0x155   : > { %4618 = vmatpush3.bf16.msra.mxu0 %v5078_v30  ;;  %v2806_v30 = vor.u32 %v2805_v19, %v2801_v16  ;;  %v2837_v19 = vshrl.u32 %v6003_v40, 16 }
 0x156   : > { %4640 = vmatpush3.bf16.msra.mxu1 %v5079_v31  ;;  %4647 = vmatprep.subr.bf16.mxu0 %v5080_v42  ;;  %v5117_v31 = vld [vmem:[%s5725_s10 + $0x7c0] sm:$0xff]  }
 0x157   : > { %4669 = vmatprep.subr.bf16.mxu1 %v5081_v45  ;;  %v5118_v42 = vld [vmem:[%s5725_s10 + $0x700] sm:$0xff]   ;;  %v2798_v45 = vrot.slane %v2796_v32, 1  ;;  %v2825_v32 = vshrl.u32 %v6008_v43, 16 }
 0x158   : > { %2528 = vmatmul.mubr.bf16.vlgmr.msra.gmra.mrb[20].mxu0 %v6008_v43 }
 0x159   : > { %2569 = vmatmul.mubr.bf16.vlgmr.msra.gmra.mrb[20].mxu1 %v6010_v44  ;;  %4648 = vmatpush3.bf16.msra.mxu0 %v5082_v46  ;;  %v2822_v46 = vrot.slane %v2820_v33, 1  ;;  %v2865_v33 = vrot.slane %v2863_v26, 1 }
 0x15a   : > { %4670 = vmatpush3.bf16.msra.mxu1 %v5083_v47  ;;  %4649 = vmatprep.subr.bf16.mxu0 %v5084_v48  ;;  %v2786_v47 = vrot.slane %v2784_v34, 1  ;;  %v2810_v48 = vrot.slane %v2808_v37, 1  ;;  %v2593_v34 = vld [vmem:[%s5715_s3 + $0x70] sm:$0x11]  ;;  %v2849_v37 = vshrl.u32 %v6010_v44, 16 }
 0x15b   : > { %4671 = vmatprep.subr.bf16.mxu1 %v5085_v49  ;;  %v5119_v49 = vld [vmem:[%s5725_s10 + $0x780] sm:$0xff]  }
 0x15d   : > { %4650 = vmatpush3.bf16.msra.mxu0 %v5086_v50  ;;  %v5120_v50 = vld [vmem:[%s5725_s10 + $0x748] sm:$0xff]  }
 0x15e   : > { %4672 = vmatpush3.bf16.msra.mxu1 %v5087_v51  ;;  %4651 = vmatprep.subr.bf16.mxu0 %v5088_v36  ;;  %v2799_v51 = vsel %vm1193_vm0, %v2794_v22, %v2798_v45  ;;  %v2823_v36 = vsel %vm1193_vm0, %v2818_v28, %v2822_v46  ;;  %v2839_v22 = vshll.u32 %v6003_v40, 16  ;;  %v5143_v28 = vld [vmem:[%s5725_s10 + $0x7b0] sm:$0xff]   ;;  %v5144_v40 = vld [vmem:[%s5725_s10 + $0x778] sm:$0xff]  }
 0x15f   : > { %4673 = vmatprep.subr.bf16.mxu1 %v5089_v52  ;;  %v2787_v52 = vsel %vm1193_vm0, %v2782_v29, %v2786_v47  ;;  %3296 = vmatprep.mubr.bf16.mxu0 %v2799_v51  ;;  %v2851_v29 = vshll.u32 %v6010_v44, 16  ;;  %v5146_v45 = vld [vmem:[%s5725_s10 + $0x738] sm:$0xff]   ;;  %v4298_v47 = vcombine.high %v2593_v34, %v2593_v34 }
 0x160   : > { %3337 = vmatprep.mubr.bf16.mxu1 %v2823_v36  ;;  %v5147_v46 = vld [vmem:[%s5725_s10 + $0x7b8] sm:$0xff]  }
 0x161   : > { %4652 = vmatpush3.bf16.msra.mxu0 %v5090_v53  ;;  %v2811_v53 = vsel %vm1193_vm0, %v2806_v30, %v2810_v48  ;;  %v2841_v30 = vrot.slane %v2839_v22, 1  ;;  %v2594_v48 = vld [vmem:[%s5715_s3 + $0x78] sm:$0x11]  ;;  %s6125_s3 = scalar_lea.sflag [#allocation5], %s270_s21 }
 0x162   : > { %4674 = vmatpush3.bf16.msra.mxu1 %v5091_v54  ;;  %4653 = vmatprep.subr.bf16.mxu0 %v5092_v55  ;;  %v5121_v54 = vld [vmem:[%s5725_s10 + $0x7c8] sm:$0xff]   ;;  %v4299_v51 = vcombine.low %v2594_v48, %v2594_v48 }
 0x163   : > { %4675 = vmatprep.subr.bf16.mxu1 %v5093_v39  ;;  %v5122_v55 = vld [vmem:[%s5725_s10 + $0x708] sm:$0xff]   ;;  %v2842_v36 = vor.u32 %v2841_v30, %v2837_v19 }
 0x164   : > { %v5123_v39 = vld [vmem:[%s5725_s10 + $0x788] sm:$0xff]   ;;  %v2856_v44 = vshll.u32 %v4299_v51, 16 }
 0x165   : > { %4654 = vmatpush3.bf16.msra.mxu0 %v5094_v11  ;;  %v5124_v11 = vld [vmem:[%s5725_s10 + $0x750] sm:$0xff]  }
 0x166   : > { %4676 = vmatpush3.bf16.msra.mxu1 %v5095_v56  ;;  %4655 = vmatprep.subr.bf16.mxu0 %v5096_v57  ;;  %v5125_v56 = vld [vmem:[%s5725_s10 + $0x7d0] sm:$0xff]  }
 0x167   : > { %4677 = vmatprep.subr.bf16.mxu1 %v5097_v58  ;;  %v5126_v57 = vld [vmem:[%s5725_s10 + $0x710] sm:$0xff]  }
 0x168   : > { %v5127_v58 = vld [vmem:[%s5725_s10 + $0x790] sm:$0xff]  }
 0x169   : > { %4656 = vmatpush3.bf16.msra.mxu0 %v5098_v35  ;;  %v5128_v35 = vld [vmem:[%s5725_s10 + $0x758] sm:$0xff]  }
 0x16a   : > { %4678 = vmatpush3.bf16.msra.mxu1 %v5099_v61  ;;  %4657 = vmatprep.subr.bf16.mxu0 %v5100_v62  ;;  %v5130_v62 = vld [vmem:[%s5725_s10 + $0x718] sm:$0xff]  }
 0x16b   : > { %4679 = vmatprep.subr.bf16.mxu1 %v5101_v1  ;;  %v5131_v1 = vld [vmem:[%s5725_s10 + $0x798] sm:$0xff]  }
 0x16d   : > { %4658 = vmatpush3.bf16.msra.mxu0 %v5102_v3  ;;  %v5132_v3 = vld [vmem:[%s5725_s10 + $0x760] sm:$0xff]  }
 0x16e   : > { %4680 = vmatpush3.bf16.msra.mxu1 %v5103_v4  ;;  %4659 = vmatprep.subr.bf16.mxu0 %v5104_v14 }
 0x16f   : > { %4681 = vmatprep.subr.bf16.mxu1 %v5105_v59  ;;  %v5134_v59 = vld [vmem:[%s5725_s10 + $0x720] sm:$0xff]  }
 0x171   : > { %4660 = vmatpush3.bf16.msra.mxu0 %v5106_v8  ;;  %v5135_v8 = vld [vmem:[%s5725_s10 + $0x7a0] sm:$0xff]  }
 0x172   : > { %4682 = vmatpush3.bf16.msra.mxu1 %v5107_v12  ;;  %4661 = vmatprep.subr.bf16.mxu0 %v5108_v60 }
 0x173   : > { %4683 = vmatprep.subr.bf16.mxu1 %v5109_v17  ;;  %v5137_v17 = vld [vmem:[%s5725_s10 + $0x7e8] sm:$0xff]  }
 0x175   : > { %4662 = vmatpush3.bf16.msra.mxu0 %v5110_v63  ;;  %v5138_v63 = vld [vmem:[%s5725_s10 + $0x728] sm:$0xff]  }
 0x176   : > { %4684 = vmatpush3.bf16.msra.mxu1 %v5111_v20  ;;  %4691 = vmatprep.subr.bf16.mxu0 %v5116_v10  ;;  %v5139_v20 = vld [vmem:[%s5725_s10 + $0x7a8] sm:$0xff]   ;;  %v2827_v10 = vshll.u32 %v6008_v43, 16 }
 0x177   : > { %4713 = vmatprep.subr.bf16.mxu1 %v5117_v31  ;;  %v5145_v31 = vld [vmem:[%s5725_s10 + $0x7f8] sm:$0xff]  }
 0x178   : > { %3297 = vmatmul.mubr.bf16.vlgmr.msra.gmra.mrb[24].mxu0 %v2787_v52  ;;  %v2829_v41 = vrot.slane %v2827_v10, 1  ;;  %v2844_v52 = vshll.u32 %v4298_v47, 16 }
 0x179   : > { %3338 = vmatmul.mubr.bf16.vlgmr.msra.gmra.mrb[24].mxu1 %v2811_v53  ;;  %4692 = vmatpush3.bf16.msra.mxu0 %v5118_v42  ;;  %v2853_v42 = vrot.slane %v2851_v29, 1 }
 0x17a   : > { %4714 = vmatpush3.bf16.msra.mxu1 %v5119_v49  ;;  %4693 = vmatprep.subr.bf16.mxu0 %v5120_v50  ;;  %v4297_v49 = vcombine.low %v2593_v34, %v2593_v34  ;;  %v4300_v50 = vcombine.high %v2594_v48, %v2594_v48  ;;  %v2830_v43 = vor.u32 %v2829_v41, %v2825_v32 }
 0x17b   : > { %4715 = vmatprep.subr.bf16.mxu1 %v5121_v54  ;;  %v2866_v54 = vor.u32 %v2865_v33, %v2861_v24 }
 0x17c   : > { %v2832_v53 = vshll.u32 %v4297_v49, 16 }
 0x17d   : > { %4694 = vmatpush3.bf16.msra.mxu0 %v5122_v55  ;;  %v2868_v55 = vshll.u32 %v4300_v50, 16 }
 0x17e   : > { %4716 = vmatpush3.bf16.msra.mxu1 %v5123_v39  ;;  %4695 = vmatprep.subr.bf16.mxu0 %v5124_v11  ;;  %v2854_v39 = vor.u32 %v2853_v42, %v2849_v37  ;;  %v2846_v11 = vrot.slane %v2844_v52, 1 }
 0x17f   : > { %4717 = vmatprep.subr.bf16.mxu1 %v5125_v56  ;;  %v2834_v56 = vrot.slane %v2832_v53, 1 }
 0x181   : > { %4696 = vmatpush3.bf16.msra.mxu0 %v5126_v57  ;;  %v2870_v57 = vrot.slane %v2868_v55, 1 }
 0x182   : > { %4718 = vmatpush3.bf16.msra.mxu1 %v5127_v58  ;;  %4697 = vmatprep.subr.bf16.mxu0 %v5128_v35  ;;  %v2858_v58 = vrot.slane %v2856_v44, 1  ;;  %v2847_v35 = vsel %vm1193_vm0, %v2842_v36, %v2846_v11 }
 0x183   : > { %4719 = vmatprep.subr.bf16.mxu1 %v5129_v15  ;;  %v2835_v15 = vsel %vm1193_vm0, %v2830_v43, %v2834_v56  ;;  %3378 = vmatprep.mubr.bf16.mxu0 %v2847_v35 }
 0x185   : > { %4698 = vmatpush3.bf16.msra.mxu0 %v5130_v62  ;;  %v2859_v62 = vsel %vm1193_vm0, %v2854_v39, %v2858_v58 }
 0x186   : > { %4720 = vmatpush3.bf16.msra.mxu1 %v5131_v1  ;;  %4699 = vmatprep.subr.bf16.mxu0 %v5132_v3 }
 0x187   : > { %4721 = vmatprep.subr.bf16.mxu1 %v5133_v5 }
 0x189   : > { %4700 = vmatpush3.bf16.msra.mxu0 %v5134_v59 }
 0x18a   : > { %4722 = vmatpush3.bf16.msra.mxu1 %v5135_v8  ;;  %4701 = vmatprep.subr.bf16.mxu0 %v5136_v13 }
 0x18b   : > { %v4399_v61 = vpop.f32.mrb[0].mxu0  ;;  %4723 = vmatprep.subr.bf16.mxu1 %v5137_v17 }
 0x18c   : > { %v4421_v0 = vpop.f32.mrb[0].mxu1  ;;  %v4400_v2 = vpop.f32.mrb[1].mxu0 }
 0x18d   : > { %v4401_v38 = vadd.f32 %v4400_v2, %v4399_v61  ;;  %v4422_v4 = vpop.f32.mrb[1].mxu1  ;;  %v4402_v6 = vpop.f32.mrb[2].mxu0  ;;  %4702 = vmatpush3.bf16.msra.mxu0 %v5138_v63  ;;  %v2871_v61 = vsel %vm1193_vm0, %v2866_v54, %v2870_v57 }
 0x18e   : > { %v4423_v14 = vadd.f32 %v4422_v4, %v4421_v0  ;;  %v4424_v7 = vpop.f32.mrb[2].mxu1  ;;  %v4403_v12 = vpop.f32.mrb[3].mxu0  ;;  %4724 = vmatpush3.bf16.msra.mxu1 %v5139_v20  ;;  %4703 = vmatprep.subr.bf16.mxu0 %v5140_v23 }
 0x18f   : > { %v4404_v60 = vadd.f32 %v4403_v12, %v4402_v6  ;;  %v4425_v16 = vpop.f32.mrb[3].mxu1  ;;  %4725 = vmatprep.subr.bf16.mxu1 %v5141_v25  ;;  %3419 = vmatprep.mubr.bf16.mxu1 %v2871_v61 }
 0x190   : > { %v6081_v9 = vadd.f32 %v4423_v14, %v4401_v38  ;;  %v4426_v18 = vadd.f32 %v4425_v16, %v4424_v7 }
 0x191   : > { %4704 = vmatpush3.bf16.msra.mxu0 %v5142_v27 }
 0x192   : > { %v6088_v21 = vadd.f32 %v4426_v18, %v4404_v60  ;;  %4726 = vmatpush3.bf16.msra.mxu1 %v5143_v28  ;;  %4705 = vmatprep.subr.bf16.mxu0 %v5144_v40 }
 0x193   : > { %4727 = vmatprep.subr.bf16.mxu1 %v5145_v31 }
 0x195   : > { %4706 = vmatpush3.bf16.msra.mxu0 %v5146_v45 }
 0x196   : > { %4728 = vmatpush3.bf16.msra.mxu1 %v5147_v46 }
 0x198   : > { %3379 = vmatmul.mubr.bf16.vlgmr.msra.gmra.mrb[28].mxu0 %v2835_v15 }
 0x199   : > { %3420 = vmatmul.mubr.bf16.vlgmr.msra.gmra.mrb[28].mxu1 %v2859_v62 }
 0x1ab   : > { %v4443_v0 = vpop.f32.mrb[4].mxu0 }
 0x1ac   : > { %v4465_v1 = vpop.f32.mrb[4].mxu1  ;;  %v4444_v2 = vpop.f32.mrb[5].mxu0 }
 0x1ad   : > { %v4445_v3 = vadd.f32 %v4444_v2, %v4443_v0  ;;  %v4466_v38 = vpop.f32.mrb[5].mxu1  ;;  %v4446_v4 = vpop.f32.mrb[6].mxu0 }
 0x1ae   : > { %v4467_v5 = vadd.f32 %v4466_v38, %v4465_v1  ;;  %v4468_v14 = vpop.f32.mrb[6].mxu1  ;;  %v4447_v6 = vpop.f32.mrb[7].mxu0 }
 0x1af   : > { %v951_v59 = vadd.f32 %v4445_v3, %v6081_v9  ;;  %v4448_v7 = vadd.f32 %v4447_v6, %v4446_v4  ;;  %v4469_v8 = vpop.f32.mrb[7].mxu1 }
 0x1b0   : > { %v4470_v12 = vadd.f32 %v4469_v8, %v4468_v14 }
 0x1b1   : > { %v992_v13 = vadd.f32 %v4467_v5, %v951_v59  ;;  %v954_v60 = vadd.f32 %v4448_v7, %v6088_v21 }
 0x1b3   : > { %v995_v16 = vadd.f32 %v4470_v12, %v954_v60 }
 0x1cb   : > { %v4487_v17 = vpop.f32.mrb[8].mxu0 }
 0x1cc   : > { %v4509_v18 = vpop.f32.mrb[8].mxu1  ;;  %v4488_v63 = vpop.f32.mrb[9].mxu0 }
 0x1cd   : > { %v4489_v19 = vadd.f32 %v4488_v63, %v4487_v17  ;;  %v4510_v20 = vpop.f32.mrb[9].mxu1  ;;  %v4490_v22 = vpop.f32.mrb[10].mxu0 }
 0x1ce   : > { %v4511_v23 = vadd.f32 %v4510_v20, %v4509_v18  ;;  %v4512_v24 = vpop.f32.mrb[10].mxu1  ;;  %v4491_v25 = vpop.f32.mrb[11].mxu0 }
 0x1cf   : > { %v4492_v26 = vadd.f32 %v4491_v25, %v4490_v22  ;;  %v4513_v27 = vpop.f32.mrb[11].mxu1 }
 0x1d0   : > { %v1758_v10 = vadd.f32 %v4511_v23, %v4489_v19  ;;  %v4514_v9 = vadd.f32 %v4513_v27, %v4512_v24 }
 0x1d2   : > { %v1761_v28 = vadd.f32 %v4514_v9, %v4492_v26 }
 0x1eb   : > { %v4531_v29 = vpop.f32.mrb[12].mxu0 }
 0x1ec   : > { %v4553_v40 = vpop.f32.mrb[12].mxu1  ;;  %v4532_v30 = vpop.f32.mrb[13].mxu0 }
 0x1ed   : > { %v4554_v31 = vpop.f32.mrb[13].mxu1  ;;  %v4533_v21 = vadd.f32 %v4532_v30, %v4531_v29  ;;  %v4534_v33 = vpop.f32.mrb[14].mxu0  ;;  %v3445_v29 = vlaneseq }
 0x1ee   : > { %v4555_v32 = vadd.f32 %v4554_v31, %v4553_v40  ;;  %v4556_v41 = vpop.f32.mrb[14].mxu1  ;;  %v4535_v34 = vpop.f32.mrb[15].mxu0 }
 0x1ef   : > { %v4557_v37 = vpop.f32.mrb[15].mxu1  ;;  %v1799_v42 = vadd.f32 %v4533_v21, %v1758_v10  ;;  %v4536_v45 = vadd.f32 %v4535_v34, %v4534_v33  ;;  %v3446_v40 = vshrl.u32 %v3445_v29, 7 }
 0x1f0   : > { %v4558_v46 = vadd.f32 %v4557_v37, %v4556_v41 }
 0x1f1   : > { %v1840_v47 = vadd.f32 %v4555_v32, %v1799_v42  ;;  %v1802_v48 = vadd.f32 %v4536_v45, %v1761_v28  ;;  %v3447_v31 = vadd.s32 8, %v3446_v40 }
 0x1f3   : > { %v1848_v49 = vadd.f32 %v1840_v47, %v992_v13  ;;  %v1843_v50 = vadd.f32 %v4558_v46, %v1802_v48  ;;  %v3452_v47 = vand.u32 7, %v3446_v40 }
 0x1f5   : > { %v1849_v51 = vadd.f32 %v1843_v50, %v995_v16  ;;  %v3459_v50 = vand.u32 7, %v3447_v31  ;;  %vm3472_vm1 = vcmp.lt.s32.totalorder %v3452_v47, 2 }
 0x1f7   : > { %vm3473_vm2 = vcmp.lt.s32.totalorder %v3459_v50, 2 }
 0x20b   : > { %v4575_v36 = vpop.f32.mrb[16].mxu0 }
 0x20c   : > { %v4597_v52 = vpop.f32.mrb[16].mxu1  ;;  %v4576_v43 = vpop.f32.mrb[17].mxu0 }
 0x20d   : > { %v4598_v53 = vpop.f32.mrb[17].mxu1  ;;  %v4577_v54 = vadd.f32 %v4576_v43, %v4575_v36  ;;  %v4578_v39 = vpop.f32.mrb[18].mxu0  ;;  %v4365_v43 = vld [vmem:[%s241_s4] ss:$0 sm:$0xff] }
 0x20e   : > { %v4599_v55 = vadd.f32 %v4598_v53, %v4597_v52  ;;  %v4600_v44 = vpop.f32.mrb[18].mxu1  ;;  %v4579_v11 = vpop.f32.mrb[19].mxu0 }
 0x20f   : > { %v4601_v56 = vpop.f32.mrb[19].mxu1  ;;  %v4580_v58 = vadd.f32 %v4579_v11, %v4578_v39 }
 0x210   : > { %v2489_v57 = vadd.f32 %v4599_v55, %v4577_v54  ;;  %v4602_v35 = vadd.f32 %v4601_v56, %v4600_v44  ;;  %v5404_v44 = vmov 0.0  }
 0x211   : > { %v4366_v11 = vsel %vm3472_vm1, 1.0, %v5404_v44  ;;  %v4367_v56 = vsel %vm3473_vm2, 1.0, %v5404_v44 }
 0x212   : > { %v2492_v15 = vadd.f32 %v4602_v35, %v4580_v58 }
 0x22b   : > { %v4619_v61 = vpop.f32.mrb[20].mxu0 }
 0x22c   : > { %v4641_v62 = vpop.f32.mrb[20].mxu1  ;;  %v4620_v0 = vpop.f32.mrb[21].mxu0 }
 0x22d   : > { %v4642_v1 = vpop.f32.mrb[21].mxu1  ;;  %v4621_v2 = vadd.f32 %v4620_v0, %v4619_v61  ;;  %v4622_v38 = vpop.f32.mrb[22].mxu0 }
 0x22e   : > { %v4643_v3 = vadd.f32 %v4642_v1, %v4641_v62  ;;  %v4644_v4 = vpop.f32.mrb[22].mxu1  ;;  %v4623_v5 = vpop.f32.mrb[23].mxu0 }
 0x22f   : > { %v4645_v14 = vpop.f32.mrb[23].mxu1  ;;  %v2530_v6 = vadd.f32 %v4621_v2, %v2489_v57  ;;  %v4624_v59 = vadd.f32 %v4623_v5, %v4622_v38 }
 0x230   : > { %v4646_v7 = vadd.f32 %v4645_v14, %v4644_v4 }
 0x231   : > { %v2571_v8 = vadd.f32 %v4643_v3, %v2530_v6  ;;  %v2533_v12 = vadd.f32 %v4624_v59, %v2492_v15 }
 0x233   : > { %v2579_v13 = vadd.f32 %v2571_v8, %v1848_v49  ;;  %v2574_v60 = vadd.f32 %v4646_v7, %v2533_v12 }
 0x235   : > { %v2580_v16 = vadd.f32 %v2574_v60, %v1849_v51 }
 0x24b   : > { %v4663_v17 = vpop.f32.mrb[24].mxu0 }
 0x24c   : > { %v4685_v18 = vpop.f32.mrb[24].mxu1  ;;  %v4664_v63 = vpop.f32.mrb[25].mxu0 }
 0x24d   : > { %v4686_v19 = vpop.f32.mrb[25].mxu1  ;;  %v4665_v20 = vadd.f32 %v4664_v63, %v4663_v17  ;;  %v4666_v23 = vpop.f32.mrb[26].mxu0 }
 0x24e   : > { %v4687_v22 = vadd.f32 %v4686_v19, %v4685_v18  ;;  %v4688_v24 = vpop.f32.mrb[26].mxu1  ;;  %v4667_v25 = vpop.f32.mrb[27].mxu0 }
 0x24f   : > { %v4689_v26 = vpop.f32.mrb[27].mxu1  ;;  %v4668_v10 = vadd.f32 %v4667_v25, %v4666_v23 }
 0x250   : > { %v3340_v27 = vadd.f32 %v4687_v22, %v4665_v20  ;;  %v4690_v9 = vadd.f32 %v4689_v26, %v4688_v24 }
 0x252   : > { %v3343_v28 = vadd.f32 %v4690_v9, %v4668_v10 }
 0x26b   : > { %v4707_v30 = vpop.f32.mrb[28].mxu0 }
 0x26c   : > { %v4729_v21 = vpop.f32.mrb[28].mxu1  ;;  %v4708_v32 = vpop.f32.mrb[29].mxu0 }
 0x26d   : > { %v4709_v33 = vadd.f32 %v4708_v32, %v4707_v30  ;;  %v4730_v41 = vpop.f32.mrb[29].mxu1  ;;  %v4710_v34 = vpop.f32.mrb[30].mxu0 }
 0x26e   : > { %v4731_v37 = vadd.f32 %v4730_v41, %v4729_v21  ;;  %v4732_v42 = vpop.f32.mrb[30].mxu1  ;;  %v4711_v45 = vpop.f32.mrb[31].mxu0 }
 0x26f   : > { %v3381_v46 = vadd.f32 %v4709_v33, %v3340_v27  ;;  %v4712_v48 = vadd.f32 %v4711_v45, %v4710_v34  ;;  %v4733_v49 = vpop.f32.mrb[31].mxu1 }
 0x270   : > { %v4734_v51 = vadd.f32 %v4733_v49, %v4732_v42 }
 0x271   : > { %v3422_v36 = vadd.f32 %v4731_v37, %v3381_v46  ;;  %v3384_v52 = vadd.f32 %v4712_v48, %v3343_v28 }
 0x273   : > { %v3430_v53 = vadd.f32 %v3422_v36, %v2579_v13  ;;  %v3425_v54 = vadd.f32 %v4734_v51, %v3384_v52 }
 0x275   : > { %v3443_v55 = vadd.f32 %v4365_v43, %v3430_v53  ;;  %v3431_v39 = vadd.f32 %v3425_v54, %v2580_v16 }
 0x277   : > { %v3444_v57 = vadd.f32 %v4365_v43, %v3431_v39  ;;  %v3478_v58 = vmul.f32 %v4366_v11, %v3443_v55 }
 0x279   : > { %v3479_v35 = vmul.f32 %v4367_v56, %v3444_v57 }
 0x27b   : > { %v3480_v15 = vadd.f32 %v3479_v35, %v3478_v58 }
 0x27d   : > { %v3481_v61 = vrot.slane %v3480_v15, 4 }
 0x27f   : > { %v3482_v62 = vadd.f32 %v3481_v61, %v3480_v15 }
 0x281   : > { %v3483_v0 = vrot.slane %v3482_v62, 2 }
 0x283   : > { %v3484_v1 = vadd.f32 %v3483_v0, %v3482_v62 }
 0x285   : > { %v3485_v2 = vrot.slane %v3484_v1, 1 }
 0x287   : > { %v3486_v3 = vadd.f32 %v3485_v2, %v3484_v1 }
 0x289   : > { %v3487_v38 = vmul.f32 0.25, %v3486_v3 }
 0x28b   : > { %v3488_v4 = vsub.f32 %v3443_v55, %v3487_v38  ;;  %v3489_v5 = vsub.f32 %v3444_v57, %v3487_v38 }
 0x28d   : > { %v3490_v14 = vmul.f32 %v3488_v4, %v3488_v4  ;;  %v3491_v6 = vmul.f32 %v3489_v5, %v3489_v5 }
 0x28f   : > { %v3492_v59 = vmul.f32 %v4366_v11, %v3490_v14  ;;  %v3493_v7 = vmul.f32 %v4367_v56, %v3491_v6 }
 0x291   : > { %v3494_v8 = vadd.f32 %v3493_v7, %v3492_v59 }
 0x293   : > { %v3495_v12 = vrot.slane %v3494_v8, 4 }
 0x295   : > { %v3496_v13 = vadd.f32 %v3495_v12, %v3494_v8 }
 0x297   : > { %v3497_v60 = vrot.slane %v3496_v13, 2 }
 0x299   : > { %v3498_v16 = vadd.f32 %v3497_v60, %v3496_v13 }
 0x29b   : > { %v3499_v17 = vrot.slane %v3498_v16, 1 }
 0x29d   : > { %v3500_v18 = vadd.f32 %v3499_v17, %v3498_v16 }
 0x29f   : > { %v3501_v63 = vmul.f32 0.25, %v3500_v18 }
 0x2a1   : > { %v3502_v19 = vadd.f32 1e-05, %v3501_v63 }
 0x2a3   : > { %5152 = vrsqrt.f32 %v3502_v19 }
 0x2ad   : > { %v5153_v20 = vpop.eup %5152 }
 0x2ae   : > { %v3504_v22 = vmul.f32 %v5153_v20, %v3488_v4  ;;  %v3505_v23 = vmul.f32 %v5153_v20, %v3489_v5 }
 0x2b0   : > { %vm3506_vm3 = vcmp.gt.f32.partialorder %v3504_v22, 0.0  ;;  %vm3507_vm4 = vcmp.gt.f32.partialorder %v3505_v23, 0.0  ;;  %v3508_v24 = vmul.f32 0.2, %v3504_v22  ;;  %v3509_v25 = vmul.f32 0.2, %v3505_v23 }
 0x2b2   : > { %v3510_v26 = vsel %vm3506_vm3, %v3504_v22, %v3508_v24  ;;  %v3511_v27 = vsel %vm3507_vm4, %v3505_v23, %v3509_v25 }
 0x2b3   : > { %v4381_v10 = vpack.c.bf16 %v3511_v27, %v3510_v26 }
 0x2b5   : > { %4382 = vst [vmem:[%s272_s22] sm:$0xff] %v4381_v10  }
 0x2b6   : > { %5257 = shalt.err (!%p5254_p1)
}
 0x2b7   : > { %s5258_s10 = scalar_lea.hbm %s6121_s20, 128  ;;  %s5262_s7 = scalar_lea.hbm %s6253_s5, 1024 }
 0x2b8   : > { %p5259_p0 = scmp.ne.s32.totalorder %s6121_s20, %s5258_s10  ;;  %p5263_p8 = scmp.lt.u32.totalorder %s6121_s20, %s6253_s5 }
 0x2b9   : > { %p5264_p5 = scmp.lt.u32.totalorder %s5262_s7, %s5258_s10  ;;  %p5266_p2 = scmp.lt.u32.totalorder %s5258_s10, %s6121_s20 }
 0x2ba   : > { %p5260_p7 = pnand %p5259_p0, %p6254_p11 }
 0x2bb   : > { %p5265_p6 = por %p5264_p5, %p5263_p8 }
 0x2bc   : > { %p5261_p13 = pneg %p5260_p7 }
 0x2bd   : > { %p5267_p10 = por %p5266_p2, %p5265_p6 }
 0x2bf   : > { %p5268_p12 = pnand %p5267_p10, %p5261_p13 }
 0x2c1   : > { %5271 = shalt.err (!%p5268_p12)
}
 0x2c2   : > { %s5406_s1 = smov 64   ;;  %s5407_s9 = smov 256  }
 0x2c3   : > { %s5408_s24 = smov 4  }
 0x2c4   : > { %4741 = dma.vmem_to_hbm [thread:$0]  (%p6254_p11), %s6123_s18, 128, %s6121_s20, %s6125_s3, %s5406_s1, %s5407_s9, %s5408_s24  }
 0x2c5 PF: > { %p4758_p3 = scmp.ge.s32.totalorder %s5394_s25, 2  ;;  %s3552_s22 = sand.u32 1, %s5342_s12  }
 0x2c6   : > { %p6255_p9 = scmp.ne.s32.totalorder %s6241_s8, 0  ;;  %s3553_s26 = scalar_lea.sflag [#allocation5], %s3552_s22 }
 0x2c8   : > { %p4754_p4 = pnand %p4758_p3, %p6255_p9 }
 0x2ca   : > { %5337 = dma.done.wait (!%p4754_p4), %s3553_s26, 128  }
 0x2cb   : > { %5339 = vsyncadd (!%p4754_p4), %s3553_s26, 4294967168  ;;  %s22_s25 = sadd.s32 1, %s5394_s25   ;;  %s6257_s28 = sld [smem:[#allocation21_spill]] }
 0x2cc   : > { %p6154_p1 = scmp.ge.s32.totalorder %s22_s25, 10   ;;  %s6258_s18 = sld [smem:[#allocation19_spill]] }
 0x2cd   : > { %s6259_s20 = sld [smem:[#allocation13_spill]]  ;;  %s6260_s3 = sld [smem:[#allocation20_spill]] }
 0x2ce   : > { %s6261_s22 = sld [smem:[#allocation16_spill]]  ;;  %s6262_s8 = sld [smem:[#allocation17_spill]] }
 0x2cf   : > { %s6263_s24 = sld [smem:[#allocation18_spill]]  ;;  %s6265_s12 = smov %s5346_s13 }
 0x2d0   : > { %s6266_s13 = smov %s5350_s14  ;;  %s6268_s15 = smov %s5358_s16 }
 0x2d1   : > { %s6267_s14 = smov %s6257_s28  ;;  %s6269_s16 = smov %s5362_s17 }
 0x2d2   : > { %s6270_s17 = smov %s6258_s18  ;;  %s6271_s18 = smov %s5370_s19 }
 0x2d3   : > { %s6272_s19 = smov %s6259_s20  ;;  %s6273_s20 = smov %s6260_s3 }
 0x2d4   : > { %s6274_s21 = smov %s5386_s23  ;;  %s6275_s23 = smov %s6262_s8 }
 0x2d5   :  { %21 = sbr.rel (!%p6154_p1) target bundleno = 16 (0x10), region = 104 }
 0x2dc   :  { %3558 = vsyncpa [#allocation4], 1 }
 0x2dd   :  { %3560 = vsyncpa [#allocation4 + $0x1], 1 }
 0x2de   :  { %3561 = vsyncpa [#allocation7], 1 }
 0x2df   :  { %3563 = vsyncpa [#allocation7 + $0x1], 1 }
 0x2e0   :  { %3564 = vsyncpa [#allocation5], 1 }
 0x2e1   :  { %3566 = vsyncpa [#allocation5 + $0x1], 1 }

// kernel: discriminator_forward.9
= control target key start
LH: loop header
LB: loop body
LE: loop exit
PB: predicated region body
PF: predicated region fallthrough
CT: control target
= control target key end

     0   :  { %8 = vsyncpa [#allocation4], 0  ;;  %s9740_s0 = inlined_call_operand.hbm [shape: bf16[2,48,512], index: 0, kind: input, shape index: {}]   ;;  %s9741_s1 = inlined_call_operand.hbm [shape: bf16[16,512,128], index: 1, kind: input, shape index: {}]   ;;  %s9742_s2 = inlined_call_operand.hbm [shape: f32[1,128], index: 2, kind: input, shape index: {}]   ;;  %s9743_s3 = inlined_call_operand.hbm [shape: f32[2,16,128], index: 3, kind: output, shape index: {}]  }
   0x1   :  { %10 = vsyncpa [#allocation4 + $0x1], 0 }
   0x2   :  { %11 = vsyncpa [#allocation7], 0 }
   0x3   :  { %12 = vsyncpa [#allocation5], 0 }
   0x4   :  { %14 = vsyncpa [#allocation5 + $0x1], 0  ;;  %s9175_s12 = smov 0   ;;  %s9177_s13 = smov 0  }
   0x5   :  { %s9179_s14 = smov 0   ;;  %s9181_s15 = smov 0  }
   0x6   :  { %s9183_s16 = smov 0   ;;  %s9185_s17 = smov 0  }
   0x7 LB: > { %s6922_s18 = sadd.s32 4294967295, %s9143_s17   ;;  %s6923_s19 = sadd.s32 4294967294, %s9143_s17   ;;  %s9143_s17 = sphi %s9185_s17, %s20_s17   ;;  %s9139_s16 = sphi %s9183_s16, %s9765_s16   ;;  %s9135_s15 = sphi %s9181_s15, %s9764_s15   ;;  %s9131_s14 = sphi %s9179_s14, %s9763_s14   ;;  %s9127_s13 = sphi %s9177_s13, %s9762_s13   ;;  %s9123_s12 = sphi %s9175_s12, %s9761_s12  }
   0x8   : > { %p52_p0 = scmp.ne.s32.totalorder %s9127_s13, %s9123_s12  ;;  %p9209_p1 = scmp.eq.s32.totalorder %s6922_s18, 0 }
   0x9   : > { %p9213_p2 = scmp.eq.s32.totalorder %s6922_s18, 1  ;;  %p126_p3 = scmp.eq.s32.totalorder %s6923_s19, 1 }
   0xa   : > { %s9748_s20 = scalar_select %p9209_p1, 1, 0 }
   0xb   : > { %p9219_p4 = por %p9209_p1, %p52_p0  ;;  %p6924_p5 = scmp.ge.s32.totalorder %s9143_s17, 1 }
   0xc   : > { %p9224_p6 = por %p126_p3, %p52_p0  ;;  %p133_p7 = scmp.lt.s32.totalorder %s9143_s17, 3 }
   0xd   : > { %s9750_s22 = scalar_select %p9219_p4, 1, 0 }
   0xe   : > { %s9751_s23 = scalar_select %p9224_p6, 1, 0 }
   0xf   : > { %p9229_p8 = pnand %p6924_p5, %p133_p7  ;;  %s9145_s25 = smov [#allocation6]  }
  0x10   : > { %s145_s26 = sshll.u32 %s9145_s25, 4  ;;  %s9146_s28 = smov [#allocation8]   ;;  %s9233_s26 = int_to_ptr.vmem [resolvable:$true] %s145_s26 }
  0x11   : > { %p8283_p9 = pneg %p9229_p8  ;;  %s159_s29 = sshll.u32 %s9146_s28, 4  ;;  %s9244_s29 = int_to_ptr.vmem [resolvable:$true] %s159_s29 }
  0x12   : > { %s8971_s5 = scalar_lea.hbm %s9741_s1, 65536 }
  0x13   : > { %p9240_p11 = pnand %p8283_p9, %p9209_p1  ;;  %p8972_p12 = scmp.ne.s32.totalorder %s9741_s1, %s8971_s5 }
  0x14   : > { %p8978_p5 = scmp.lt.u32.totalorder %s8971_s5, %s9741_s1 }
  0x15   : > { %p8973_p13 = pneg %p9240_p11 }
  0x17   : > { %p8974_p0 = pnand %p8973_p13, %p8972_p12 }
  0x19   : > { %p8975_p3 = pneg %p8974_p0 }
  0x1b   : > { %p8980_p7 = pnand %p8978_p5, %p8975_p3 }
  0x1d   : > { %8983 = shalt.err (!%p8980_p7)
}
  0x1e   : > { %s8984_s10 = scalar_lea.vmem %s9233_s26, 65536  ;;  %p8992_p1 = scmp.lt.s32.totalorder %s9233_s26, %s9233_s26 }
  0x1f   : > { %p8985_p9 = scmp.ne.s32.totalorder %s9233_s26, %s8984_s10  ;;  %p8993_p12 = scmp.lt.s32.totalorder %s8984_s10, %s8984_s10 }
  0x21   : > { %p8987_p10 = pnand %p8985_p9, %p8973_p13  ;;  %p8994_p0 = por %p8993_p12, %p8992_p1 }
  0x23   : > { %p8988_p6 = pneg %p8987_p10 }
  0x25   : > { %p8995_p4 = pnand %p8994_p0, %p8988_p6 }
  0x27   : > { %8998 = shalt.err (!%p8995_p4)
}
  0x28   : > { %s9147_s11 = smov 64   ;;  %s9148_s18 = smov 4  }
  0x29   : > { %8286 = dma.hbm_to_vmem [thread:$0]  (!%p9240_p11), %s9741_s1, 65536, %s9233_s26, [#allocation7], %s9147_s11, %s9147_s11, %s9148_s18  }
  0x2a   : > { %s8999_s4 = scalar_lea.hbm %s9742_s2, 16 }
  0x2b   : > { %p9000_p1 = scmp.ne.s32.totalorder %s9742_s2, %s8999_s4  ;;  %p9006_p10 = scmp.lt.u32.totalorder %s8999_s4, %s9742_s2 }
  0x2d   : > { %p9002_p4 = pnand %p9000_p1, %p8973_p13 }
  0x2f   : > { %p9003_p6 = pneg %p9002_p4 }
  0x31   : > { %p9008_p3 = pnand %p9006_p10, %p9003_p6 }
  0x33   : > { %9011 = shalt.err (!%p9008_p3)
}
  0x34   : > { %s9012_s26 = scalar_lea.vmem %s9244_s29, 16  ;;  %s9019_s9 = scalar_lea.vmem %s9244_s29, 32 }
  0x35   : > { %p9013_p5 = scmp.ne.s32.totalorder %s9244_s29, %s9012_s26  ;;  %p9020_p12 = scmp.lt.s32.totalorder %s9244_s29, %s9244_s29 }
  0x36   : > { %p9021_p0 = scmp.lt.s32.totalorder %s9019_s9, %s9012_s26 }
  0x37   : > { %p9015_p7 = pnand %p9013_p5, %p8973_p13 }
  0x38   : > { %p9022_p1 = por %p9021_p0, %p9020_p12 }
  0x39   : > { %p9016_p9 = pneg %p9015_p7 }
  0x3b   : > { %p9023_p4 = pnand %p9022_p1, %p9016_p9 }
  0x3d   : > { %9026 = shalt.err (!%p9023_p4)
}
  0x3e   : > { %8289 = dma.hbm_to_vmem [thread:$0]  (!%p9240_p11), %s9742_s2, 16, %s9244_s29, [#allocation7]  }
  0x3f   : > { %s32_s18 = sadd.s32 1, %s9139_s16  ;;  %s39_s19 = sadd.s32 1, %s9131_s14 }
  0x40   : > { %p34_p13 = scmp.ge.s32.totalorder %s32_s18, 2  ;;  %p46_p6 = scmp.ne.s32.totalorder %s9131_s14, %s9127_s13 }
  0x41   : > { %p47_p10 = scmp.eq.s32.totalorder %s9143_s17, 0  ;;  %p8300_p3 = scmp.lt.s32.totalorder %s9143_s17, 2 }
  0x42   : > { %s9767_s18 = smov (%p34_p13, %s32_s18), 0  ;;  %p9309_p7 = por %p9213_p2, %p46_p6 }
  0x43   : > { %p48_p5 = por %p47_p10, %p46_p6  ;;  %s36_s25 = ssub.s32 %s9139_s16, %s9767_s18 }
  0x44   : > { %s9754_s27 = scalar_select %p9309_p7, 1, 0 }
  0x45   : > { %s170_s28 = sand.u32 1, %s9131_s14   ;;  %p37_p9 = scmp.eq.s32.totalorder %s36_s25, 0 }
  0x46   : > { %s8268_s29 = smul.u32 96, %s170_s28  ;;  %p9316_p11 = pnand %p8300_p3, %p48_p5 }
  0x47   : > { %s9321_s4 = scalar_select %p37_p9, %s9131_s14, %s39_s19  }
  0x48   : > { %s8269_s5 = smul.u32 1536, %s9139_s16  ;;  %s174_s6 = scalar_lea.vmem [#allocation3], %s8268_s29 }
  0x49   : > { %s181_s7 = sshll.u32 %s174_s6, 4  ;;  %s9331_s9 = scalar_lea.sflag [#allocation4], %s170_s28  ;;  %s9329_s7 = int_to_ptr.vmem [resolvable:$true] %s181_s7 }
  0x4a   : > { %s9327_s26 = scalar_lea.hbm %s9740_s0, %s8269_s5  ;;  %p9029_p12 = pneg %p9316_p11 }
  0x4b   : > { %s9027_s10 = scalar_lea.hbm %s9327_s26, 1536  ;;  %s9032_s25 = scalar_lea.hbm %s9740_s0, 3072 }
  0x4c   : > { %p9028_p2 = scmp.ne.s32.totalorder %s9327_s26, %s9027_s10  ;;  %p9033_p4 = scmp.lt.u32.totalorder %s9327_s26, %s9740_s0 }
  0x4d   : > { %p9034_p13 = scmp.lt.u32.totalorder %s9032_s25, %s9027_s10  ;;  %p9036_p10 = scmp.lt.u32.totalorder %s9027_s10, %s9327_s26 }
  0x4e   : > { %p9030_p0 = pnand %p9029_p12, %p9028_p2 }
  0x4f   : > { %p9035_p6 = por %p9034_p13, %p9033_p4 }
  0x50   : > { %p9031_p1 = pneg %p9030_p0 }
  0x51   : > { %p9037_p3 = por %p9036_p10, %p9035_p6 }
  0x53   : > { %p9038_p5 = pnand %p9037_p3, %p9031_p1 }
  0x55   : > { %9041 = shalt.err (!%p9038_p5)
}
  0x56   : > { %s9042_s28 = scalar_lea.vmem %s9329_s7, 1536  ;;  %s9149_s6 = smov [#allocation3]  }
  0x57   : > { %p9043_p9 = scmp.ne.s32.totalorder %s9329_s7, %s9042_s28  ;;  %s9047_s21 = sshll.u32 %s9149_s6, 4  ;;  %s9048_s21 = int_to_ptr.vmem [resolvable:$false] %s9047_s21 }
  0x58   : > { %s9049_s8 = scalar_lea.vmem %s9048_s21, 3072  ;;  %p9050_p7 = scmp.lt.s32.totalorder %s9329_s7, %s9048_s21 }
  0x59   : > { %p9045_p2 = pnand %p9043_p9, %p9029_p12  ;;  %p9051_p4 = scmp.lt.s32.totalorder %s9049_s8, %s9042_s28 }
  0x5b   : > { %p9046_p0 = pneg %p9045_p2  ;;  %p9052_p13 = por %p9051_p4, %p9050_p7 }
  0x5d   : > { %p9053_p6 = pnand %p9052_p13, %p9046_p0 }
  0x5f   : > { %9056 = shalt.err (!%p9053_p6)
}
  0x60   : > { %s9150_s10 = smov 256   ;;  %s9151_s11 = smov 16  }
  0x61   : > { %8293 = dma.hbm_to_vmem [thread:$0]  (!%p9316_p11), %s9327_s26, 1536, %s9329_s7, %s9331_s9, %s9150_s10, %s9150_s10, %s9151_s11  }
  0x62   : > { %193 = sbr.rel (%p9229_p8) target bundleno = 872 (0x368), region = 32  ;;  %s9362_s19 = sand.u32 (!%p9229_p8), 1, %s9127_s13  }
  0x63   : > { %s8270_s25 = smul.u32 (!%p9229_p8), 96, %s9362_s19  ;;  %s196_s29 = scalar_lea.sflag (!%p9229_p8), [#allocation4], %s9362_s19 }
  0x64   : > { %p9756_p7 = scmp.ne.s32.totalorder (!%p9229_p8), %s9750_s22, 0 }
  0x65   : > { %s9366_s5 = scalar_lea.vmem (!%p9229_p8), [#allocation3], %s8270_s25 }
  0x69   : > { %9110 = dma.done.wait (%p9756_p7), %s196_s29, 1536  }
  0x6a   : > { %9112 = vsyncadd (%p9756_p7), %s196_s29, 4294965760  ;;  %p9757_p11 = scmp.ne.s32.totalorder %s9748_s20, 0 }
  0x6c   : > { %9114 = dma.done.wait (%p9757_p11), [#allocation7], 65552  }
  0x6d   : > { %9116 = vsyncadd (%p9757_p11), [#allocation7], 4294901744  ;;  %v8360_v0 = vld [vmem:[#allocation6 + $0x40] sm:$0xff]   ;;  %v8364_v4 = vld [vmem:[#allocation6 + $0x48] sm:$0xff]   ;;  %vm693_vm0 = vsmask.f32 7424 }
  0x6e   : > { %v8361_v1 = vld [vmem:[#allocation6 + $0xc0] sm:$0xff]   ;;  %7564 = vmatprep.subr.bf16.mxu0 %v8360_v0  ;;  %v8365_v5 = vld [vmem:[#allocation6 + $0xc8] sm:$0xff]   ;;  %v8368_v8 = vld [vmem:[#allocation6 + $0x50] sm:$0xff]   ;;  %vm1123_vm1 = vcmask 1046528   ;;  %vm1517_vm2 = vsmask.f32 6400 }
  0x6f   : > { %v8362_v2 = vld [vmem:[#allocation6] sm:$0xff]   ;;  %7586 = vmatprep.subr.bf16.mxu1 %v8361_v1  ;;  %v8366_v6 = vld [vmem:[#allocation6 + $0x8] sm:$0xff]   ;;  %v8369_v9 = vld [vmem:[#allocation6 + $0xd0] sm:$0xff]   ;;  %s6932_s20 = sshll.u32 %s9362_s19, 4  ;;  %s7563_s30 = sshll.u32 %s9135_s15, 8 }
  0x70   : > { %v8363_v3 = vld [vmem:[#allocation6 + $0x80] sm:$0xff]   ;;  %7565 = vmatpush3.bf16.msra.mxu0 %v8362_v2  ;;  %v8367_v7 = vld [vmem:[#allocation6 + $0x88] sm:$0xff]   ;;  %v8370_v10 = vld [vmem:[#allocation6 + $0x10] sm:$0xff]   ;;  %s229_s22 = scalar_lea.vmem [#allocation9], %s6932_s20  ;;  %s9689_s9 = scalar_lea.hbm %s9743_s3, %s7563_s30 }
  0x71   : > { %7587 = vmatpush3.bf16.msra.mxu1 %v8363_v3  ;;  %7566 = vmatprep.subr.bf16.mxu0 %v8364_v4  ;;  %v8371_v11 = vld [vmem:[#allocation6 + $0x90] sm:$0xff]   ;;  %v8372_v12 = vld [vmem:[#allocation6 + $0x58] sm:$0xff]   ;;  %v8376_v16 = vld [vmem:[#allocation6 + $0x60] sm:$0xff]   ;;  %s6819_s24 = sshll.u32 %s229_s22, 4  ;;  %s6804_s28 = scalar_lea.sflag [#allocation5], %s9362_s19  ;;  %s9691_s24 = int_to_ptr.vmem [resolvable:$true] %s6819_s24 }
  0x72   : > { %7588 = vmatprep.subr.bf16.mxu1 %v8365_v5  ;;  %v8373_v13 = vld [vmem:[#allocation6 + $0xd8] sm:$0xff]   ;;  %v8377_v17 = vld [vmem:[#allocation6 + $0xe0] sm:$0xff]   ;;  %v8380_v20 = vld [vmem:[#allocation6 + $0x68] sm:$0xff]   ;;  %s9057_s6 = scalar_lea.vmem %s9691_s24, 256  ;;  %p9758_p12 = scmp.ne.s32.totalorder %s9754_s27, 0 }
  0x73   : > { %v8374_v14 = vld [vmem:[#allocation6 + $0x18] sm:$0xff]   ;;  %v8378_v18 = vld [vmem:[#allocation6 + $0x20] sm:$0xff]   ;;  %v8381_v21 = vld [vmem:[#allocation6 + $0xe8] sm:$0xff]   ;;  %p9058_p8 = scmp.ne.s32.totalorder %s9691_s24, %s9057_s6  ;;  %s9152_s15 = smov [#allocation9]  }
  0x74   : > { %7567 = vmatpush3.bf16.msra.mxu0 %v8366_v6  ;;  %v8375_v15 = vld [vmem:[#allocation6 + $0x98] sm:$0xff]   ;;  %v8379_v19 = vld [vmem:[#allocation6 + $0xa0] sm:$0xff]   ;;  %v8382_v22 = vld [vmem:[#allocation6 + $0x28] sm:$0xff]   ;;  %s9061_s21 = sshll.u32 %s9152_s15, 4  ;;  %s9062_s21 = int_to_ptr.vmem [resolvable:$false] %s9061_s21 }
  0x75   : > { %7589 = vmatpush3.bf16.msra.mxu1 %v8367_v7  ;;  %7568 = vmatprep.subr.bf16.mxu0 %v8368_v8  ;;  %v8383_v23 = vld [vmem:[#allocation6 + $0xa8] sm:$0xff]   ;;  %v8384_v24 = vld [vmem:[#allocation6 + $0x70] sm:$0xff]   ;;  %v8388_v28 = vld [vmem:[#allocation6 + $0x78] sm:$0xff]   ;;  %p9059_p1 = pnand %p9058_p8, %p9758_p12  ;;  %s9063_s8 = scalar_lea.vmem %s9062_s21, 512 }
  0x76   : > { %7590 = vmatprep.subr.bf16.mxu1 %v8369_v9  ;;  %v8385_v25 = vld [vmem:[#allocation6 + $0xf0] sm:$0xff]   ;;  %v8389_v29 = vld [vmem:[#allocation6 + $0xf8] sm:$0xff]   ;;  %v232_v32 = vld [vmem:[%s9366_s5] sm:$0xff]  ;;  %p9064_p3 = scmp.lt.s32.totalorder %s9691_s24, %s9062_s21  ;;  %p9065_p5 = scmp.lt.s32.totalorder %s9063_s8, %s9057_s6 }
  0x77   : > { %v8386_v26 = vld [vmem:[#allocation6 + $0x30] sm:$0xff]   ;;  %v8390_v30 = vld [vmem:[#allocation6 + $0x38] sm:$0xff]   ;;  %v233_v34 = vld [vmem:[%s9366_s5 + $0x8] sm:$0xff]  ;;  %p9060_p10 = pneg %p9059_p1 }
  0x78   : > { %7569 = vmatpush3.bf16.msra.mxu0 %v8370_v10  ;;  %v8387_v27 = vld [vmem:[#allocation6 + $0xb0] sm:$0xff]   ;;  %v8391_v31 = vld [vmem:[#allocation6 + $0xb8] sm:$0xff]   ;;  %v8396_v40 = vld [vmem:[#allocation6 + $0x140] sm:$0xff]   ;;  %p9066_p9 = por %p9065_p5, %p9064_p3 }
  0x79   : > { %7591 = vmatpush3.bf16.msra.mxu1 %v8371_v11  ;;  %7570 = vmatprep.subr.bf16.mxu0 %v8372_v12  ;;  %v9378_v33 = vld [vmem:[%s9366_s5 + $0x10] sm:$0xff]  ;;  %v9388_v37 = vld [vmem:[%s9366_s5 + $0x18] sm:$0xff]  ;;  %v8397_v41 = vld [vmem:[#allocation6 + $0x1c0] sm:$0xff]  }
  0x7a   : > { %7592 = vmatprep.subr.bf16.mxu1 %v8373_v13  ;;  %v9382_v35 = vcombine.low %v232_v32, %v9378_v33  ;;  %v9385_v36 = vcombine.high %v232_v32, %v9378_v33  ;;  %v9391_v38 = vcombine.low %v233_v34, %v9388_v37  ;;  %v9394_v39 = vcombine.high %v233_v34, %v9388_v37  ;;  %v8398_v42 = vld [vmem:[#allocation6 + $0x100] sm:$0xff]   ;;  %v8400_v44 = vld [vmem:[#allocation6 + $0x148] sm:$0xff]   ;;  %v8404_v48 = vld [vmem:[#allocation6 + $0x150] sm:$0xff]   ;;  %p9067_p2 = pnand %p9066_p9, %p9060_p10 }
  0x7b   : > { %v8399_v43 = vld [vmem:[#allocation6 + $0x180] sm:$0xff]   ;;  %v8401_v45 = vld [vmem:[#allocation6 + $0x1c8] sm:$0xff]   ;;  %v8405_v49 = vld [vmem:[#allocation6 + $0x1d0] sm:$0xff]  }
  0x7c   : > { %7571 = vmatpush3.bf16.msra.mxu0 %v8374_v14  ;;  %544 = vmatprep.mubr.bf16.mxu0 %v9385_v36  ;;  %v8402_v46 = vld [vmem:[#allocation6 + $0x108] sm:$0xff]   ;;  %v8406_v50 = vld [vmem:[#allocation6 + $0x110] sm:$0xff]   ;;  %v8408_v52 = vld [vmem:[#allocation6 + $0x158] sm:$0xff]   ;;  %v709_v58 = vshll.u32 %v9385_v36, 16  ;;  %v707_v61 = vshrl.u32 %v9385_v36, 16  ;;  %v731_v63 = vshrl.u32 %v9394_v39, 16 }
  0x7d   : > { %7593 = vmatpush3.bf16.msra.mxu1 %v8375_v15  ;;  %7572 = vmatprep.subr.bf16.mxu0 %v8376_v16  ;;  %v8403_v47 = vld [vmem:[#allocation6 + $0x188] sm:$0xff]   ;;  %v8407_v51 = vld [vmem:[#allocation6 + $0x190] sm:$0xff]   ;;  %v8409_v53 = vld [vmem:[#allocation6 + $0x1d8] sm:$0xff]   ;;  %v733_v3 = vshll.u32 %v9394_v39, 16  ;;  %v695_v5 = vshrl.u32 %v9382_v35, 16  ;;  %v697_v7 = vshll.u32 %v9382_v35, 16 }
  0x7e   : > { %7594 = vmatprep.subr.bf16.mxu1 %v8377_v17  ;;  %585 = vmatprep.mubr.bf16.mxu1 %v9394_v39  ;;  %v8410_v54 = vld [vmem:[#allocation6 + $0x118] sm:$0xff]   ;;  %v8412_v56 = vld [vmem:[#allocation6 + $0x160] sm:$0xff]   ;;  %v8416_v62 = vld [vmem:[#allocation6 + $0x168] sm:$0xff]   ;;  %v711_v1 = vrot.slane %v709_v58, 1  ;;  %v721_v9 = vshll.u32 %v9391_v38, 16  ;;  %v719_v13 = vshrl.u32 %v9391_v38, 16 }
  0x7f   : > { %v8411_v55 = vld [vmem:[#allocation6 + $0x198] sm:$0xff]   ;;  %v8413_v57 = vld [vmem:[#allocation6 + $0x1e0] sm:$0xff]   ;;  %v8417_v0 = vld [vmem:[#allocation6 + $0x1e8] sm:$0xff]   ;;  %v735_v11 = vrot.slane %v733_v3, 1  ;;  %v699_v15 = vrot.slane %v697_v7, 1 }
  0x80   : > { %7573 = vmatpush3.bf16.msra.mxu0 %v8378_v18  ;;  %v8414_v59 = vld [vmem:[#allocation6 + $0x120] sm:$0xff]   ;;  %v8418_v2 = vld [vmem:[#allocation6 + $0x128] sm:$0xff]   ;;  %v8420_v6 = vld [vmem:[#allocation6 + $0x170] sm:$0xff]   ;;  %v723_v17 = vrot.slane %v721_v9, 1 }
  0x81   : > { %7595 = vmatpush3.bf16.msra.mxu1 %v8379_v19  ;;  %7574 = vmatprep.subr.bf16.mxu0 %v8380_v20  ;;  %v8415_v60 = vld [vmem:[#allocation6 + $0x1a0] sm:$0xff]   ;;  %v8419_v4 = vld [vmem:[#allocation6 + $0x1a8] sm:$0xff]   ;;  %v8421_v8 = vld [vmem:[#allocation6 + $0x1f0] sm:$0xff]  }
  0x82   : > { %7596 = vmatprep.subr.bf16.mxu1 %v8381_v21  ;;  %v8422_v10 = vld [vmem:[#allocation6 + $0x130] sm:$0xff]   ;;  %v8424_v14 = vld [vmem:[#allocation6 + $0x178] sm:$0xff]   ;;  %v600_v20 = vld [vmem:[%s9366_s5 + $0x20] sm:$0x11] }
  0x83   : > { %v8423_v12 = vld [vmem:[#allocation6 + $0x1b0] sm:$0xff]   ;;  %v8425_v16 = vld [vmem:[#allocation6 + $0x1f8] sm:$0xff]   ;;  %v601_v21 = vld [vmem:[%s9366_s5 + $0x28] sm:$0x11] }
  0x84   : > { %7575 = vmatpush3.bf16.msra.mxu0 %v8382_v22  ;;  %v8426_v18 = vld [vmem:[#allocation6 + $0x138] sm:$0xff]   ;;  %v6974_v22 = vcombine.high %v600_v20, %v600_v20  ;;  %v8455_v3 = vld [vmem:[#allocation6 + $0x2a8] sm:$0xff]   ;;  %v8459_v7 = vld [vmem:[#allocation6 + $0x2b0] sm:$0xff]  }
  0x85   : > { %7597 = vmatpush3.bf16.msra.mxu1 %v8383_v23  ;;  %7576 = vmatprep.subr.bf16.mxu0 %v8384_v24  ;;  %v8427_v19 = vld [vmem:[#allocation6 + $0x1b8] sm:$0xff]   ;;  %v6976_v23 = vcombine.high %v601_v21, %v601_v21  ;;  %v6973_v24 = vcombine.low %v600_v20, %v600_v20 }
  0x86   : > { %7598 = vmatprep.subr.bf16.mxu1 %v8385_v25  ;;  %v6975_v25 = vcombine.low %v601_v21, %v601_v21  ;;  %v714_v32 = vshll.u32 %v6974_v22, 16  ;;  %v8446_v58 = vld [vmem:[#allocation6 + $0x218] sm:$0xff]  }
  0x87   : > { %v738_v34 = vshll.u32 %v6976_v23, 16  ;;  %v8461_v9 = vld [vmem:[#allocation6 + $0x2f8] sm:$0xff]   ;;  %v8472_v23 = vld [vmem:[#allocation6 + $0x340] sm:$0xff]  }
  0x88   : > { %7577 = vmatpush3.bf16.msra.mxu0 %v8386_v26  ;;  %v8432_v26 = vld [vmem:[#allocation6 + $0x240] sm:$0xff]   ;;  %v726_v36 = vshll.u32 %v6975_v25, 16  ;;  %v716_v39 = vrot.slane %v714_v32, 1 }
  0x89   : > { %7599 = vmatpush3.bf16.msra.mxu1 %v8387_v27  ;;  %7578 = vmatprep.subr.bf16.mxu0 %v8388_v28  ;;  %v712_v27 = vor.u32 %v711_v1, %v707_v61  ;;  %v736_v28 = vor.u32 %v735_v11, %v731_v63  ;;  %v8449_v61 = vld [vmem:[#allocation6 + $0x2e0] sm:$0xff]   ;;  %v8453_v1 = vld [vmem:[#allocation6 + $0x2e8] sm:$0xff]   ;;  %v8463_v11 = vld [vmem:[#allocation6 + $0x2b8] sm:$0xff]  }
  0x8a   : > { %7600 = vmatprep.subr.bf16.mxu1 %v8389_v29  ;;  %v700_v29 = vor.u32 %v699_v15, %v695_v5  ;;  %v8451_v63 = vld [vmem:[#allocation6 + $0x2a0] sm:$0xff]   ;;  %v8457_v5 = vld [vmem:[#allocation6 + $0x2f0] sm:$0xff]  }
  0x8c   : > { %7579 = vmatpush3.bf16.msra.mxu0 %v8390_v30  ;;  %v724_v30 = vor.u32 %v723_v17, %v719_v13  ;;  %v1030_v13 = vld [vmem:[%s9366_s5 + $0x20] sm:$0x11]  ;;  %v1031_v17 = vld [vmem:[%s9366_s5 + $0x28] sm:$0x11] }
  0x8d   : > { %7601 = vmatpush3.bf16.msra.mxu1 %v8391_v31  ;;  %7608 = vmatprep.subr.bf16.mxu0 %v8396_v40  ;;  %v8433_v31 = vld [vmem:[#allocation6 + $0x2c0] sm:$0xff]   ;;  %v740_v40 = vrot.slane %v738_v34, 1  ;;  %v7014_v15 = vcombine.high %v1030_v13, %v1030_v13  ;;  %v7016_v20 = vcombine.high %v1031_v17, %v1031_v17  ;;  %v7013_v21 = vcombine.low %v1030_v13, %v1030_v13 }
  0x8e   : > { %7630 = vmatprep.subr.bf16.mxu1 %v8397_v41 }
  0x8f   : > { %545 = vmatmul.mubr.bf16.vlgmr.msra.gmra.mrb[0].mxu0 %v9382_v35  ;;  %v702_v35 = vshll.u32 %v6973_v24, 16  ;;  %v1128_v25 = vrot.slane %v7014_v15, 1 }
  0x90   : > { %586 = vmatmul.mubr.bf16.vlgmr.msra.gmra.mrb[0].mxu1 %v9391_v38  ;;  %7609 = vmatpush3.bf16.msra.mxu0 %v8398_v42  ;;  %v8434_v38 = vld [vmem:[#allocation6 + $0x200] sm:$0xff]   ;;  %v728_v42 = vrot.slane %v726_v36, 1 }
  0x91   : > { %7631 = vmatpush3.bf16.msra.mxu1 %v8399_v43  ;;  %7610 = vmatprep.subr.bf16.mxu0 %v8400_v44  ;;  %v704_v41 = vrot.slane %v702_v35, 1  ;;  %v8435_v43 = vld [vmem:[#allocation6 + $0x280] sm:$0xff]   ;;  %v717_v44 = vsel %vm693_vm0, %v712_v27, %v716_v39  ;;  %v7015_v27 = vcombine.low %v1031_v17, %v1031_v17 }
  0x92   : > { %7632 = vmatprep.subr.bf16.mxu1 %v8401_v45  ;;  %v741_v45 = vsel %vm693_vm0, %v736_v28, %v740_v40  ;;  %970 = vmatprep.mubr.bf16.mxu0 %v717_v44  ;;  %v8473_v28 = vld [vmem:[#allocation6 + $0x3c0] sm:$0xff]   ;;  %v8478_v44 = vld [vmem:[#allocation6 + $0x308] sm:$0xff]  }
  0x93   : > { %1011 = vmatprep.mubr.bf16.mxu1 %v741_v45  ;;  %v1131_v35 = vrot.slane %v7015_v27, 1  ;;  %v8474_v36 = vld [vmem:[#allocation6 + $0x300] sm:$0xff]   ;;  %v8479_v45 = vld [vmem:[#allocation6 + $0x388] sm:$0xff]  }
  0x94   : > { %7611 = vmatpush3.bf16.msra.mxu0 %v8402_v46  ;;  %v705_v46 = vsel %vm693_vm0, %v700_v29, %v704_v41  ;;  %v8475_v40 = vld [vmem:[#allocation6 + $0x380] sm:$0xff]  }
  0x95   : > { %7633 = vmatpush3.bf16.msra.mxu1 %v8403_v47  ;;  %7612 = vmatprep.subr.bf16.mxu0 %v8404_v48  ;;  %v729_v47 = vsel %vm693_vm0, %v724_v30, %v728_v42  ;;  %v8436_v48 = vld [vmem:[#allocation6 + $0x248] sm:$0xff]   ;;  %v1134_v30 = vrot.slane %v7016_v20, 1 }
  0x96   : > { %7634 = vmatprep.subr.bf16.mxu1 %v8405_v49  ;;  %v8437_v49 = vld [vmem:[#allocation6 + $0x2c8] sm:$0xff]  }
  0x97   : > { %v8476_v42 = vld [vmem:[#allocation6 + $0x348] sm:$0xff]  }
  0x98   : > { %7613 = vmatpush3.bf16.msra.mxu0 %v8406_v50  ;;  %v8438_v50 = vld [vmem:[#allocation6 + $0x208] sm:$0xff]  }
  0x99   : > { %7635 = vmatpush3.bf16.msra.mxu1 %v8407_v51  ;;  %7614 = vmatprep.subr.bf16.mxu0 %v8408_v52  ;;  %v8439_v51 = vld [vmem:[#allocation6 + $0x288] sm:$0xff]   ;;  %v8440_v52 = vld [vmem:[#allocation6 + $0x250] sm:$0xff]  }
  0x9a   : > { %7636 = vmatprep.subr.bf16.mxu1 %v8409_v53  ;;  %v8441_v53 = vld [vmem:[#allocation6 + $0x2d0] sm:$0xff]  }
  0x9c   : > { %7615 = vmatpush3.bf16.msra.mxu0 %v8410_v54  ;;  %v8442_v54 = vld [vmem:[#allocation6 + $0x210] sm:$0xff]  }
  0x9d   : > { %7637 = vmatpush3.bf16.msra.mxu1 %v8411_v55  ;;  %7616 = vmatprep.subr.bf16.mxu0 %v8412_v56  ;;  %v8443_v55 = vld [vmem:[#allocation6 + $0x290] sm:$0xff]   ;;  %v8444_v56 = vld [vmem:[#allocation6 + $0x258] sm:$0xff]  }
  0x9e   : > { %7638 = vmatprep.subr.bf16.mxu1 %v8413_v57  ;;  %v8445_v57 = vld [vmem:[#allocation6 + $0x2d8] sm:$0xff]  }
  0xa0   : > { %7617 = vmatpush3.bf16.msra.mxu0 %v8414_v59  ;;  %v8447_v59 = vld [vmem:[#allocation6 + $0x298] sm:$0xff]  }
  0xa1   : > { %7639 = vmatpush3.bf16.msra.mxu1 %v8415_v60  ;;  %7618 = vmatprep.subr.bf16.mxu0 %v8416_v62  ;;  %v8448_v60 = vld [vmem:[#allocation6 + $0x260] sm:$0xff]  }
  0xa2   : > { %7640 = vmatprep.subr.bf16.mxu1 %v8417_v0  ;;  %v8450_v62 = vld [vmem:[#allocation6 + $0x220] sm:$0xff]   ;;  %v8452_v0 = vld [vmem:[#allocation6 + $0x268] sm:$0xff]  }
  0xa4   : > { %7619 = vmatpush3.bf16.msra.mxu0 %v8418_v2  ;;  %v8454_v2 = vld [vmem:[#allocation6 + $0x228] sm:$0xff]  }
  0xa5   : > { %7641 = vmatpush3.bf16.msra.mxu1 %v8419_v4  ;;  %7620 = vmatprep.subr.bf16.mxu0 %v8420_v6  ;;  %v8456_v4 = vld [vmem:[#allocation6 + $0x270] sm:$0xff]  }
  0xa6   : > { %7642 = vmatprep.subr.bf16.mxu1 %v8421_v8  ;;  %v8458_v6 = vld [vmem:[#allocation6 + $0x230] sm:$0xff]   ;;  %v8460_v8 = vld [vmem:[#allocation6 + $0x278] sm:$0xff]  }
  0xa8   : > { %7621 = vmatpush3.bf16.msra.mxu0 %v8422_v10  ;;  %v8462_v10 = vld [vmem:[#allocation6 + $0x238] sm:$0xff]  }
  0xa9   : > { %7643 = vmatpush3.bf16.msra.mxu1 %v8423_v12  ;;  %7622 = vmatprep.subr.bf16.mxu0 %v8424_v14  ;;  %v1026_v12 = vld [vmem:[%s9366_s5] sm:$0xee] }
  0xaa   : > { %7644 = vmatprep.subr.bf16.mxu1 %v8425_v16  ;;  %v7010_v14 = vcombine.high %v1026_v12, %v9378_v33  ;;  %v1027_v16 = vld [vmem:[%s9366_s5 + $0x8] sm:$0xee] }
  0xab   : > { %v7011_v22 = vcombine.low %v1027_v16, %v9388_v37 }
  0xac   : > { %7623 = vmatpush3.bf16.msra.mxu0 %v8426_v18  ;;  %v7009_v18 = vcombine.low %v1026_v12, %v9378_v33  ;;  %v1127_v24 = vrot.slane %v7010_v14, 1 }
  0xad   : > { %7645 = vmatpush3.bf16.msra.mxu1 %v8427_v19  ;;  %7652 = vmatprep.subr.bf16.mxu0 %v8432_v26  ;;  %v7012_v19 = vcombine.high %v1027_v16, %v9388_v37  ;;  %v1130_v32 = vrot.slane %v7011_v22, 1  ;;  %v8512_v16 = vld [vmem:[#allocation6 + $0x440] sm:$0xff]  }
  0xae   : > { %7674 = vmatprep.subr.bf16.mxu1 %v8433_v31  ;;  %v1124_v26 = vrot.slane %v7009_v18, 1  ;;  %v1125_v31 = vrot.slane %v7013_v21, 1  ;;  %v1129_v34 = vsel %vm1123_vm1, %v1127_v24, %v1128_v25 }
  0xaf   : > { %971 = vmatmul.mubr.bf16.vlgmr.msra.gmra.mrb[4].mxu0 %v705_v46  ;;  %v1133_v29 = vrot.slane %v7012_v19, 1  ;;  %v1132_v41 = vsel %vm1123_vm1, %v1130_v32, %v1131_v35  ;;  %v8480_v46 = vld [vmem:[#allocation6 + $0x350] sm:$0xff]  }
  0xb0   : > { %1012 = vmatmul.mubr.bf16.vlgmr.msra.gmra.mrb[4].mxu1 %v729_v47  ;;  %7653 = vmatpush3.bf16.msra.mxu0 %v8434_v38  ;;  %v1126_v39 = vsel %vm1123_vm1, %v1124_v26, %v1125_v31  ;;  %v8481_v47 = vld [vmem:[#allocation6 + $0x3d0] sm:$0xff]  }
  0xb1   : > { %7675 = vmatpush3.bf16.msra.mxu1 %v8435_v43  ;;  %7654 = vmatprep.subr.bf16.mxu0 %v8436_v48  ;;  %v1135_v38 = vsel %vm1123_vm1, %v1133_v29, %v1134_v30  ;;  %v8477_v43 = vld [vmem:[#allocation6 + $0x3c8] sm:$0xff]   ;;  %v8482_v48 = vld [vmem:[#allocation6 + $0x310] sm:$0xff]  }
  0xb2   : > { %7676 = vmatprep.subr.bf16.mxu1 %v8437_v49  ;;  %1364 = vmatprep.mubr.bf16.mxu0 %v1129_v34  ;;  %v8483_v49 = vld [vmem:[#allocation6 + $0x390] sm:$0xff]  }
  0xb3   : > { %1405 = vmatprep.mubr.bf16.mxu1 %v1135_v38 }
  0xb4   : > { %7655 = vmatpush3.bf16.msra.mxu0 %v8438_v50  ;;  %v8484_v50 = vld [vmem:[#allocation6 + $0x358] sm:$0xff]  }
  0xb5   : > { %7677 = vmatpush3.bf16.msra.mxu1 %v8439_v51  ;;  %7656 = vmatprep.subr.bf16.mxu0 %v8440_v52  ;;  %v8485_v51 = vld [vmem:[#allocation6 + $0x3d8] sm:$0xff]  }
  0xb6   : > { %7678 = vmatprep.subr.bf16.mxu1 %v8441_v53  ;;  %v8486_v52 = vld [vmem:[#allocation6 + $0x318] sm:$0xff]  }
  0xb7   : > { %v8487_v53 = vld [vmem:[#allocation6 + $0x398] sm:$0xff]  }
  0xb8   : > { %7657 = vmatpush3.bf16.msra.mxu0 %v8442_v54  ;;  %v8488_v54 = vld [vmem:[#allocation6 + $0x360] sm:$0xff]  }
  0xb9   : > { %7679 = vmatpush3.bf16.msra.mxu1 %v8443_v55  ;;  %7658 = vmatprep.subr.bf16.mxu0 %v8444_v56  ;;  %v8489_v55 = vld [vmem:[#allocation6 + $0x3e0] sm:$0xff]  }
  0xba   : > { %7680 = vmatprep.subr.bf16.mxu1 %v8445_v57  ;;  %v8490_v56 = vld [vmem:[#allocation6 + $0x320] sm:$0xff]  }
  0xbb   : > { %v8491_v57 = vld [vmem:[#allocation6 + $0x3a0] sm:$0xff]  }
  0xbc   : > { %7659 = vmatpush3.bf16.msra.mxu0 %v8446_v58  ;;  %v8492_v58 = vld [vmem:[#allocation6 + $0x368] sm:$0xff]  }
  0xbd   : > { %7681 = vmatpush3.bf16.msra.mxu1 %v8447_v59  ;;  %7660 = vmatprep.subr.bf16.mxu0 %v8448_v60  ;;  %v8493_v59 = vld [vmem:[#allocation6 + $0x3e8] sm:$0xff]  }
  0xbe   : > { %7682 = vmatprep.subr.bf16.mxu1 %v8449_v61  ;;  %v8494_v60 = vld [vmem:[#allocation6 + $0x328] sm:$0xff]  }
  0xbf   : > { %v8495_v61 = vld [vmem:[#allocation6 + $0x3a8] sm:$0xff]  }
  0xc0   : > { %7661 = vmatpush3.bf16.msra.mxu0 %v8450_v62  ;;  %v8496_v62 = vld [vmem:[#allocation6 + $0x370] sm:$0xff]  }
  0xc1   : > { %7683 = vmatpush3.bf16.msra.mxu1 %v8451_v63  ;;  %7662 = vmatprep.subr.bf16.mxu0 %v8452_v0  ;;  %v8497_v63 = vld [vmem:[#allocation6 + $0x3f0] sm:$0xff]  }
  0xc2   : > { %7684 = vmatprep.subr.bf16.mxu1 %v8453_v1  ;;  %v8498_v0 = vld [vmem:[#allocation6 + $0x330] sm:$0xff]  }
  0xc3   : > { %v8499_v1 = vld [vmem:[#allocation6 + $0x3b0] sm:$0xff]  }
  0xc4   : > { %7663 = vmatpush3.bf16.msra.mxu0 %v8454_v2  ;;  %v8500_v2 = vld [vmem:[#allocation6 + $0x378] sm:$0xff]  }
  0xc5   : > { %7685 = vmatpush3.bf16.msra.mxu1 %v8455_v3  ;;  %7664 = vmatprep.subr.bf16.mxu0 %v8456_v4  ;;  %v8501_v3 = vld [vmem:[#allocation6 + $0x3f8] sm:$0xff]  }
  0xc6   : > { %7686 = vmatprep.subr.bf16.mxu1 %v8457_v5  ;;  %v8502_v4 = vld [vmem:[#allocation6 + $0x338] sm:$0xff]  }
  0xc7   : > { %v8503_v5 = vld [vmem:[#allocation6 + $0x3b8] sm:$0xff]  }
  0xc8   : > { %7665 = vmatpush3.bf16.msra.mxu0 %v8458_v6  ;;  %v1420_v6 = vld [vmem:[%s9366_s5] sm:$0xee] }
  0xc9   : > { %7687 = vmatpush3.bf16.msra.mxu1 %v8459_v7  ;;  %7666 = vmatprep.subr.bf16.mxu0 %v8460_v8  ;;  %v1424_v7 = vld [vmem:[%s9366_s5 + $0x20] sm:$0x33]  ;;  %v7050_v8 = vcombine.high %v1420_v6, %v9378_v33 }
  0xca   : > { %7688 = vmatprep.subr.bf16.mxu1 %v8461_v9  ;;  %v1421_v9 = vld [vmem:[%s9366_s5 + $0x8] sm:$0xee]  ;;  %v7054_v12 = vcombine.high %v1424_v7, %v1424_v7  ;;  %v7053_v15 = vcombine.low %v1424_v7, %v1424_v7  ;;  %v8521_v7 = vld [vmem:[#allocation6 + $0x4d0] sm:$0xff]  }
  0xcb   : > { %v7052_v13 = vcombine.high %v1421_v9, %v9388_v37  ;;  %v1536_v17 = vshrl.u32 %v7050_v8, 16  ;;  %v1539_v18 = vshll.u32 %v7050_v8, 16  ;;  %v8522_v8 = vld [vmem:[#allocation6 + $0x410] sm:$0xff]  }
  0xcc   : > { %7667 = vmatpush3.bf16.msra.mxu0 %v8462_v10  ;;  %v1425_v10 = vld [vmem:[%s9366_s5 + $0x28] sm:$0x33]  ;;  %v1544_v21 = vshrl.u32 %v7054_v12, 16  ;;  %v1547_v22 = vshll.u32 %v7054_v12, 16  ;;  %v8526_v12 = vld [vmem:[#allocation6 + $0x418] sm:$0xff]  }
  0xcd   : > { %7689 = vmatpush3.bf16.msra.mxu1 %v8463_v11  ;;  %7696 = vmatprep.subr.bf16.mxu0 %v8472_v23  ;;  %v7049_v11 = vcombine.low %v1420_v6, %v9378_v33  ;;  %v7056_v14 = vcombine.high %v1425_v10, %v1425_v10  ;;  %v1570_v23 = vshrl.u32 %v7052_v13, 16  ;;  %v1573_v24 = vshll.u32 %v7052_v13, 16  ;;  %v8519_v6 = vld [vmem:[#allocation6 + $0x488] sm:$0xff]   ;;  %v8528_v13 = vld [vmem:[#allocation6 + $0x460] sm:$0xff]  }
  0xce   : > { %7718 = vmatprep.subr.bf16.mxu1 %v8473_v28  ;;  %v1538_v25 = vrot.slane %v1536_v17, 1  ;;  %v1541_v26 = vrot.slane %v1539_v18, 2  ;;  %v8513_v28 = vld [vmem:[#allocation6 + $0x4c0] sm:$0xff]   ;;  %v1546_v29 = vrot.slane %v1544_v21, 1  ;;  %v1549_v30 = vrot.slane %v1547_v22, 2  ;;  %v8532_v17 = vld [vmem:[#allocation6 + $0x468] sm:$0xff]  }
  0xcf   : > { %1365 = vmatmul.mubr.bf16.vlgmr.msra.gmra.mrb[8].mxu0 %v1126_v39  ;;  %v1519_v19 = vshrl.u32 %v7049_v11, 16  ;;  %v1522_v20 = vshll.u32 %v7049_v11, 16  ;;  %v1578_v33 = vshrl.u32 %v7056_v14, 16  ;;  %v1581_v27 = vshll.u32 %v7056_v14, 16  ;;  %v8525_v11 = vld [vmem:[#allocation6 + $0x4d8] sm:$0xff]   ;;  %v8531_v18 = vld [vmem:[#allocation6 + $0x4a0] sm:$0xff]  }
  0xd0   : > { %1406 = vmatmul.mubr.bf16.vlgmr.msra.gmra.mrb[8].mxu1 %v1132_v41  ;;  %7697 = vmatpush3.bf16.msra.mxu0 %v8474_v36  ;;  %v1572_v31 = vrot.slane %v1570_v23, 1  ;;  %v1575_v32 = vrot.slane %v1573_v24, 2  ;;  %v1542_v34 = vor.u32 %v1541_v26, %v1538_v25  ;;  %v1550_v39 = vor.u32 %v1549_v30, %v1546_v29  ;;  %v8527_v14 = vld [vmem:[#allocation6 + $0x498] sm:$0xff]   ;;  %v8535_v21 = vld [vmem:[#allocation6 + $0x4a8] sm:$0xff]   ;;  %v8536_v22 = vld [vmem:[#allocation6 + $0x470] sm:$0xff]  }
  0xd1   : > { %7719 = vmatpush3.bf16.msra.mxu1 %v8475_v40  ;;  %7698 = vmatprep.subr.bf16.mxu0 %v8476_v42  ;;  %v1580_v35 = vrot.slane %v1578_v33, 1  ;;  %v1583_v36 = vrot.slane %v1581_v27, 2  ;;  %v1521_v38 = vrot.slane %v1519_v19, 1  ;;  %v1524_v41 = vrot.slane %v1522_v20, 2  ;;  %v8533_v19 = vld [vmem:[#allocation6 + $0x4e8] sm:$0xff]   ;;  %v8537_v23 = vld [vmem:[#allocation6 + $0x4f0] sm:$0xff]  }
  0xd2   : > { %7720 = vmatprep.subr.bf16.mxu1 %v8477_v43  ;;  %v1576_v40 = vor.u32 %v1575_v32, %v1572_v31  ;;  %v1527_v42 = vshrl.u32 %v7053_v15, 16  ;;  %v8534_v20 = vld [vmem:[#allocation6 + $0x428] sm:$0xff]   ;;  %v8538_v24 = vld [vmem:[#allocation6 + $0x430] sm:$0xff]   ;;  %v8540_v25 = vld [vmem:[#allocation6 + $0x478] sm:$0xff]  }
  0xd3   : > { %v1584_v43 = vor.u32 %v1583_v36, %v1580_v35  ;;  %v8539_v26 = vld [vmem:[#allocation6 + $0x4b0] sm:$0xff]   ;;  %v9440_v27 = vld [vmem:[%s9366_s5 + $0x20] sm:$0xff]  ;;  %v9447_v30 = vld [vmem:[%s9366_s5 + $0x28] sm:$0xff] }
  0xd4   : > { %7699 = vmatpush3.bf16.msra.mxu0 %v8478_v44  ;;  %v1530_v44 = vshll.u32 %v7053_v15, 16  ;;  %v8529_v15 = vld [vmem:[#allocation6 + $0x4e0] sm:$0xff]   ;;  %v1870_v33 = vld [vmem:[%s9366_s5 + $0x10] sm:$0xff]  ;;  %v8541_v31 = vld [vmem:[#allocation6 + $0x4f8] sm:$0xff]  }
  0xd5   : > { %7721 = vmatpush3.bf16.msra.mxu1 %v8479_v45  ;;  %7700 = vmatprep.subr.bf16.mxu0 %v8480_v46  ;;  %v7051_v45 = vcombine.low %v1421_v9, %v9388_v37  ;;  %v7055_v46 = vcombine.low %v1425_v10, %v1425_v10  ;;  %v8524_v9 = vld [vmem:[#allocation6 + $0x458] sm:$0xff]   ;;  %v8523_v10 = vld [vmem:[#allocation6 + $0x490] sm:$0xff]   ;;  %v9444_v29 = vcombine.high %v1870_v33, %v9440_v27  ;;  %v8548_v35 = vld [vmem:[#allocation6 + $0x540] sm:$0xff]  }
  0xd6   : > { %7722 = vmatprep.subr.bf16.mxu1 %v8481_v47  ;;  %v1551_v47 = vsel %vm1517_vm2, %v1542_v34, %v1550_v39  ;;  %v8542_v34 = vld [vmem:[#allocation6 + $0x438] sm:$0xff]   ;;  %v8549_v39 = vld [vmem:[#allocation6 + $0x5c0] sm:$0xff]  }
  0xd7   : > { %1814 = vmatprep.mubr.bf16.mxu0 %v1551_v47  ;;  %v8543_v36 = vld [vmem:[#allocation6 + $0x4b8] sm:$0xff]   ;;  %v8555_v47 = vld [vmem:[#allocation6 + $0x588] sm:$0xff]  }
  0xd8   : > { %7701 = vmatpush3.bf16.msra.mxu0 %v8482_v48  ;;  %v1525_v48 = vor.u32 %v1524_v41, %v1521_v38  ;;  %v9455_v38 = vcombine.low %v1870_v33, %v9440_v27  ;;  %v8552_v41 = vld [vmem:[#allocation6 + $0x548] sm:$0xff]   ;;  %v8579_v33 = vld [vmem:[#allocation6 + $0x5b8] sm:$0xff]  }
  0xd9   : > { %7723 = vmatpush3.bf16.msra.mxu1 %v8483_v49  ;;  %7702 = vmatprep.subr.bf16.mxu0 %v8484_v50  ;;  %v1529_v49 = vrot.slane %v1527_v42, 1  ;;  %v1585_v50 = vsel %vm1517_vm2, %v1576_v40, %v1584_v43  ;;  %v8550_v40 = vld [vmem:[#allocation6 + $0x500] sm:$0xff]  }
  0xda   : > { %7724 = vmatprep.subr.bf16.mxu1 %v8485_v51  ;;  %v1532_v51 = vrot.slane %v1530_v44, 2  ;;  %1855 = vmatprep.mubr.bf16.mxu1 %v1585_v50  ;;  %v8551_v43 = vld [vmem:[#allocation6 + $0x580] sm:$0xff]   ;;  %v8553_v44 = vld [vmem:[#allocation6 + $0x5c8] sm:$0xff]   ;;  %v8560_v50 = vld [vmem:[#allocation6 + $0x558] sm:$0xff]  }
  0xdc   : > { %7703 = vmatpush3.bf16.msra.mxu0 %v8486_v52  ;;  %v1553_v52 = vshrl.u32 %v7051_v45, 16 }
  0xdd   : > { %7725 = vmatpush3.bf16.msra.mxu1 %v8487_v53  ;;  %7704 = vmatprep.subr.bf16.mxu0 %v8488_v54  ;;  %v1556_v53 = vshll.u32 %v7051_v45, 16  ;;  %v1561_v54 = vshrl.u32 %v7055_v46, 16  ;;  %v8554_v45 = vld [vmem:[#allocation6 + $0x508] sm:$0xff]  }
  0xde   : > { %7726 = vmatprep.subr.bf16.mxu1 %v8489_v55  ;;  %v1564_v55 = vshll.u32 %v7055_v46, 16  ;;  %v8556_v46 = vld [vmem:[#allocation6 + $0x550] sm:$0xff]  }
  0xdf   : > { %v1563_v37 = vrot.slane %v1561_v54, 1  ;;  %v8564_v54 = vld [vmem:[#allocation6 + $0x560] sm:$0xff]  }
  0xe0   : > { %7705 = vmatpush3.bf16.msra.mxu0 %v8490_v56  ;;  %v1533_v56 = vor.u32 %v1532_v51, %v1529_v49  ;;  %v8558_v49 = vld [vmem:[#allocation6 + $0x510] sm:$0xff]  }
  0xe1   : > { %7727 = vmatpush3.bf16.msra.mxu1 %v8491_v57  ;;  %7706 = vmatprep.subr.bf16.mxu0 %v8492_v58  ;;  %v1555_v57 = vrot.slane %v1553_v52, 1  ;;  %v1558_v58 = vrot.slane %v1556_v53, 2  ;;  %v8559_v51 = vld [vmem:[#allocation6 + $0x590] sm:$0xff]   ;;  %v8561_v52 = vld [vmem:[#allocation6 + $0x5d8] sm:$0xff]  }
  0xe2   : > { %7728 = vmatprep.subr.bf16.mxu1 %v8493_v59  ;;  %v8514_v59 = vld [vmem:[#allocation6 + $0x400] sm:$0xff]   ;;  %v8562_v53 = vld [vmem:[#allocation6 + $0x518] sm:$0xff]  }
  0xe4   : > { %7707 = vmatpush3.bf16.msra.mxu0 %v8494_v60  ;;  %v8516_v60 = vld [vmem:[#allocation6 + $0x448] sm:$0xff]  }
  0xe5   : > { %7729 = vmatpush3.bf16.msra.mxu1 %v8495_v61  ;;  %7708 = vmatprep.subr.bf16.mxu0 %v8496_v62  ;;  %v1566_v61 = vrot.slane %v1564_v55, 2  ;;  %v1534_v62 = vsel %vm1517_vm2, %v1525_v48, %v1533_v56  ;;  %v8557_v48 = vld [vmem:[#allocation6 + $0x5d0] sm:$0xff]   ;;  %v8563_v55 = vld [vmem:[#allocation6 + $0x598] sm:$0xff]   ;;  %v2351_v56 = vshll.u32 %v9444_v29, 16 }
  0xe6   : > { %7730 = vmatprep.subr.bf16.mxu1 %v8497_v63  ;;  %v1559_v63 = vor.u32 %v1558_v58, %v1555_v57  ;;  %v8565_v57 = vld [vmem:[#allocation6 + $0x5e0] sm:$0xff]  }
  0xe7   : > { %v8566_v58 = vld [vmem:[#allocation6 + $0x520] sm:$0xff]  }
  0xe8   : > { %7709 = vmatpush3.bf16.msra.mxu0 %v8498_v0  ;;  %v8515_v0 = vld [vmem:[#allocation6 + $0x480] sm:$0xff]  }
  0xe9   : > { %7731 = vmatpush3.bf16.msra.mxu1 %v8499_v1  ;;  %7710 = vmatprep.subr.bf16.mxu0 %v8500_v2  ;;  %v1567_v1 = vor.u32 %v1566_v61, %v1563_v37  ;;  %v8517_v2 = vld [vmem:[#allocation6 + $0x4c8] sm:$0xff]   ;;  %v8567_v61 = vld [vmem:[#allocation6 + $0x5a0] sm:$0xff]  }
  0xea   : > { %7732 = vmatprep.subr.bf16.mxu1 %v8501_v3  ;;  %v8518_v3 = vld [vmem:[#allocation6 + $0x408] sm:$0xff]  }
  0xec   : > { %7711 = vmatpush3.bf16.msra.mxu0 %v8502_v4  ;;  %v1568_v4 = vsel %vm1517_vm2, %v1559_v63, %v1567_v1  ;;  %v8569_v63 = vld [vmem:[#allocation6 + $0x5e8] sm:$0xff]  }
  0xed   : > { %7733 = vmatpush3.bf16.msra.mxu1 %v8503_v5  ;;  %7740 = vmatprep.subr.bf16.mxu0 %v8512_v16  ;;  %v8520_v5 = vld [vmem:[#allocation6 + $0x450] sm:$0xff]   ;;  %v8530_v16 = vld [vmem:[#allocation6 + $0x420] sm:$0xff]   ;;  %v8570_v1 = vld [vmem:[#allocation6 + $0x528] sm:$0xff]  }
  0xee   : > { %7762 = vmatprep.subr.bf16.mxu1 %v8513_v28  ;;  %v1871_v28 = vld [vmem:[%s9366_s5 + $0x18] sm:$0xff] }
  0xef   : > { %1815 = vmatmul.mubr.bf16.vlgmr.msra.gmra.mrb[12].mxu0 %v1534_v62  ;;  %v9450_v32 = vcombine.high %v1871_v28, %v9447_v30  ;;  %v9458_v42 = vcombine.low %v1871_v28, %v9447_v30  ;;  %v2353_v62 = vrot.slane %v2351_v56, 1  ;;  %v8597_v56 = vld [vmem:[#allocation6 + $0x6d8] sm:$0xff]  }
  0xf0   : > { %7741 = vmatpush3.bf16.msra.mxu0 %v8514_v59  ;;  %1856 = vmatmul.mubr.bf16.vlgmr.msra.gmra.mrb[12].mxu1 %v1568_v4  ;;  %v2349_v59 = vshrl.u32 %v9444_v29, 16  ;;  %v2337_v4 = vshrl.u32 %v9455_v38, 16 }
  0xf1   : > { %7742 = vmatprep.subr.bf16.mxu0 %v8516_v60  ;;  %7763 = vmatpush3.bf16.msra.mxu1 %v8515_v0  ;;  %v8568_v60 = vld [vmem:[#allocation6 + $0x568] sm:$0xff]   ;;  %v2373_v37 = vshrl.u32 %v9450_v32, 16  ;;  %v2375_v0 = vshll.u32 %v9450_v32, 16 }
  0xf2   : > { %7764 = vmatprep.subr.bf16.mxu1 %v8517_v2  ;;  %2183 = vmatprep.mubr.bf16.mxu0 %v9444_v29  ;;  %v2339_v2 = vshll.u32 %v9455_v38, 16 }
  0xf3   : > { %2224 = vmatprep.mubr.bf16.mxu1 %v9450_v32 }
  0xf4   : > { %7743 = vmatpush3.bf16.msra.mxu0 %v8518_v3  ;;  %v8572_v3 = vld [vmem:[#allocation6 + $0x570] sm:$0xff]  }
  0xf5   : > { %7744 = vmatprep.subr.bf16.mxu0 %v8520_v5  ;;  %7765 = vmatpush3.bf16.msra.mxu1 %v8519_v6  ;;  %v8571_v5 = vld [vmem:[#allocation6 + $0x5a8] sm:$0xff]   ;;  %v2363_v6 = vshll.u32 %v9458_v42, 16 }
  0xf6   : > { %7766 = vmatprep.subr.bf16.mxu1 %v8521_v7  ;;  %v8573_v7 = vld [vmem:[#allocation6 + $0x5f0] sm:$0xff]  }
  0xf8   : > { %7745 = vmatpush3.bf16.msra.mxu0 %v8522_v8  ;;  %v2377_v8 = vrot.slane %v2375_v0, 1  ;;  %v8606_v0 = vld [vmem:[#allocation6 + $0x628] sm:$0xff]  }
  0xf9   : > { %7746 = vmatprep.subr.bf16.mxu0 %v8524_v9  ;;  %7767 = vmatpush3.bf16.msra.mxu1 %v8523_v10  ;;  %v8574_v9 = vld [vmem:[#allocation6 + $0x530] sm:$0xff]   ;;  %v2341_v10 = vrot.slane %v2339_v2, 1  ;;  %v8607_v2 = vld [vmem:[#allocation6 + $0x6a8] sm:$0xff]  }
  0xfa   : > { %7768 = vmatprep.subr.bf16.mxu1 %v8525_v11  ;;  %v8575_v11 = vld [vmem:[#allocation6 + $0x5b0] sm:$0xff]  }
  0xfc   : > { %7747 = vmatpush3.bf16.msra.mxu0 %v8526_v12  ;;  %v8576_v12 = vld [vmem:[#allocation6 + $0x578] sm:$0xff]  }
  0xfd   : > { %7748 = vmatprep.subr.bf16.mxu0 %v8528_v13  ;;  %7769 = vmatpush3.bf16.msra.mxu1 %v8527_v14  ;;  %v2361_v13 = vshrl.u32 %v9458_v42, 16  ;;  %v8577_v14 = vld [vmem:[#allocation6 + $0x5f8] sm:$0xff]  }
  0xfe   : > { %7770 = vmatprep.subr.bf16.mxu1 %v8529_v15  ;;  %v2243_v15 = vld [vmem:[%s9366_s5 + $0x30] sm:$0x11] }
 0x100   : > { %7749 = vmatpush3.bf16.msra.mxu0 %v8530_v16  ;;  %v2244_v16 = vld [vmem:[%s9366_s5 + $0x38] sm:$0x11] }
 0x101   : > { %7750 = vmatprep.subr.bf16.mxu0 %v8532_v17  ;;  %7771 = vmatpush3.bf16.msra.mxu1 %v8531_v18  ;;  %v2365_v17 = vrot.slane %v2363_v6, 1  ;;  %v8578_v18 = vld [vmem:[#allocation6 + $0x538] sm:$0xff]   ;;  %v8611_v6 = vld [vmem:[#allocation6 + $0x6b0] sm:$0xff]  }
 0x102   : > { %7772 = vmatprep.subr.bf16.mxu1 %v8533_v19  ;;  %v7130_v19 = vcombine.high %v2243_v15, %v2243_v15 }
 0x104   : > { %7751 = vmatpush3.bf16.msra.mxu0 %v8534_v20  ;;  %v7132_v20 = vcombine.high %v2244_v16, %v2244_v16  ;;  %v2356_v28 = vshll.u32 %v7130_v19, 16 }
 0x105   : > { %7752 = vmatprep.subr.bf16.mxu0 %v8536_v22  ;;  %7773 = vmatpush3.bf16.msra.mxu1 %v8535_v21  ;;  %v7129_v21 = vcombine.low %v2243_v15, %v2243_v15  ;;  %v7131_v22 = vcombine.low %v2244_v16, %v2244_v16  ;;  %v2673_v15 = vld [vmem:[%s9366_s5 + $0x38] sm:$0x11] }
 0x106   : > { %7774 = vmatprep.subr.bf16.mxu1 %v8537_v23  ;;  %v2354_v23 = vor.u32 %v2353_v62, %v2349_v59  ;;  %v2380_v29 = vshll.u32 %v7132_v20, 16  ;;  %v8599_v59 = vld [vmem:[#allocation6 + $0x698] sm:$0xff]   ;;  %v8603_v62 = vld [vmem:[#allocation6 + $0x6a0] sm:$0xff]   ;;  %v7172_v19 = vcombine.high %v2673_v15, %v2673_v15 }
 0x107   : > { %v2368_v32 = vshll.u32 %v7131_v22, 16  ;;  %v8624_v22 = vld [vmem:[#allocation6 + $0x740] sm:$0xff]  }
 0x108   : > { %7753 = vmatpush3.bf16.msra.mxu0 %v8538_v24  ;;  %v2378_v24 = vor.u32 %v2377_v8, %v2373_v37  ;;  %v8602_v37 = vld [vmem:[#allocation6 + $0x620] sm:$0xff]   ;;  %v8614_v8 = vld [vmem:[#allocation6 + $0x638] sm:$0xff]  }
 0x109   : > { %7754 = vmatprep.subr.bf16.mxu0 %v8540_v25  ;;  %7775 = vmatpush3.bf16.msra.mxu1 %v8539_v26  ;;  %v2342_v25 = vor.u32 %v2341_v10, %v2337_v4  ;;  %v8584_v26 = vld [vmem:[#allocation6 + $0x640] sm:$0xff]   ;;  %v8610_v4 = vld [vmem:[#allocation6 + $0x630] sm:$0xff]  }
 0x10a   : > { %7776 = vmatprep.subr.bf16.mxu1 %v8541_v31  ;;  %v2344_v31 = vshll.u32 %v7129_v21, 16  ;;  %v2672_v10 = vld [vmem:[%s9366_s5 + $0x30] sm:$0x11]  ;;  %v7171_v21 = vcombine.low %v2673_v15, %v2673_v15  ;;  %v8653_v15 = vld [vmem:[#allocation6 + $0x7f8] sm:$0xff]  }
 0x10c   : > { %7755 = vmatpush3.bf16.msra.mxu0 %v8542_v34  ;;  %v2366_v34 = vor.u32 %v2365_v17, %v2361_v13  ;;  %v7170_v13 = vcombine.high %v2672_v10, %v2672_v10  ;;  %v7169_v17 = vcombine.low %v2672_v10, %v2672_v10  ;;  %v8648_v10 = vld [vmem:[#allocation6 + $0x770] sm:$0xff]  }
 0x10d   : > { %7784 = vmatprep.subr.bf16.mxu0 %v8548_v35  ;;  %7777 = vmatpush3.bf16.msra.mxu1 %v8543_v36  ;;  %v8585_v35 = vld [vmem:[#allocation6 + $0x6c0] sm:$0xff]   ;;  %v2358_v36 = vrot.slane %v2356_v28, 1  ;;  %v2775_v28 = vrot.slane %v7172_v19, 1  ;;  %v3065_v19 = vld [vmem:[%s9366_s5 + $0x30] sm:$0x33] }
 0x10e   : > { %7806 = vmatprep.subr.bf16.mxu1 %v8549_v39  ;;  %v2346_v39 = vrot.slane %v2344_v31, 1  ;;  %v2772_v31 = vrot.slane %v7171_v21, 1  ;;  %v3062_v21 = vld [vmem:[%s9366_s5 + $0x18] sm:$0xee] }
 0x10f   : > { %2184 = vmatmul.mubr.bf16.vlgmr.msra.gmra.mrb[16].mxu0 %v9455_v38  ;;  %v2382_v38 = vrot.slane %v2380_v29, 1 }
 0x110   : > { %7785 = vmatpush3.bf16.msra.mxu0 %v8550_v40  ;;  %2225 = vmatmul.mubr.bf16.vlgmr.msra.gmra.mrb[16].mxu1 %v9458_v42  ;;  %v2370_v40 = vrot.slane %v2368_v32, 1  ;;  %v2359_v42 = vsel %vm693_vm0, %v2354_v23, %v2358_v36  ;;  %v8625_v32 = vld [vmem:[#allocation6 + $0x7c0] sm:$0xff]  }
 0x111   : > { %7786 = vmatprep.subr.bf16.mxu0 %v8552_v41  ;;  %7807 = vmatpush3.bf16.msra.mxu1 %v8551_v43  ;;  %v8586_v41 = vld [vmem:[#allocation6 + $0x600] sm:$0xff]   ;;  %v2383_v43 = vsel %vm693_vm0, %v2378_v24, %v2382_v38  ;;  %v2769_v24 = vrot.slane %v7170_v13, 1  ;;  %v8651_v13 = vld [vmem:[#allocation6 + $0x7b0] sm:$0xff]  }
 0x112   : > { %7808 = vmatprep.subr.bf16.mxu1 %v8553_v44  ;;  %v2347_v44 = vsel %vm693_vm0, %v2342_v25, %v2346_v39  ;;  %2612 = vmatprep.mubr.bf16.mxu0 %v2359_v42  ;;  %v8627_v39 = vld [vmem:[#allocation6 + $0x780] sm:$0xff]   ;;  %v8629_v42 = vld [vmem:[#allocation6 + $0x7c8] sm:$0xff]  }
 0x113   : > { %2653 = vmatprep.mubr.bf16.mxu1 %v2383_v43  ;;  %v8630_v43 = vld [vmem:[#allocation6 + $0x708] sm:$0xff]  }
 0x114   : > { %7787 = vmatpush3.bf16.msra.mxu0 %v8554_v45  ;;  %v8588_v45 = vld [vmem:[#allocation6 + $0x648] sm:$0xff]  }
 0x115   : > { %7788 = vmatprep.subr.bf16.mxu0 %v8556_v46  ;;  %7809 = vmatpush3.bf16.msra.mxu1 %v8555_v47  ;;  %v8587_v46 = vld [vmem:[#allocation6 + $0x680] sm:$0xff]   ;;  %v2371_v47 = vsel %vm693_vm0, %v2366_v34, %v2370_v40 }
 0x116   : > { %7810 = vmatprep.subr.bf16.mxu1 %v8557_v48  ;;  %v8589_v48 = vld [vmem:[#allocation6 + $0x6c8] sm:$0xff]   ;;  %v8626_v34 = vld [vmem:[#allocation6 + $0x700] sm:$0xff]  }
 0x118   : > { %7789 = vmatpush3.bf16.msra.mxu0 %v8558_v49  ;;  %v8590_v49 = vld [vmem:[#allocation6 + $0x608] sm:$0xff]  }
 0x119   : > { %7790 = vmatprep.subr.bf16.mxu0 %v8560_v50  ;;  %7811 = vmatpush3.bf16.msra.mxu1 %v8559_v51  ;;  %v8592_v50 = vld [vmem:[#allocation6 + $0x650] sm:$0xff]   ;;  %v8591_v51 = vld [vmem:[#allocation6 + $0x688] sm:$0xff]  }
 0x11a   : > { %7812 = vmatprep.subr.bf16.mxu1 %v8561_v52  ;;  %v8593_v52 = vld [vmem:[#allocation6 + $0x6d0] sm:$0xff]  }
 0x11c   : > { %7791 = vmatpush3.bf16.msra.mxu0 %v8562_v53  ;;  %v8594_v53 = vld [vmem:[#allocation6 + $0x610] sm:$0xff]  }
 0x11d   : > { %7792 = vmatprep.subr.bf16.mxu0 %v8564_v54  ;;  %7813 = vmatpush3.bf16.msra.mxu1 %v8563_v55  ;;  %v8596_v54 = vld [vmem:[#allocation6 + $0x658] sm:$0xff]   ;;  %v8595_v55 = vld [vmem:[#allocation6 + $0x690] sm:$0xff]  }
 0x11e   : > { %7814 = vmatprep.subr.bf16.mxu1 %v8565_v57  ;;  %v8598_v57 = vld [vmem:[#allocation6 + $0x618] sm:$0xff]  }
 0x120   : > { %7793 = vmatpush3.bf16.msra.mxu0 %v8566_v58  ;;  %v8600_v58 = vld [vmem:[#allocation6 + $0x660] sm:$0xff]  }
 0x121   : > { %7794 = vmatprep.subr.bf16.mxu0 %v8568_v60  ;;  %7815 = vmatpush3.bf16.msra.mxu1 %v8567_v61  ;;  %v8601_v60 = vld [vmem:[#allocation6 + $0x6e0] sm:$0xff]   ;;  %v8604_v61 = vld [vmem:[#allocation6 + $0x668] sm:$0xff]  }
 0x122   : > { %7816 = vmatprep.subr.bf16.mxu1 %v8569_v63  ;;  %v8605_v63 = vld [vmem:[#allocation6 + $0x6e8] sm:$0xff]  }
 0x124   : > { %7795 = vmatpush3.bf16.msra.mxu0 %v8570_v1  ;;  %v8608_v1 = vld [vmem:[#allocation6 + $0x670] sm:$0xff]  }
 0x125   : > { %7796 = vmatprep.subr.bf16.mxu0 %v8572_v3  ;;  %7817 = vmatpush3.bf16.msra.mxu1 %v8571_v5  ;;  %v8609_v3 = vld [vmem:[#allocation6 + $0x6f0] sm:$0xff]   ;;  %v8612_v5 = vld [vmem:[#allocation6 + $0x678] sm:$0xff]  }
 0x126   : > { %7818 = vmatprep.subr.bf16.mxu1 %v8573_v7  ;;  %v8613_v7 = vld [vmem:[#allocation6 + $0x6f8] sm:$0xff]  }
 0x128   : > { %7797 = vmatpush3.bf16.msra.mxu0 %v8574_v9  ;;  %v2668_v9 = vld [vmem:[%s9366_s5 + $0x10] sm:$0xee] }
 0x129   : > { %7798 = vmatprep.subr.bf16.mxu0 %v8576_v12  ;;  %7819 = vmatpush3.bf16.msra.mxu1 %v8575_v11  ;;  %v8615_v11 = vld [vmem:[#allocation6 + $0x6b8] sm:$0xff]   ;;  %v7166_v12 = vcombine.high %v2668_v9, %v9440_v27  ;;  %v7165_v16 = vcombine.low %v2668_v9, %v9440_v27  ;;  %v8647_v9 = vld [vmem:[#allocation6 + $0x7a8] sm:$0xff]  }
 0x12a   : > { %7820 = vmatprep.subr.bf16.mxu1 %v8577_v14  ;;  %v2669_v14 = vld [vmem:[%s9366_s5 + $0x18] sm:$0xee] }
 0x12b   : > { %v7167_v20 = vcombine.low %v2669_v14, %v9447_v30  ;;  %v2768_v23 = vrot.slane %v7166_v12, 1  ;;  %v2765_v25 = vrot.slane %v7165_v16, 1  ;;  %v8650_v12 = vld [vmem:[#allocation6 + $0x730] sm:$0xff]   ;;  %v8654_v16 = vld [vmem:[#allocation6 + $0x738] sm:$0xff]  }
 0x12c   : > { %7799 = vmatpush3.bf16.msra.mxu0 %v8578_v18  ;;  %v7168_v18 = vcombine.high %v2669_v14, %v9447_v30  ;;  %v8652_v14 = vld [vmem:[#allocation6 + $0x778] sm:$0xff]  }
 0x12d   : > { %7828 = vmatprep.subr.bf16.mxu0 %v8584_v26  ;;  %7821 = vmatpush3.bf16.msra.mxu1 %v8579_v33  ;;  %v2766_v26 = vrot.slane %v7169_v17, 1  ;;  %v2771_v29 = vrot.slane %v7167_v20, 1  ;;  %v8655_v17 = vld [vmem:[#allocation6 + $0x7b8] sm:$0xff]  }
 0x12e   : > { %7850 = vmatprep.subr.bf16.mxu1 %v8585_v35  ;;  %v2774_v33 = vrot.slane %v7168_v18, 1  ;;  %v2770_v35 = vsel %vm1123_vm1, %v2768_v23, %v2769_v24  ;;  %v3061_v18 = vld [vmem:[%s9366_s5 + $0x10] sm:$0xee]  ;;  %v7210_v24 = vcombine.high %v3065_v19, %v3065_v19 }
 0x12f   : > { %2613 = vmatmul.mubr.bf16.vlgmr.msra.gmra.mrb[20].mxu0 %v2347_v44  ;;  %v2767_v36 = vsel %vm1123_vm1, %v2765_v25, %v2766_v26  ;;  %v2773_v40 = vsel %vm1123_vm1, %v2771_v29, %v2772_v31  ;;  %v7206_v20 = vcombine.high %v3061_v18, %v9440_v27  ;;  %v7205_v23 = vcombine.low %v3061_v18, %v9440_v27  ;;  %v8669_v18 = vld [vmem:[#allocation6 + $0x8c8] sm:$0xff]  }
 0x130   : > { %7829 = vmatpush3.bf16.msra.mxu0 %v8586_v41  ;;  %2654 = vmatmul.mubr.bf16.vlgmr.msra.gmra.mrb[20].mxu1 %v2371_v47  ;;  %v2776_v38 = vsel %vm1123_vm1, %v2774_v33, %v2775_v28  ;;  %v8628_v41 = vld [vmem:[#allocation6 + $0x748] sm:$0xff]   ;;  %v8632_v47 = vld [vmem:[#allocation6 + $0x750] sm:$0xff]   ;;  %v7208_v25 = vcombine.high %v3062_v21, %v9447_v30  ;;  %v7209_v33 = vcombine.low %v3065_v19, %v3065_v19  ;;  %v8664_v28 = vld [vmem:[#allocation6 + $0x840] sm:$0xff]  }
 0x131   : > { %7830 = vmatprep.subr.bf16.mxu0 %v8588_v45  ;;  %7851 = vmatpush3.bf16.msra.mxu1 %v8587_v46  ;;  %v8631_v45 = vld [vmem:[#allocation6 + $0x788] sm:$0xff]   ;;  %v3176_v29 = vshrl.u32 %v7206_v20, 16  ;;  %v3179_v31 = vshll.u32 %v7206_v20, 16 }
 0x132   : > { %7852 = vmatprep.subr.bf16.mxu1 %v8589_v48  ;;  %3005 = vmatprep.mubr.bf16.mxu0 %v2770_v35  ;;  %v3184_v35 = vshrl.u32 %v7210_v24, 16  ;;  %v8670_v20 = vld [vmem:[#allocation6 + $0x808] sm:$0xff]  }
 0x133   : > { %3046 = vmatprep.mubr.bf16.mxu1 %v2776_v38  ;;  %v3210_v38 = vshrl.u32 %v7208_v25, 16  ;;  %v3181_v27 = vrot.slane %v3179_v31, 2 }
 0x134   : > { %7831 = vmatpush3.bf16.msra.mxu0 %v8590_v49  ;;  %v8633_v49 = vld [vmem:[#allocation6 + $0x7d0] sm:$0xff]   ;;  %v3186_v30 = vrot.slane %v3184_v35, 1 }
 0x135   : > { %7832 = vmatprep.subr.bf16.mxu0 %v8592_v50  ;;  %7853 = vmatpush3.bf16.msra.mxu1 %v8591_v51 }
 0x136   : > { %7854 = vmatprep.subr.bf16.mxu1 %v8593_v52  ;;  %v8634_v52 = vld [vmem:[#allocation6 + $0x710] sm:$0xff]  }
 0x138   : > { %7833 = vmatpush3.bf16.msra.mxu0 %v8594_v53 }
 0x139   : > { %7834 = vmatprep.subr.bf16.mxu0 %v8596_v54  ;;  %7855 = vmatpush3.bf16.msra.mxu1 %v8595_v55  ;;  %v8635_v55 = vld [vmem:[#allocation6 + $0x790] sm:$0xff]  }
 0x13a   : > { %7856 = vmatprep.subr.bf16.mxu1 %v8597_v56 }
 0x13c   : > { %7835 = vmatpush3.bf16.msra.mxu0 %v8598_v57  ;;  %v8636_v57 = vld [vmem:[#allocation6 + $0x758] sm:$0xff]  }
 0x13d   : > { %7836 = vmatprep.subr.bf16.mxu0 %v8600_v58  ;;  %7857 = vmatpush3.bf16.msra.mxu1 %v8599_v59 }
 0x13e   : > { %7858 = vmatprep.subr.bf16.mxu1 %v8601_v60  ;;  %v8637_v60 = vld [vmem:[#allocation6 + $0x7d8] sm:$0xff]  }
 0x140   : > { %7837 = vmatpush3.bf16.msra.mxu0 %v8602_v37 }
 0x141   : > { %7838 = vmatprep.subr.bf16.mxu0 %v8604_v61  ;;  %7859 = vmatpush3.bf16.msra.mxu1 %v8603_v62  ;;  %v8638_v62 = vld [vmem:[#allocation6 + $0x718] sm:$0xff]  }
 0x142   : > { %7860 = vmatprep.subr.bf16.mxu1 %v8605_v63 }
 0x144   : > { %7839 = vmatpush3.bf16.msra.mxu0 %v8606_v0  ;;  %v8639_v0 = vld [vmem:[#allocation6 + $0x798] sm:$0xff]  }
 0x145   : > { %7840 = vmatprep.subr.bf16.mxu0 %v8608_v1  ;;  %7861 = vmatpush3.bf16.msra.mxu1 %v8607_v2  ;;  %v8640_v1 = vld [vmem:[#allocation6 + $0x760] sm:$0xff]  }
 0x146   : > { %7862 = vmatprep.subr.bf16.mxu1 %v8609_v3  ;;  %v8641_v3 = vld [vmem:[#allocation6 + $0x7e0] sm:$0xff]  }
 0x148   : > { %7841 = vmatpush3.bf16.msra.mxu0 %v8610_v4  ;;  %v8642_v4 = vld [vmem:[#allocation6 + $0x720] sm:$0xff]  }
 0x149   : > { %7842 = vmatprep.subr.bf16.mxu0 %v8612_v5  ;;  %7863 = vmatpush3.bf16.msra.mxu1 %v8611_v6  ;;  %v8643_v5 = vld [vmem:[#allocation6 + $0x7a0] sm:$0xff]   ;;  %v8644_v6 = vld [vmem:[#allocation6 + $0x768] sm:$0xff]  }
 0x14a   : > { %7864 = vmatprep.subr.bf16.mxu1 %v8613_v7  ;;  %v8645_v7 = vld [vmem:[#allocation6 + $0x7e8] sm:$0xff]  }
 0x14c   : > { %7843 = vmatpush3.bf16.msra.mxu0 %v8614_v8  ;;  %v8646_v8 = vld [vmem:[#allocation6 + $0x728] sm:$0xff]  }
 0x14d   : > { %7872 = vmatprep.subr.bf16.mxu0 %v8624_v22  ;;  %7865 = vmatpush3.bf16.msra.mxu1 %v8615_v11  ;;  %v8649_v11 = vld [vmem:[#allocation6 + $0x7f0] sm:$0xff]   ;;  %v3066_v22 = vld [vmem:[%s9366_s5 + $0x38] sm:$0x33] }
 0x14e   : > { %7894 = vmatprep.subr.bf16.mxu1 %v8625_v32  ;;  %v7212_v26 = vcombine.high %v3066_v22, %v3066_v22  ;;  %v3159_v32 = vshrl.u32 %v7205_v23, 16 }
 0x14f   : > { %3006 = vmatmul.mubr.bf16.vlgmr.msra.gmra.mrb[24].mxu0 %v2767_v36  ;;  %v3187_v36 = vshll.u32 %v7210_v24, 16 }
 0x150   : > { %7873 = vmatpush3.bf16.msra.mxu0 %v8626_v34  ;;  %3047 = vmatmul.mubr.bf16.vlgmr.msra.gmra.mrb[24].mxu1 %v2773_v40  ;;  %v3162_v34 = vshll.u32 %v7205_v23, 16  ;;  %v3178_v40 = vrot.slane %v3176_v29, 1  ;;  %v8672_v23 = vld [vmem:[#allocation6 + $0x850] sm:$0xff]  }
 0x151   : > { %7874 = vmatprep.subr.bf16.mxu0 %v8628_v41  ;;  %7895 = vmatpush3.bf16.msra.mxu1 %v8627_v39  ;;  %v3213_v39 = vshll.u32 %v7208_v25, 16  ;;  %v3218_v41 = vshrl.u32 %v7212_v26, 16  ;;  %v8673_v29 = vld [vmem:[#allocation6 + $0x8d0] sm:$0xff]  }
 0x152   : > { %7896 = vmatprep.subr.bf16.mxu1 %v8629_v42  ;;  %v3221_v42 = vshll.u32 %v7212_v26, 16  ;;  %v8671_v26 = vld [vmem:[#allocation6 + $0x888] sm:$0xff]  }
 0x154   : > { %7875 = vmatpush3.bf16.msra.mxu0 %v8630_v43  ;;  %v8665_v43 = vld [vmem:[#allocation6 + $0x8c0] sm:$0xff]  }
 0x155   : > { %7876 = vmatprep.subr.bf16.mxu0 %v8632_v47  ;;  %7897 = vmatpush3.bf16.msra.mxu1 %v8631_v45  ;;  %v3212_v45 = vrot.slane %v3210_v38, 1  ;;  %v3182_v47 = vor.u32 %v3181_v27, %v3178_v40  ;;  %v8675_v40 = vld [vmem:[#allocation6 + $0x890] sm:$0xff]  }
 0x156   : > { %7898 = vmatprep.subr.bf16.mxu1 %v8633_v49  ;;  %v3223_v49 = vrot.slane %v3221_v42, 2  ;;  %v8677_v42 = vld [vmem:[#allocation6 + $0x8d8] sm:$0xff]  }
 0x158   : > { %7877 = vmatpush3.bf16.msra.mxu0 %v8634_v52 }
 0x159   : > { %7878 = vmatprep.subr.bf16.mxu0 %v8636_v57  ;;  %7899 = vmatpush3.bf16.msra.mxu1 %v8635_v55  ;;  %v8970_v57 = vld [vmem:[%s9366_s5 + $0x28] sm:$0xff] }
 0x15a   : > { %7900 = vmatprep.subr.bf16.mxu1 %v8637_v60  ;;  %v7211_v60 = vcombine.low %v3066_v22, %v3066_v22 }
 0x15c   : > { %7879 = vmatpush3.bf16.msra.mxu0 %v8638_v62 }
 0x15d   : > { %7880 = vmatprep.subr.bf16.mxu0 %v8640_v1  ;;  %7901 = vmatpush3.bf16.msra.mxu1 %v8639_v0 }
 0x15e   : > { %7902 = vmatprep.subr.bf16.mxu1 %v8641_v3 }
 0x160   : > { %7881 = vmatpush3.bf16.msra.mxu0 %v8642_v4  ;;  %v3201_v4 = vshrl.u32 %v7211_v60, 16 }
 0x161   : > { %7882 = vmatprep.subr.bf16.mxu0 %v8644_v6  ;;  %7903 = vmatpush3.bf16.msra.mxu1 %v8643_v5  ;;  %v3204_v5 = vshll.u32 %v7211_v60, 16  ;;  %v3511_v60 = vld [vmem:[%s9366_s5 + $0x28] sm:$0xff] }
 0x162   : > { %v7580_v44 = vpop.f32.mrb[0].mxu0  ;;  %7904 = vmatprep.subr.bf16.mxu1 %v8645_v7 }
 0x163   : > { %v7602_v46 = vpop.f32.mrb[0].mxu1  ;;  %v7581_v48 = vpop.f32.mrb[1].mxu0 }
 0x164   : > { %v7582_v50 = vadd.f32 %v7581_v48, %v7580_v44  ;;  %v7603_v51 = vpop.f32.mrb[1].mxu1  ;;  %v7583_v54 = vpop.f32.mrb[2].mxu0  ;;  %7883 = vmatpush3.bf16.msra.mxu0 %v8646_v8  ;;  %v3189_v44 = vrot.slane %v3187_v36, 2  ;;  %v3220_v48 = vrot.slane %v3218_v41, 1  ;;  %v8676_v36 = vld [vmem:[#allocation6 + $0x858] sm:$0xff]  }
 0x165   : > { %v7604_v53 = vadd.f32 %v7603_v51, %v7602_v46  ;;  %v7605_v56 = vpop.f32.mrb[2].mxu1  ;;  %v7584_v59 = vpop.f32.mrb[3].mxu0  ;;  %7884 = vmatprep.subr.bf16.mxu0 %v8648_v10  ;;  %7905 = vmatpush3.bf16.msra.mxu1 %v8647_v9  ;;  %v3215_v46 = vrot.slane %v3213_v39, 2  ;;  %v8666_v9 = vld [vmem:[#allocation6 + $0x800] sm:$0xff]   ;;  %v8668_v10 = vld [vmem:[#allocation6 + $0x848] sm:$0xff]  }
 0x166   : > { %v7585_v37 = vadd.f32 %v7584_v59, %v7583_v54  ;;  %v7606_v61 = vpop.f32.mrb[3].mxu1  ;;  %7906 = vmatprep.subr.bf16.mxu1 %v8649_v11  ;;  %v3190_v51 = vor.u32 %v3189_v44, %v3186_v30  ;;  %v3167_v54 = vshrl.u32 %v7209_v33, 16  ;;  %v3224_v55 = vor.u32 %v3223_v49, %v3220_v48  ;;  %v8680_v44 = vld [vmem:[#allocation6 + $0x860] sm:$0xff]  }
 0x167   : > { %v9488_v58 = vadd.f32 %v7604_v53, %v7582_v50  ;;  %v7607_v63 = vadd.f32 %v7606_v61, %v7605_v56  ;;  %v3161_v50 = vrot.slane %v3159_v32, 1  ;;  %v3216_v52 = vor.u32 %v3215_v46, %v3212_v45  ;;  %v8674_v32 = vld [vmem:[#allocation6 + $0x810] sm:$0xff]   ;;  %v8679_v45 = vld [vmem:[#allocation6 + $0x898] sm:$0xff]   ;;  %v8682_v48 = vld [vmem:[#allocation6 + $0x820] sm:$0xff]  }
 0x168   : > { %7885 = vmatpush3.bf16.msra.mxu0 %v8650_v12  ;;  %v3164_v53 = vrot.slane %v3162_v34, 2  ;;  %v3170_v56 = vshll.u32 %v7209_v33, 16  ;;  %v7207_v59 = vcombine.low %v3062_v21, %v8970_v57  ;;  %v3169_v62 = vrot.slane %v3167_v54, 1  ;;  %v8683_v49 = vld [vmem:[#allocation6 + $0x8a0] sm:$0xff]   ;;  %v8690_v54 = vld [vmem:[#allocation6 + $0x830] sm:$0xff]  }
 0x169   : > { %v9490_v2 = vadd.f32 %v7607_v63, %v7585_v37  ;;  %7886 = vmatprep.subr.bf16.mxu0 %v8652_v14  ;;  %7907 = vmatpush3.bf16.msra.mxu1 %v8651_v13  ;;  %v3191_v37 = vsel %vm1517_vm2, %v3182_v47, %v3190_v51  ;;  %v3225_v63 = vsel %vm1517_vm2, %v3216_v52, %v3224_v55  ;;  %v3203_v11 = vrot.slane %v3201_v4, 1  ;;  %v8681_v47 = vld [vmem:[#allocation6 + $0x8e0] sm:$0xff]   ;;  %v8686_v51 = vld [vmem:[#allocation6 + $0x828] sm:$0xff]   ;;  %v8688_v52 = vld [vmem:[#allocation6 + $0x870] sm:$0xff]  }
 0x16a   : > { %7908 = vmatprep.subr.bf16.mxu1 %v8653_v15  ;;  %v3165_v61 = vor.u32 %v3164_v53, %v3161_v50  ;;  %3454 = vmatprep.mubr.bf16.mxu0 %v3191_v37  ;;  %v3172_v0 = vrot.slane %v3170_v56, 2  ;;  %v3193_v1 = vshrl.u32 %v7207_v59, 16  ;;  %v3196_v3 = vshll.u32 %v7207_v59, 16  ;;  %v8667_v15 = vld [vmem:[#allocation6 + $0x880] sm:$0xff]   ;;  %v8685_v50 = vld [vmem:[#allocation6 + $0x8e8] sm:$0xff]   ;;  %v8689_v53 = vld [vmem:[#allocation6 + $0x8f0] sm:$0xff]  }
 0x16b   : > { %3495 = vmatprep.mubr.bf16.mxu1 %v3225_v63  ;;  %v3206_v12 = vrot.slane %v3204_v5, 2  ;;  %v8692_v55 = vld [vmem:[#allocation6 + $0x878] sm:$0xff]   ;;  %v8691_v56 = vld [vmem:[#allocation6 + $0x8b0] sm:$0xff]   ;;  %v3510_v57 = vld [vmem:[%s9366_s5 + $0x20] sm:$0xff] }
 0x16c   : > { %7887 = vmatpush3.bf16.msra.mxu0 %v8654_v16  ;;  %v3173_v6 = vor.u32 %v3172_v0, %v3169_v62  ;;  %v3195_v7 = vrot.slane %v3193_v1, 1  ;;  %v3198_v8 = vrot.slane %v3196_v3, 2  ;;  %v9512_v59 = vld [vmem:[%s9366_s5 + $0x30] sm:$0xff]  ;;  %v8693_v62 = vld [vmem:[#allocation6 + $0x8f8] sm:$0xff]   ;;  %v8700_v1 = vld [vmem:[#allocation6 + $0x940] sm:$0xff]  }
 0x16d   : > { %7916 = vmatprep.subr.bf16.mxu0 %v8664_v28  ;;  %7909 = vmatpush3.bf16.msra.mxu1 %v8655_v17  ;;  %v3207_v17 = vor.u32 %v3206_v12, %v3203_v11  ;;  %v9516_v37 = vcombine.high %v3510_v57, %v9512_v59  ;;  %v8694_v0 = vld [vmem:[#allocation6 + $0x838] sm:$0xff]   ;;  %v9527_v4 = vcombine.low %v3510_v57, %v9512_v59  ;;  %v8701_v5 = vld [vmem:[#allocation6 + $0x9c0] sm:$0xff]   ;;  %v8727_v57 = vld [vmem:[#allocation6 + $0x9b0] sm:$0xff]  }
 0x16e   : > { %7938 = vmatprep.subr.bf16.mxu1 %v8665_v43  ;;  %v3174_v13 = vsel %vm1517_vm2, %v3165_v61, %v3173_v6  ;;  %v3199_v14 = vor.u32 %v3198_v8, %v3195_v7  ;;  %v8678_v43 = vld [vmem:[#allocation6 + $0x818] sm:$0xff]   ;;  %v8702_v6 = vld [vmem:[#allocation6 + $0x900] sm:$0xff]   ;;  %v8704_v8 = vld [vmem:[#allocation6 + $0x948] sm:$0xff]  }
 0x16f   : > { %3455 = vmatmul.mubr.bf16.vlgmr.msra.gmra.mrb[28].mxu0 %v3174_v13  ;;  %v9519_v61 = vld [vmem:[%s9366_s5 + $0x38] sm:$0xff]  ;;  %v8703_v11 = vld [vmem:[#allocation6 + $0x980] sm:$0xff]   ;;  %v8705_v13 = vld [vmem:[#allocation6 + $0x9c8] sm:$0xff]  }
 0x170   : > { %7917 = vmatpush3.bf16.msra.mxu0 %v8666_v9  ;;  %v3208_v22 = vsel %vm1517_vm2, %v3199_v14, %v3207_v17  ;;  %v9522_v63 = vcombine.high %v3511_v60, %v9519_v61  ;;  %3823 = vmatprep.mubr.bf16.mxu0 %v9516_v37  ;;  %v8695_v3 = vld [vmem:[#allocation6 + $0x8b8] sm:$0xff]  }
 0x171   : > { %7918 = vmatprep.subr.bf16.mxu0 %v8668_v10  ;;  %3496 = vmatmul.mubr.bf16.vlgmr.msra.gmra.mrb[28].mxu1 %v3208_v22  ;;  %v9530_v10 = vcombine.low %v3511_v60, %v9519_v61  ;;  %v8728_v60 = vld [vmem:[#allocation6 + $0x978] sm:$0xff]  }
 0x172   : > { %7939 = vmatpush3.bf16.msra.mxu1 %v8667_v15  ;;  %3864 = vmatprep.mubr.bf16.mxu1 %v9522_v63 }
 0x173   : > { %7940 = vmatprep.subr.bf16.mxu1 %v8669_v18 }
 0x174   : > { %7919 = vmatpush3.bf16.msra.mxu0 %v8670_v20 }
 0x175   : > { %7920 = vmatprep.subr.bf16.mxu0 %v8672_v23 }
 0x176   : > { %7941 = vmatpush3.bf16.msra.mxu1 %v8671_v26 }
 0x177   : > { %7942 = vmatprep.subr.bf16.mxu1 %v8673_v29 }
 0x178   : > { %7921 = vmatpush3.bf16.msra.mxu0 %v8674_v32  ;;  %v8711_v32 = vld [vmem:[#allocation6 + $0x990] sm:$0xff]  }
 0x179   : > { %7922 = vmatprep.subr.bf16.mxu0 %v8676_v36  ;;  %v8714_v36 = vld [vmem:[#allocation6 + $0x918] sm:$0xff]  }
 0x17a   : > { %7943 = vmatpush3.bf16.msra.mxu1 %v8675_v40  ;;  %v8715_v40 = vld [vmem:[#allocation6 + $0x998] sm:$0xff]  }
 0x17b   : > { %7944 = vmatprep.subr.bf16.mxu1 %v8677_v42  ;;  %v8718_v42 = vld [vmem:[#allocation6 + $0x920] sm:$0xff]  }
 0x17c   : > { %7923 = vmatpush3.bf16.msra.mxu0 %v8678_v43  ;;  %v3989_v43 = vshrl.u32 %v9516_v37, 16 }
 0x17d   : > { %7924 = vmatprep.subr.bf16.mxu0 %v8680_v44  ;;  %v4013_v44 = vshrl.u32 %v9522_v63, 16 }
 0x17e   : > { %7945 = vmatpush3.bf16.msra.mxu1 %v8679_v45  ;;  %v8719_v45 = vld [vmem:[#allocation6 + $0x9a0] sm:$0xff]  }
 0x17f   : > { %7946 = vmatprep.subr.bf16.mxu1 %v8681_v47 }
 0x180   : > { %7925 = vmatpush3.bf16.msra.mxu0 %v8682_v48  ;;  %v4015_v48 = vshll.u32 %v9522_v63, 16  ;;  %v3883_v63 = vld [vmem:[%s9366_s5 + $0x40] sm:$0x11] }
 0x182   : > { %v7624_v16 = vpop.f32.mrb[4].mxu0  ;;  %7947 = vmatpush3.bf16.msra.mxu1 %v8683_v49  ;;  %v3979_v49 = vshll.u32 %v9527_v4, 16 }
 0x183   : > { %v7646_v19 = vpop.f32.mrb[4].mxu1  ;;  %v7625_v21 = vpop.f32.mrb[5].mxu0  ;;  %7948 = vmatprep.subr.bf16.mxu1 %v8685_v50  ;;  %v8724_v50 = vld [vmem:[#allocation6 + $0x970] sm:$0xff]  }
 0x184   : > { %v7626_v24 = vadd.f32 %v7625_v21, %v7624_v16  ;;  %v7647_v25 = vpop.f32.mrb[5].mxu1  ;;  %v7627_v28 = vpop.f32.mrb[6].mxu0  ;;  %v8706_v16 = vld [vmem:[#allocation6 + $0x908] sm:$0xff]  }
 0x185   : > { %v7648_v33 = vadd.f32 %v7647_v25, %v7646_v19  ;;  %v7649_v31 = vpop.f32.mrb[6].mxu1  ;;  %v7628_v35 = vpop.f32.mrb[7].mxu0  ;;  %v8708_v19 = vld [vmem:[#allocation6 + $0x950] sm:$0xff]   ;;  %v8707_v21 = vld [vmem:[#allocation6 + $0x988] sm:$0xff]  }
 0x186   : > { %v7629_v38 = vadd.f32 %v7628_v35, %v7627_v28  ;;  %v7650_v39 = vpop.f32.mrb[7].mxu1  ;;  %v8713_v35 = vld [vmem:[#allocation6 + $0x9d8] sm:$0xff]  }
 0x187   : > { %v1014_v34 = vadd.f32 %v7648_v33, %v7626_v24  ;;  %v7651_v41 = vadd.f32 %v7650_v39, %v7649_v31  ;;  %v8709_v24 = vld [vmem:[#allocation6 + $0x9d0] sm:$0xff]   ;;  %v8712_v31 = vld [vmem:[#allocation6 + $0x958] sm:$0xff]   ;;  %v8716_v39 = vld [vmem:[#allocation6 + $0x960] sm:$0xff]  }
 0x188   : > { %v8710_v33 = vld [vmem:[#allocation6 + $0x910] sm:$0xff]  }
 0x189   : > { %v9505_v27 = vadd.f32 %v1014_v34, %v9488_v58  ;;  %v1017_v30 = vadd.f32 %v7651_v41, %v7629_v38  ;;  %v8684_v58 = vld [vmem:[#allocation6 + $0x868] sm:$0xff]   ;;  %v3991_v41 = vshll.u32 %v9516_v37, 16  ;;  %v4001_v37 = vshrl.u32 %v9530_v10, 16 }
 0x18a   : > { %7926 = vmatprep.subr.bf16.mxu0 %v8684_v58  ;;  %v8722_v58 = vld [vmem:[#allocation6 + $0x928] sm:$0xff]  }
 0x18b   : > { %v9508_v46 = vadd.f32 %v1017_v30, %v9490_v2  ;;  %v8687_v2 = vld [vmem:[#allocation6 + $0x8a8] sm:$0xff]   ;;  %7927 = vmatpush3.bf16.msra.mxu0 %v8686_v51  ;;  %v3993_v47 = vrot.slane %v3991_v41, 1  ;;  %v3977_v51 = vshrl.u32 %v9527_v4, 16  ;;  %v8748_v41 = vld [vmem:[#allocation6 + $0xa58] sm:$0xff]  }
 0x18c   : > { %7928 = vmatprep.subr.bf16.mxu0 %v8688_v52  ;;  %7949 = vmatpush3.bf16.msra.mxu1 %v8687_v2  ;;  %v8720_v30 = vld [vmem:[#allocation6 + $0x968] sm:$0xff]   ;;  %v4003_v52 = vshll.u32 %v9530_v10, 16 }
 0x18d   : > { %7950 = vmatprep.subr.bf16.mxu1 %v8689_v53  ;;  %v8723_v2 = vld [vmem:[#allocation6 + $0x9a8] sm:$0xff]   ;;  %v8725_v53 = vld [vmem:[#allocation6 + $0x9f0] sm:$0xff]  }
 0x18f   : > { %7929 = vmatpush3.bf16.msra.mxu0 %v8690_v54  ;;  %v4017_v54 = vrot.slane %v4015_v48, 1  ;;  %v8751_v48 = vld [vmem:[#allocation6 + $0xa98] sm:$0xff]  }
 0x190   : > { %7930 = vmatprep.subr.bf16.mxu0 %v8692_v55  ;;  %7951 = vmatpush3.bf16.msra.mxu1 %v8691_v56  ;;  %v8726_v55 = vld [vmem:[#allocation6 + $0x930] sm:$0xff]   ;;  %v3981_v56 = vrot.slane %v3979_v49, 1  ;;  %v8753_v49 = vld [vmem:[#allocation6 + $0xae0] sm:$0xff]  }
 0x191   : > { %7952 = vmatprep.subr.bf16.mxu1 %v8693_v62  ;;  %v8729_v62 = vld [vmem:[#allocation6 + $0x9f8] sm:$0xff]  }
 0x193   : > { %7931 = vmatpush3.bf16.msra.mxu0 %v8694_v0  ;;  %v3884_v0 = vld [vmem:[%s9366_s5 + $0x48] sm:$0x11] }
 0x194   : > { %7960 = vmatprep.subr.bf16.mxu0 %v8700_v1  ;;  %7953 = vmatpush3.bf16.msra.mxu1 %v8695_v3  ;;  %v4005_v1 = vrot.slane %v4003_v52, 1  ;;  %v8730_v3 = vld [vmem:[#allocation6 + $0x938] sm:$0xff]  }
 0x195   : > { %7982 = vmatprep.subr.bf16.mxu1 %v8701_v5  ;;  %v7288_v5 = vcombine.high %v3884_v0, %v3884_v0 }
 0x196   : > { %3824 = vmatmul.mubr.bf16.vlgmr.msra.gmra.mrb[32].mxu0 %v9527_v4  ;;  %v7286_v4 = vcombine.high %v3883_v63, %v3883_v63 }
 0x197   : > { %7961 = vmatpush3.bf16.msra.mxu0 %v8702_v6  ;;  %3865 = vmatmul.mubr.bf16.vlgmr.msra.gmra.mrb[32].mxu1 %v9530_v10  ;;  %v7285_v6 = vcombine.low %v3883_v63, %v3883_v63  ;;  %v4020_v10 = vshll.u32 %v7288_v5, 16 }
 0x198   : > { %7962 = vmatprep.subr.bf16.mxu0 %v8704_v8  ;;  %7983 = vmatpush3.bf16.msra.mxu1 %v8703_v11  ;;  %v3994_v8 = vor.u32 %v3993_v47, %v3989_v43  ;;  %v3982_v11 = vor.u32 %v3981_v56, %v3977_v51  ;;  %v8754_v51 = vld [vmem:[#allocation6 + $0xa20] sm:$0xff]  }
 0x199   : > { %7984 = vmatprep.subr.bf16.mxu1 %v8705_v13  ;;  %v8731_v13 = vld [vmem:[#allocation6 + $0x9b8] sm:$0xff]  }
 0x19b   : > { %7963 = vmatpush3.bf16.msra.mxu0 %v8706_v16 }
 0x19c   : > { %7964 = vmatprep.subr.bf16.mxu0 %v8708_v19  ;;  %7985 = vmatpush3.bf16.msra.mxu1 %v8707_v21 }
 0x19d   : > { %7986 = vmatprep.subr.bf16.mxu1 %v8709_v24 }
 0x19f   : > { %7965 = vmatpush3.bf16.msra.mxu0 %v8710_v33  ;;  %v8740_v33 = vld [vmem:[#allocation6 + $0xa48] sm:$0xff]  }
 0x1a0   : > { %7966 = vmatprep.subr.bf16.mxu0 %v8712_v31  ;;  %7987 = vmatpush3.bf16.msra.mxu1 %v8711_v32  ;;  %v8741_v32 = vld [vmem:[#allocation6 + $0xac8] sm:$0xff]  }
 0x1a1   : > { %7988 = vmatprep.subr.bf16.mxu1 %v8713_v35  ;;  %v8744_v35 = vld [vmem:[#allocation6 + $0xa50] sm:$0xff]  }
 0x1a2   : > { %v7668_v7 = vpop.f32.mrb[8].mxu0 }
 0x1a3   : > { %v7690_v9 = vpop.f32.mrb[8].mxu1  ;;  %v7669_v12 = vpop.f32.mrb[9].mxu0  ;;  %7967 = vmatpush3.bf16.msra.mxu0 %v8714_v36  ;;  %v8743_v36 = vld [vmem:[#allocation6 + $0xa88] sm:$0xff]  }
 0x1a4   : > { %v7670_v14 = vadd.f32 %v7669_v12, %v7668_v7  ;;  %v7691_v15 = vpop.f32.mrb[9].mxu1  ;;  %v7671_v18 = vpop.f32.mrb[10].mxu0  ;;  %7968 = vmatprep.subr.bf16.mxu0 %v8716_v39  ;;  %7989 = vmatpush3.bf16.msra.mxu1 %v8715_v40  ;;  %v7287_v7 = vcombine.low %v3884_v0, %v3884_v0  ;;  %v8736_v12 = vld [vmem:[#allocation6 + $0xa40] sm:$0xff]   ;;  %v8745_v39 = vld [vmem:[#allocation6 + $0xad0] sm:$0xff]   ;;  %v8758_v0 = vld [vmem:[#allocation6 + $0xa28] sm:$0xff]  }
 0x1a5   : > { %v7692_v17 = vadd.f32 %v7691_v15, %v7690_v9  ;;  %v7693_v20 = vpop.f32.mrb[10].mxu1  ;;  %v7672_v23 = vpop.f32.mrb[11].mxu0  ;;  %v4018_v9 = vor.u32 %v4017_v54, %v4013_v44  ;;  %v3984_v15 = vshll.u32 %v7285_v6, 16  ;;  %v8746_v40 = vld [vmem:[#allocation6 + $0xa10] sm:$0xff]  }
 0x1a6   : > { %v7673_v25 = vadd.f32 %v7672_v23, %v7671_v18  ;;  %v7694_v26 = vpop.f32.mrb[11].mxu1  ;;  %v4008_v16 = vshll.u32 %v7287_v7, 16  ;;  %v8737_v18 = vld [vmem:[#allocation6 + $0xac0] sm:$0xff]   ;;  %v8761_v6 = vld [vmem:[#allocation6 + $0xaf0] sm:$0xff]  }
 0x1a7   : > { %v1408_v22 = vadd.f32 %v7692_v17, %v7670_v14  ;;  %v7695_v29 = vadd.f32 %v7694_v26, %v7693_v20  ;;  %7969 = vmatpush3.bf16.msra.mxu0 %v8718_v42  ;;  %v3996_v14 = vshll.u32 %v7286_v4, 16  ;;  %v4006_v17 = vor.u32 %v4005_v1, %v4001_v37  ;;  %v8738_v23 = vld [vmem:[#allocation6 + $0xa00] sm:$0xff]   ;;  %v8749_v42 = vld [vmem:[#allocation6 + $0xad8] sm:$0xff]   ;;  %v8757_v37 = vld [vmem:[#allocation6 + $0xae8] sm:$0xff]  }
 0x1a8   : > { %7970 = vmatprep.subr.bf16.mxu0 %v8720_v30  ;;  %v4022_v20 = vrot.slane %v4020_v10, 1  ;;  %v3986_v21 = vrot.slane %v3984_v15, 1  ;;  %v8750_v30 = vld [vmem:[#allocation6 + $0xa18] sm:$0xff]   ;;  %v8759_v4 = vld [vmem:[#allocation6 + $0xaa8] sm:$0xff]   ;;  %v8762_v7 = vld [vmem:[#allocation6 + $0xa30] sm:$0xff]  }
 0x1a9   : > { %v9535_v28 = vadd.f32 %v1408_v22, %v9505_v27  ;;  %v1411_v34 = vadd.f32 %v7695_v29, %v7673_v25  ;;  %v8717_v27 = vld [vmem:[#allocation6 + $0x9e0] sm:$0xff]   ;;  %v3998_v19 = vrot.slane %v3996_v14, 1  ;;  %v4010_v22 = vrot.slane %v4008_v16, 1  ;;  %v8767_v14 = vld [vmem:[#allocation6 + $0xab8] sm:$0xff]   ;;  %v4309_v15 = vld [vmem:[%s9366_s5 + $0x28] sm:$0xee] }
 0x1aa   : > { %7990 = vmatprep.subr.bf16.mxu1 %v8717_v27  ;;  %v4023_v25 = vsel %vm693_vm0, %v4018_v9, %v4022_v20  ;;  %v3987_v26 = vsel %vm693_vm0, %v3982_v11, %v3986_v21  ;;  %v8739_v29 = vld [vmem:[#allocation6 + $0xa80] sm:$0xff]   ;;  %v8747_v27 = vld [vmem:[#allocation6 + $0xa90] sm:$0xff]   ;;  %v8765_v9 = vld [vmem:[#allocation6 + $0xaf8] sm:$0xff]   ;;  %v7323_v21 = vcombine.low %v4309_v15, %v9519_v61 }
 0x1ab   : > { %v9538_v38 = vadd.f32 %v1411_v34, %v9508_v46  ;;  %v8721_v46 = vld [vmem:[#allocation6 + $0x9e8] sm:$0xff]   ;;  %7991 = vmatpush3.bf16.msra.mxu1 %v8719_v45  ;;  %7971 = vmatpush3.bf16.msra.mxu0 %v8722_v58  ;;  %v3999_v24 = vsel %vm693_vm0, %v3994_v8, %v3998_v19  ;;  %v4011_v31 = vsel %vm693_vm0, %v4006_v17, %v4010_v22  ;;  %v8752_v45 = vld [vmem:[#allocation6 + $0xa60] sm:$0xff]   ;;  %v8763_v8 = vld [vmem:[#allocation6 + $0xab0] sm:$0xff]  }
 0x1ac   : > { %7992 = vmatprep.subr.bf16.mxu1 %v8721_v46  ;;  %7972 = vmatprep.subr.bf16.mxu0 %v8724_v50  ;;  %v8742_v34 = vld [vmem:[#allocation6 + $0xa08] sm:$0xff]   ;;  %v8766_v11 = vld [vmem:[#allocation6 + $0xa38] sm:$0xff]   ;;  %v7324_v19 = vcombine.high %v4309_v15, %v9519_v61  ;;  %v8803_v15 = vld [vmem:[#allocation6 + $0xbb0] sm:$0xff]  }
 0x1ad   : > { %4252 = vmatprep.mubr.bf16.mxu0 %v3999_v24  ;;  %4293 = vmatprep.mubr.bf16.mxu1 %v4023_v25  ;;  %v4313_v16 = vld [vmem:[%s9366_s5 + $0x48] sm:$0x11] }
 0x1ae   : > { %v7328_v20 = vcombine.high %v4313_v16, %v4313_v16  ;;  %v7327_v22 = vcombine.low %v4313_v16, %v4313_v16  ;;  %v8804_v16 = vld [vmem:[#allocation6 + $0xb78] sm:$0xff]  }
 0x1af   : > { %7993 = vmatpush3.bf16.msra.mxu1 %v8723_v2  ;;  %7973 = vmatpush3.bf16.msra.mxu0 %v8726_v55  ;;  %v8755_v55 = vld [vmem:[#allocation6 + $0xaa0] sm:$0xff]  }
 0x1b0   : > { %7994 = vmatprep.subr.bf16.mxu1 %v8725_v53  ;;  %7974 = vmatprep.subr.bf16.mxu0 %v8728_v60  ;;  %v8756_v53 = vld [vmem:[#allocation6 + $0xa68] sm:$0xff]  }
 0x1b3   : > { %7995 = vmatpush3.bf16.msra.mxu1 %v8727_v57  ;;  %7975 = vmatpush3.bf16.msra.mxu0 %v8730_v3  ;;  %v8760_v3 = vld [vmem:[#allocation6 + $0xa70] sm:$0xff]  }
 0x1b4   : > { %7996 = vmatprep.subr.bf16.mxu1 %v8729_v62  ;;  %8004 = vmatprep.subr.bf16.mxu0 %v8736_v12  ;;  %v4308_v12 = vld [vmem:[%s9366_s5 + $0x20] sm:$0xee] }
 0x1b5   : > { %v7321_v17 = vcombine.low %v4308_v12, %v9512_v59 }
 0x1b6   : > { %4253 = vmatmul.mubr.bf16.vlgmr.msra.gmra.mrb[36].mxu0 %v3987_v26 }
 0x1b7   : > { %7997 = vmatpush3.bf16.msra.mxu1 %v8731_v13  ;;  %8005 = vmatpush3.bf16.msra.mxu0 %v8738_v23  ;;  %v4312_v13 = vld [vmem:[%s9366_s5 + $0x40] sm:$0x11]  ;;  %v4405_v26 = vrot.slane %v7321_v17, 1  ;;  %v8805_v17 = vld [vmem:[#allocation6 + $0xbf8] sm:$0xff]  }
 0x1b8   : > { %8026 = vmatprep.subr.bf16.mxu1 %v8737_v18  ;;  %8006 = vmatprep.subr.bf16.mxu0 %v8740_v33  ;;  %v7326_v10 = vcombine.high %v4312_v13, %v4312_v13  ;;  %v7325_v18 = vcombine.low %v4312_v13, %v4312_v13  ;;  %v8776_v23 = vld [vmem:[#allocation6 + $0xb40] sm:$0xff]   ;;  %v8799_v13 = vld [vmem:[#allocation6 + $0xba8] sm:$0xff]  }
 0x1ba   : > { %4294 = vmatmul.mubr.bf16.vlgmr.msra.gmra.mrb[36].mxu1 %v4011_v31  ;;  %v4409_v25 = vrot.slane %v7326_v10, 1  ;;  %v4406_v33 = vrot.slane %v7325_v18, 1  ;;  %v4415_v31 = vrot.slane %v7328_v20, 1  ;;  %v8801_v10 = vld [vmem:[#allocation6 + $0xbf0] sm:$0xff]   ;;  %v8807_v18 = vld [vmem:[#allocation6 + $0xbb8] sm:$0xff]  }
 0x1bb   : > { %8027 = vmatpush3.bf16.msra.mxu1 %v8739_v29  ;;  %8007 = vmatpush3.bf16.msra.mxu0 %v8742_v34  ;;  %v4414_v29 = vrot.slane %v7324_v19, 1  ;;  %v4412_v34 = vrot.slane %v7327_v22, 1  ;;  %v4701_v19 = vld [vmem:[%s9366_s5 + $0x20] sm:$0xee]  ;;  %v9580_v20 = vld [vmem:[%s9366_s5 + $0x30] sm:$0xff] }
 0x1bc   : > { %8028 = vmatprep.subr.bf16.mxu1 %v8741_v32  ;;  %8008 = vmatprep.subr.bf16.mxu0 %v8744_v35  ;;  %v4411_v32 = vrot.slane %v7323_v21, 1  ;;  %v8778_v35 = vld [vmem:[#allocation6 + $0xb00] sm:$0xff]   ;;  %v4702_v22 = vld [vmem:[%s9366_s5 + $0x28] sm:$0xee] }
 0x1bd   : > { %v4416_v61 = vsel %vm1123_vm1, %v4414_v29, %v4415_v31  ;;  %v4705_v21 = vld [vmem:[%s9366_s5 + $0x40] sm:$0x33] }
 0x1be   : > { %4686 = vmatprep.mubr.bf16.mxu1 %v4416_v61  ;;  %v7365_v29 = vcombine.low %v4705_v21, %v4705_v21 }
 0x1bf   : > { %8029 = vmatpush3.bf16.msra.mxu1 %v8743_v36  ;;  %8009 = vmatpush3.bf16.msra.mxu0 %v8746_v40  ;;  %v8779_v40 = vld [vmem:[#allocation6 + $0xb80] sm:$0xff]  }
 0x1c0   : > { %8030 = vmatprep.subr.bf16.mxu1 %v8745_v39  ;;  %8010 = vmatprep.subr.bf16.mxu0 %v8748_v41  ;;  %v4407_v39 = vsel %vm1123_vm1, %v4405_v26, %v4406_v33  ;;  %v4413_v41 = vsel %vm1123_vm1, %v4411_v32, %v4412_v34  ;;  %v4706_v26 = vld [vmem:[%s9366_s5 + $0x48] sm:$0x33]  ;;  %v7361_v33 = vcombine.low %v4701_v19, %v9580_v20 }
 0x1c1   : > { %v7368_v32 = vcombine.high %v4706_v26, %v4706_v26 }
 0x1c2   : > { %v7712_v43 = vpop.f32.mrb[12].mxu0 }
 0x1c3   : > { %v7713_v44 = vpop.f32.mrb[13].mxu0  ;;  %v7734_v58 = vpop.f32.mrb[12].mxu1  ;;  %8031 = vmatpush3.bf16.msra.mxu1 %v8747_v27  ;;  %8011 = vmatpush3.bf16.msra.mxu0 %v8750_v30  ;;  %v8780_v27 = vld [vmem:[#allocation6 + $0xb48] sm:$0xff]  }
 0x1c4   : > { %v7714_v47 = vadd.f32 %v7713_v44, %v7712_v43  ;;  %v7715_v46 = vpop.f32.mrb[14].mxu0  ;;  %v7735_v50 = vpop.f32.mrb[13].mxu1  ;;  %8032 = vmatprep.subr.bf16.mxu1 %v8749_v42  ;;  %8012 = vmatprep.subr.bf16.mxu0 %v8752_v45  ;;  %v8781_v42 = vld [vmem:[#allocation6 + $0xbc8] sm:$0xff]   ;;  %v8784_v44 = vld [vmem:[#allocation6 + $0xb50] sm:$0xff]  }
 0x1c5   : > { %v7736_v2 = vadd.f32 %v7735_v50, %v7734_v58  ;;  %v7737_v52 = vpop.f32.mrb[14].mxu1  ;;  %v7716_v54 = vpop.f32.mrb[15].mxu0  ;;  %v8782_v43 = vld [vmem:[#allocation6 + $0xb08] sm:$0xff]   ;;  %v8785_v45 = vld [vmem:[#allocation6 + $0xbd0] sm:$0xff]  }
 0x1c6   : > { %v7717_v57 = vadd.f32 %v7716_v54, %v7715_v46  ;;  %v7738_v60 = vpop.f32.mrb[15].mxu1  ;;  %v8783_v30 = vld [vmem:[#allocation6 + $0xb88] sm:$0xff]   ;;  %v8787_v46 = vld [vmem:[#allocation6 + $0xb90] sm:$0xff]  }
 0x1c7   : > { %v1858_v56 = vadd.f32 %v7736_v2, %v7714_v47  ;;  %8033 = vmatpush3.bf16.msra.mxu1 %v8751_v48  ;;  %v7739_v62 = vadd.f32 %v7738_v60, %v7737_v52  ;;  %8013 = vmatpush3.bf16.msra.mxu0 %v8754_v51  ;;  %v8786_v47 = vld [vmem:[#allocation6 + $0xb10] sm:$0xff]   ;;  %v8788_v48 = vld [vmem:[#allocation6 + $0xb58] sm:$0xff]  }
 0x1c8   : > { %8034 = vmatprep.subr.bf16.mxu1 %v8753_v49  ;;  %8014 = vmatprep.subr.bf16.mxu0 %v8756_v53  ;;  %v8789_v49 = vld [vmem:[#allocation6 + $0xbd8] sm:$0xff]  }
 0x1c9   : > { %v9555_v63 = vadd.f32 %v1858_v56, %v9535_v28  ;;  %v1861_v1 = vadd.f32 %v7739_v62, %v7717_v57  ;;  %v8764_v28 = vld [vmem:[#allocation6 + $0xa78] sm:$0xff]   ;;  %v8793_v57 = vld [vmem:[#allocation6 + $0xbe0] sm:$0xff]  }
 0x1ca   : > { %v8790_v51 = vld [vmem:[#allocation6 + $0xb18] sm:$0xff]   ;;  %v8794_v62 = vld [vmem:[#allocation6 + $0xb20] sm:$0xff]  }
 0x1cb   : > { %8035 = vmatpush3.bf16.msra.mxu1 %v8755_v55  ;;  %v9558_v5 = vadd.f32 %v1861_v1, %v9538_v38  ;;  %8015 = vmatpush3.bf16.msra.mxu0 %v8758_v0  ;;  %v7322_v38 = vcombine.high %v4308_v12, %v9512_v59  ;;  %v8777_v59 = vld [vmem:[#allocation6 + $0xbc0] sm:$0xff]   ;;  %v8791_v53 = vld [vmem:[#allocation6 + $0xb98] sm:$0xff]  }
 0x1cc   : > { %8036 = vmatprep.subr.bf16.mxu1 %v8757_v37  ;;  %8016 = vmatprep.subr.bf16.mxu0 %v8760_v3  ;;  %v8792_v55 = vld [vmem:[#allocation6 + $0xb60] sm:$0xff]  }
 0x1cd   : > { %v4408_v24 = vrot.slane %v7322_v38, 1  ;;  %v8795_v1 = vld [vmem:[#allocation6 + $0xba0] sm:$0xff]   ;;  %v8800_v38 = vld [vmem:[#allocation6 + $0xb70] sm:$0xff]  }
 0x1cf   : > { %8037 = vmatpush3.bf16.msra.mxu1 %v8759_v4  ;;  %8017 = vmatpush3.bf16.msra.mxu0 %v8762_v7  ;;  %v4410_v36 = vsel %vm1123_vm1, %v4408_v24, %v4409_v25  ;;  %v8796_v7 = vld [vmem:[#allocation6 + $0xb68] sm:$0xff]   ;;  %v7366_v24 = vcombine.high %v4705_v21, %v4705_v21  ;;  %v9586_v25 = vld [vmem:[%s9366_s5 + $0x38] sm:$0xff] }
 0x1d0   : > { %8038 = vmatprep.subr.bf16.mxu1 %v8761_v6  ;;  %8018 = vmatprep.subr.bf16.mxu0 %v8764_v28  ;;  %v7364_v31 = vcombine.high %v4702_v22, %v9586_v25  ;;  %v7363_v34 = vcombine.low %v4702_v22, %v9586_v25  ;;  %v8822_v22 = vld [vmem:[#allocation6 + $0xc08] sm:$0xff]  }
 0x1d1   : > { %4645 = vmatprep.mubr.bf16.mxu0 %v4410_v36  ;;  %v4824_v61 = vshrl.u32 %v7366_v24, 16 }
 0x1d3   : > { %8039 = vmatpush3.bf16.msra.mxu1 %v8763_v8  ;;  %8019 = vmatpush3.bf16.msra.mxu0 %v8766_v11  ;;  %v8798_v11 = vld [vmem:[#allocation6 + $0xb28] sm:$0xff]  }
 0x1d4   : > { %8040 = vmatprep.subr.bf16.mxu1 %v8765_v9  ;;  %8048 = vmatprep.subr.bf16.mxu0 %v8776_v23  ;;  %v8797_v9 = vld [vmem:[#allocation6 + $0xbe8] sm:$0xff]   ;;  %v7362_v23 = vcombine.high %v4701_v19, %v9580_v20 }
 0x1d5   : > { %v8821_v19 = vld [vmem:[#allocation6 + $0xcc8] sm:$0xff]  }
 0x1d6   : > { %4646 = vmatmul.mubr.bf16.vlgmr.msra.gmra.mrb[40].mxu0 %v4407_v39  ;;  %v4816_v36 = vshrl.u32 %v7362_v23, 16  ;;  %v4819_v39 = vshll.u32 %v7362_v23, 16 }
 0x1d7   : > { %8041 = vmatpush3.bf16.msra.mxu1 %v8767_v14  ;;  %8049 = vmatpush3.bf16.msra.mxu0 %v8778_v35  ;;  %v8816_v35 = vld [vmem:[#allocation6 + $0xc40] sm:$0xff]  }
 0x1d8   : > { %8070 = vmatprep.subr.bf16.mxu1 %v8777_v59  ;;  %8050 = vmatprep.subr.bf16.mxu0 %v8780_v27  ;;  %v7367_v59 = vcombine.low %v4706_v26, %v4706_v26  ;;  %v4853_v27 = vshll.u32 %v7364_v31, 16  ;;  %v8824_v26 = vld [vmem:[#allocation6 + $0xc50] sm:$0xff]  }
 0x1da   : > { %4687 = vmatmul.mubr.bf16.vlgmr.msra.gmra.mrb[40].mxu1 %v4413_v41  ;;  %v4850_v41 = vshrl.u32 %v7364_v31, 16 }
 0x1db   : > { %8071 = vmatpush3.bf16.msra.mxu1 %v8779_v40  ;;  %8051 = vmatpush3.bf16.msra.mxu0 %v8782_v43  ;;  %v4827_v40 = vshll.u32 %v7366_v24, 16  ;;  %v4861_v43 = vshll.u32 %v7368_v32, 16 }
 0x1dc   : > { %8072 = vmatprep.subr.bf16.mxu1 %v8781_v42  ;;  %8052 = vmatprep.subr.bf16.mxu0 %v8784_v44  ;;  %v4858_v42 = vshrl.u32 %v7368_v32, 16  ;;  %v4818_v44 = vrot.slane %v4816_v36, 1  ;;  %v8826_v36 = vld [vmem:[#allocation6 + $0xc10] sm:$0xff]  }
 0x1df   : > { %8073 = vmatpush3.bf16.msra.mxu1 %v8783_v30  ;;  %8053 = vmatpush3.bf16.msra.mxu0 %v8786_v47  ;;  %v8817_v30 = vld [vmem:[#allocation6 + $0xcc0] sm:$0xff]   ;;  %v4826_v47 = vrot.slane %v4824_v61, 1  ;;  %v8828_v61 = vld [vmem:[#allocation6 + $0xc58] sm:$0xff]  }
 0x1e0   : > { %8074 = vmatprep.subr.bf16.mxu1 %v8785_v45  ;;  %8054 = vmatprep.subr.bf16.mxu0 %v8788_v48  ;;  %v4821_v45 = vrot.slane %v4819_v39, 2  ;;  %v4852_v48 = vrot.slane %v4850_v41, 1 }
 0x1e2   : > { %v7756_v58 = vpop.f32.mrb[16].mxu0 }
 0x1e3   : > { %v7757_v50 = vpop.f32.mrb[17].mxu0  ;;  %v7778_v54 = vpop.f32.mrb[16].mxu1  ;;  %8075 = vmatpush3.bf16.msra.mxu1 %v8787_v46  ;;  %8055 = vmatpush3.bf16.msra.mxu0 %v8790_v51  ;;  %v4829_v46 = vrot.slane %v4827_v40, 2  ;;  %v4822_v51 = vor.u32 %v4821_v45, %v4818_v44 }
 0x1e4   : > { %v7758_v2 = vadd.f32 %v7757_v50, %v7756_v58  ;;  %v7759_v52 = vpop.f32.mrb[18].mxu0  ;;  %v7779_v56 = vpop.f32.mrb[17].mxu1  ;;  %8076 = vmatprep.subr.bf16.mxu1 %v8789_v49  ;;  %8056 = vmatprep.subr.bf16.mxu0 %v8792_v55  ;;  %v4855_v58 = vrot.slane %v4853_v27, 2  ;;  %v4860_v49 = vrot.slane %v4858_v42, 1  ;;  %v4863_v50 = vrot.slane %v4861_v43, 2  ;;  %v8827_v27 = vld [vmem:[#allocation6 + $0xc90] sm:$0xff]  }
 0x1e5   : > { %v7780_v60 = vadd.f32 %v7779_v56, %v7778_v54  ;;  %v7781_v37 = vpop.f32.mrb[18].mxu1  ;;  %v7760_v0 = vpop.f32.mrb[19].mxu0  ;;  %v4807_v56 = vshrl.u32 %v7365_v29, 16 }
 0x1e6   : > { %v7761_v4 = vadd.f32 %v7760_v0, %v7759_v52  ;;  %v7782_v6 = vpop.f32.mrb[19].mxu1  ;;  %v4799_v52 = vshrl.u32 %v7361_v33, 16  ;;  %v4856_v54 = vor.u32 %v4855_v58, %v4852_v48  ;;  %v4864_v55 = vor.u32 %v4863_v50, %v4860_v49  ;;  %v8831_v58 = vld [vmem:[#allocation6 + $0xc98] sm:$0xff]   ;;  %v8833_v49 = vld [vmem:[#allocation6 + $0xce0] sm:$0xff]  }
 0x1e7   : > { %v2227_v3 = vadd.f32 %v7780_v60, %v7758_v2  ;;  %8077 = vmatpush3.bf16.msra.mxu1 %v8791_v53  ;;  %v7783_v28 = vadd.f32 %v7782_v6, %v7781_v37  ;;  %8057 = vmatpush3.bf16.msra.mxu0 %v8794_v62  ;;  %v4830_v2 = vor.u32 %v4829_v46, %v4826_v47  ;;  %v4802_v53 = vshll.u32 %v7361_v33, 16  ;;  %v8830_v47 = vld [vmem:[#allocation6 + $0xc18] sm:$0xff]   ;;  %v8832_v46 = vld [vmem:[#allocation6 + $0xc60] sm:$0xff]  }
 0x1e8   : > { %8078 = vmatprep.subr.bf16.mxu1 %v8793_v57  ;;  %8058 = vmatprep.subr.bf16.mxu0 %v8796_v7  ;;  %v4810_v57 = vshll.u32 %v7365_v29, 16  ;;  %v4801_v37 = vrot.slane %v4799_v52, 1  ;;  %v4833_v0 = vshrl.u32 %v7363_v34, 16  ;;  %v4836_v6 = vshll.u32 %v7363_v34, 16  ;;  %v8823_v29 = vld [vmem:[#allocation6 + $0xc88] sm:$0xff]   ;;  %v8825_v34 = vld [vmem:[#allocation6 + $0xcd0] sm:$0xff]  }
 0x1e9   : > { %v9573_v8 = vadd.f32 %v2227_v3, %v9555_v63  ;;  %v2230_v12 = vadd.f32 %v7783_v28, %v7761_v4  ;;  %v8802_v63 = vld [vmem:[#allocation6 + $0xb30] sm:$0xff]   ;;  %v4831_v60 = vsel %vm1517_vm2, %v4822_v51, %v4830_v2  ;;  %v4804_v62 = vrot.slane %v4802_v53, 2  ;;  %v8834_v51 = vld [vmem:[#allocation6 + $0xc20] sm:$0xff]   ;;  %v8836_v2 = vld [vmem:[#allocation6 + $0xc68] sm:$0xff]  }
 0x1ea   : > { %5094 = vmatprep.mubr.bf16.mxu0 %v4831_v60  ;;  %v4809_v3 = vrot.slane %v4807_v56, 1  ;;  %v4812_v4 = vrot.slane %v4810_v57, 2  ;;  %v4835_v28 = vrot.slane %v4833_v0, 1  ;;  %v8837_v52 = vld [vmem:[#allocation6 + $0xce8] sm:$0xff]   ;;  %v8841_v56 = vld [vmem:[#allocation6 + $0xcf0] sm:$0xff]   ;;  %v8844_v60 = vld [vmem:[#allocation6 + $0xc78] sm:$0xff]  }
 0x1eb   : > { %8079 = vmatpush3.bf16.msra.mxu1 %v8795_v1  ;;  %v9576_v14 = vadd.f32 %v2230_v12, %v9558_v5  ;;  %8059 = vmatpush3.bf16.msra.mxu0 %v8798_v11  ;;  %v8806_v5 = vld [vmem:[#allocation6 + $0xb38] sm:$0xff]   ;;  %v4865_v1 = vsel %vm1517_vm2, %v4856_v54, %v4864_v55  ;;  %v4805_v7 = vor.u32 %v4804_v62, %v4801_v37  ;;  %v4844_v11 = vshll.u32 %v7367_v59, 16  ;;  %v8818_v12 = vld [vmem:[#allocation6 + $0xc00] sm:$0xff]   ;;  %v8838_v53 = vld [vmem:[#allocation6 + $0xc28] sm:$0xff]  }
 0x1ec   : > { %8080 = vmatprep.subr.bf16.mxu1 %v8797_v9  ;;  %8060 = vmatprep.subr.bf16.mxu0 %v8800_v38  ;;  %v4841_v9 = vshrl.u32 %v7367_v59, 16  ;;  %v4838_v38 = vrot.slane %v4836_v6, 2  ;;  %v8840_v54 = vld [vmem:[#allocation6 + $0xc70] sm:$0xff]   ;;  %v8839_v55 = vld [vmem:[#allocation6 + $0xca8] sm:$0xff]   ;;  %v9603_v37 = vld [vmem:[%s9366_s5 + $0x40] sm:$0xff] }
 0x1ed   : > { %5135 = vmatprep.mubr.bf16.mxu1 %v4865_v1  ;;  %v8843_v57 = vld [vmem:[#allocation6 + $0xcb0] sm:$0xff]   ;;  %v9607_v62 = vcombine.high %v9580_v20, %v9603_v37  ;;  %v9610_v0 = vld [vmem:[%s9366_s5 + $0x48] sm:$0xff]  ;;  %v8845_v1 = vld [vmem:[#allocation6 + $0xcf8] sm:$0xff]  }
 0x1ee   : > { %v8852_v6 = vld [vmem:[#allocation6 + $0xd40] sm:$0xff]  }
 0x1ef   : > { %8081 = vmatpush3.bf16.msra.mxu1 %v8799_v13  ;;  %8061 = vmatpush3.bf16.msra.mxu0 %v8802_v63  ;;  %v4813_v13 = vor.u32 %v4812_v4, %v4809_v3  ;;  %v4843_v63 = vrot.slane %v4841_v9, 1  ;;  %v9614_v3 = vcombine.high %v9586_v25, %v9610_v0  ;;  %v8846_v4 = vld [vmem:[#allocation6 + $0xc38] sm:$0xff]   ;;  %v8853_v9 = vld [vmem:[#allocation6 + $0xdc0] sm:$0xff]  }
 0x1f0   : > { %8082 = vmatprep.subr.bf16.mxu1 %v8801_v10  ;;  %8062 = vmatprep.subr.bf16.mxu0 %v8804_v16  ;;  %v8820_v10 = vld [vmem:[#allocation6 + $0xc48] sm:$0xff]   ;;  %v8819_v16 = vld [vmem:[#allocation6 + $0xc80] sm:$0xff]  }
 0x1f3   : > { %8083 = vmatpush3.bf16.msra.mxu1 %v8803_v15  ;;  %8063 = vmatpush3.bf16.msra.mxu0 %v8806_v5  ;;  %v4846_v15 = vrot.slane %v4844_v11, 2  ;;  %v4839_v5 = vor.u32 %v4838_v38, %v4835_v28  ;;  %v9620_v28 = vcombine.low %v9580_v20, %v9603_v37  ;;  %v8854_v11 = vld [vmem:[#allocation6 + $0xd00] sm:$0xff]   ;;  %v9624_v38 = vcombine.low %v9586_v25, %v9610_v0  ;;  %v8859_v25 = vld [vmem:[#allocation6 + $0xd88] sm:$0xff]  }
 0x1f4   : > { %8084 = vmatprep.subr.bf16.mxu1 %v8805_v17  ;;  %8092 = vmatprep.subr.bf16.mxu0 %v8816_v35  ;;  %v4814_v17 = vsel %vm1517_vm2, %v4805_v7, %v4813_v13  ;;  %v8847_v7 = vld [vmem:[#allocation6 + $0xcb8] sm:$0xff]  }
 0x1f6   : > { %5095 = vmatmul.mubr.bf16.vlgmr.msra.gmra.mrb[44].mxu0 %v4814_v17  ;;  %v8858_v17 = vld [vmem:[#allocation6 + $0xd08] sm:$0xff]  }
 0x1f7   : > { %8085 = vmatpush3.bf16.msra.mxu1 %v8807_v18  ;;  %v4847_v18 = vor.u32 %v4846_v15, %v4843_v63  ;;  %8093 = vmatpush3.bf16.msra.mxu0 %v8818_v12  ;;  %v8856_v12 = vld [vmem:[#allocation6 + $0xd48] sm:$0xff]  }
 0x1f8   : > { %8114 = vmatprep.subr.bf16.mxu1 %v8817_v30  ;;  %8094 = vmatprep.subr.bf16.mxu0 %v8820_v10  ;;  %v8829_v30 = vld [vmem:[#allocation6 + $0xcd8] sm:$0xff]   ;;  %v8855_v10 = vld [vmem:[#allocation6 + $0xd80] sm:$0xff]   ;;  %v8857_v15 = vld [vmem:[#allocation6 + $0xdc8] sm:$0xff]  }
 0x1f9   : > { %v4848_v24 = vsel %vm1517_vm2, %v4839_v5, %v4847_v18  ;;  %5463 = vmatprep.mubr.bf16.mxu0 %v9607_v62  ;;  %v8860_v18 = vld [vmem:[#allocation6 + $0xd50] sm:$0xff]  }
 0x1fa   : > { %5136 = vmatmul.mubr.bf16.vlgmr.msra.gmra.mrb[44].mxu1 %v4848_v24 }
 0x1fb   : > { %8115 = vmatpush3.bf16.msra.mxu1 %v8819_v16  ;;  %8095 = vmatpush3.bf16.msra.mxu0 %v8822_v22 }
 0x1fc   : > { %8116 = vmatprep.subr.bf16.mxu1 %v8821_v19  ;;  %8096 = vmatprep.subr.bf16.mxu0 %v8824_v26 }
 0x1fd   : > { %5504 = vmatprep.mubr.bf16.mxu1 %v9614_v3 }
 0x1ff   : > { %8117 = vmatpush3.bf16.msra.mxu1 %v8823_v29  ;;  %8097 = vmatpush3.bf16.msra.mxu0 %v8826_v36  ;;  %v8865_v36 = vld [vmem:[#allocation6 + $0xdd8] sm:$0xff]  }
 0x200   : > { %8118 = vmatprep.subr.bf16.mxu1 %v8825_v34  ;;  %8098 = vmatprep.subr.bf16.mxu0 %v8828_v61  ;;  %v8866_v61 = vld [vmem:[#allocation6 + $0xd18] sm:$0xff]  }
 0x202   : > { %v7800_v21 = vpop.f32.mrb[20].mxu0 }
 0x203   : > { %v7822_v23 = vpop.f32.mrb[20].mxu1  ;;  %v7801_v33 = vpop.f32.mrb[21].mxu0  ;;  %8119 = vmatpush3.bf16.msra.mxu1 %v8827_v27  ;;  %8099 = vmatpush3.bf16.msra.mxu0 %v8830_v47  ;;  %v8867_v27 = vld [vmem:[#allocation6 + $0xd98] sm:$0xff]   ;;  %v5655_v47 = vshll.u32 %v9614_v3, 16 }
 0x204   : > { %v7802_v31 = vadd.f32 %v7801_v33, %v7800_v21  ;;  %v7823_v32 = vpop.f32.mrb[21].mxu1  ;;  %v7803_v35 = vpop.f32.mrb[22].mxu0  ;;  %8120 = vmatprep.subr.bf16.mxu1 %v8829_v30  ;;  %8100 = vmatprep.subr.bf16.mxu0 %v8832_v46  ;;  %v8862_v33 = vld [vmem:[#allocation6 + $0xd10] sm:$0xff]   ;;  %v8870_v30 = vld [vmem:[#allocation6 + $0xd20] sm:$0xff]  }
 0x205   : > { %v7824_v59 = vadd.f32 %v7823_v32, %v7822_v23  ;;  %v7825_v39 = vpop.f32.mrb[22].mxu1  ;;  %v7804_v41 = vpop.f32.mrb[23].mxu0  ;;  %v8861_v23 = vld [vmem:[#allocation6 + $0xdd0] sm:$0xff]   ;;  %v8864_v32 = vld [vmem:[#allocation6 + $0xd58] sm:$0xff]   ;;  %v8871_v46 = vld [vmem:[#allocation6 + $0xda0] sm:$0xff]  }
 0x206   : > { %v7805_v42 = vadd.f32 %v7804_v41, %v7803_v35  ;;  %v7826_v43 = vpop.f32.mrb[23].mxu1  ;;  %v8863_v35 = vld [vmem:[#allocation6 + $0xd90] sm:$0xff]  }
 0x207   : > { %v2656_v40 = vadd.f32 %v7824_v59, %v7802_v31  ;;  %v7827_v45 = vadd.f32 %v7826_v43, %v7825_v39  ;;  %8121 = vmatpush3.bf16.msra.mxu1 %v8831_v58  ;;  %8101 = vmatpush3.bf16.msra.mxu0 %v8834_v51  ;;  %v5631_v43 = vshll.u32 %v9607_v62, 16  ;;  %v8873_v58 = vld [vmem:[#allocation6 + $0xde8] sm:$0xff]   ;;  %v5619_v51 = vshll.u32 %v9620_v28, 16 }
 0x208   : > { %8122 = vmatprep.subr.bf16.mxu1 %v8833_v49  ;;  %8102 = vmatprep.subr.bf16.mxu0 %v8836_v2  ;;  %v8876_v2 = vld [vmem:[#allocation6 + $0xd70] sm:$0xff]  }
 0x209   : > { %v9597_v44 = vadd.f32 %v2656_v40, %v9573_v8  ;;  %v2659_v48 = vadd.f32 %v7827_v45, %v7805_v42  ;;  %v8835_v8 = vld [vmem:[#allocation6 + $0xca0] sm:$0xff]   ;;  %v8872_v45 = vld [vmem:[#allocation6 + $0xd68] sm:$0xff]   ;;  %v5633_v49 = vrot.slane %v5631_v43, 1  ;;  %v8899_v43 = vld [vmem:[#allocation6 + $0xe90] sm:$0xff]  }
 0x20a   : > { %v8868_v40 = vld [vmem:[#allocation6 + $0xd60] sm:$0xff]  }
 0x20b   : > { %v9600_v50 = vadd.f32 %v2659_v48, %v9576_v14  ;;  %8123 = vmatpush3.bf16.msra.mxu1 %v8835_v8  ;;  %8103 = vmatpush3.bf16.msra.mxu0 %v8838_v53  ;;  %v8842_v14 = vld [vmem:[#allocation6 + $0xc30] sm:$0xff]   ;;  %v8869_v42 = vld [vmem:[#allocation6 + $0xde0] sm:$0xff]   ;;  %v5653_v48 = vshrl.u32 %v9614_v3, 16  ;;  %v5657_v8 = vrot.slane %v5655_v47, 1  ;;  %v5643_v53 = vshll.u32 %v9624_v38, 16 }
 0x20c   : > { %8124 = vmatprep.subr.bf16.mxu1 %v8837_v52  ;;  %8104 = vmatprep.subr.bf16.mxu0 %v8840_v54  ;;  %v8875_v52 = vld [vmem:[#allocation6 + $0xda8] sm:$0xff]   ;;  %v8877_v54 = vld [vmem:[#allocation6 + $0xdf0] sm:$0xff]  }
 0x20d   : > { %v5523_v3 = vld [vmem:[%s9366_s5 + $0x50] sm:$0x11] }
 0x20f   : > { %8125 = vmatpush3.bf16.msra.mxu1 %v8839_v55  ;;  %8105 = vmatpush3.bf16.msra.mxu0 %v8842_v14  ;;  %v5617_v55 = vshrl.u32 %v9620_v28, 16  ;;  %v5621_v14 = vrot.slane %v5619_v51, 1  ;;  %v8905_v51 = vld [vmem:[#allocation6 + $0xee0] sm:$0xff]  }
 0x210   : > { %8126 = vmatprep.subr.bf16.mxu1 %v8841_v56  ;;  %8106 = vmatprep.subr.bf16.mxu0 %v8844_v60  ;;  %v8878_v56 = vld [vmem:[#allocation6 + $0xd30] sm:$0xff]   ;;  %v8880_v60 = vld [vmem:[#allocation6 + $0xd78] sm:$0xff]  }
 0x213   : > { %8127 = vmatpush3.bf16.msra.mxu1 %v8843_v57  ;;  %8107 = vmatpush3.bf16.msra.mxu0 %v8846_v4  ;;  %v8879_v57 = vld [vmem:[#allocation6 + $0xdb0] sm:$0xff]   ;;  %v5524_v4 = vld [vmem:[%s9366_s5 + $0x58] sm:$0x11] }
 0x214   : > { %8128 = vmatprep.subr.bf16.mxu1 %v8845_v1  ;;  %8136 = vmatprep.subr.bf16.mxu0 %v8852_v6  ;;  %v8881_v1 = vld [vmem:[#allocation6 + $0xdf8] sm:$0xff]   ;;  %v5645_v6 = vrot.slane %v5643_v53, 1 }
 0x216   : > { %5464 = vmatmul.mubr.bf16.vlgmr.msra.gmra.mrb[48].mxu0 %v9620_v28 }
 0x217   : > { %8129 = vmatpush3.bf16.msra.mxu1 %v8847_v7  ;;  %8137 = vmatpush3.bf16.msra.mxu0 %v8854_v11  ;;  %v8882_v7 = vld [vmem:[#allocation6 + $0xd38] sm:$0xff]   ;;  %v7444_v11 = vcombine.high %v5524_v4, %v5524_v4 }
 0x218   : > { %8158 = vmatprep.subr.bf16.mxu1 %v8853_v9  ;;  %8138 = vmatprep.subr.bf16.mxu0 %v8856_v12  ;;  %v7442_v9 = vcombine.high %v5523_v3, %v5523_v3  ;;  %v7441_v12 = vcombine.low %v5523_v3, %v5523_v3 }
 0x21a   : > { %5505 = vmatmul.mubr.bf16.vlgmr.msra.gmra.mrb[48].mxu1 %v9624_v38 }
 0x21b   : > { %8159 = vmatpush3.bf16.msra.mxu1 %v8855_v10  ;;  %8139 = vmatpush3.bf16.msra.mxu0 %v8858_v17  ;;  %v5658_v10 = vor.u32 %v5657_v8, %v5653_v48  ;;  %v5624_v17 = vshll.u32 %v7441_v12, 16  ;;  %v8906_v8 = vld [vmem:[#allocation6 + $0xe20] sm:$0xff]   ;;  %v8913_v12 = vld [vmem:[#allocation6 + $0xef0] sm:$0xff]  }
 0x21c   : > { %8160 = vmatprep.subr.bf16.mxu1 %v8857_v15  ;;  %8140 = vmatprep.subr.bf16.mxu0 %v8860_v18  ;;  %v8888_v15 = vld [vmem:[#allocation6 + $0xe40] sm:$0xff]  }
 0x21f   : > { %8161 = vmatpush3.bf16.msra.mxu1 %v8859_v25  ;;  %8141 = vmatpush3.bf16.msra.mxu0 %v8862_v33 }
 0x220   : > { %8162 = vmatprep.subr.bf16.mxu1 %v8861_v23  ;;  %8142 = vmatprep.subr.bf16.mxu0 %v8864_v32  ;;  %v8891_v32 = vld [vmem:[#allocation6 + $0xe80] sm:$0xff]  }
 0x222   : > { %v7844_v13 = vpop.f32.mrb[24].mxu0 }
 0x223   : > { %v7845_v63 = vpop.f32.mrb[25].mxu0  ;;  %v7866_v16 = vpop.f32.mrb[24].mxu1  ;;  %8163 = vmatpush3.bf16.msra.mxu1 %v8863_v35  ;;  %8143 = vmatpush3.bf16.msra.mxu0 %v8866_v61  ;;  %v8893_v35 = vld [vmem:[#allocation6 + $0xec8] sm:$0xff]  }
 0x224   : > { %v7846_v20 = vadd.f32 %v7845_v63, %v7844_v13  ;;  %v7867_v5 = vpop.f32.mrb[25].mxu1  ;;  %v7847_v21 = vpop.f32.mrb[26].mxu0  ;;  %8164 = vmatprep.subr.bf16.mxu1 %v8865_v36  ;;  %8144 = vmatprep.subr.bf16.mxu0 %v8868_v40  ;;  %v7443_v13 = vcombine.low %v5524_v4, %v5524_v4  ;;  %v5622_v63 = vor.u32 %v5621_v14, %v5617_v55  ;;  %v8894_v36 = vld [vmem:[#allocation6 + $0xe08] sm:$0xff]   ;;  %v8897_v40 = vld [vmem:[#allocation6 + $0xed0] sm:$0xff]  }
 0x225   : > { %v7868_v19 = vadd.f32 %v7867_v5, %v7866_v16  ;;  %v7869_v22 = vpop.f32.mrb[26].mxu1  ;;  %v7848_v26 = vpop.f32.mrb[27].mxu0  ;;  %v8883_v16 = vld [vmem:[#allocation6 + $0xdb8] sm:$0xff]   ;;  %v8895_v61 = vld [vmem:[#allocation6 + $0xe88] sm:$0xff]  }
 0x226   : > { %v7849_v29 = vadd.f32 %v7848_v26, %v7847_v21  ;;  %v7870_v31 = vpop.f32.mrb[27].mxu1  ;;  %v5648_v5 = vshll.u32 %v7443_v13, 16  ;;  %v8910_v4 = vld [vmem:[#allocation6 + $0xe28] sm:$0xff]   ;;  %v8914_v13 = vld [vmem:[#allocation6 + $0xe30] sm:$0xff]  }
 0x227   : > { %v3049_v24 = vadd.f32 %v7868_v19, %v7846_v20  ;;  %v7871_v59 = vadd.f32 %v7870_v31, %v7869_v22  ;;  %8165 = vmatpush3.bf16.msra.mxu1 %v8867_v27  ;;  %8145 = vmatpush3.bf16.msra.mxu0 %v8870_v30  ;;  %v5636_v20 = vshll.u32 %v7442_v9, 16  ;;  %v8889_v19 = vld [vmem:[#allocation6 + $0xec0] sm:$0xff]   ;;  %v5626_v22 = vrot.slane %v5624_v17, 1  ;;  %v8892_v31 = vld [vmem:[#allocation6 + $0xe48] sm:$0xff]   ;;  %v8898_v27 = vld [vmem:[#allocation6 + $0xe10] sm:$0xff]  }
 0x228   : > { %8166 = vmatprep.subr.bf16.mxu1 %v8869_v42  ;;  %8146 = vmatprep.subr.bf16.mxu0 %v8872_v45  ;;  %v5650_v23 = vrot.slane %v5648_v5, 1  ;;  %v8900_v42 = vld [vmem:[#allocation6 + $0xe58] sm:$0xff]   ;;  %v8911_v9 = vld [vmem:[#allocation6 + $0xea8] sm:$0xff]  }
 0x229   : > { %v9629_v34 = vadd.f32 %v3049_v24, %v9597_v44  ;;  %v3052_v39 = vadd.f32 %v7871_v59, %v7849_v29  ;;  %v5629_v44 = vshrl.u32 %v9607_v62, 16  ;;  %v5641_v62 = vshrl.u32 %v9624_v38, 16  ;;  %v8890_v24 = vld [vmem:[#allocation6 + $0xe00] sm:$0xff]   ;;  %v8901_v30 = vld [vmem:[#allocation6 + $0xed8] sm:$0xff]  }
 0x22a   : > { %v5660_v38 = vshll.u32 %v7444_v11, 16  ;;  %v5638_v21 = vrot.slane %v5636_v20, 1  ;;  %v5627_v29 = vsel %vm693_vm0, %v5622_v63, %v5626_v22  ;;  %v8902_v45 = vld [vmem:[#allocation6 + $0xe18] sm:$0xff]  }
 0x22b   : > { %v9632_v41 = vadd.f32 %v3052_v39, %v9600_v50  ;;  %v8874_v50 = vld [vmem:[#allocation6 + $0xd28] sm:$0xff]   ;;  %8167 = vmatpush3.bf16.msra.mxu1 %v8871_v46  ;;  %v5634_v28 = vor.u32 %v5633_v49, %v5629_v44  ;;  %v5646_v18 = vor.u32 %v5645_v6, %v5641_v62  ;;  %v8896_v39 = vld [vmem:[#allocation6 + $0xe50] sm:$0xff]   ;;  %v8904_v46 = vld [vmem:[#allocation6 + $0xe60] sm:$0xff]  }
 0x22c   : > { %8168 = vmatprep.subr.bf16.mxu1 %v8873_v58  ;;  %8147 = vmatpush3.bf16.msra.mxu0 %v8874_v50  ;;  %v5662_v25 = vrot.slane %v5660_v38, 1  ;;  %v8903_v49 = vld [vmem:[#allocation6 + $0xe98] sm:$0xff]   ;;  %v8909_v62 = vld [vmem:[#allocation6 + $0xee8] sm:$0xff]  }
 0x22d   : > { %8148 = vmatprep.subr.bf16.mxu0 %v8876_v2  ;;  %v5639_v26 = vsel %vm693_vm0, %v5634_v28, %v5638_v21  ;;  %v5651_v59 = vsel %vm693_vm0, %v5646_v18, %v5650_v23  ;;  %v8915_v28 = vld [vmem:[#allocation6 + $0xeb0] sm:$0xff]   ;;  %v8918_v63 = vld [vmem:[#allocation6 + $0xe38] sm:$0xff]  }
 0x22e   : > { %v5663_v33 = vsel %vm693_vm0, %v5658_v10, %v5662_v25  ;;  %5892 = vmatprep.mubr.bf16.mxu0 %v5639_v26  ;;  %v8917_v10 = vld [vmem:[#allocation6 + $0xef8] sm:$0xff]  }
 0x22f   : > { %8169 = vmatpush3.bf16.msra.mxu1 %v8875_v52  ;;  %5933 = vmatprep.mubr.bf16.mxu1 %v5663_v33  ;;  %v8919_v20 = vld [vmem:[#allocation6 + $0xeb8] sm:$0xff]  }
 0x230   : > { %8170 = vmatprep.subr.bf16.mxu1 %v8877_v54  ;;  %8149 = vmatpush3.bf16.msra.mxu0 %v8878_v56  ;;  %v8908_v54 = vld [vmem:[#allocation6 + $0xe68] sm:$0xff]   ;;  %v8907_v56 = vld [vmem:[#allocation6 + $0xea0] sm:$0xff]   ;;  %v5949_v17 = vld [vmem:[%s9366_s5 + $0x38] sm:$0xee] }
 0x231   : > { %8150 = vmatprep.subr.bf16.mxu0 %v8880_v60  ;;  %v5953_v5 = vld [vmem:[%s9366_s5 + $0x58] sm:$0x11]  ;;  %v7480_v21 = vcombine.high %v5949_v17, %v9610_v0  ;;  %v7479_v22 = vcombine.low %v5949_v17, %v9610_v0  ;;  %v8954_v17 = vld [vmem:[#allocation6 + $0xf30] sm:$0xff]  }
 0x232   : > { %v7484_v25 = vcombine.high %v5953_v5, %v5953_v5  ;;  %v7483_v23 = vcombine.low %v5953_v5, %v5953_v5  ;;  %v8956_v5 = vld [vmem:[#allocation6 + $0xf78] sm:$0xff]  }
 0x233   : > { %8171 = vmatpush3.bf16.msra.mxu1 %v8879_v57 }
 0x234   : > { %8172 = vmatprep.subr.bf16.mxu1 %v8881_v1  ;;  %8151 = vmatpush3.bf16.msra.mxu0 %v8882_v7  ;;  %v8912_v7 = vld [vmem:[#allocation6 + $0xe70] sm:$0xff]  }
 0x235   : > { %8180 = vmatprep.subr.bf16.mxu0 %v8888_v15  ;;  %v5948_v15 = vld [vmem:[%s9366_s5 + $0x30] sm:$0xee] }
 0x236   : > { %v7477_v18 = vcombine.low %v5948_v15, %v9603_v37 }
 0x237   : > { %8173 = vmatpush3.bf16.msra.mxu1 %v8883_v16  ;;  %5893 = vmatmul.mubr.bf16.vlgmr.msra.gmra.mrb[52].mxu0 %v5627_v29  ;;  %v5952_v16 = vld [vmem:[%s9366_s5 + $0x50] sm:$0x11] }
 0x238   : > { %8202 = vmatprep.subr.bf16.mxu1 %v8889_v19  ;;  %8181 = vmatpush3.bf16.msra.mxu0 %v8890_v24  ;;  %v7482_v38 = vcombine.high %v5952_v16, %v5952_v16  ;;  %v7481_v19 = vcombine.low %v5952_v16, %v5952_v16  ;;  %v8928_v24 = vld [vmem:[#allocation6 + $0xf40] sm:$0xff]   ;;  %v6045_v29 = vrot.slane %v7477_v18, 1  ;;  %v8951_v16 = vld [vmem:[#allocation6 + $0xfa8] sm:$0xff]   ;;  %v8957_v18 = vld [vmem:[#allocation6 + $0xff8] sm:$0xff]  }
 0x239   : > { %8182 = vmatprep.subr.bf16.mxu0 %v8892_v31 }
 0x23a   : > { %5934 = vmatmul.mubr.bf16.vlgmr.msra.gmra.mrb[52].mxu1 %v5651_v59  ;;  %v6049_v33 = vrot.slane %v7482_v38, 1  ;;  %v6046_v31 = vrot.slane %v7481_v19, 1  ;;  %v6055_v59 = vrot.slane %v7484_v25, 1  ;;  %v8953_v38 = vld [vmem:[#allocation6 + $0xff0] sm:$0xff]   ;;  %v8958_v19 = vld [vmem:[#allocation6 + $0xf38] sm:$0xff]  }
 0x23b   : > { %8203 = vmatpush3.bf16.msra.mxu1 %v8891_v32  ;;  %v6054_v32 = vrot.slane %v7480_v21, 1  ;;  %v6345_v21 = vld [vmem:[%s9366_s5 + $0x50] sm:$0x33] }
 0x23c   : > { %8204 = vmatprep.subr.bf16.mxu1 %v8893_v35  ;;  %8183 = vmatpush3.bf16.msra.mxu0 %v8894_v36  ;;  %v6051_v35 = vrot.slane %v7479_v22, 1  ;;  %v6052_v36 = vrot.slane %v7483_v23, 1  ;;  %v8960_v25 = vld [vmem:[%s9366_s5 + $0x34] ss:$16 sps:$4 sm:$0xfe]   ;;  %v7522_v22 = vcombine.high %v6345_v21, %v6345_v21 }
 0x23d   : > { %8184 = vmatprep.subr.bf16.mxu0 %v8896_v39  ;;  %v8930_v39 = vld [vmem:[#allocation6 + $0xf00] sm:$0xff]   ;;  %v6056_v0 = vsel %vm1123_vm1, %v6054_v32, %v6055_v59  ;;  %v6346_v23 = vld [vmem:[%s9366_s5 + $0x58] sm:$0x33] }
 0x23e   : > { %6326 = vmatprep.mubr.bf16.mxu1 %v6056_v0  ;;  %v6464_v32 = vshrl.u32 %v7522_v22, 16  ;;  %v6467_v59 = vshll.u32 %v7522_v22, 16 }
 0x23f   : > { %8205 = vmatpush3.bf16.msra.mxu1 %v8895_v61 }
 0x240   : > { %8206 = vmatprep.subr.bf16.mxu1 %v8897_v40  ;;  %8185 = vmatpush3.bf16.msra.mxu0 %v8898_v27  ;;  %v6047_v40 = vsel %vm1123_vm1, %v6045_v29, %v6046_v31  ;;  %v8931_v27 = vld [vmem:[#allocation6 + $0xf80] sm:$0xff]   ;;  %v8963_v29 = vld [vmem:[%s9366_s5 + $0x3c] ss:$16 sps:$4 sm:$0xfe]   ;;  %v7524_v31 = vcombine.high %v6346_v23, %v6346_v23 }
 0x241   : > { %8186 = vmatprep.subr.bf16.mxu0 %v8900_v42  ;;  %v6053_v42 = vsel %vm1123_vm1, %v6051_v35, %v6052_v36  ;;  %v8966_v35 = vld [vmem:[%s9366_s5 + $0x30] ss:$16 sps:$4 sm:$0xfe]   ;;  %v6493_v0 = vshll.u32 %v8963_v29, 16 }
 0x242   : > { %v7888_v44 = vpop.f32.mrb[28].mxu0 }
 0x243   : > { %v7889_v47 = vpop.f32.mrb[29].mxu0  ;;  %8207 = vmatpush3.bf16.msra.mxu1 %v8899_v43  ;;  %v8932_v43 = vld [vmem:[#allocation6 + $0xf48] sm:$0xff]  }
 0x244   : > { %v7890_v48 = vadd.f32 %v7889_v47, %v7888_v44  ;;  %v7891_v58 = vpop.f32.mrb[30].mxu0  ;;  %v7910_v50 = vpop.f32.mrb[28].mxu1  ;;  %8208 = vmatprep.subr.bf16.mxu1 %v8901_v30  ;;  %8187 = vmatpush3.bf16.msra.mxu0 %v8902_v45  ;;  %v8933_v30 = vld [vmem:[#allocation6 + $0xfc8] sm:$0xff]   ;;  %v8936_v47 = vld [vmem:[#allocation6 + $0xf50] sm:$0xff]  }
 0x245   : > { %v7911_v2 = vpop.f32.mrb[29].mxu1  ;;  %8188 = vmatprep.subr.bf16.mxu0 %v8904_v46  ;;  %v7892_v55 = vpop.f32.mrb[31].mxu0  ;;  %v8934_v44 = vld [vmem:[#allocation6 + $0xf08] sm:$0xff]   ;;  %v8937_v46 = vld [vmem:[#allocation6 + $0xfd0] sm:$0xff]  }
 0x246   : > { %v7912_v52 = vadd.f32 %v7911_v2, %v7910_v50  ;;  %v7913_v53 = vpop.f32.mrb[30].mxu1  ;;  %v7893_v57 = vadd.f32 %v7892_v55, %v7891_v58  ;;  %v8935_v45 = vld [vmem:[#allocation6 + $0xf88] sm:$0xff]   ;;  %v8939_v58 = vld [vmem:[#allocation6 + $0xf90] sm:$0xff]  }
 0x247   : > { %v7914_v60 = vpop.f32.mrb[31].mxu1  ;;  %8209 = vmatpush3.bf16.msra.mxu1 %v8903_v49  ;;  %v8940_v49 = vld [vmem:[#allocation6 + $0xf58] sm:$0xff]  }
 0x248   : > { %v3498_v14 = vadd.f32 %v7912_v52, %v7890_v48  ;;  %v7915_v1 = vadd.f32 %v7914_v60, %v7913_v53  ;;  %8210 = vmatprep.subr.bf16.mxu1 %v8905_v51  ;;  %8189 = vmatpush3.bf16.msra.mxu0 %v8906_v8  ;;  %v8938_v48 = vld [vmem:[#allocation6 + $0xf10] sm:$0xff]   ;;  %v8941_v51 = vld [vmem:[#allocation6 + $0xfd8] sm:$0xff]  }
 0x249   : > { %8190 = vmatprep.subr.bf16.mxu0 %v8908_v54  ;;  %v8942_v8 = vld [vmem:[#allocation6 + $0xf18] sm:$0xff]  }
 0x24a   : > { %v9649_v3 = vadd.f32 %v3498_v14, %v9629_v34  ;;  %v3501_v6 = vadd.f32 %v7915_v1, %v7893_v57  ;;  %v8916_v34 = vld [vmem:[#allocation6 + $0xe78] sm:$0xff]   ;;  %v8945_v57 = vld [vmem:[#allocation6 + $0xfe0] sm:$0xff]  }
 0x24b   : > { %8211 = vmatpush3.bf16.msra.mxu1 %v8907_v56  ;;  %v8943_v54 = vld [vmem:[#allocation6 + $0xf98] sm:$0xff]   ;;  %v8944_v56 = vld [vmem:[#allocation6 + $0xf60] sm:$0xff]  }
 0x24c   : > { %v9652_v11 = vadd.f32 %v3501_v6, %v9632_v41  ;;  %8212 = vmatprep.subr.bf16.mxu1 %v8909_v62  ;;  %8191 = vmatpush3.bf16.msra.mxu0 %v8910_v4  ;;  %v7478_v41 = vcombine.high %v5948_v15, %v9603_v37  ;;  %v8929_v37 = vld [vmem:[#allocation6 + $0xfc0] sm:$0xff]  }
 0x24d   : > { %8192 = vmatprep.subr.bf16.mxu0 %v8912_v7  ;;  %v8946_v1 = vld [vmem:[#allocation6 + $0xf20] sm:$0xff]  }
 0x24e   : > { %v6048_v26 = vrot.slane %v7478_v41, 1  ;;  %v8947_v6 = vld [vmem:[#allocation6 + $0xfa0] sm:$0xff]   ;;  %v8952_v41 = vld [vmem:[#allocation6 + $0xf70] sm:$0xff]  }
 0x24f   : > { %8213 = vmatpush3.bf16.msra.mxu1 %v8911_v9 }
 0x250   : > { %8214 = vmatprep.subr.bf16.mxu1 %v8913_v12  ;;  %8193 = vmatpush3.bf16.msra.mxu0 %v8914_v13  ;;  %v6050_v61 = vsel %vm1123_vm1, %v6048_v26, %v6049_v33  ;;  %v8948_v13 = vld [vmem:[#allocation6 + $0xf68] sm:$0xff]   ;;  %v6456_v26 = vshrl.u32 %v8960_v25, 16  ;;  %v6459_v33 = vshll.u32 %v8960_v25, 16 }
 0x251   : > { %8194 = vmatprep.subr.bf16.mxu0 %v8916_v34  ;;  %6285 = vmatprep.mubr.bf16.mxu0 %v6050_v61 }
 0x252   : > { %v6461_v61 = vrot.slane %v6459_v33, 2 }
 0x253   : > { %8215 = vmatpush3.bf16.msra.mxu1 %v8915_v28 }
 0x254   : > { %8216 = vmatprep.subr.bf16.mxu1 %v8917_v10  ;;  %8195 = vmatpush3.bf16.msra.mxu0 %v8918_v63  ;;  %v8949_v10 = vld [vmem:[#allocation6 + $0xfe8] sm:$0xff]  }
 0x255   : > { %8224 = vmatprep.subr.bf16.mxu0 %v8928_v24  ;;  %v8950_v63 = vld [vmem:[#allocation6 + $0xf28] sm:$0xff]   ;;  %v7521_v24 = vcombine.low %v6345_v21, %v6345_v21 }
 0x257   : > { %8217 = vmatpush3.bf16.msra.mxu1 %v8919_v20  ;;  %6286 = vmatmul.mubr.bf16.vlgmr.msra.gmra.mrb[56].mxu0 %v6047_v40  ;;  %v6447_v36 = vshrl.u32 %v7521_v24, 16  ;;  %v6490_v40 = vshrl.u32 %v8963_v29, 16 }
 0x258   : > { %8246 = vmatprep.subr.bf16.mxu1 %v8929_v37  ;;  %8225 = vmatpush3.bf16.msra.mxu0 %v8930_v39  ;;  %v7523_v37 = vcombine.low %v6346_v23, %v6346_v23  ;;  %v6458_v39 = vrot.slane %v6456_v26, 1 }
 0x259   : > { %8226 = vmatprep.subr.bf16.mxu0 %v8932_v43  ;;  %v6498_v43 = vshrl.u32 %v7524_v31, 16 }
 0x25a   : > { %6327 = vmatmul.mubr.bf16.vlgmr.msra.gmra.mrb[56].mxu1 %v6053_v42  ;;  %v6469_v42 = vrot.slane %v6467_v59, 2 }
 0x25b   : > { %8247 = vmatpush3.bf16.msra.mxu1 %v8931_v27  ;;  %v6466_v27 = vrot.slane %v6464_v32, 1 }
 0x25c   : > { %8248 = vmatprep.subr.bf16.mxu1 %v8933_v30  ;;  %8227 = vmatpush3.bf16.msra.mxu0 %v8934_v44  ;;  %v6501_v30 = vshll.u32 %v7524_v31, 16  ;;  %v6462_v44 = vor.u32 %v6461_v61, %v6458_v39 }
 0x25d   : > { %8228 = vmatprep.subr.bf16.mxu0 %v8936_v47  ;;  %v6495_v47 = vrot.slane %v6493_v0, 2 }
 0x25f   : > { %8249 = vmatpush3.bf16.msra.mxu1 %v8935_v45  ;;  %v6492_v45 = vrot.slane %v6490_v40, 1 }
 0x260   : > { %8250 = vmatprep.subr.bf16.mxu1 %v8937_v46  ;;  %8229 = vmatpush3.bf16.msra.mxu0 %v8938_v48  ;;  %v6439_v46 = vshrl.u32 %v8966_v35, 16  ;;  %v8968_v48 = vld [vmem:[%s9366_s5 + $0x38] ss:$16 sps:$4 sm:$0xfe]  }
 0x261   : > { %8230 = vmatprep.subr.bf16.mxu0 %v8940_v49  ;;  %v6500_v49 = vrot.slane %v6498_v43, 1 }
 0x263   : > { %8251 = vmatpush3.bf16.msra.mxu1 %v8939_v58  ;;  %v6470_v58 = vor.u32 %v6469_v42, %v6466_v27 }
 0x264   : > { %8252 = vmatprep.subr.bf16.mxu1 %v8941_v51  ;;  %8231 = vmatpush3.bf16.msra.mxu0 %v8942_v8  ;;  %v6442_v51 = vshll.u32 %v8966_v35, 16  ;;  %v6441_v8 = vrot.slane %v6439_v46, 1 }
 0x265   : > { %8232 = vmatprep.subr.bf16.mxu0 %v8944_v56 }
 0x266   : > { %v6444_v56 = vrot.slane %v6442_v51, 2 }
 0x267   : > { %8253 = vmatpush3.bf16.msra.mxu1 %v8943_v54  ;;  %v6471_v54 = vsel %vm1517_vm2, %v6462_v44, %v6470_v58 }
 0x268   : > { %8254 = vmatprep.subr.bf16.mxu1 %v8945_v57  ;;  %8233 = vmatpush3.bf16.msra.mxu0 %v8946_v1  ;;  %v6484_v1 = vshll.u32 %v7523_v37, 16 }
 0x269   : > { %v7932_v50 = vpop.f32.mrb[32].mxu0  ;;  %8234 = vmatprep.subr.bf16.mxu0 %v8948_v13  ;;  %6734 = vmatprep.mubr.bf16.mxu0 %v6471_v54 }
 0x26a   : > { %v7933_v2 = vpop.f32.mrb[33].mxu0  ;;  %v7954_v55 = vpop.f32.mrb[32].mxu1 }
 0x26b   : > { %v7934_v52 = vadd.f32 %v7933_v2, %v7932_v50  ;;  %v7935_v53 = vpop.f32.mrb[34].mxu0  ;;  %v7955_v14 = vpop.f32.mrb[33].mxu1  ;;  %8255 = vmatpush3.bf16.msra.mxu1 %v8947_v6  ;;  %v6503_v50 = vrot.slane %v6501_v30, 2  ;;  %v6496_v2 = vor.u32 %v6495_v47, %v6492_v45  ;;  %v6445_v6 = vor.u32 %v6444_v56, %v6441_v8 }
 0x26c   : > { %v7956_v60 = vadd.f32 %v7955_v14, %v7954_v55  ;;  %v7957_v62 = vpop.f32.mrb[34].mxu1  ;;  %v7936_v4 = vpop.f32.mrb[35].mxu0  ;;  %8256 = vmatprep.subr.bf16.mxu1 %v8949_v10  ;;  %8235 = vmatpush3.bf16.msra.mxu0 %v8950_v63  ;;  %v6473_v14 = vshrl.u32 %v8968_v48, 16 }
 0x26d   : > { %v7937_v9 = vadd.f32 %v7936_v4, %v7935_v53  ;;  %v7958_v12 = vpop.f32.mrb[35].mxu1  ;;  %8236 = vmatprep.subr.bf16.mxu0 %v8952_v41  ;;  %v6450_v53 = vshll.u32 %v7521_v24, 16  ;;  %v6504_v55 = vor.u32 %v6503_v50, %v6500_v49 }
 0x26e   : > { %v3867_v7 = vadd.f32 %v7956_v60, %v7934_v52  ;;  %v7959_v34 = vadd.f32 %v7958_v12, %v7957_v62  ;;  %v6449_v52 = vrot.slane %v6447_v36, 1  ;;  %v6476_v60 = vshll.u32 %v8968_v48, 16 }
 0x26f   : > { %8257 = vmatpush3.bf16.msra.mxu1 %v8951_v16  ;;  %v6452_v57 = vrot.slane %v6450_v53, 2  ;;  %v6481_v62 = vshrl.u32 %v7523_v37, 16  ;;  %v6505_v4 = vsel %vm1517_vm2, %v6496_v2, %v6504_v55 }
 0x270   : > { %v9667_v28 = vadd.f32 %v3867_v7, %v9649_v3  ;;  %v3870_v15 = vadd.f32 %v7959_v34, %v7937_v9  ;;  %v8955_v3 = vld [vmem:[#allocation6 + $0xfb0] sm:$0xff]   ;;  %8258 = vmatprep.subr.bf16.mxu1 %v8953_v38  ;;  %8237 = vmatpush3.bf16.msra.mxu0 %v8954_v17  ;;  %v6475_v7 = vrot.slane %v6473_v14, 1  ;;  %v6478_v12 = vrot.slane %v6476_v60, 2 }
 0x271   : > { %8238 = vmatprep.subr.bf16.mxu0 %v8956_v5  ;;  %6775 = vmatprep.mubr.bf16.mxu1 %v6505_v4  ;;  %v6453_v9 = vor.u32 %v6452_v57, %v6449_v52  ;;  %v6483_v13 = vrot.slane %v6481_v62, 1  ;;  %v6486_v34 = vrot.slane %v6484_v1, 2 }
 0x272   : > { %v9670_v20 = vadd.f32 %v3870_v15, %v9652_v11  ;;  %v8959_v11 = vld [vmem:[#allocation6 + $0xfb8] sm:$0xff]   ;;  %v6479_v16 = vor.u32 %v6478_v12, %v6475_v7 }
 0x273   : > { %8259 = vmatpush3.bf16.msra.mxu1 %v8955_v3  ;;  %v6454_v15 = vsel %vm1517_vm2, %v6445_v6, %v6453_v9  ;;  %v6487_v41 = vor.u32 %v6486_v34, %v6483_v13 }
 0x274   : > { %8260 = vmatprep.subr.bf16.mxu1 %v8957_v18  ;;  %8239 = vmatpush3.bf16.msra.mxu0 %v8958_v19 }
 0x275   : > { %v6488_v18 = vsel %vm1517_vm2, %v6479_v16, %v6487_v41 }
 0x277   : > { %8261 = vmatpush3.bf16.msra.mxu1 %v8959_v11  ;;  %6735 = vmatmul.mubr.bf16.vlgmr.msra.gmra.mrb[60].mxu0 %v6454_v15 }
 0x27a   : > { %6776 = vmatmul.mubr.bf16.vlgmr.msra.gmra.mrb[60].mxu1 %v6488_v18 }
 0x289   : > { %v7976_v10 = vpop.f32.mrb[36].mxu0 }
 0x28a   : > { %v7977_v63 = vpop.f32.mrb[37].mxu0 }
 0x28b   : > { %v7978_v38 = vadd.f32 %v7977_v63, %v7976_v10  ;;  %v7979_v17 = vpop.f32.mrb[38].mxu0 }
 0x28c   : > { %v7980_v5 = vpop.f32.mrb[39].mxu0 }
 0x28d   : > { %v7998_v3 = vpop.f32.mrb[36].mxu1  ;;  %v7981_v11 = vadd.f32 %v7980_v5, %v7979_v17 }
 0x28e   : > { %v7999_v19 = vpop.f32.mrb[37].mxu1 }
 0x28f   : > { %v8000_v21 = vadd.f32 %v7999_v19, %v7998_v3  ;;  %v8001_v25 = vpop.f32.mrb[38].mxu1 }
 0x290   : > { %v8002_v22 = vpop.f32.mrb[39].mxu1 }
 0x291   : > { %v4296_v23 = vadd.f32 %v8000_v21, %v7978_v38  ;;  %v8003_v24 = vadd.f32 %v8002_v22, %v8001_v25 }
 0x293   : > { %v4304_v26 = vadd.f32 %v4296_v23, %v9667_v28  ;;  %v4299_v33 = vadd.f32 %v8003_v24, %v7981_v11 }
 0x295   : > { %v4305_v29 = vadd.f32 %v4299_v33, %v9670_v20 }
 0x2a9   : > { %v8020_v31 = vpop.f32.mrb[40].mxu0 }
 0x2aa   : > { %v8021_v32 = vpop.f32.mrb[41].mxu0 }
 0x2ab   : > { %v8022_v35 = vadd.f32 %v8021_v32, %v8020_v31  ;;  %v8023_v36 = vpop.f32.mrb[42].mxu0 }
 0x2ac   : > { %v8024_v39 = vpop.f32.mrb[43].mxu0 }
 0x2ad   : > { %v8042_v59 = vpop.f32.mrb[40].mxu1  ;;  %v8025_v0 = vadd.f32 %v8024_v39, %v8023_v36 }
 0x2ae   : > { %v8043_v37 = vpop.f32.mrb[41].mxu1 }
 0x2af   : > { %v8044_v61 = vadd.f32 %v8043_v37, %v8042_v59  ;;  %v8045_v40 = vpop.f32.mrb[42].mxu1 }
 0x2b0   : > { %v8046_v27 = vpop.f32.mrb[43].mxu1 }
 0x2b1   : > { %v4689_v42 = vadd.f32 %v8044_v61, %v8022_v35  ;;  %v8047_v43 = vadd.f32 %v8046_v27, %v8045_v40 }
 0x2b3   : > { %v4697_v30 = vadd.f32 %v4689_v42, %v4304_v26  ;;  %v4692_v44 = vadd.f32 %v8047_v43, %v8025_v0 }
 0x2b5   : > { %v4698_v45 = vadd.f32 %v4692_v44, %v4305_v29 }
 0x2c9   : > { %v8064_v28 = vpop.f32.mrb[44].mxu0 }
 0x2ca   : > { %v8065_v47 = vpop.f32.mrb[45].mxu0 }
 0x2cb   : > { %v8066_v46 = vadd.f32 %v8065_v47, %v8064_v28  ;;  %v8067_v20 = vpop.f32.mrb[46].mxu0 }
 0x2cc   : > { %v8068_v58 = vpop.f32.mrb[47].mxu0 }
 0x2cd   : > { %v8086_v48 = vpop.f32.mrb[44].mxu1  ;;  %v8069_v50 = vadd.f32 %v8068_v58, %v8067_v20 }
 0x2ce   : > { %v8087_v49 = vpop.f32.mrb[45].mxu1 }
 0x2cf   : > { %v8088_v51 = vadd.f32 %v8087_v49, %v8086_v48  ;;  %v8089_v2 = vpop.f32.mrb[46].mxu1 }
 0x2d0   : > { %v8090_v8 = vpop.f32.mrb[47].mxu1 }
 0x2d1   : > { %v5138_v52 = vadd.f32 %v8088_v51, %v8066_v46  ;;  %v8091_v53 = vadd.f32 %v8090_v8, %v8089_v2 }
 0x2d3   : > { %v5146_v54 = vadd.f32 %v5138_v52, %v4697_v30  ;;  %v5141_v55 = vadd.f32 %v8091_v53, %v8069_v50 }
 0x2d5   : > { %v5147_v56 = vadd.f32 %v5141_v55, %v4698_v45 }
 0x2e9   : > { %v8108_v14 = vpop.f32.mrb[48].mxu0 }
 0x2ea   : > { %v8109_v57 = vpop.f32.mrb[49].mxu0 }
 0x2eb   : > { %v8110_v60 = vadd.f32 %v8109_v57, %v8108_v14  ;;  %v8111_v62 = vpop.f32.mrb[50].mxu0 }
 0x2ec   : > { %v8112_v4 = vpop.f32.mrb[51].mxu0 }
 0x2ed   : > { %v8130_v1 = vpop.f32.mrb[48].mxu1  ;;  %v8113_v7 = vadd.f32 %v8112_v4, %v8111_v62 }
 0x2ee   : > { %v8131_v6 = vpop.f32.mrb[49].mxu1 }
 0x2ef   : > { %v8132_v9 = vadd.f32 %v8131_v6, %v8130_v1  ;;  %v8133_v12 = vpop.f32.mrb[50].mxu1 }
 0x2f0   : > { %v8134_v13 = vpop.f32.mrb[51].mxu1 }
 0x2f1   : > { %v5507_v34 = vadd.f32 %v8132_v9, %v8110_v60  ;;  %v8135_v10 = vadd.f32 %v8134_v13, %v8133_v12 }
 0x2f3   : > { %v5515_v63 = vadd.f32 %v5507_v34, %v5146_v54  ;;  %v5510_v15 = vadd.f32 %v8135_v10, %v8113_v7  ;;  %v7557_v54 = vld [vmem:[#allocation8] ss:$0 sm:$0xff] }
 0x2f5   : > { %v5516_v16 = vadd.f32 %v5510_v15, %v5147_v56 }
 0x30a   : > { %v8152_v41 = vpop.f32.mrb[52].mxu0 }
 0x30b   : > { %v8153_v38 = vpop.f32.mrb[53].mxu0 }
 0x30c   : > { %v8154_v17 = vadd.f32 %v8153_v38, %v8152_v41  ;;  %v8155_v3 = vpop.f32.mrb[54].mxu0 }
 0x30d   : > { %v8174_v5 = vpop.f32.mrb[52].mxu1  ;;  %v8156_v18 = vpop.f32.mrb[55].mxu0 }
 0x30e   : > { %v8175_v19 = vpop.f32.mrb[53].mxu1  ;;  %v8157_v11 = vadd.f32 %v8156_v18, %v8155_v3 }
 0x30f   : > { %v8176_v21 = vadd.f32 %v8175_v19, %v8174_v5  ;;  %v8177_v25 = vpop.f32.mrb[54].mxu1 }
 0x310   : > { %v8178_v22 = vpop.f32.mrb[55].mxu1 }
 0x311   : > { %v5936_v23 = vadd.f32 %v8176_v21, %v8154_v17  ;;  %v8179_v24 = vadd.f32 %v8178_v22, %v8177_v25 }
 0x313   : > { %v5944_v26 = vadd.f32 %v5936_v23, %v5515_v63  ;;  %v5939_v33 = vadd.f32 %v8179_v24, %v8157_v11 }
 0x315   : > { %v5945_v29 = vadd.f32 %v5939_v33, %v5516_v16 }
 0x32a   : > { %v8196_v31 = vpop.f32.mrb[56].mxu0 }
 0x32b   : > { %v8197_v32 = vpop.f32.mrb[57].mxu0 }
 0x32c   : > { %v8198_v35 = vadd.f32 %v8197_v32, %v8196_v31  ;;  %v8199_v36 = vpop.f32.mrb[58].mxu0 }
 0x32d   : > { %v8218_v59 = vpop.f32.mrb[56].mxu1  ;;  %v8200_v39 = vpop.f32.mrb[59].mxu0 }
 0x32e   : > { %v8219_v37 = vpop.f32.mrb[57].mxu1  ;;  %v8201_v0 = vadd.f32 %v8200_v39, %v8199_v36 }
 0x32f   : > { %v8220_v61 = vadd.f32 %v8219_v37, %v8218_v59  ;;  %v8221_v40 = vpop.f32.mrb[58].mxu1 }
 0x330   : > { %v8222_v27 = vpop.f32.mrb[59].mxu1 }
 0x331   : > { %v6329_v42 = vadd.f32 %v8220_v61, %v8198_v35  ;;  %v8223_v43 = vadd.f32 %v8222_v27, %v8221_v40 }
 0x333   : > { %v6337_v30 = vadd.f32 %v6329_v42, %v5944_v26  ;;  %v6332_v44 = vadd.f32 %v8223_v43, %v8201_v0 }
 0x335   : > { %v6338_v45 = vadd.f32 %v6332_v44, %v5945_v29 }
 0x34a   : > { %v8240_v28 = vpop.f32.mrb[60].mxu0 }
 0x34b   : > { %v8241_v47 = vpop.f32.mrb[61].mxu0 }
 0x34c   : > { %v8242_v20 = vadd.f32 %v8241_v47, %v8240_v28  ;;  %v8243_v48 = vpop.f32.mrb[62].mxu0 }
 0x34d   : > { %v8262_v46 = vpop.f32.mrb[60].mxu1  ;;  %v8244_v49 = vpop.f32.mrb[63].mxu0 }
 0x34e   : > { %v8263_v58 = vpop.f32.mrb[61].mxu1  ;;  %v8245_v2 = vadd.f32 %v8244_v49, %v8243_v48 }
 0x34f   : > { %v8264_v50 = vadd.f32 %v8263_v58, %v8262_v46  ;;  %v8265_v51 = vpop.f32.mrb[62].mxu1 }
 0x350   : > { %v8266_v8 = vpop.f32.mrb[63].mxu1 }
 0x351   : > { %v6778_v52 = vadd.f32 %v8264_v50, %v8242_v20  ;;  %v8267_v53 = vadd.f32 %v8266_v8, %v8265_v51 }
 0x353   : > { %v6786_v55 = vadd.f32 %v6778_v52, %v6337_v30  ;;  %v6781_v56 = vadd.f32 %v8267_v53, %v8245_v2 }
 0x355   : > { %v6799_v14 = vadd.f32 %v7557_v54, %v6786_v55  ;;  %v6787_v57 = vadd.f32 %v6781_v56, %v6338_v45 }
 0x357   : > { %6801 = vst [vmem:[%s229_s22] sm:$0xff] %v6799_v14  ;;  %v6800_v60 = vadd.f32 %v7557_v54, %v6787_v57 }
 0x359   : > { %6802 = vst [vmem:[%s229_s22 + $0x8] sm:$0xff] %v6800_v60 }
 0x35a   : > { %9070 = shalt.err (!%p9067_p2)
}
 0x35b   : > { %s9071_s10 = scalar_lea.hbm %s9689_s9, 256  ;;  %s9075_s29 = scalar_lea.hbm %s9743_s3, 512 }
 0x35c   : > { %p9072_p0 = scmp.ne.s32.totalorder %s9689_s9, %s9071_s10  ;;  %p9076_p6 = scmp.lt.u32.totalorder %s9689_s9, %s9743_s3 }
 0x35d   : > { %p9077_p7 = scmp.lt.u32.totalorder %s9075_s29, %s9071_s10  ;;  %p9079_p8 = scmp.lt.u32.totalorder %s9071_s10, %s9689_s9 }
 0x35e   : > { %p9073_p4 = pnand %p9072_p0, %p9758_p12 }
 0x35f   : > { %p9078_p11 = por %p9077_p7, %p9076_p6 }
 0x360   : > { %p9074_p13 = pneg %p9073_p4 }
 0x361   : > { %p9080_p1 = por %p9079_p8, %p9078_p11 }
 0x363   : > { %p9081_p10 = pnand %p9080_p1, %p9074_p13 }
 0x365   : > { %9084 = shalt.err (!%p9081_p10)
}
 0x366   : > { %s9153_s22 = smov 128   ;;  %s9154_s30 = smov 8  }
 0x367   : > { %8281 = dma.vmem_to_hbm [thread:$0]  (%p9758_p12), %s9691_s24, 256, %s9689_s9, %s6804_s28, %s9153_s22, %s9153_s22, %s9154_s30  }
 0x368 PF: > { %s6834_s7 = sand.u32 1, %s9123_s12   ;;  %p9759_p3 = scmp.ne.s32.totalorder %s9751_s23, 0 }
 0x369   : > { %p9760_p5 = scmp.ge.s32.totalorder %s9143_s17, 2  ;;  %s6835_s26 = scalar_lea.sflag [#allocation5], %s6834_s7 }
 0x36b   : > { %p8295_p9 = pnand %p9760_p5, %p9759_p3 }
 0x36d   : > { %9118 = dma.done.wait (!%p8295_p9), %s6835_s26, 256  }
 0x36e   : > { %9120 = vsyncadd (!%p8295_p9), %s6835_s26, 4294967040  ;;  %s20_s17 = sadd.s32 1, %s9143_s17   ;;  %s9761_s12 = smov %s9127_s13 }
 0x36f   : > { %p17_p2 = scmp.ge.s32.totalorder %s20_s17, 4   ;;  %s9762_s13 = smov %s9131_s14 }
 0x370   : > { %s9763_s14 = smov %s9321_s4  ;;  %s9764_s15 = smov %s9139_s16 }
 0x371   : > { %s9765_s16 = smov %s9767_s18  ;;  %19 = sbr.rel (!%p17_p2) target bundleno = 7 (0x7), region = 100 }
 0x378   :  { %6840 = vsyncpa [#allocation4], 1 }
 0x379   :  { %6842 = vsyncpa [#allocation4 + $0x1], 1 }
 0x37a   :  { %6843 = vsyncpa [#allocation7], 1 }
 0x37b   :  { %6844 = vsyncpa [#allocation5], 1 }
 0x37c   :  { %6846 = vsyncpa [#allocation5 + $0x1], 1 }

</bundles_post_ra>
